<compile_context>
chip_gen: v5e
topology: v5e:2x2
jax: 0.10.0
libtpu: 0.0.40
codegen_flags: <defaults>
</compile_context>

<pallas_src>
import functools

import jax
import jax.numpy as jnp
from jax.experimental import pallas as pl
from jax.experimental.pallas import tpu as pltpu

BN_EPS = 1e-5
_LANE = 128
_MXU_M = 128          # batch-tile granularity (valid on v5e/v6e/v7x MXUs)


def _round_up(x, m):
    return (x + m - 1) // m * m


def _pad2d(a, rows, cols):
    r, c = a.shape
    if r == rows and c == cols:
        return a
    return jnp.pad(a, ((0, rows - r), (0, cols - c)))


def _vmem_capacity_bytes():
    """Per-core VMEM capacity; conservative v7x fallback if query fails."""
    try:
        cap = getattr(pltpu.get_tpu_info(), "vmem_capacity_bytes", None)
        if cap:
            return int(cap)
    except Exception:
        pass
    return 64 << 20


def _vmem_footprint(bm, inp, hid, outp):
    """Estimated peak VMEM: streamed blocks double-buffered, weights once."""
    bf16, f32 = 2, 4
    streamed = 2 * bm * inp * f32 + 2 * bm * outp * f32            # x / out blocks
    resident = inp * hid * bf16 + hid * outp * bf16 + (2 * hid + outp) * f32
    scratch = 4 * hid * f32                                        # sum/ssq/scale/shift
    temps = 2 * bm * hid * f32 + bm * hid * bf16                   # in-kernel h temporaries
    return streamed + resident + scratch + temps


def _pick_block_rows(n, inp, hid, outp, block_rows, budget):
    bm_cap = max(_MXU_M, _round_up(n, _MXU_M))
    bm = min(max(_MXU_M, _round_up(block_rows, _MXU_M)), bm_cap)
    while bm > _MXU_M and _vmem_footprint(bm, inp, hid, outp) > budget:
        bm -= _MXU_M
    return bm


def _fused_mlp_head_kernel(inv_n, x_ref, w1_ref, gamma_ref, beta_ref, w2_ref,
                           b2_ref, o_ref, sum_ref, ssq_ref, scale_ref, shift_ref):
    p = pl.program_id(0)   # 0: batch-statistics phase, 1: output phase
    i = pl.program_id(1)   # batch tile

    # Needed by both phases; recomputing in phase 1 avoids the HBM round trip
    # of the (N, inner) f32 intermediate.
    h = jnp.dot(x_ref[...].astype(jnp.bfloat16), w1_ref[...],
                preferred_element_type=jnp.float32)

    @pl.when(p == 0)
    def _stats():
        @pl.when(i == 0)
        def _init():
            sum_ref[...] = jnp.zeros_like(sum_ref)
            ssq_ref[...] = jnp.zeros_like(ssq_ref)

        # Zero-padded batch rows contribute exactly 0 (pre-BN bias is dropped).
        sum_ref[...] += jnp.sum(h, axis=0, keepdims=True)
        ssq_ref[...] += jnp.sum(h * h, axis=0, keepdims=True)

    @pl.when((p == 1) & (i == 0))
    def _finalize_stats():
        mean = sum_ref[...] * inv_n
        # TODO(synk): E[h^2]-E[h]^2 in f32 can cancel for |mean| >> std or very
        # large N; a centered (Chan/Welford) tile combine would be more robust.
        var = jnp.maximum(ssq_ref[...] * inv_n - mean * mean, 0.0)
        scale = gamma_ref[...] * jax.lax.rsqrt(var + BN_EPS)
        scale_ref[...] = scale
        shift_ref[...] = beta_ref[...] - mean * scale

    @pl.when(p == 1)
    def _output():
        a = jnp.maximum(h * scale_ref[...] + shift_ref[...], 0.0)
        out = jnp.dot(a.astype(jnp.bfloat16), w2_ref[...],
                      preferred_element_type=jnp.float32)
        o_ref[...] = (out + b2_ref[...]).astype(o_ref.dtype)


def mlp_head(x, w1, b1, gamma, beta, w2, b2, *, block_rows=1024,
             out_dtype=jnp.float32):
    """x: (N, in_dim) f32. Weights stored (in, out). Returns (N, out_dim)."""
    n, in_dim = x.shape
    inner_dim = w1.shape[1]
    out_dim = w2.shape[1]

    # b1 is mathematically cancelled by the training-mode BatchNorm that
    # immediately follows Linear1, so it is never loaded by the kernel.
    # (If eval-mode / running-stats BN is ever needed, b1 must be restored.)
    del b1

    inp = _round_up(in_dim, _LANE)
    hid = _round_up(inner_dim, _LANE)
    outp = _round_up(out_dim, _LANE)

    capacity = _vmem_capacity_bytes()
    budget = int(capacity * 0.70)            # per-generation: ~45 MiB v7x, ~90 MiB v5e/v6e
    vmem_limit = int(min(capacity * 0.85, capacity - (2 << 20)))

    bm = _pick_block_rows(n, inp, hid, outp, block_rows, budget)
    np_ = _round_up(n, bm)
    nb = np_ // bm

    # Pre-pad (+ fused cast to bf16) only when padding is actually required;
    # otherwise feed f32 directly and cast to bf16 in-kernel.
    if (np_, inp) == (n, in_dim):
        x_in = x
    else:
        x_in = _pad2d(x, np_, inp).astype(jnp.bfloat16)

    w1_p = _pad2d(w1, inp, hid).astype(jnp.bfloat16)
    w2_p = _pad2d(w2, hid, outp).astype(jnp.bfloat16)
    b2_p = _pad2d(jnp.reshape(b2, (1, -1)), 1, outp).astype(jnp.float32)
    # gamma/beta MUST be zero-padded so padded inner lanes get scale=shift=0.
    gamma_p = _pad2d(jnp.reshape(gamma, (1, -1)), 1, hid).astype(jnp.float32)
    beta_p = _pad2d(jnp.reshape(beta, (1, -1)), 1, hid).astype(jnp.float32)

    kernel = functools.partial(_fused_mlp_head_kernel, 1.0 / float(n))

    out_p = pl.pallas_call(
        kernel,
        grid_spec=pltpu.PrefetchScalarGridSpec(
            num_scalar_prefetch=0,
            grid=(2, nb),                                    # (phase, batch tile)
            in_specs=[
                pl.BlockSpec((bm, inp), lambda p, i: (i, 0)),      # x (re-read per phase)
                pl.BlockSpec((inp, hid), lambda p, i: (0, 0)),     # w1 (resident)
                pl.BlockSpec((1, hid), lambda p, i: (0, 0)),       # gamma
                pl.BlockSpec((1, hid), lambda p, i: (0, 0)),       # beta
                pl.BlockSpec((hid, outp), lambda p, i: (0, 0)),    # w2 (resident)
                pl.BlockSpec((1, outp), lambda p, i: (0, 0)),      # b2
            ],
            # Block index stays 0 through phase 0 (never written there), then
            # tracks the batch tile in phase 1 -> no garbage writebacks.
            out_specs=pl.BlockSpec((bm, outp), lambda p, i: (i * p, 0)),
            scratch_shapes=[
                pltpu.VMEM((1, hid), jnp.float32),   # sum
                pltpu.VMEM((1, hid), jnp.float32),   # sum of squares
                pltpu.VMEM((1, hid), jnp.float32),   # fused BN scale
                pltpu.VMEM((1, hid), jnp.float32),   # fused BN shift
            ],
        ),
        out_shape=jax.ShapeDtypeStruct((np_, outp), out_dtype),
        compiler_params=pltpu.CompilerParams(
            # Stats accumulate across batch tiles and across the phase boundary,
            # so both axes are sequential.
            # TODO(synk): a 2-kernel variant with per-tile partial stats could
            # use both v7x TensorCores; omitted to keep the single-launch fusion.
            dimension_semantics=("arbitrary", "arbitrary"),
            vmem_limit_bytes=vmem_limit,
        ),
    )(x_in, w1_p, gamma_p, beta_p, w2_p, b2_p)

    return out_p[:n, :out_dim]


def reference(x, w1, b1, gamma, beta, w2, b2):
    """Pure-JAX reference mirroring the kernel's bf16 MXU feeds."""
    xb = x.astype(jnp.bfloat16)
    w1b = w1.astype(jnp.bfloat16)
    w2b = w2.astype(jnp.bfloat16)
    h = jnp.dot(xb, w1b, preferred_element_type=jnp.float32) + b1
    mean = jnp.mean(h, axis=0, keepdims=True)
    var = jnp.mean((h - mean) ** 2, axis=0, keepdims=True)
    h = (h - mean) * jax.lax.rsqrt(var + BN_EPS) * gamma + beta
    h = jnp.maximum(h, 0.0)
    return jnp.dot(h.astype(jnp.bfloat16), w2b,
                   preferred_element_type=jnp.float32) + b2


if __name__ == "__main__":
    # Small shapes consistent with the module (lane-aligned features, batch not
    # tile-aligned so the zero-row padding path is exercised).
    N, IN_DIM, INNER_DIM, OUT_DIM = 300, 256, 512, 256

    key = jax.random.PRNGKey(0)
    kx, kw1, kb1, kw2, kb2 = jax.random.split(key, 5)

    x = jax.random.normal(kx, (N, IN_DIM), dtype=jnp.float32)

    bound1 = 1.0 / (IN_DIM ** 0.5)
    w1 = jax.random.uniform(kw1, (IN_DIM, INNER_DIM), jnp.float32, -bound1, bound1)
    b1 = jax.random.uniform(kb1, (1, INNER_DIM), jnp.float32, -bound1, bound1)
    gamma = jnp.ones((1, INNER_DIM), jnp.float32)   # BatchNorm1d default weight
    beta = jnp.zeros((1, INNER_DIM), jnp.float32)   # BatchNorm1d default bias

    bound2 = 1.0 / (INNER_DIM ** 0.5)
    w2 = jax.random.uniform(kw2, (INNER_DIM, OUT_DIM), jnp.float32, -bound2, bound2)
    b2 = jax.random.uniform(kb2, (1, OUT_DIM), jnp.float32, -bound2, bound2)

    out = mlp_head(x, w1, b1, gamma, beta, w2, b2)
    out = jax.block_until_ready(out)

    ref = reference(x, w1, b1, gamma, beta, w2, b2)
    assert out.shape == (N, OUT_DIM)
    max_err = float(jnp.max(jnp.abs(out - ref)))
    assert jnp.allclose(out, ref, atol=2e-2, rtol=2e-2), (
        f"mismatch vs reference, max abs err {max_err}")

    print("KERNEL_OK")
</pallas_src>

<mosaic_0001>
module attributes {stable_mosaic.version = 11 : i64} {
  func.func @_fused_mlp_head_kernel(%arg0: i32, %arg1: i32, %arg2: memref<384x256xbf16, #tpu.memory_space<vmem>>, %arg3: memref<256x512xbf16, #tpu.memory_space<vmem>>, %arg4: memref<1x512xf32, #tpu.memory_space<vmem>>, %arg5: memref<1x512xf32, #tpu.memory_space<vmem>>, %arg6: memref<512x256xbf16, #tpu.memory_space<vmem>>, %arg7: memref<1x256xf32, #tpu.memory_space<vmem>>, %arg8: memref<384x256xf32, #tpu.memory_space<vmem>>, %arg9: memref<1x512xf32, #tpu.memory_space<vmem>>, %arg10: memref<1x512xf32, #tpu.memory_space<vmem>>, %arg11: memref<1x512xf32, #tpu.memory_space<vmem>>, %arg12: memref<1x512xf32, #tpu.memory_space<vmem>>) attributes {dimension_semantics = [#tpu.dimension_semantics<arbitrary>, #tpu.dimension_semantics<arbitrary>], iteration_bounds = array<i64: 2, 1>, scalar_prefetch = 0 : i64, scratch_operands = 4 : i64, tpu.core_type = #tpu.core_type<tc>, window_params = [{transform_indices = @transform_0, window_bounds = array<i64: 384, 256>}, {pipeline_mode = #tpu.pipeline_mode<synchronous>, transform_indices = @transform_1, window_bounds = array<i64: 256, 512>}, {pipeline_mode = #tpu.pipeline_mode<synchronous>, transform_indices = @transform_2, window_bounds = array<i64: 1, 512>}, {pipeline_mode = #tpu.pipeline_mode<synchronous>, transform_indices = @transform_3, window_bounds = array<i64: 1, 512>}, {pipeline_mode = #tpu.pipeline_mode<synchronous>, transform_indices = @transform_4, window_bounds = array<i64: 512, 256>}, {pipeline_mode = #tpu.pipeline_mode<synchronous>, transform_indices = @transform_5, window_bounds = array<i64: 1, 256>}, {transform_indices = @transform_6, window_bounds = array<i64: 384, 256>}]} {
    %c0 = arith.constant 0 : index
    %c0_0 = arith.constant 0 : index
    %0 = vector.load %arg2[%c0, %c0_0] : memref<384x256xbf16, #tpu.memory_space<vmem>>, vector<384x256xbf16>
    %c0_1 = arith.constant 0 : index
    %c0_2 = arith.constant 0 : index
    %1 = vector.load %arg3[%c0_1, %c0_2] : memref<256x512xbf16, #tpu.memory_space<vmem>>, vector<256x512xbf16>
    %cst = arith.constant dense<0.000000e+00> : vector<384x512xf32>
    %2 = tpu.matmul %0, %1, %cst {dimension_numbers = #tpu.dot_dimension_numbers<[1], [0], [0], [1], [0, 0, 1, 1], [], []>} : vector<384x256xbf16>, vector<256x512xbf16>, vector<384x512xf32> -> vector<384x512xf32>
    %c0_i32 = arith.constant 0 : i32
    %3 = arith.cmpi eq, %arg0, %c0_i32 : i32
    %4 = arith.extui %3 : i1 to i32
    %c0_i32_3 = arith.constant 0 : i32
    %5 = arith.cmpi ne, %4, %c0_i32_3 : i32
    scf.if %5 {
      %c0_i32_8 = arith.constant 0 : i32
      %14 = arith.cmpi eq, %arg1, %c0_i32_8 : i32
      %15 = arith.extui %14 : i1 to i32
      %c0_i32_9 = arith.constant 0 : i32
      %16 = arith.cmpi ne, %15, %c0_i32_9 : i32
      scf.if %16 {
        %cst_20 = arith.constant 0.000000e+00 : f32
        %28 = vector.broadcast %cst_20 : f32 to vector<1x512xf32>
        %c0_21 = arith.constant 0 : index
        %c0_22 = arith.constant 0 : index
        %29 = vector.load %arg9[%c0_21, %c0_22] : memref<1x512xf32, #tpu.memory_space<vmem>>, vector<1x512xf32>
        tpu.vector_store %arg9[%c0_21, %c0_22], %28 {strides = array<i32>} : memref<1x512xf32, #tpu.memory_space<vmem>>, vector<1x512xf32>,
        %cst_23 = arith.constant 0.000000e+00 : f32
        %30 = vector.broadcast %cst_23 : f32 to vector<1x512xf32>
        %c0_24 = arith.constant 0 : index
        %c0_25 = arith.constant 0 : index
        %31 = vector.load %arg10[%c0_24, %c0_25] : memref<1x512xf32, #tpu.memory_space<vmem>>, vector<1x512xf32>
        tpu.vector_store %arg10[%c0_24, %c0_25], %30 {strides = array<i32>} : memref<1x512xf32, #tpu.memory_space<vmem>>, vector<1x512xf32>,
      } else {
      }
      %c0_10 = arith.constant 0 : index
      %c0_11 = arith.constant 0 : index
      %17 = vector.load %arg9[%c0_10, %c0_11] : memref<1x512xf32, #tpu.memory_space<vmem>>, vector<1x512xf32>
      %cst_12 = arith.constant dense<0.000000e+00> : vector<512xf32>
      %18 = vector.multi_reduction <add>, %2, %cst_12 [0] : vector<384x512xf32> to vector<512xf32>
      %19 = vector.shape_cast %18 : vector<512xf32> to vector<1x512xf32>
      %20 = arith.addf %17, %19 : vector<1x512xf32>
      %c0_13 = arith.constant 0 : index
      %c0_14 = arith.constant 0 : index
      %21 = vector.load %arg9[%c0_13, %c0_14] : memref<1x512xf32, #tpu.memory_space<vmem>>, vector<1x512xf32>
      tpu.vector_store %arg9[%c0_13, %c0_14], %20 {strides = array<i32>} : memref<1x512xf32, #tpu.memory_space<vmem>>, vector<1x512xf32>,
      %c0_15 = arith.constant 0 : index
      %c0_16 = arith.constant 0 : index
      %22 = vector.load %arg10[%c0_15, %c0_16] : memref<1x512xf32, #tpu.memory_space<vmem>>, vector<1x512xf32>
      %23 = arith.mulf %2, %2 : vector<384x512xf32>
      %cst_17 = arith.constant dense<0.000000e+00> : vector<512xf32>
      %24 = vector.multi_reduction <add>, %23, %cst_17 [0] : vector<384x512xf32> to vector<512xf32>
      %25 = vector.shape_cast %24 : vector<512xf32> to vector<1x512xf32>
      %26 = arith.addf %22, %25 : vector<1x512xf32>
      %c0_18 = arith.constant 0 : index
      %c0_19 = arith.constant 0 : index
      %27 = vector.load %arg10[%c0_18, %c0_19] : memref<1x512xf32, #tpu.memory_space<vmem>>, vector<1x512xf32>
      tpu.vector_store %arg10[%c0_18, %c0_19], %26 {strides = array<i32>} : memref<1x512xf32, #tpu.memory_space<vmem>>, vector<1x512xf32>,
    } else {
    }
    %c1_i32 = arith.constant 1 : i32
    %6 = arith.cmpi eq, %arg0, %c1_i32 : i32
    %c0_i32_4 = arith.constant 0 : i32
    %7 = arith.cmpi eq, %arg1, %c0_i32_4 : i32
    %8 = arith.andi %6, %7 : i1
    %9 = arith.extui %8 : i1 to i32
    %c0_i32_5 = arith.constant 0 : i32
    %10 = arith.cmpi ne, %9, %c0_i32_5 : i32
    scf.if %10 {
      %c0_8 = arith.constant 0 : index
      %c0_9 = arith.constant 0 : index
      %14 = vector.load %arg9[%c0_8, %c0_9] : memref<1x512xf32, #tpu.memory_space<vmem>>, vector<1x512xf32>
      %cst_10 = arith.constant 0.00333333341 : f32
      %15 = vector.broadcast %cst_10 : f32 to vector<1x512xf32>
      %16 = arith.mulf %14, %15 : vector<1x512xf32>
      %c0_11 = arith.constant 0 : index
      %c0_12 = arith.constant 0 : index
      %17 = vector.load %arg10[%c0_11, %c0_12] : memref<1x512xf32, #tpu.memory_space<vmem>>, vector<1x512xf32>
      %cst_13 = arith.constant 0.00333333341 : f32
      %18 = vector.broadcast %cst_13 : f32 to vector<1x512xf32>
      %19 = arith.mulf %17, %18 : vector<1x512xf32>
      %20 = arith.mulf %16, %16 : vector<1x512xf32>
      %21 = arith.subf %19, %20 : vector<1x512xf32>
      %cst_14 = arith.constant 0.000000e+00 : f32
      %22 = vector.broadcast %cst_14 : f32 to vector<1x512xf32>
      %23 = arith.maximumf %21, %22 : vector<1x512xf32>
      %c0_15 = arith.constant 0 : index
      %c0_16 = arith.constant 0 : index
      %24 = vector.load %arg4[%c0_15, %c0_16] : memref<1x512xf32, #tpu.memory_space<vmem>>, vector<1x512xf32>
      %cst_17 = arith.constant 9.99999974E-6 : f32
      %25 = vector.broadcast %cst_17 : f32 to vector<1x512xf32>
      %26 = arith.addf %23, %25 : vector<1x512xf32>
      %27 = math.rsqrt %26 : vector<1x512xf32>
      %28 = arith.mulf %24, %27 : vector<1x512xf32>
      %c0_18 = arith.constant 0 : index
      %c0_19 = arith.constant 0 : index
      %29 = vector.load %arg11[%c0_18, %c0_19] : memref<1x512xf32, #tpu.memory_space<vmem>>, vector<1x512xf32>
      tpu.vector_store %arg11[%c0_18, %c0_19], %28 {strides = array<i32>} : memref<1x512xf32, #tpu.memory_space<vmem>>, vector<1x512xf32>,
      %c0_20 = arith.constant 0 : index
      %c0_21 = arith.constant 0 : index
      %30 = vector.load %arg5[%c0_20, %c0_21] : memref<1x512xf32, #tpu.memory_space<vmem>>, vector<1x512xf32>
      %31 = arith.mulf %16, %28 : vector<1x512xf32>
      %32 = arith.subf %30, %31 : vector<1x512xf32>
      %c0_22 = arith.constant 0 : index
      %c0_23 = arith.constant 0 : index
      %33 = vector.load %arg12[%c0_22, %c0_23] : memref<1x512xf32, #tpu.memory_space<vmem>>, vector<1x512xf32>
      tpu.vector_store %arg12[%c0_22, %c0_23], %32 {strides = array<i32>} : memref<1x512xf32, #tpu.memory_space<vmem>>, vector<1x512xf32>,
    } else {
    }
    %c1_i32_6 = arith.constant 1 : i32
    %11 = arith.cmpi eq, %arg0, %c1_i32_6 : i32
    %12 = arith.extui %11 : i1 to i32
    %c0_i32_7 = arith.constant 0 : i32
    %13 = arith.cmpi ne, %12, %c0_i32_7 : i32
    scf.if %13 {
      %c0_8 = arith.constant 0 : index
      %c0_9 = arith.constant 0 : index
      %14 = vector.load %arg11[%c0_8, %c0_9] : memref<1x512xf32, #tpu.memory_space<vmem>>, vector<1x512xf32>
      %15 = vector.broadcast %14 : vector<1x512xf32> to vector<384x512xf32>
      %16 = arith.mulf %2, %15 : vector<384x512xf32>
      %c0_10 = arith.constant 0 : index
      %c0_11 = arith.constant 0 : index
      %17 = vector.load %arg12[%c0_10, %c0_11] : memref<1x512xf32, #tpu.memory_space<vmem>>, vector<1x512xf32>
      %18 = vector.broadcast %17 : vector<1x512xf32> to vector<384x512xf32>
      %19 = arith.addf %16, %18 : vector<384x512xf32>
      %cst_12 = arith.constant 0.000000e+00 : f32
      %20 = vector.broadcast %cst_12 : f32 to vector<384x512xf32>
      %21 = arith.maximumf %19, %20 : vector<384x512xf32>
      %22 = arith.truncf %21 : vector<384x512xf32> to vector<384x512xbf16>
      %c0_13 = arith.constant 0 : index
      %c0_14 = arith.constant 0 : index
      %23 = vector.load %arg6[%c0_13, %c0_14] : memref<512x256xbf16, #tpu.memory_space<vmem>>, vector<512x256xbf16>
      %cst_15 = arith.constant dense<0.000000e+00> : vector<384x256xf32>
      %24 = tpu.matmul %22, %23, %cst_15 {dimension_numbers = #tpu.dot_dimension_numbers<[1], [0], [0], [1], [0, 0, 1, 1], [], []>} : vector<384x512xbf16>, vector<512x256xbf16>, vector<384x256xf32> -> vector<384x256xf32>
      %c0_16 = arith.constant 0 : index
      %c0_17 = arith.constant 0 : index
      %25 = vector.load %arg7[%c0_16, %c0_17] : memref<1x256xf32, #tpu.memory_space<vmem>>, vector<1x256xf32>
      %26 = vector.broadcast %25 : vector<1x256xf32> to vector<384x256xf32>
      %27 = arith.addf %24, %26 : vector<384x256xf32>
      %c0_18 = arith.constant 0 : index
      %c0_19 = arith.constant 0 : index
      %28 = vector.load %arg8[%c0_18, %c0_19] : memref<384x256xf32, #tpu.memory_space<vmem>>, vector<384x256xf32>
      tpu.vector_store %arg8[%c0_18, %c0_19], %27 {strides = array<i32>} : memref<384x256xf32, #tpu.memory_space<vmem>>, vector<384x256xf32>,
    } else {
    }
    return
  }
  func.func @transform_0(%arg0: i32, %arg1: i32) -> (i32, i32) {
    %c0_i32 = arith.constant 0 : i32
    %c0_i32_0 = arith.constant 0 : i32
    return %arg1, %c0_i32 : i32, i32
  }
  func.func @transform_1(%arg0: i32, %arg1: i32) -> (i32, i32) {
    %c0_i32 = arith.constant 0 : i32
    %c0_i32_0 = arith.constant 0 : i32
    %c0_i32_1 = arith.constant 0 : i32
    return %c0_i32, %c0_i32_0 : i32, i32
  }
  func.func @transform_2(%arg0: i32, %arg1: i32) -> (i32, i32) {
    %c0_i32 = arith.constant 0 : i32
    %c0_i32_0 = arith.constant 0 : i32
    %c0_i32_1 = arith.constant 0 : i32
    return %c0_i32, %c0_i32_0 : i32, i32
  }
  func.func @transform_3(%arg0: i32, %arg1: i32) -> (i32, i32) {
    %c0_i32 = arith.constant 0 : i32
    %c0_i32_0 = arith.constant 0 : i32
    %c0_i32_1 = arith.constant 0 : i32
    return %c0_i32, %c0_i32_0 : i32, i32
  }
  func.func @transform_4(%arg0: i32, %arg1: i32) -> (i32, i32) {
    %c0_i32 = arith.constant 0 : i32
    %c0_i32_0 = arith.constant 0 : i32
    %c0_i32_1 = arith.constant 0 : i32
    return %c0_i32, %c0_i32_0 : i32, i32
  }
  func.func @transform_5(%arg0: i32, %arg1: i32) -> (i32, i32) {
    %c0_i32 = arith.constant 0 : i32
    %c0_i32_0 = arith.constant 0 : i32
    %c0_i32_1 = arith.constant 0 : i32
    return %c0_i32, %c0_i32_0 : i32, i32
  }
  func.func @transform_6(%arg0: i32, %arg1: i32) -> (i32, i32) {
    %0 = arith.muli %arg1, %arg0 : i32
    %c0_i32 = arith.constant 0 : i32
    %c0_i32_0 = arith.constant 0 : i32
    return %0, %c0_i32 : i32, i32
  }
}

</mosaic_0001>

<bundles_post_ra>
// kernel: tpu_custom_call.1
= control target key start
LH: loop header
LB: loop body
LE: loop exit
PB: predicated region body
PF: predicated region fallthrough
CT: control target
= control target key end

     0   :  { %11 = vsyncpa [#allocation7], 0  ;;  %s8930_s0 = inlined_call_operand.hbm [shape: bf16[384,256], index: 0, kind: input, shape index: {}]   ;;  %s8931_s1 = inlined_call_operand.hbm [shape: bf16[256,512], index: 1, kind: input, shape index: {}]   ;;  %s8932_s2 = inlined_call_operand.hbm [shape: f32[1,512], index: 2, kind: input, shape index: {}]   ;;  %s8933_s3 = inlined_call_operand.hbm [shape: f32[1,512], index: 3, kind: input, shape index: {}]   ;;  %s8934_s4 = inlined_call_operand.hbm [shape: bf16[512,256], index: 4, kind: input, shape index: {}]   ;;  %s8935_s5 = inlined_call_operand.vmem [shape: f32[1,256], index: 5, kind: input, shape index: {}]   ;;  %s8936_s6 = inlined_call_operand.hbm [shape: f32[384,256], index: 6, kind: output, shape index: {}]  }
   0x1   :  { %12 = vsyncpa [#allocation10], 0 }
   0x2   :  { %13 = vsyncpa [#allocation13], 0 }
   0x3   :  { %14 = vsyncpa [#allocation8], 0 }
   0x4   :  { %16 = vsyncpa [#allocation8 + $0x1], 0  ;;  %s6345_s21 = smov 0   ;;  %s6347_s22 = smov 0  }
   0x5   :  { %s6349_s23 = smov 0  }
   0x6 LB: > { %s227_s26 = sshll.u32 %s8931_s1, 4  ;;  %s5080_s27 = sadd.s32 4294967295, %s6295_s23   ;;  %s6295_s23 = sphi %s6349_s23, %s22_s23   ;;  %s6291_s22 = sphi %s6347_s22, %s10007_s22   ;;  %s6287_s21 = sphi %s6345_s21, %s10006_s21   ;;  %s228_s26 = int_to_ptr.hbm [resolvable:$true] %s227_s26 }
   0x7   : > { %s5081_s28 = sadd.s32 4294967294, %s6295_s23   ;;  %p5082_p0 = scmp.ge.s32.totalorder %s6295_s23, 1 }
   0x8   : > { %p198_p1 = scmp.lt.s32.totalorder %s6295_s23, 3  ;;  %p6369_p2 = scmp.eq.s32.totalorder %s5080_s27, 0 }
   0x9   : > { %s6297_s7 = smov [#allocation9]   ;;  %s254_s11 = sshll.u32 %s8933_s3, 4  ;;  %s255_s11 = int_to_ptr.hbm [resolvable:$true] %s254_s11 }
   0xa   : > { %p6373_p3 = pnand %p5082_p0, %p198_p1  ;;  %s229_s8 = sshll.u32 %s6297_s7, 4  ;;  %s230_s8 = int_to_ptr.vmem [resolvable:$true] %s229_s8 }
   0xb   : > { %s6298_s13 = smov [#allocation12]   ;;  %s6299_s15 = smov 256  }
   0xc   : > { %p6006_p4 = pneg %p6373_p3  ;;  %s256_s14 = sshll.u32 %s6298_s13, 4  ;;  %s257_s14 = int_to_ptr.vmem [resolvable:$true] %s256_s14 }
   0xd   : > { %s6300_s16 = smov 16   ;;  %s34_s17 = sadd.s32 1, %s6291_s22 }
   0xe   : > { %p6384_p5 = pnand %p6369_p2, %p6006_p4  ;;  %s213_s20 = sshll.u32 %s8930_s0, 4  ;;  %s214_s20 = int_to_ptr.hbm [resolvable:$true] %s213_s20 }
   0xf   : > { %p36_p6 = scmp.ge.s32.totalorder %s34_s17, 2  ;;  %s6301_s24 = smov [#allocation6]  }
  0x10   : > { %6012 = dma.hbm_to_vmem [thread:$0]  (!%p6384_p5), %s228_s26, 8192, %s230_s8, [#allocation10], %s6299_s15, %s6299_s15, %s6300_s16  }
  0x11   : > { %6018 = dma.hbm_to_vmem [thread:$0]  (!%p6384_p5), %s255_s11, 64, %s257_s14, [#allocation13]  }
  0x12   : > { %s10009_s17 = smov (%p36_p6, %s34_s17), 0  ;;  %s215_s25 = sshll.u32 %s6301_s24, 4  ;;  %s216_s25 = int_to_ptr.vmem [resolvable:$true] %s215_s25 }
  0x13   : > { %s242_s26 = sshll.u32 %s8932_s2, 4  ;;  %s6302_s8 = smov 128   ;;  %s243_s26 = int_to_ptr.hbm [resolvable:$true] %s242_s26 }
  0x14   : > { %s6303_s10 = smov 8   ;;  %s6304_s11 = smov [#allocation11]  }
  0x15   : > { %6009 = dma.hbm_to_vmem [thread:$0]  (!%p6384_p5), %s214_s20, 6144, %s216_s25, [#allocation7], %s6302_s8, %s6302_s8, %s6303_s10  }
  0x16   : > { %s244_s13 = sshll.u32 %s6304_s11, 4  ;;  %s265_s16 = sshll.u32 %s8934_s4, 4  ;;  %s245_s13 = int_to_ptr.vmem [resolvable:$true] %s244_s13  ;;  %s266_s16 = int_to_ptr.hbm [resolvable:$true] %s265_s16 }
  0x17   : > { %6015 = dma.hbm_to_vmem [thread:$0]  (!%p6384_p5), %s243_s26, 64, %s245_s13, [#allocation10]  }
  0x18   : > { %s6305_s18 = smov [#allocation14]   ;;  %286 = sbr.rel (%p6373_p3) target bundleno = 2163 (0x873), region = 44 }
  0x19   : > { %s267_s19 = sshll.u32 %s6305_s18, 4  ;;  %s268_s19 = int_to_ptr.vmem [resolvable:$true] %s267_s19 }
  0x1a   : > { %6021 = dma.hbm_to_vmem [thread:$0]  (!%p6384_p5), %s266_s16, 8192, %s268_s19, [#allocation13], %s6302_s8, %s6302_s8, %s6303_s10  }
  0x1d   : > { %6270 = dma.done.wait (%p6369_p2), [#allocation7], 6144  }
  0x1e   : > { %6272 = vsyncadd (%p6369_p2), [#allocation7], 4294961152 }
  0x1f   : > { %6274 = dma.done.wait (%p6369_p2), [#allocation10], 8256  }
  0x20   : > { %6276 = vsyncadd (%p6369_p2), [#allocation10], 4294959040 }
  0x21   : > { %6278 = dma.done.wait (%p6369_p2), [#allocation13], 8256  }
  0x22   : > { %6280 = vsyncadd (%p6369_p2), [#allocation13], 4294959040  ;;  %v5400_v0 = vld [vmem:[#allocation9 + $0xe0] sm:$0xf]  ;;  %v5883_v1 = vld [vmem:[#allocation9 + $0xec] sm:$0xf0] }
  0x23   : > { %v5528_v2 = vld [vmem:[#allocation9 + $0x1e0] sm:$0xf]  ;;  %v5401_v3 = vor.u32 %v5883_v1, %v5400_v0  ;;  %v5915_v4 = vld [vmem:[#allocation9 + $0x1ec] sm:$0xf0]  ;;  %v5881_v5 = vld [vmem:[#allocation9 + $0xe4] sm:$0xf] }
  0x24   : > { %v5402_v6 = vld [vmem:[#allocation9 + $0xf0] sm:$0xf0]  ;;  %v5529_v7 = vor.u32 %v5915_v4, %v5528_v2  ;;  %v5913_v9 = vld [vmem:[#allocation9 + $0x1e4] sm:$0xf]  ;;  %v5384_v11 = vld [vmem:[#allocation9 + $0xc0] sm:$0xf] }
  0x25   : > { %v5405_v8 = vor.u32 %v5881_v5, %v5402_v6  ;;  %v5530_v10 = vld [vmem:[#allocation9 + $0x1f0] sm:$0xf0]  ;;  %1007 = vmatpush.bf16.msra.mxu0 %v5401_v3  ;;  %v5879_v13 = vld [vmem:[#allocation9 + $0xcc] sm:$0xf0]  ;;  %v5512_v14 = vld [vmem:[#allocation9 + $0x1c0] sm:$0xf] }
  0x26   : > { %v5533_v12 = vor.u32 %v5913_v9, %v5530_v10  ;;  %v5911_v15 = vld [vmem:[#allocation9 + $0x1cc] sm:$0xf0]  ;;  %1136 = vmatpush.bf16.msra.mxu1 %v5529_v7  ;;  %v5385_v16 = vor.u32 %v5879_v13, %v5384_v11  ;;  %v5877_v18 = vld [vmem:[#allocation9 + $0xc4] sm:$0xf]  ;;  %v5386_v19 = vld [vmem:[#allocation9 + $0xd0] sm:$0xf0] }
  0x27   : > { %1265 = vmatpush.bf16.msra.mxu2 %v5405_v8  ;;  %v5513_v17 = vor.u32 %v5911_v15, %v5512_v14  ;;  %v5909_v20 = vld [vmem:[#allocation9 + $0x1c4] sm:$0xf]  ;;  %v5389_v21 = vor.u32 %v5877_v18, %v5386_v19  ;;  %v5514_v22 = vld [vmem:[#allocation9 + $0x1d0] sm:$0xf0]  ;;  %v5368_v23 = vld [vmem:[#allocation9 + $0xa0] sm:$0xf] }
  0x28   : > { %1394 = vmatpush.bf16.msra.mxu3 %v5533_v12  ;;  %v5875_v24 = vld [vmem:[#allocation9 + $0xac] sm:$0xf0]  ;;  %v5517_v25 = vor.u32 %v5909_v20, %v5514_v22  ;;  %v5496_v26 = vld [vmem:[#allocation9 + $0x1a0] sm:$0xf]  ;;  %v5873_v28 = vld [vmem:[#allocation9 + $0xa4] sm:$0xf] }
  0x29   : > { %v5907_v27 = vld [vmem:[#allocation9 + $0x1ac] sm:$0xf0]  ;;  %1008 = vmatpush.bf16.msra.mxu0 %v5385_v16  ;;  %v5369_v29 = vor.u32 %v5875_v24, %v5368_v23  ;;  %v5370_v30 = vld [vmem:[#allocation9 + $0xb0] sm:$0xf0]  ;;  %v5905_v31 = vld [vmem:[#allocation9 + $0x1a4] sm:$0xf] }
  0x2a   : > { %v5498_v32 = vld [vmem:[#allocation9 + $0x1b0] sm:$0xf0]  ;;  %1137 = vmatpush.bf16.msra.mxu1 %v5513_v17  ;;  %v5497_v33 = vor.u32 %v5907_v27, %v5496_v26  ;;  %v5373_v34 = vor.u32 %v5873_v28, %v5370_v30  ;;  %v5352_v35 = vld [vmem:[#allocation9 + $0x80] sm:$0xf]  ;;  %v5871_v36 = vld [vmem:[#allocation9 + $0x8c] sm:$0xf0] }
  0x2b   : > { %1266 = vmatpush.bf16.msra.mxu2 %v5389_v21  ;;  %v5480_v37 = vld [vmem:[#allocation9 + $0x180] sm:$0xf]  ;;  %v5501_v38 = vor.u32 %v5905_v31, %v5498_v32  ;;  %v5903_v39 = vld [vmem:[#allocation9 + $0x18c] sm:$0xf0]  ;;  %v5869_v40 = vld [vmem:[#allocation9 + $0x84] sm:$0xf]  ;;  %v5353_v44 = vor.u32 %v5871_v36, %v5352_v35 }
  0x2c   : > { %1395 = vmatpush.bf16.msra.mxu3 %v5517_v25  ;;  %v5354_v41 = vld [vmem:[#allocation9 + $0x90] sm:$0xf0]  ;;  %v5901_v42 = vld [vmem:[#allocation9 + $0x184] sm:$0xf]  ;;  %v5481_v45 = vor.u32 %v5903_v39, %v5480_v37  ;;  %v5336_v47 = vld [vmem:[#allocation9 + $0x60] sm:$0xf] }
  0x2d   : > { %v5482_v43 = vld [vmem:[#allocation9 + $0x190] sm:$0xf0]  ;;  %1009 = vmatpush.bf16.msra.mxu0 %v5369_v29  ;;  %v5357_v46 = vor.u32 %v5869_v40, %v5354_v41  ;;  %v5867_v48 = vld [vmem:[#allocation9 + $0x6c] sm:$0xf0]  ;;  %v5464_v49 = vld [vmem:[#allocation9 + $0x160] sm:$0xf] }
  0x2e   : > { %1138 = vmatpush.bf16.msra.mxu1 %v5497_v33  ;;  %v5485_v50 = vor.u32 %v5901_v42, %v5482_v43  ;;  %v5899_v51 = vld [vmem:[#allocation9 + $0x16c] sm:$0xf0]  ;;  %v5865_v52 = vld [vmem:[#allocation9 + $0x64] sm:$0xf]  ;;  %v5338_v53 = vld [vmem:[#allocation9 + $0x70] sm:$0xf0]  ;;  %v5337_v56 = vor.u32 %v5867_v48, %v5336_v47 }
  0x2f   : > { %1267 = vmatpush.bf16.msra.mxu2 %v5373_v34  ;;  %v5897_v54 = vld [vmem:[#allocation9 + $0x164] sm:$0xf]  ;;  %v5466_v55 = vld [vmem:[#allocation9 + $0x170] sm:$0xf0]  ;;  %v5465_v57 = vor.u32 %v5899_v51, %v5464_v49  ;;  %v5341_v58 = vor.u32 %v5865_v52, %v5338_v53  ;;  %v5320_v59 = vld [vmem:[#allocation9 + $0x40] sm:$0xf] }
  0x30   : > { %1396 = vmatpush.bf16.msra.mxu3 %v5501_v38  ;;  %v5863_v60 = vld [vmem:[#allocation9 + $0x4c] sm:$0xf0]  ;;  %v5448_v61 = vld [vmem:[#allocation9 + $0x140] sm:$0xf]  ;;  %v5469_v62 = vor.u32 %v5897_v54, %v5466_v55  ;;  %v5861_v0 = vld [vmem:[#allocation9 + $0x44] sm:$0xf] }
  0x31   : > { %1010 = vmatpush.bf16.msra.mxu0 %v5353_v44  ;;  %v5895_v63 = vld [vmem:[#allocation9 + $0x14c] sm:$0xf0]  ;;  %v5322_v1 = vld [vmem:[#allocation9 + $0x50] sm:$0xf0]  ;;  %v5893_v2 = vld [vmem:[#allocation9 + $0x144] sm:$0xf]  ;;  %v5321_v4 = vor.u32 %v5863_v60, %v5320_v59 }
  0x32   : > { %1139 = vmatpush.bf16.msra.mxu1 %v5481_v45  ;;  %v5450_v3 = vld [vmem:[#allocation9 + $0x150] sm:$0xf0]  ;;  %v5449_v5 = vor.u32 %v5895_v63, %v5448_v61  ;;  %v5325_v6 = vor.u32 %v5861_v0, %v5322_v1  ;;  %v5304_v7 = vld [vmem:[#allocation9 + $0x20] sm:$0xf]  ;;  %v5859_v8 = vld [vmem:[#allocation9 + $0x2c] sm:$0xf0] }
  0x33   : > { %1268 = vmatpush.bf16.msra.mxu2 %v5357_v46  ;;  %v5432_v9 = vld [vmem:[#allocation9 + $0x120] sm:$0xf]  ;;  %v5453_v10 = vor.u32 %v5893_v2, %v5450_v3  ;;  %v5891_v11 = vld [vmem:[#allocation9 + $0x12c] sm:$0xf0]  ;;  %v5857_v12 = vld [vmem:[#allocation9 + $0x24] sm:$0xf]  ;;  %v5305_v16 = vor.u32 %v5859_v8, %v5304_v7 }
  0x34   : > { %1397 = vmatpush.bf16.msra.mxu3 %v5485_v50  ;;  %v5306_v13 = vld [vmem:[#allocation9 + $0x30] sm:$0xf0]  ;;  %v5889_v14 = vld [vmem:[#allocation9 + $0x124] sm:$0xf]  ;;  %v5288_v17 = vld [vmem:[#allocation9] sm:$0xf]  ;;  %v5433_v19 = vor.u32 %v5891_v11, %v5432_v9 }
  0x35   : > { %1011 = vmatpush.bf16.msra.mxu0 %v5337_v56  ;;  %v5434_v15 = vld [vmem:[#allocation9 + $0x130] sm:$0xf0]  ;;  %v5855_v18 = vld [vmem:[#allocation9 + $0xc] sm:$0xf0]  ;;  %v5309_v20 = vor.u32 %v5857_v12, %v5306_v13  ;;  %v5416_v21 = vld [vmem:[#allocation9 + $0x100] sm:$0xf] }
  0x36   : > { %1140 = vmatpush.bf16.msra.mxu1 %v5465_v57  ;;  %v5887_v22 = vld [vmem:[#allocation9 + $0x10c] sm:$0xf0]  ;;  %v5853_v23 = vld [vmem:[#allocation9 + $0x4] sm:$0xf]  ;;  %v5437_v24 = vor.u32 %v5889_v14, %v5434_v15  ;;  %v5290_v25 = vld [vmem:[#allocation9 + $0x10] sm:$0xf0]  ;;  %v5289_v31 = vor.u32 %v5855_v18, %v5288_v17 }
  0x37   : > { %1269 = vmatpush.bf16.msra.mxu2 %v5341_v58  ;;  %v5885_v26 = vld [vmem:[#allocation9 + $0x104] sm:$0xf]  ;;  %v5418_v27 = vld [vmem:[#allocation9 + $0x110] sm:$0xf0]  ;;  %v5096_v28 = vld [vmem:[#allocation6] sm:$0xf]  ;;  %v5417_v35 = vor.u32 %v5887_v22, %v5416_v21  ;;  %v5293_v36 = vor.u32 %v5853_v23, %v5290_v25 }
  0x38   : > { %1398 = vmatpush.bf16.msra.mxu3 %v5469_v62  ;;  %v5882_v29 = vld [vmem:[#allocation9 + $0xec] sm:$0xf]  ;;  %v5410_v30 = vld [vmem:[#allocation9 + $0xf8] sm:$0xf0]  ;;  %v5806_v32 = vld [vmem:[#allocation6 + $0x4] sm:$0xf0]  ;;  %v5421_v39 = vor.u32 %v5885_v26, %v5418_v27 }
  0x39   : > { %1012 = vmatpush.bf16.msra.mxu0 %v5321_v4  ;;  %v5914_v33 = vld [vmem:[#allocation9 + $0x1ec] sm:$0xf]  ;;  %v5538_v34 = vld [vmem:[#allocation9 + $0x1f8] sm:$0xf0]  ;;  %v5805_v37 = vld [vmem:[#allocation6 + $0x4] sm:$0xf]  ;;  %v5413_v40 = vor.u32 %v5882_v29, %v5410_v30  ;;  %v6424_v43 = vor.u32 %v5806_v32, %v5096_v28 }
  0x3a   : > { %1141 = vmatpush.bf16.msra.mxu1 %v5449_v5  ;;  %v5098_v38 = vld [vmem:[#allocation6 + $0x8] sm:$0xf0]  ;;  %v5408_v41 = vld [vmem:[#allocation9 + $0xe8] sm:$0xf]  ;;  %v5884_v42 = vld [vmem:[#allocation9 + $0xf4] sm:$0xf0]  ;;  %v5541_v44 = vor.u32 %v5914_v33, %v5538_v34 }
  0x3b   : > { %1270 = vmatpush.bf16.msra.mxu2 %v5325_v6  ;;  %v5536_v45 = vld [vmem:[#allocation9 + $0x1e8] sm:$0xf]  ;;  %v5916_v46 = vld [vmem:[#allocation9 + $0x1f4] sm:$0xf0]  ;;  %v6426_v47 = vor.u32 %v5805_v37, %v5098_v38  ;;  %v5409_v48 = vor.u32 %v5884_v42, %v5408_v41  ;;  %v5104_v50 = vld [vmem:[#allocation6 + $0x10] sm:$0xf] }
  0x3c   : > { %1399 = vmatpush.bf16.msra.mxu3 %v5453_v10  ;;  %v5537_v49 = vor.u32 %v5916_v46, %v5536_v45  ;;  %v5808_v51 = vld [vmem:[#allocation6 + $0x14] sm:$0xf0]  ;;  %v5807_v52 = vld [vmem:[#allocation6 + $0x14] sm:$0xf]  ;;  %v5106_v53 = vld [vmem:[#allocation6 + $0x18] sm:$0xf0] }
  0x3d   : > { %1013 = vmatpush.bf16.msra.mxu0 %v5305_v16  ;;  %v6432_v54 = vor.u32 %v5808_v51, %v5104_v50  ;;  %v6434_v55 = vor.u32 %v5807_v52, %v5106_v53  ;;  %v5878_v56 = vld [vmem:[#allocation9 + $0xcc] sm:$0xf]  ;;  %v5394_v57 = vld [vmem:[#allocation9 + $0xd8] sm:$0xf0]  ;;  %v5392_v61 = vld [vmem:[#allocation9 + $0xc8] sm:$0xf] }
  0x3e   : > { %1142 = vmatpush.bf16.msra.mxu1 %v5433_v19  ;;  %v5910_v58 = vld [vmem:[#allocation9 + $0x1cc] sm:$0xf]  ;;  %v5397_v59 = vor.u32 %v5878_v56, %v5394_v57  ;;  %v5522_v60 = vld [vmem:[#allocation9 + $0x1d8] sm:$0xf0]  ;;  %v5880_v62 = vld [vmem:[#allocation9 + $0xd4] sm:$0xf0] }
  0x3f   : > { %1271 = vmatpush.bf16.msra.mxu2 %v5309_v20  ;;  %v5525_v63 = vor.u32 %v5910_v58, %v5522_v60  ;;  %v5393_v0 = vor.u32 %v5880_v62, %v5392_v61  ;;  %v5520_v1 = vld [vmem:[#allocation9 + $0x1c8] sm:$0xf]  ;;  %v5912_v2 = vld [vmem:[#allocation9 + $0x1d4] sm:$0xf0]  ;;  %v5112_v4 = vld [vmem:[#allocation6 + $0x20] sm:$0xf] }
  0x40   : > { %1400 = vmatpush.bf16.msra.mxu3 %v5437_v24  ;;  %v5521_v3 = vor.u32 %v5912_v2, %v5520_v1  ;;  %v5810_v5 = vld [vmem:[#allocation6 + $0x24] sm:$0xf0]  ;;  %v5809_v6 = vld [vmem:[#allocation6 + $0x24] sm:$0xf]  ;;  %v5114_v7 = vld [vmem:[#allocation6 + $0x28] sm:$0xf0] }
  0x41   : > { %1014 = vmatpush.bf16.msra.mxu0 %v5289_v31  ;;  %v6440_v8 = vor.u32 %v5810_v5, %v5112_v4  ;;  %v6442_v9 = vor.u32 %v5809_v6, %v5114_v7  ;;  %v5120_v10 = vld [vmem:[#allocation6 + $0x30] sm:$0xf]  ;;  %v5812_v11 = vld [vmem:[#allocation6 + $0x34] sm:$0xf0]  ;;  %v5811_v12 = vld [vmem:[#allocation6 + $0x34] sm:$0xf] }
  0x42   : > { %1143 = vmatpush.bf16.msra.mxu1 %v5417_v35  ;;  %v5122_v13 = vld [vmem:[#allocation6 + $0x38] sm:$0xf0]  ;;  %v6448_v14 = vor.u32 %v5812_v11, %v5120_v10  ;;  %v5128_v16 = vld [vmem:[#allocation6 + $0x40] sm:$0xf]  ;;  %v5814_v17 = vld [vmem:[#allocation6 + $0x44] sm:$0xf0] }
  0x43   : > { %1272 = vmatpush.bf16.msra.mxu2 %v5293_v36  ;;  %v6450_v15 = vor.u32 %v5811_v12, %v5122_v13  ;;  %v5813_v18 = vld [vmem:[#allocation6 + $0x44] sm:$0xf]  ;;  %v5130_v19 = vld [vmem:[#allocation6 + $0x48] sm:$0xf0]  ;;  %v6456_v20 = vor.u32 %v5814_v17, %v5128_v16  ;;  %v5378_v23 = vld [vmem:[#allocation9 + $0xb8] sm:$0xf0] }
  0x44   : > { %1401 = vmatpush.bf16.msra.mxu3 %v5421_v39  ;;  %1015 = vmatmul.bf16.vlgmr.msra.gmra.mxu0 %v6424_v43  ;;  %v6458_v21 = vor.u32 %v5813_v18, %v5130_v19  ;;  %v5874_v22 = vld [vmem:[#allocation9 + $0xac] sm:$0xf]  ;;  %v5506_v26 = vld [vmem:[#allocation9 + $0x1b8] sm:$0xf0]  ;;  %v5376_v27 = vld [vmem:[#allocation9 + $0xa8] sm:$0xf] }
  0x45   : > { %1144 = vmatmul.bf16.vlgmr.msra.gmra.mxu1 %v6426_v47  ;;  %1523 = vmatpush.bf16.msrb.mxu0 %v5409_v48  ;;  %v5906_v24 = vld [vmem:[#allocation9 + $0x1ac] sm:$0xf]  ;;  %v5381_v25 = vor.u32 %v5874_v22, %v5378_v23  ;;  %v5876_v28 = vld [vmem:[#allocation9 + $0xb4] sm:$0xf0]  ;;  %v5504_v31 = vld [vmem:[#allocation9 + $0x1a8] sm:$0xf] }
  0x46   : > { %1273 = vmatmul.bf16.vlgmr.msra.gmra.mxu2 %v6424_v43  ;;  %1652 = vmatpush.bf16.msrb.mxu1 %v5537_v49  ;;  %v5509_v29 = vor.u32 %v5906_v24, %v5506_v26  ;;  %v5377_v30 = vor.u32 %v5876_v28, %v5376_v27  ;;  %v5908_v32 = vld [vmem:[#allocation9 + $0x1b4] sm:$0xf0]  ;;  %v5136_v34 = vld [vmem:[#allocation6 + $0x50] sm:$0xf]  ;;  %v5815_v36 = vld [vmem:[#allocation6 + $0x54] sm:$0xf] }
  0x47   : > { %1781 = vmatpush.bf16.msrb.mxu2 %v5413_v40  ;;  %1402 = vmatmul.bf16.vlgmr.msra.gmra.mxu3 %v6426_v47  ;;  %v5505_v33 = vor.u32 %v5908_v32, %v5504_v31  ;;  %v5816_v35 = vld [vmem:[#allocation6 + $0x54] sm:$0xf0]  ;;  %v5138_v37 = vld [vmem:[#allocation6 + $0x58] sm:$0xf0]  ;;  %v5144_v40 = vld [vmem:[#allocation6 + $0x60] sm:$0xf] }
  0x48   : > { %1910 = vmatpush.bf16.msrb.mxu3 %v5541_v44  ;;  %v6464_v38 = vor.u32 %v5816_v35, %v5136_v34  ;;  %v6466_v39 = vor.u32 %v5815_v36, %v5138_v37  ;;  %v5818_v41 = vld [vmem:[#allocation6 + $0x64] sm:$0xf0]  ;;  %v5817_v42 = vld [vmem:[#allocation6 + $0x64] sm:$0xf]  ;;  %v5146_v44 = vld [vmem:[#allocation6 + $0x68] sm:$0xf0] }
  0x49   : > { %1524 = vmatpush.bf16.msrb.mxu0 %v5393_v0  ;;  %v6472_v45 = vor.u32 %v5818_v41, %v5144_v40  ;;  %v6474_v46 = vor.u32 %v5817_v42, %v5146_v44  ;;  %v5152_v48 = vld [vmem:[#allocation6 + $0x70] sm:$0xf]  ;;  %v5820_v49 = vld [vmem:[#allocation6 + $0x74] sm:$0xf0]  ;;  %v5819_v50 = vld [vmem:[#allocation6 + $0x74] sm:$0xf] }
  0x4a   : > { %1653 = vmatpush.bf16.msrb.mxu1 %v5521_v3  ;;  %v5154_v51 = vld [vmem:[#allocation6 + $0x78] sm:$0xf0]  ;;  %v6480_v52 = vor.u32 %v5820_v49, %v5152_v48  ;;  %v5870_v56 = vld [vmem:[#allocation9 + $0x8c] sm:$0xf]  ;;  %v5360_v62 = vld [vmem:[#allocation9 + $0x88] sm:$0xf] }
  0x4b   : > { %1782 = vmatpush.bf16.msrb.mxu2 %v5397_v59  ;;  %v6482_v53 = vor.u32 %v5819_v50, %v5154_v51  ;;  %v5362_v57 = vld [vmem:[#allocation9 + $0x98] sm:$0xf0]  ;;  %v5902_v58 = vld [vmem:[#allocation9 + $0x18c] sm:$0xf]  ;;  %v5488_v0 = vld [vmem:[#allocation9 + $0x188] sm:$0xf] }
  0x4c   : > { %1911 = vmatpush.bf16.msrb.mxu3 %v5525_v63  ;;  %v5365_v59 = vor.u32 %v5870_v56, %v5362_v57  ;;  %v5490_v60 = vld [vmem:[#allocation9 + $0x198] sm:$0xf0]  ;;  %v5872_v63 = vld [vmem:[#allocation9 + $0x94] sm:$0xf0]  ;;  %v5160_v3 = vld [vmem:[#allocation6 + $0x80] sm:$0xf] }
  0x4d   : > { %1525 = vmatpush.bf16.msrb.mxu0 %v5377_v30  ;;  %v5493_v61 = vor.u32 %v5902_v58, %v5490_v60  ;;  %v5361_v1 = vor.u32 %v5872_v63, %v5360_v62  ;;  %v5904_v2 = vld [vmem:[#allocation9 + $0x194] sm:$0xf0]  ;;  %v5822_v4 = vld [vmem:[#allocation6 + $0x84] sm:$0xf0]  ;;  %v5821_v6 = vld [vmem:[#allocation6 + $0x84] sm:$0xf] }
  0x4e   : > { %1654 = vmatpush.bf16.msrb.mxu1 %v5505_v33  ;;  %v5489_v5 = vor.u32 %v5904_v2, %v5488_v0  ;;  %v5162_v7 = vld [vmem:[#allocation6 + $0x88] sm:$0xf0]  ;;  %v6488_v10 = vor.u32 %v5822_v4, %v5160_v3  ;;  %v5824_v26 = vld [vmem:[#allocation6 + $0x94] sm:$0xf0]  ;;  %v5823_v27 = vld [vmem:[#allocation6 + $0x94] sm:$0xf] }
  0x4f   : > { %1783 = vmatpush.bf16.msrb.mxu2 %v5381_v25  ;;  %v6490_v12 = vor.u32 %v5821_v6, %v5162_v7  ;;  %v5168_v25 = vld [vmem:[#allocation6 + $0x90] sm:$0xf]  ;;  %v5170_v28 = vld [vmem:[#allocation6 + $0x98] sm:$0xf0]  ;;  %v5176_v49 = vld [vmem:[#allocation6 + $0xa0] sm:$0xf] }
  0x50   : > { %1912 = vmatpush.bf16.msrb.mxu3 %v5509_v29  ;;  %v6502_v30 = vor.u32 %v5824_v26, %v5168_v25  ;;  %v6504_v33 = vor.u32 %v5823_v27, %v5170_v28  ;;  %v5826_v50 = vld [vmem:[#allocation6 + $0xa4] sm:$0xf0]  ;;  %v5825_v51 = vld [vmem:[#allocation6 + $0xa4] sm:$0xf]  ;;  %v5178_v56 = vld [vmem:[#allocation6 + $0xa8] sm:$0xf0] }
  0x51   : > { %1526 = vmatpush.bf16.msrb.mxu0 %v5361_v1  ;;  %v6518_v58 = vor.u32 %v5826_v50, %v5176_v49  ;;  %v5866_v1 = vld [vmem:[#allocation9 + $0x6c] sm:$0xf]  ;;  %v5346_v2 = vld [vmem:[#allocation9 + $0x78] sm:$0xf0]  ;;  %v5868_v25 = vld [vmem:[#allocation9 + $0x74] sm:$0xf0] }
  0x52   : > { %1655 = vmatpush.bf16.msrb.mxu1 %v5489_v5  ;;  %v5898_v3 = vld [vmem:[#allocation9 + $0x16c] sm:$0xf]  ;;  %v5349_v4 = vor.u32 %v5866_v1, %v5346_v2  ;;  %v5474_v5 = vld [vmem:[#allocation9 + $0x178] sm:$0xf0]  ;;  %v5472_v26 = vld [vmem:[#allocation9 + $0x168] sm:$0xf] }
  0x53   : > { %1784 = vmatpush.bf16.msrb.mxu2 %v5365_v59  ;;  %v5477_v7 = vor.u32 %v5898_v3, %v5474_v5  ;;  %v5900_v28 = vld [vmem:[#allocation9 + $0x174] sm:$0xf0]  ;;  %v5830_v5 = vld [vmem:[#allocation6 + $0xc4] sm:$0xf0]  ;;  %p5542_p7 = scmp.ne.s32.totalorder %s6287_s21, 0 }
  0x54   : > { %1020 = vmatmul.bf16.gmra.mxu0 %v6432_v54  ;;  %1913 = vmatpush.bf16.msrb.mxu3 %v5493_v61  ;;  %v6520_v61 = vor.u32 %v5825_v51, %v5178_v56 }
  0x55   : > { %1149 = vmatmul.bf16.gmra.mxu1 %v6434_v55 }
  0x56   : > { %1278 = vmatmul.bf16.gmra.mxu2 %v6432_v54 }
  0x57   : > { %1407 = vmatmul.bf16.gmra.mxu3 %v6434_v55  ;;  %1785 = vmatpush.bf16.msrb.mxu2 %v5349_v4  ;;  %v5192_v4 = vld [vmem:[#allocation6 + $0xc0] sm:$0xf] }
  0x58   : > { %1914 = vmatpush.bf16.msrb.mxu3 %v5477_v7  ;;  %v5194_v7 = vld [vmem:[#allocation6 + $0xc8] sm:$0xf0] }
  0x64   : > { %1025 = vmatmul.bf16.gmra.mxu0 %v6440_v8 }
  0x65   : > { %1154 = vmatmul.bf16.gmra.mxu1 %v6442_v9 }
  0x66   : > { %1283 = vmatmul.bf16.gmra.mxu2 %v6440_v8 }
  0x67   : > { %1412 = vmatmul.bf16.gmra.mxu3 %v6442_v9 }
  0x74   : > { %1030 = vmatmul.bf16.gmra.mxu0 %v6448_v14 }
  0x75   : > { %1159 = vmatmul.bf16.gmra.mxu1 %v6450_v15 }
  0x76   : > { %1288 = vmatmul.bf16.gmra.mxu2 %v6448_v14 }
  0x77   : > { %1417 = vmatmul.bf16.gmra.mxu3 %v6450_v15 }
  0x84   : > { %1035 = vmatmul.bf16.gmra.mxu0 %v6456_v20 }
  0x85   : > { %1164 = vmatmul.bf16.gmra.mxu1 %v6458_v21 }
  0x86   : > { %1293 = vmatmul.bf16.gmra.mxu2 %v6456_v20 }
  0x87   : > { %1422 = vmatmul.bf16.gmra.mxu3 %v6458_v21 }
  0x94   : > { %1040 = vmatmul.bf16.gmra.mxu0 %v6464_v38 }
  0x95   : > { %1169 = vmatmul.bf16.gmra.mxu1 %v6466_v39 }
  0x96   : > { %1298 = vmatmul.bf16.gmra.mxu2 %v6464_v38 }
  0x97   : > { %1427 = vmatmul.bf16.gmra.mxu3 %v6466_v39 }
  0xa4   : > { %1045 = vmatmul.bf16.gmra.mxu0 %v6472_v45 }
  0xa5   : > { %1174 = vmatmul.bf16.gmra.mxu1 %v6474_v46 }
  0xa6   : > { %1303 = vmatmul.bf16.gmra.mxu2 %v6472_v45 }
  0xa7   : > { %1432 = vmatmul.bf16.gmra.mxu3 %v6474_v46 }
  0xb4   : > { %1050 = vmatmul.bf16.gmra.mxu0 %v6480_v52 }
  0xb5   : > { %1179 = vmatmul.bf16.gmra.mxu1 %v6482_v53 }
  0xb6   : > { %1308 = vmatmul.bf16.gmra.mxu2 %v6480_v52 }
  0xb7   : > { %1437 = vmatmul.bf16.gmra.mxu3 %v6482_v53 }
  0xc1   : > { %v1016_v11 = vpop.f32.mrf.mxu0 }
  0xc2   : > { %v1145_v13 = vpop.f32.mrf.mxu1 }
  0xc3   : > { %v6492_v16 = vadd.f32 %v1145_v13, %v1016_v11 }
  0xc4   : > { %1055 = vmatmul.bf16.gmra.mxu0 %v6488_v10 }
  0xc5   : > { %9191 = vst [vmem:[#allocation20_spill] sm:$0xff] %v6492_v16  ;;  %1184 = vmatmul.bf16.gmra.mxu1 %v6490_v12 }
  0xc6   : > { %1313 = vmatmul.bf16.gmra.mxu2 %v6488_v10 }
  0xc7   : > { %1442 = vmatmul.bf16.gmra.mxu3 %v6490_v12 }
  0xc9   : > { %v1274_v17 = vpop.f32.mrf.mxu2  ;;  %v1018_v19 = vpop.f32.mrf.mxu0 }
  0xca   : > { %v1403_v18 = vpop.f32.mrf.mxu3  ;;  %v1147_v23 = vpop.f32.mrf.mxu1 }
  0xcb   : > { %v6498_v22 = vadd.f32 %v1403_v18, %v1274_v17  ;;  %v6500_v24 = vadd.f32 %v1147_v23, %v1018_v19  ;;  %v5344_v23 = vld [vmem:[#allocation9 + $0x68] sm:$0xf] }
  0xcc   : > { %v5345_v27 = vor.u32 %v5868_v25, %v5344_v23 }
  0xcd   : > { %9192 = vst [vmem:[#allocation21_spill] sm:$0xff] %v6498_v22 }
  0xce   : > { %9193 = vst [vmem:[#allocation22_spill] sm:$0xff] %v6500_v24  ;;  %1527 = vmatpush.bf16.msrb.mxu0 %v5345_v27 }
  0xd1   : > { %v1276_v29 = vpop.f32.mrf.mxu2  ;;  %v1021_v32 = vpop.f32.mrf.mxu0 }
  0xd2   : > { %v1405_v31 = vpop.f32.mrf.mxu3  ;;  %v1150_v35 = vpop.f32.mrf.mxu1 }
  0xd3   : > { %v6506_v34 = vadd.f32 %v1405_v31, %v1276_v29  ;;  %v6508_v36 = vadd.f32 %v1150_v35, %v1021_v32  ;;  %v5184_v29 = vld [vmem:[#allocation6 + $0xb0] sm:$0xf]  ;;  %v5828_v31 = vld [vmem:[#allocation6 + $0xb4] sm:$0xf0]  ;;  %v5473_v32 = vor.u32 %v5900_v28, %v5472_v26  ;;  %v5827_v35 = vld [vmem:[#allocation6 + $0xb4] sm:$0xf] }
  0xd4   : > { %1060 = vmatmul.bf16.gmra.mxu0 %v6502_v30 }
  0xd5   : > { %9194 = vst [vmem:[#allocation23_spill] sm:$0xff] %v6506_v34  ;;  %1189 = vmatmul.bf16.gmra.mxu1 %v6504_v33 }
  0xd6   : > { %9195 = vst [vmem:[#allocation24_spill] sm:$0xff] %v6508_v36  ;;  %1318 = vmatmul.bf16.gmra.mxu2 %v6502_v30  ;;  %1656 = vmatpush.bf16.msrb.mxu1 %v5473_v32  ;;  %v5258_v36 = vld [vmem:[#allocation6 + $0x148] sm:$0xf0] }
  0xd7   : > { %1447 = vmatmul.bf16.gmra.mxu3 %v6504_v33 }
  0xd9   : > { %v1279_v37 = vpop.f32.mrf.mxu2  ;;  %v1023_v41 = vpop.f32.mrf.mxu0 }
  0xda   : > { %v1408_v40 = vpop.f32.mrf.mxu3  ;;  %v1152_v44 = vpop.f32.mrf.mxu1 }
  0xdb   : > { %v6514_v42 = vadd.f32 %v1408_v40, %v1279_v37  ;;  %v6516_v48 = vadd.f32 %v1152_v44, %v1023_v41  ;;  %v5186_v37 = vld [vmem:[#allocation6 + $0xb8] sm:$0xf0]  ;;  %v6534_v41 = vor.u32 %v5828_v31, %v5184_v29 }
  0xdc   : > { %v6536_v50 = vor.u32 %v5827_v35, %v5186_v37 }
  0xdd   : > { %9196 = vst [vmem:[#allocation25_spill] sm:$0xff] %v6514_v42  ;;  %v5846_v42 = vld [vmem:[#allocation6 + $0x144] sm:$0xf0] }
  0xde   : > { %9197 = vst [vmem:[#allocation26_spill] sm:$0xff] %v6516_v48  ;;  %v5256_v48 = vld [vmem:[#allocation6 + $0x140] sm:$0xf] }
  0xe1   : > { %v1281_v57 = vpop.f32.mrf.mxu2  ;;  %v1026_v60 = vpop.f32.mrf.mxu0 }
  0xe2   : > { %v1410_v59 = vpop.f32.mrf.mxu3  ;;  %v1155_v63 = vpop.f32.mrf.mxu1 }
  0xe3   : > { %v6522_v62 = vadd.f32 %v1410_v59, %v1281_v57  ;;  %v6524_v0 = vadd.f32 %v1155_v63, %v1026_v60 }
  0xe4   : > { %1065 = vmatmul.bf16.gmra.mxu0 %v6518_v58 }
  0xe5   : > { %9198 = vst [vmem:[#allocation27_spill] sm:$0xff] %v6522_v62  ;;  %1194 = vmatmul.bf16.gmra.mxu1 %v6520_v61  ;;  %v5888_v62 = vld [vmem:[#allocation9 + $0x114] sm:$0xf0] }
  0xe6   : > { %9199 = vst [vmem:[#allocation28_spill] sm:$0xff] %v6524_v0  ;;  %1323 = vmatmul.bf16.gmra.mxu2 %v6518_v58 }
  0xe7   : > { %1452 = vmatmul.bf16.gmra.mxu3 %v6520_v61 }
  0xe9   : > { %v1284_v6 = vpop.f32.mrf.mxu2  ;;  %v1028_v13 = vpop.f32.mrf.mxu0 }
  0xea   : > { %v1413_v11 = vpop.f32.mrf.mxu3  ;;  %v1157_v18 = vpop.f32.mrf.mxu1 }
  0xeb   : > { %v6530_v17 = vadd.f32 %v1413_v11, %v1284_v6  ;;  %v6532_v19 = vadd.f32 %v1157_v18, %v1028_v13  ;;  %v5829_v6 = vld [vmem:[#allocation6 + $0xc4] sm:$0xf]  ;;  %v6550_v13 = vor.u32 %v5830_v5, %v5192_v4 }
  0xec   : > { %v6552_v25 = vor.u32 %v5829_v6, %v5194_v7 }
  0xed   : > { %9200 = vst [vmem:[#allocation29_spill] sm:$0xff] %v6530_v17 }
  0xee   : > { %9201 = vst [vmem:[#allocation30_spill] sm:$0xff] %v6532_v19  ;;  %v5234_v19 = vld [vmem:[#allocation6 + $0x118] sm:$0xf0] }
  0xf1   : > { %v1286_v40 = vpop.f32.mrf.mxu2  ;;  %v1031_v49 = vpop.f32.mrf.mxu0 }
  0xf2   : > { %v1415_v44 = vpop.f32.mrf.mxu3  ;;  %v1160_v56 = vpop.f32.mrf.mxu1 }
  0xf3   : > { %v6538_v51 = vadd.f32 %v1415_v44, %v1286_v40  ;;  %v6540_v57 = vadd.f32 %v1160_v56, %v1031_v49  ;;  %v5200_v44 = vld [vmem:[#allocation6 + $0xd0] sm:$0xf]  ;;  %v5832_v49 = vld [vmem:[#allocation6 + $0xd4] sm:$0xf0]  ;;  %v5831_v56 = vld [vmem:[#allocation6 + $0xd4] sm:$0xf] }
  0xf4   : > { %1070 = vmatmul.bf16.gmra.mxu0 %v6534_v41 }
  0xf5   : > { %9202 = vst [vmem:[#allocation31_spill] sm:$0xff] %v6538_v51  ;;  %1199 = vmatmul.bf16.gmra.mxu1 %v6536_v50  ;;  %v5840_v51 = vld [vmem:[#allocation6 + $0x114] sm:$0xf0] }
  0xf6   : > { %9203 = vst [vmem:[#allocation32_spill] sm:$0xff] %v6540_v57  ;;  %1328 = vmatmul.bf16.gmra.mxu2 %v6534_v41  ;;  %v5232_v57 = vld [vmem:[#allocation6 + $0x110] sm:$0xf] }
  0xf7   : > { %1457 = vmatmul.bf16.gmra.mxu3 %v6536_v50 }
  0xf9   : > { %v1289_v59 = vpop.f32.mrf.mxu2  ;;  %v1033_v63 = vpop.f32.mrf.mxu0 }
  0xfa   : > { %v1418_v60 = vpop.f32.mrf.mxu3  ;;  %v1162_v2 = vpop.f32.mrf.mxu1 }
  0xfb   : > { %v6546_v1 = vadd.f32 %v1418_v60, %v1289_v59  ;;  %v6548_v3 = vadd.f32 %v1162_v2, %v1033_v63  ;;  %v5202_v59 = vld [vmem:[#allocation6 + $0xd8] sm:$0xf0]  ;;  %v6566_v63 = vor.u32 %v5832_v49, %v5200_v44 }
  0xfc   : > { %v6568_v5 = vor.u32 %v5831_v56, %v5202_v59 }
  0xfd   : > { %9204 = vst [vmem:[#allocation33_spill] sm:$0xff] %v6546_v1  ;;  %v5892_v1 = vld [vmem:[#allocation9 + $0x134] sm:$0xf0] }
  0xfe   : > { %9205 = vst [vmem:[#allocation34_spill] sm:$0xff] %v6548_v3 }
 0x101   : > { %v1291_v11 = vpop.f32.mrf.mxu2  ;;  %v1036_v23 = vpop.f32.mrf.mxu0 }
 0x102   : > { %v1420_v18 = vpop.f32.mrf.mxu3  ;;  %v1165_v27 = vpop.f32.mrf.mxu1 }
 0x103   : > { %v6554_v26 = vadd.f32 %v1420_v18, %v1291_v11  ;;  %v6556_v28 = vadd.f32 %v1165_v27, %v1036_v23  ;;  %v5862_v18 = vld [vmem:[#allocation9 + $0x4c] sm:$0xf]  ;;  %v5330_v23 = vld [vmem:[#allocation9 + $0x58] sm:$0xf0] }
 0x104   : > { %1075 = vmatmul.bf16.gmra.mxu0 %v6550_v13  ;;  %v5894_v27 = vld [vmem:[#allocation9 + $0x14c] sm:$0xf] }
 0x105   : > { %9206 = vst [vmem:[#allocation35_spill] sm:$0xff] %v6554_v26  ;;  %1204 = vmatmul.bf16.gmra.mxu1 %v6552_v25 }
 0x106   : > { %9207 = vst [vmem:[#allocation36_spill] sm:$0xff] %v6556_v28  ;;  %1333 = vmatmul.bf16.gmra.mxu2 %v6550_v13  ;;  %v5210_v28 = vld [vmem:[#allocation6 + $0xe8] sm:$0xf0] }
 0x107   : > { %1462 = vmatmul.bf16.gmra.mxu3 %v6552_v25 }
 0x109   : > { %v1294_v29 = vpop.f32.mrf.mxu2  ;;  %v1038_v32 = vpop.f32.mrf.mxu0 }
 0x10a   : > { %v1423_v31 = vpop.f32.mrf.mxu3  ;;  %v1167_v37 = vpop.f32.mrf.mxu1 }
 0x10b   : > { %v6562_v35 = vadd.f32 %v1423_v31, %v1294_v29  ;;  %v6564_v40 = vadd.f32 %v1167_v37, %v1038_v32  ;;  %v5333_v29 = vor.u32 %v5862_v18, %v5330_v23  ;;  %v5458_v31 = vld [vmem:[#allocation9 + $0x158] sm:$0xf0]  ;;  %v5833_v23 = vld [vmem:[#allocation6 + $0xe4] sm:$0xf] }
 0x10c   : > { %v5461_v37 = vor.u32 %v5894_v27, %v5458_v31 }
 0x10d   : > { %9208 = vst [vmem:[#allocation37_spill] sm:$0xff] %v6562_v35  ;;  %1786 = vmatpush.bf16.msrb.mxu2 %v5333_v29  ;;  %v5834_v35 = vld [vmem:[#allocation6 + $0xe4] sm:$0xf0] }
 0x10e   : > { %9209 = vst [vmem:[#allocation38_spill] sm:$0xff] %v6564_v40  ;;  %1915 = vmatpush.bf16.msrb.mxu3 %v5461_v37  ;;  %v5208_v40 = vld [vmem:[#allocation6 + $0xe0] sm:$0xf]  ;;  %v6584_v37 = vor.u32 %v5833_v23, %v5210_v28  ;;  %v5218_v23 = vld [vmem:[#allocation6 + $0xf8] sm:$0xf0] }
 0x10f   : > { %v6582_v29 = vor.u32 %v5834_v35, %v5208_v40 }
 0x111   : > { %v1296_v60 = vpop.f32.mrf.mxu2  ;;  %v1041_v4 = vpop.f32.mrf.mxu0 }
 0x112   : > { %v1425_v2 = vpop.f32.mrf.mxu3  ;;  %v1170_v7 = vpop.f32.mrf.mxu1 }
 0x113   : > { %v6570_v6 = vadd.f32 %v1425_v2, %v1296_v60  ;;  %v6572_v11 = vadd.f32 %v1170_v7, %v1041_v4  ;;  %v5328_v2 = vld [vmem:[#allocation9 + $0x48] sm:$0xf]  ;;  %v5864_v4 = vld [vmem:[#allocation9 + $0x54] sm:$0xf0] }
 0x114   : > { %1080 = vmatmul.bf16.gmra.mxu0 %v6566_v63  ;;  %v5456_v7 = vld [vmem:[#allocation9 + $0x148] sm:$0xf] }
 0x115   : > { %9210 = vst [vmem:[#allocation39_spill] sm:$0xff] %v6570_v6  ;;  %1209 = vmatmul.bf16.gmra.mxu1 %v6568_v5  ;;  %v5896_v6 = vld [vmem:[#allocation9 + $0x154] sm:$0xf0] }
 0x116   : > { %9211 = vst [vmem:[#allocation40_spill] sm:$0xff] %v6572_v11  ;;  %1338 = vmatmul.bf16.gmra.mxu2 %v6566_v63  ;;  %v5329_v11 = vor.u32 %v5864_v4, %v5328_v2  ;;  %v5457_v18 = vor.u32 %v5896_v6, %v5456_v7  ;;  %v5216_v4 = vld [vmem:[#allocation6 + $0xf0] sm:$0xf]  ;;  %v5836_v7 = vld [vmem:[#allocation6 + $0xf4] sm:$0xf0] }
 0x117   : > { %1467 = vmatmul.bf16.gmra.mxu3 %v6568_v5 }
 0x118   : > { %1528 = vmatpush.bf16.msrb.mxu0 %v5329_v11  ;;  %1657 = vmatpush.bf16.msrb.mxu1 %v5457_v18  ;;  %v5835_v18 = vld [vmem:[#allocation6 + $0xf4] sm:$0xf] }
 0x119   : > { %v1299_v32 = vpop.f32.mrf.mxu2  ;;  %v1043_v49 = vpop.f32.mrf.mxu0 }
 0x11a   : > { %v1428_v44 = vpop.f32.mrf.mxu3  ;;  %v1172_v59 = vpop.f32.mrf.mxu1 }
 0x11b   : > { %v6578_v56 = vadd.f32 %v1428_v44, %v1299_v32  ;;  %v6580_v60 = vadd.f32 %v1172_v59, %v1043_v49 }
 0x11d   : > { %9212 = vst [vmem:[#allocation41_spill] sm:$0xff] %v6578_v56 }
 0x11e   : > { %9213 = vst [vmem:[#allocation42_spill] sm:$0xff] %v6580_v60 }
 0x121   : > { %v1301_v27 = vpop.f32.mrf.mxu2  ;;  %v1046_v32 = vpop.f32.mrf.mxu0 }
 0x122   : > { %v1430_v31 = vpop.f32.mrf.mxu3  ;;  %v1175_v49 = vpop.f32.mrf.mxu1 }
 0x123   : > { %v6586_v44 = vadd.f32 %v1430_v31, %v1301_v27  ;;  %v6588_v59 = vadd.f32 %v1175_v49, %v1046_v32  ;;  %v6598_v31 = vor.u32 %v5836_v7, %v5216_v4 }
 0x124   : > { %1085 = vmatmul.bf16.gmra.mxu0 %v6582_v29 }
 0x125   : > { %9214 = vst [vmem:[#allocation43_spill] sm:$0xff] %v6586_v44  ;;  %1214 = vmatmul.bf16.gmra.mxu1 %v6584_v37 }
 0x126   : > { %9215 = vst [vmem:[#allocation44_spill] sm:$0xff] %v6588_v59  ;;  %1343 = vmatmul.bf16.gmra.mxu2 %v6582_v29  ;;  %v6600_v59 = vor.u32 %v5835_v18, %v5218_v23  ;;  %v5224_v18 = vld [vmem:[#allocation6 + $0x100] sm:$0xf]  ;;  %v5838_v23 = vld [vmem:[#allocation6 + $0x104] sm:$0xf0] }
 0x127   : > { %1472 = vmatmul.bf16.gmra.mxu3 %v6584_v37 }
 0x129   : > { %v1304_v6 = vpop.f32.mrf.mxu2  ;;  %v1048_v40 = vpop.f32.mrf.mxu0 }
 0x12a   : > { %v1433_v35 = vpop.f32.mrf.mxu3  ;;  %v1177_v28 = vpop.f32.mrf.mxu1 }
 0x12b   : > { %v6594_v11 = vadd.f32 %v1433_v35, %v1304_v6  ;;  %v6596_v2 = vadd.f32 %v1177_v28, %v1048_v40 }
 0x12d   : > { %9216 = vst [vmem:[#allocation45_spill] sm:$0xff] %v6594_v11 }
 0x12e   : > { %9217 = vst [vmem:[#allocation46_spill] sm:$0xff] %v6596_v2 }
 0x131   : > { %v1306_v27 = vpop.f32.mrf.mxu2  ;;  %v1051_v49 = vpop.f32.mrf.mxu0 }
 0x132   : > { %v1435_v32 = vpop.f32.mrf.mxu3  ;;  %v1180_v60 = vpop.f32.mrf.mxu1 }
 0x133   : > { %v6602_v44 = vadd.f32 %v1435_v32, %v1306_v27  ;;  %v6604_v56 = vadd.f32 %v1180_v60, %v1051_v49  ;;  %v5837_v60 = vld [vmem:[#allocation6 + $0x104] sm:$0xf]  ;;  %v5226_v27 = vld [vmem:[#allocation6 + $0x108] sm:$0xf0]  ;;  %v6614_v49 = vor.u32 %v5838_v23, %v5224_v18  ;;  %v5442_v18 = vld [vmem:[#allocation9 + $0x138] sm:$0xf0] }
 0x134   : > { %1090 = vmatmul.bf16.gmra.mxu0 %v6598_v31  ;;  %v6616_v2 = vor.u32 %v5837_v60, %v5226_v27 }
 0x135   : > { %9218 = vst [vmem:[#allocation47_spill] sm:$0xff] %v6602_v44  ;;  %1219 = vmatmul.bf16.gmra.mxu1 %v6600_v59 }
 0x136   : > { %9219 = vst [vmem:[#allocation48_spill] sm:$0xff] %v6604_v56  ;;  %1348 = vmatmul.bf16.gmra.mxu2 %v6598_v31 }
 0x137   : > { %1477 = vmatmul.bf16.gmra.mxu3 %v6600_v59 }
 0x139   : > { %v1309_v6 = vpop.f32.mrf.mxu2  ;;  %v1053_v40 = vpop.f32.mrf.mxu0 }
 0x13a   : > { %v1438_v35 = vpop.f32.mrf.mxu3  ;;  %v1182_v4 = vpop.f32.mrf.mxu1 }
 0x13b   : > { %v6610_v28 = vadd.f32 %v1438_v35, %v1309_v6  ;;  %v6612_v7 = vadd.f32 %v1182_v4, %v1053_v40  ;;  %v5858_v6 = vld [vmem:[#allocation9 + $0x2c] sm:$0xf]  ;;  %v5314_v35 = vld [vmem:[#allocation9 + $0x38] sm:$0xf0] }
 0x13c   : > { %v5890_v40 = vld [vmem:[#allocation9 + $0x12c] sm:$0xf]  ;;  %v5317_v4 = vor.u32 %v5858_v6, %v5314_v35  ;;  %v5839_v35 = vld [vmem:[#allocation6 + $0x114] sm:$0xf] }
 0x13d   : > { %9220 = vst [vmem:[#allocation49_spill] sm:$0xff] %v6610_v28  ;;  %v5445_v60 = vor.u32 %v5890_v40, %v5442_v18 }
 0x13e   : > { %9221 = vst [vmem:[#allocation50_spill] sm:$0xff] %v6612_v7  ;;  %1787 = vmatpush.bf16.msrb.mxu2 %v5317_v4  ;;  %v5440_v7 = vld [vmem:[#allocation9 + $0x128] sm:$0xf]  ;;  %v6630_v4 = vor.u32 %v5840_v51, %v5232_v57 }
 0x13f   : > { %1916 = vmatpush.bf16.msrb.mxu3 %v5445_v60  ;;  %v5441_v6 = vor.u32 %v5892_v1, %v5440_v7  ;;  %v6632_v60 = vor.u32 %v5839_v35, %v5234_v19  ;;  %v5842_v7 = vld [vmem:[#allocation6 + $0x124] sm:$0xf0]  ;;  %v5242_v35 = vld [vmem:[#allocation6 + $0x128] sm:$0xf0] }
 0x141   : > { %v1311_v32 = vpop.f32.mrf.mxu2  ;;  %v1056_v44 = vpop.f32.mrf.mxu0  ;;  %1658 = vmatpush.bf16.msrb.mxu1 %v5441_v6  ;;  %v5841_v6 = vld [vmem:[#allocation6 + $0x124] sm:$0xf] }
 0x142   : > { %v1440_v56 = vpop.f32.mrf.mxu3  ;;  %v1185_v26 = vpop.f32.mrf.mxu1 }
 0x143   : > { %v6618_v11 = vadd.f32 %v1440_v56, %v1311_v32  ;;  %v6620_v3 = vadd.f32 %v1185_v26, %v1056_v44 }
 0x144   : > { %1095 = vmatmul.bf16.gmra.mxu0 %v6614_v49 }
 0x145   : > { %9222 = vst [vmem:[#allocation51_spill] sm:$0xff] %v6618_v11  ;;  %1224 = vmatmul.bf16.gmra.mxu1 %v6616_v2  ;;  %v5860_v11 = vld [vmem:[#allocation9 + $0x34] sm:$0xf0] }
 0x146   : > { %9223 = vst [vmem:[#allocation52_spill] sm:$0xff] %v6620_v3  ;;  %1353 = vmatmul.bf16.gmra.mxu2 %v6614_v49  ;;  %v5312_v3 = vld [vmem:[#allocation9 + $0x28] sm:$0xf] }
 0x147   : > { %1482 = vmatmul.bf16.gmra.mxu3 %v6616_v2  ;;  %v5313_v28 = vor.u32 %v5860_v11, %v5312_v3 }
 0x149   : > { %v1314_v23 = vpop.f32.mrf.mxu2  ;;  %v1058_v27 = vpop.f32.mrf.mxu0  ;;  %1529 = vmatpush.bf16.msrb.mxu0 %v5313_v28  ;;  %v5240_v28 = vld [vmem:[#allocation6 + $0x120] sm:$0xf] }
 0x14a   : > { %v1443_v56 = vpop.f32.mrf.mxu3  ;;  %v1187_v44 = vpop.f32.mrf.mxu1 }
 0x14b   : > { %v6626_v26 = vadd.f32 %v1443_v56, %v1314_v23  ;;  %v6628_v32 = vadd.f32 %v1187_v44, %v1058_v27 }
 0x14d   : > { %9224 = vst [vmem:[#allocation53_spill] sm:$0xff] %v6626_v26 }
 0x14e   : > { %9225 = vst [vmem:[#allocation54_spill] sm:$0xff] %v6628_v32 }
 0x151   : > { %v1316_v40 = vpop.f32.mrf.mxu2  ;;  %v1061_v23 = vpop.f32.mrf.mxu0 }
 0x152   : > { %v1445_v18 = vpop.f32.mrf.mxu3  ;;  %v1190_v27 = vpop.f32.mrf.mxu1 }
 0x153   : > { %v6634_v56 = vadd.f32 %v1445_v18, %v1316_v40  ;;  %v6636_v44 = vadd.f32 %v1190_v27, %v1061_v23  ;;  %v6646_v18 = vor.u32 %v5842_v7, %v5240_v28 }
 0x154   : > { %1100 = vmatmul.bf16.gmra.mxu0 %v6630_v4 }
 0x155   : > { %9226 = vst [vmem:[#allocation55_spill] sm:$0xff] %v6634_v56  ;;  %1229 = vmatmul.bf16.gmra.mxu1 %v6632_v60 }
 0x156   : > { %9227 = vst [vmem:[#allocation56_spill] sm:$0xff] %v6636_v44  ;;  %1358 = vmatmul.bf16.gmra.mxu2 %v6630_v4  ;;  %v6648_v44 = vor.u32 %v5841_v6, %v5242_v35  ;;  %v5248_v6 = vld [vmem:[#allocation6 + $0x130] sm:$0xf]  ;;  %v5844_v35 = vld [vmem:[#allocation6 + $0x134] sm:$0xf0] }
 0x157   : > { %1487 = vmatmul.bf16.gmra.mxu3 %v6632_v60 }
 0x159   : > { %v1319_v1 = vpop.f32.mrf.mxu2  ;;  %v1063_v57 = vpop.f32.mrf.mxu0 }
 0x15a   : > { %v1448_v51 = vpop.f32.mrf.mxu3  ;;  %v1192_v19 = vpop.f32.mrf.mxu1 }
 0x15b   : > { %v6642_v3 = vadd.f32 %v1448_v51, %v1319_v1  ;;  %v6644_v11 = vadd.f32 %v1192_v19, %v1063_v57 }
 0x15d   : > { %9228 = vst [vmem:[#allocation57_spill] sm:$0xff] %v6642_v3 }
 0x15e   : > { %9229 = vst [vmem:[#allocation58_spill] sm:$0xff] %v6644_v11 }
 0x161   : > { %v1321_v40 = vpop.f32.mrf.mxu2  ;;  %v1066_v27 = vpop.f32.mrf.mxu0 }
 0x162   : > { %v1450_v23 = vpop.f32.mrf.mxu3  ;;  %v1195_v32 = vpop.f32.mrf.mxu1 }
 0x163   : > { %v6650_v56 = vadd.f32 %v1450_v23, %v1321_v40  ;;  %v6652_v26 = vadd.f32 %v1195_v32, %v1066_v27  ;;  %v5843_v32 = vld [vmem:[#allocation6 + $0x134] sm:$0xf]  ;;  %v5250_v40 = vld [vmem:[#allocation6 + $0x138] sm:$0xf0]  ;;  %v6662_v27 = vor.u32 %v5844_v35, %v5248_v6 }
 0x164   : > { %1105 = vmatmul.bf16.gmra.mxu0 %v6646_v18  ;;  %v6664_v11 = vor.u32 %v5843_v32, %v5250_v40  ;;  %v5426_v6 = vld [vmem:[#allocation9 + $0x118] sm:$0xf0] }
 0x165   : > { %9230 = vst [vmem:[#allocation59_spill] sm:$0xff] %v6650_v56  ;;  %1234 = vmatmul.bf16.gmra.mxu1 %v6648_v44 }
 0x166   : > { %9231 = vst [vmem:[#allocation60_spill] sm:$0xff] %v6652_v26  ;;  %1363 = vmatmul.bf16.gmra.mxu2 %v6646_v18 }
 0x167   : > { %1492 = vmatmul.bf16.gmra.mxu3 %v6648_v44 }
 0x169   : > { %v1324_v1 = vpop.f32.mrf.mxu2  ;;  %v1068_v57 = vpop.f32.mrf.mxu0 }
 0x16a   : > { %v1453_v51 = vpop.f32.mrf.mxu3  ;;  %v1197_v28 = vpop.f32.mrf.mxu1 }
 0x16b   : > { %v6658_v19 = vadd.f32 %v1453_v51, %v1324_v1  ;;  %v6660_v7 = vadd.f32 %v1197_v28, %v1068_v57  ;;  %v5854_v1 = vld [vmem:[#allocation9 + $0xc] sm:$0xf]  ;;  %v5298_v51 = vld [vmem:[#allocation9 + $0x18] sm:$0xf0] }
 0x16c   : > { %v5886_v57 = vld [vmem:[#allocation9 + $0x10c] sm:$0xf]  ;;  %v5301_v28 = vor.u32 %v5854_v1, %v5298_v51  ;;  %v5845_v51 = vld [vmem:[#allocation6 + $0x144] sm:$0xf] }
 0x16d   : > { %9232 = vst [vmem:[#allocation61_spill] sm:$0xff] %v6658_v19  ;;  %v5429_v32 = vor.u32 %v5886_v57, %v5426_v6 }
 0x16e   : > { %9233 = vst [vmem:[#allocation62_spill] sm:$0xff] %v6660_v7  ;;  %1788 = vmatpush.bf16.msrb.mxu2 %v5301_v28  ;;  %v5424_v7 = vld [vmem:[#allocation9 + $0x108] sm:$0xf]  ;;  %v6678_v28 = vor.u32 %v5846_v42, %v5256_v48 }
 0x16f   : > { %1917 = vmatpush.bf16.msrb.mxu3 %v5429_v32  ;;  %v5425_v1 = vor.u32 %v5888_v62, %v5424_v7  ;;  %v6680_v32 = vor.u32 %v5845_v51, %v5258_v36  ;;  %v5848_v7 = vld [vmem:[#allocation6 + $0x154] sm:$0xf0]  ;;  %v5266_v51 = vld [vmem:[#allocation6 + $0x158] sm:$0xf0] }
 0x171   : > { %v1326_v23 = vpop.f32.mrf.mxu2  ;;  %v1071_v56 = vpop.f32.mrf.mxu0  ;;  %1659 = vmatpush.bf16.msrb.mxu1 %v5425_v1  ;;  %v5847_v1 = vld [vmem:[#allocation6 + $0x154] sm:$0xf] }
 0x172   : > { %v1455_v26 = vpop.f32.mrf.mxu3  ;;  %v1200_v17 = vpop.f32.mrf.mxu1 }
 0x173   : > { %v6666_v3 = vadd.f32 %v1455_v26, %v1326_v23  ;;  %v6668_v0 = vadd.f32 %v1200_v17, %v1071_v56 }
 0x174   : > { %1110 = vmatmul.bf16.gmra.mxu0 %v6662_v27 }
 0x175   : > { %9234 = vst [vmem:[#allocation63_spill] sm:$0xff] %v6666_v3  ;;  %1239 = vmatmul.bf16.gmra.mxu1 %v6664_v11  ;;  %v5856_v3 = vld [vmem:[#allocation9 + $0x14] sm:$0xf0] }
 0x176   : > { %9235 = vst [vmem:[#allocation64_spill] sm:$0xff] %v6668_v0  ;;  %1368 = vmatmul.bf16.gmra.mxu2 %v6662_v27  ;;  %v5296_v0 = vld [vmem:[#allocation9 + $0x8] sm:$0xf] }
 0x177   : > { %1497 = vmatmul.bf16.gmra.mxu3 %v6664_v11  ;;  %v5297_v19 = vor.u32 %v5856_v3, %v5296_v0 }
 0x179   : > { %v1329_v35 = vpop.f32.mrf.mxu2  ;;  %v1073_v40 = vpop.f32.mrf.mxu0  ;;  %1530 = vmatpush.bf16.msrb.mxu0 %v5297_v19  ;;  %v5264_v19 = vld [vmem:[#allocation6 + $0x150] sm:$0xf] }
 0x17a   : > { %v1458_v26 = vpop.f32.mrf.mxu3  ;;  %v1202_v56 = vpop.f32.mrf.mxu1 }
 0x17b   : > { %v6674_v17 = vadd.f32 %v1458_v26, %v1329_v35  ;;  %v6676_v23 = vadd.f32 %v1202_v56, %v1073_v40 }
 0x17d   : > { %9236 = vst [vmem:[#allocation65_spill] sm:$0xff] %v6674_v17 }
 0x17e   : > { %9237 = vst [vmem:[#allocation66_spill] sm:$0xff] %v6676_v23 }
 0x181   : > { %v1331_v57 = vpop.f32.mrf.mxu2  ;;  %v1076_v35 = vpop.f32.mrf.mxu0 }
 0x182   : > { %v1460_v6 = vpop.f32.mrf.mxu3  ;;  %v1205_v40 = vpop.f32.mrf.mxu1 }
 0x183   : > { %v6682_v26 = vadd.f32 %v1460_v6, %v1331_v57  ;;  %v6684_v56 = vadd.f32 %v1205_v40, %v1076_v35  ;;  %v6694_v6 = vor.u32 %v5848_v7, %v5264_v19 }
 0x184   : > { %1115 = vmatmul.bf16.gmra.mxu0 %v6678_v28 }
 0x185   : > { %9238 = vst [vmem:[#allocation67_spill] sm:$0xff] %v6682_v26  ;;  %1244 = vmatmul.bf16.gmra.mxu1 %v6680_v32 }
 0x186   : > { %9239 = vst [vmem:[#allocation68_spill] sm:$0xff] %v6684_v56  ;;  %1373 = vmatmul.bf16.gmra.mxu2 %v6678_v28  ;;  %v6696_v56 = vor.u32 %v5847_v1, %v5266_v51  ;;  %v5272_v1 = vld [vmem:[#allocation6 + $0x160] sm:$0xf]  ;;  %v5850_v51 = vld [vmem:[#allocation6 + $0x164] sm:$0xf0] }
 0x187   : > { %1502 = vmatmul.bf16.gmra.mxu3 %v6680_v32 }
 0x189   : > { %v1334_v62 = vpop.f32.mrf.mxu2  ;;  %v1078_v48 = vpop.f32.mrf.mxu0 }
 0x18a   : > { %v1463_v42 = vpop.f32.mrf.mxu3  ;;  %v1207_v36 = vpop.f32.mrf.mxu1 }
 0x18b   : > { %v6690_v0 = vadd.f32 %v1463_v42, %v1334_v62  ;;  %v6692_v3 = vadd.f32 %v1207_v36, %v1078_v48 }
 0x18d   : > { %9240 = vst [vmem:[#allocation69_spill] sm:$0xff] %v6690_v0 }
 0x18e   : > { %9241 = vst [vmem:[#allocation70_spill] sm:$0xff] %v6692_v3 }
 0x191   : > { %v1336_v57 = vpop.f32.mrf.mxu2  ;;  %v1081_v40 = vpop.f32.mrf.mxu0 }
 0x192   : > { %v1465_v35 = vpop.f32.mrf.mxu3  ;;  %v1210_v23 = vpop.f32.mrf.mxu1 }
 0x193   : > { %v6698_v26 = vadd.f32 %v1465_v35, %v1336_v57  ;;  %v6700_v17 = vadd.f32 %v1210_v23, %v1081_v40  ;;  %v5849_v23 = vld [vmem:[#allocation6 + $0x164] sm:$0xf]  ;;  %v5274_v57 = vld [vmem:[#allocation6 + $0x168] sm:$0xf0]  ;;  %v6710_v40 = vor.u32 %v5850_v51, %v5272_v1 }
 0x194   : > { %1120 = vmatmul.bf16.gmra.mxu0 %v6694_v6  ;;  %v6712_v3 = vor.u32 %v5849_v23, %v5274_v57  ;;  %v5852_v23 = vld [vmem:[#allocation6 + $0x174] sm:$0xf0] }
 0x195   : > { %9242 = vst [vmem:[#allocation71_spill] sm:$0xff] %v6698_v26  ;;  %1249 = vmatmul.bf16.gmra.mxu1 %v6696_v56 }
 0x196   : > { %9243 = vst [vmem:[#allocation72_spill] sm:$0xff] %v6700_v17  ;;  %1378 = vmatmul.bf16.gmra.mxu2 %v6694_v6 }
 0x197   : > { %1507 = vmatmul.bf16.gmra.mxu3 %v6696_v56 }
 0x199   : > { %v1339_v62 = vpop.f32.mrf.mxu2  ;;  %v1083_v48 = vpop.f32.mrf.mxu0 }
 0x19a   : > { %v1468_v42 = vpop.f32.mrf.mxu3  ;;  %v1212_v19 = vpop.f32.mrf.mxu1 }
 0x19b   : > { %v6706_v36 = vadd.f32 %v1468_v42, %v1339_v62  ;;  %v6708_v7 = vadd.f32 %v1212_v19, %v1083_v48 }
 0x19d   : > { %9244 = vst [vmem:[#allocation73_spill] sm:$0xff] %v6706_v36 }
 0x19e   : > { %9245 = vst [vmem:[#allocation74_spill] sm:$0xff] %v6708_v7 }
 0x1a1   : > { %v1341_v35 = vpop.f32.mrf.mxu2  ;;  %v1086_v26 = vpop.f32.mrf.mxu0 }
 0x1a2   : > { %v1470_v17 = vpop.f32.mrf.mxu3  ;;  %v1215_v34 = vpop.f32.mrf.mxu1 }
 0x1a3   : > { %v6714_v0 = vadd.f32 %v1470_v17, %v1341_v35  ;;  %v6716_v22 = vadd.f32 %v1215_v34, %v1086_v26  ;;  %v5280_v17 = vld [vmem:[#allocation6 + $0x170] sm:$0xf]  ;;  %v5851_v34 = vld [vmem:[#allocation6 + $0x174] sm:$0xf]  ;;  %v5282_v26 = vld [vmem:[#allocation6 + $0x178] sm:$0xf0] }
 0x1a4   : > { %1125 = vmatmul.bf16.gmra.mxu0 %v6710_v40  ;;  %v6726_v35 = vor.u32 %v5852_v23, %v5280_v17  ;;  %v6728_v7 = vor.u32 %v5851_v34, %v5282_v26 }
 0x1a5   : > { %9246 = vst [vmem:[#allocation75_spill] sm:$0xff] %v6714_v0  ;;  %1254 = vmatmul.bf16.gmra.mxu1 %v6712_v3 }
 0x1a6   : > { %9247 = vst [vmem:[#allocation76_spill] sm:$0xff] %v6716_v22  ;;  %1383 = vmatmul.bf16.gmra.mxu2 %v6710_v40 }
 0x1a7   : > { %1512 = vmatmul.bf16.gmra.mxu3 %v6712_v3 }
 0x1a9   : > { %v1344_v62 = vpop.f32.mrf.mxu2  ;;  %v1088_v48 = vpop.f32.mrf.mxu0 }
 0x1aa   : > { %v1473_v42 = vpop.f32.mrf.mxu3  ;;  %v1217_v1 = vpop.f32.mrf.mxu1 }
 0x1ab   : > { %v6722_v19 = vadd.f32 %v1473_v42, %v1344_v62  ;;  %v6724_v51 = vadd.f32 %v1217_v1, %v1088_v48 }
 0x1ad   : > { %9248 = vst [vmem:[#allocation77_spill] sm:$0xff] %v6722_v19 }
 0x1ae   : > { %9249 = vst [vmem:[#allocation78_spill] sm:$0xff] %v6724_v51 }
 0x1b1   : > { %v1346_v57 = vpop.f32.mrf.mxu2  ;;  %v1091_v0 = vpop.f32.mrf.mxu0 }
 0x1b2   : > { %v1475_v22 = vpop.f32.mrf.mxu3  ;;  %v1220_v24 = vpop.f32.mrf.mxu1 }
 0x1b3   : > { %v6730_v36 = vadd.f32 %v1475_v22, %v1346_v57  ;;  %v6732_v16 = vadd.f32 %v1220_v24, %v1091_v0 }
 0x1b4   : > { %1130 = vmatmul.bf16.gmra.mxu0 %v6726_v35 }
 0x1b5   : > { %9250 = vst [vmem:[#allocation79_spill] sm:$0xff] %v6730_v36  ;;  %1259 = vmatmul.bf16.gmra.mxu1 %v6728_v7 }
 0x1b6   : > { %9251 = vst [vmem:[#allocation80_spill] sm:$0xff] %v6732_v16  ;;  %1388 = vmatmul.bf16.gmra.mxu2 %v6726_v35 }
 0x1b7   : > { %1517 = vmatmul.bf16.gmra.mxu3 %v6728_v7 }
 0x1b9   : > { %v1349_v62 = vpop.f32.mrf.mxu2  ;;  %v1093_v48 = vpop.f32.mrf.mxu0 }
 0x1ba   : > { %v1478_v42 = vpop.f32.mrf.mxu3  ;;  %v1222_v17 = vpop.f32.mrf.mxu1 }
 0x1bb   : > { %v6738_v1 = vadd.f32 %v1478_v42, %v1349_v62  ;;  %v6740_v23 = vadd.f32 %v1222_v17, %v1093_v48 }
 0x1bd   : > { %9252 = vst [vmem:[#allocation81_spill] sm:$0xff] %v6738_v1 }
 0x1be   : > { %9253 = vst [vmem:[#allocation82_spill] sm:$0xff] %v6740_v23 }
 0x1c1   : > { %v1351_v22 = vpop.f32.mrf.mxu2  ;;  %v1096_v24 = vpop.f32.mrf.mxu0 }
 0x1c2   : > { %v1480_v34 = vpop.f32.mrf.mxu3  ;;  %v1225_v26 = vpop.f32.mrf.mxu1 }
 0x1c3   : > { %v6742_v0 = vadd.f32 %v1480_v34, %v1351_v22  ;;  %v6744_v57 = vadd.f32 %v1225_v26, %v1096_v24 }
 0x1c4   : > { %1531 = vmatmul.bf16.vlgmr.msrb.gmra.mxu0 %v6424_v43 }
 0x1c5   : > { %9254 = vst [vmem:[#allocation83_spill] sm:$0xff] %v6742_v0  ;;  %1660 = vmatmul.bf16.vlgmr.msrb.gmra.mxu1 %v6426_v47 }
 0x1c6   : > { %9255 = vst [vmem:[#allocation84_spill] sm:$0xff] %v6744_v57  ;;  %1789 = vmatmul.bf16.vlgmr.msrb.gmra.mxu2 %v6424_v43 }
 0x1c7   : > { %1918 = vmatmul.bf16.vlgmr.msrb.gmra.mxu3 %v6426_v47 }
 0x1c9   : > { %v1354_v62 = vpop.f32.mrf.mxu2  ;;  %v1098_v48 = vpop.f32.mrf.mxu0 }
 0x1ca   : > { %v1483_v42 = vpop.f32.mrf.mxu3  ;;  %v1227_v23 = vpop.f32.mrf.mxu1 }
 0x1cb   : > { %v6750_v17 = vadd.f32 %v1483_v42, %v1354_v62  ;;  %v6752_v1 = vadd.f32 %v1227_v23, %v1098_v48 }
 0x1cd   : > { %9256 = vst [vmem:[#allocation85_spill] sm:$0xff] %v6750_v17 }
 0x1ce   : > { %9257 = vst [vmem:[#allocation86_spill] sm:$0xff] %v6752_v1 }
 0x1d1   : > { %v1356_v22 = vpop.f32.mrf.mxu2  ;;  %v1101_v24 = vpop.f32.mrf.mxu0 }
 0x1d2   : > { %v1485_v34 = vpop.f32.mrf.mxu3  ;;  %v1230_v57 = vpop.f32.mrf.mxu1 }
 0x1d3   : > { %v6754_v26 = vadd.f32 %v1485_v34, %v1356_v22  ;;  %v6756_v0 = vadd.f32 %v1230_v57, %v1101_v24 }
 0x1d4   : > { %1536 = vmatmul.bf16.gmra.mxu0 %v6432_v54 }
 0x1d5   : > { %9258 = vst [vmem:[#allocation87_spill] sm:$0xff] %v6754_v26  ;;  %1665 = vmatmul.bf16.gmra.mxu1 %v6434_v55 }
 0x1d6   : > { %9259 = vst [vmem:[#allocation88_spill] sm:$0xff] %v6756_v0  ;;  %1794 = vmatmul.bf16.gmra.mxu2 %v6432_v54 }
 0x1d7   : > { %1923 = vmatmul.bf16.gmra.mxu3 %v6434_v55 }
 0x1d9   : > { %v1359_v43 = vpop.f32.mrf.mxu2  ;;  %v1103_v23 = vpop.f32.mrf.mxu0 }
 0x1da   : > { %v1488_v47 = vpop.f32.mrf.mxu3  ;;  %v1232_v42 = vpop.f32.mrf.mxu1 }
 0x1db   : > { %v6762_v62 = vadd.f32 %v1488_v47, %v1359_v43  ;;  %v6764_v48 = vadd.f32 %v1232_v42, %v1103_v23 }
 0x1dd   : > { %9260 = vst [vmem:[#allocation89_spill] sm:$0xff] %v6762_v62 }
 0x1de   : > { %9261 = vst [vmem:[#allocation90_spill] sm:$0xff] %v6764_v48 }
 0x1e1   : > { %v1361_v22 = vpop.f32.mrf.mxu2  ;;  %v1106_v57 = vpop.f32.mrf.mxu0 }
 0x1e2   : > { %v1490_v34 = vpop.f32.mrf.mxu3  ;;  %v1235_v0 = vpop.f32.mrf.mxu1 }
 0x1e3   : > { %v6766_v24 = vadd.f32 %v1490_v34, %v1361_v22  ;;  %v6768_v26 = vadd.f32 %v1235_v0, %v1106_v57 }
 0x1e4   : > { %1541 = vmatmul.bf16.gmra.mxu0 %v6440_v8 }
 0x1e5   : > { %9262 = vst [vmem:[#allocation91_spill] sm:$0xff] %v6766_v24  ;;  %1670 = vmatmul.bf16.gmra.mxu1 %v6442_v9 }
 0x1e6   : > { %9263 = vst [vmem:[#allocation92_spill] sm:$0xff] %v6768_v26  ;;  %1799 = vmatmul.bf16.gmra.mxu2 %v6440_v8 }
 0x1e7   : > { %1928 = vmatmul.bf16.gmra.mxu3 %v6442_v9 }
 0x1e9   : > { %v1364_v54 = vpop.f32.mrf.mxu2  ;;  %v1108_v43 = vpop.f32.mrf.mxu0 }
 0x1ea   : > { %v1493_v55 = vpop.f32.mrf.mxu3  ;;  %v1237_v23 = vpop.f32.mrf.mxu1 }
 0x1eb   : > { %v6774_v47 = vadd.f32 %v1493_v55, %v1364_v54  ;;  %v6776_v42 = vadd.f32 %v1237_v23, %v1108_v43 }
 0x1ed   : > { %9264 = vst [vmem:[#allocation93_spill] sm:$0xff] %v6774_v47 }
 0x1ee   : > { %9265 = vst [vmem:[#allocation94_spill] sm:$0xff] %v6776_v42 }
 0x1f1   : > { %v1366_v22 = vpop.f32.mrf.mxu2  ;;  %v1111_v0 = vpop.f32.mrf.mxu0 }
 0x1f2   : > { %v1495_v34 = vpop.f32.mrf.mxu3  ;;  %v1240_v26 = vpop.f32.mrf.mxu1 }
 0x1f3   : > { %v6778_v57 = vadd.f32 %v1495_v34, %v1366_v22  ;;  %v6780_v24 = vadd.f32 %v1240_v26, %v1111_v0 }
 0x1f4   : > { %1546 = vmatmul.bf16.gmra.mxu0 %v6448_v14 }
 0x1f5   : > { %9266 = vst [vmem:[#allocation95_spill] sm:$0xff] %v6778_v57  ;;  %1675 = vmatmul.bf16.gmra.mxu1 %v6450_v15 }
 0x1f6   : > { %9267 = vst [vmem:[#allocation96_spill] sm:$0xff] %v6780_v24  ;;  %1804 = vmatmul.bf16.gmra.mxu2 %v6448_v14 }
 0x1f7   : > { %1933 = vmatmul.bf16.gmra.mxu3 %v6450_v15 }
 0x1f9   : > { %v1369_v8 = vpop.f32.mrf.mxu2  ;;  %v1113_v54 = vpop.f32.mrf.mxu0 }
 0x1fa   : > { %v1498_v9 = vpop.f32.mrf.mxu3  ;;  %v1242_v43 = vpop.f32.mrf.mxu1 }
 0x1fb   : > { %v6786_v55 = vadd.f32 %v1498_v9, %v1369_v8  ;;  %v6788_v23 = vadd.f32 %v1242_v43, %v1113_v54 }
 0x1fd   : > { %9268 = vst [vmem:[#allocation97_spill] sm:$0xff] %v6786_v55 }
 0x1fe   : > { %9269 = vst [vmem:[#allocation98_spill] sm:$0xff] %v6788_v23 }
 0x201   : > { %v1371_v22 = vpop.f32.mrf.mxu2  ;;  %v1116_v26 = vpop.f32.mrf.mxu0 }
 0x202   : > { %v1500_v34 = vpop.f32.mrf.mxu3  ;;  %v1245_v24 = vpop.f32.mrf.mxu1 }
 0x203   : > { %v6790_v0 = vadd.f32 %v1500_v34, %v1371_v22  ;;  %v6792_v57 = vadd.f32 %v1245_v24, %v1116_v26 }
 0x204   : > { %1551 = vmatmul.bf16.gmra.mxu0 %v6456_v20 }
 0x205   : > { %9270 = vst [vmem:[#allocation99_spill] sm:$0xff] %v6790_v0  ;;  %1680 = vmatmul.bf16.gmra.mxu1 %v6458_v21 }
 0x206   : > { %9271 = vst [vmem:[#allocation100_spill] sm:$0xff] %v6792_v57  ;;  %1809 = vmatmul.bf16.gmra.mxu2 %v6456_v20 }
 0x207   : > { %1938 = vmatmul.bf16.gmra.mxu3 %v6458_v21 }
 0x209   : > { %v1374_v14 = vpop.f32.mrf.mxu2  ;;  %v1118_v8 = vpop.f32.mrf.mxu0 }
 0x20a   : > { %v1503_v15 = vpop.f32.mrf.mxu3  ;;  %v1247_v54 = vpop.f32.mrf.mxu1 }
 0x20b   : > { %v6798_v9 = vadd.f32 %v1503_v15, %v1374_v14  ;;  %v6800_v43 = vadd.f32 %v1247_v54, %v1118_v8 }
 0x20d   : > { %9272 = vst [vmem:[#allocation101_spill] sm:$0xff] %v6798_v9 }
 0x20e   : > { %9273 = vst [vmem:[#allocation102_spill] sm:$0xff] %v6800_v43 }
 0x211   : > { %v1376_v22 = vpop.f32.mrf.mxu2  ;;  %v1121_v24 = vpop.f32.mrf.mxu0 }
 0x212   : > { %v1505_v34 = vpop.f32.mrf.mxu3  ;;  %v1250_v57 = vpop.f32.mrf.mxu1 }
 0x213   : > { %v6802_v26 = vadd.f32 %v1505_v34, %v1376_v22  ;;  %v6804_v0 = vadd.f32 %v1250_v57, %v1121_v24 }
 0x214   : > { %1556 = vmatmul.bf16.gmra.mxu0 %v6464_v38 }
 0x215   : > { %9274 = vst [vmem:[#allocation103_spill] sm:$0xff] %v6802_v26  ;;  %1685 = vmatmul.bf16.gmra.mxu1 %v6466_v39 }
 0x216   : > { %9275 = vst [vmem:[#allocation104_spill] sm:$0xff] %v6804_v0  ;;  %1814 = vmatmul.bf16.gmra.mxu2 %v6464_v38 }
 0x217   : > { %1943 = vmatmul.bf16.gmra.mxu3 %v6466_v39 }
 0x219   : > { %v1379_v20 = vpop.f32.mrf.mxu2  ;;  %v1123_v14 = vpop.f32.mrf.mxu0 }
 0x21a   : > { %v1508_v21 = vpop.f32.mrf.mxu3  ;;  %v1252_v8 = vpop.f32.mrf.mxu1 }
 0x21b   : > { %v6810_v15 = vadd.f32 %v1508_v21, %v1379_v20  ;;  %v6812_v54 = vadd.f32 %v1252_v8, %v1123_v14 }
 0x21d   : > { %9276 = vst [vmem:[#allocation105_spill] sm:$0xff] %v6810_v15 }
 0x21e   : > { %9277 = vst [vmem:[#allocation106_spill] sm:$0xff] %v6812_v54 }
 0x221   : > { %v1381_v22 = vpop.f32.mrf.mxu2  ;;  %v1126_v57 = vpop.f32.mrf.mxu0 }
 0x222   : > { %v1510_v34 = vpop.f32.mrf.mxu3  ;;  %v1255_v0 = vpop.f32.mrf.mxu1 }
 0x223   : > { %v6814_v24 = vadd.f32 %v1510_v34, %v1381_v22  ;;  %v6816_v26 = vadd.f32 %v1255_v0, %v1126_v57 }
 0x224   : > { %1561 = vmatmul.bf16.gmra.mxu0 %v6472_v45 }
 0x225   : > { %9278 = vst [vmem:[#allocation107_spill] sm:$0xff] %v6814_v24  ;;  %1690 = vmatmul.bf16.gmra.mxu1 %v6474_v46 }
 0x226   : > { %9279 = vst [vmem:[#allocation108_spill] sm:$0xff] %v6816_v26  ;;  %1819 = vmatmul.bf16.gmra.mxu2 %v6472_v45 }
 0x227   : > { %1948 = vmatmul.bf16.gmra.mxu3 %v6474_v46 }
 0x229   : > { %v1384_v38 = vpop.f32.mrf.mxu2  ;;  %v1128_v20 = vpop.f32.mrf.mxu0 }
 0x22a   : > { %v1513_v39 = vpop.f32.mrf.mxu3  ;;  %v1257_v14 = vpop.f32.mrf.mxu1 }
 0x22b   : > { %v6822_v21 = vadd.f32 %v1513_v39, %v1384_v38  ;;  %v6824_v8 = vadd.f32 %v1257_v14, %v1128_v20 }
 0x22d   : > { %9280 = vst [vmem:[#allocation109_spill] sm:$0xff] %v6822_v21 }
 0x22e   : > { %9281 = vst [vmem:[#allocation110_spill] sm:$0xff] %v6824_v8 }
 0x231   : > { %v1386_v22 = vpop.f32.mrf.mxu2  ;;  %v1131_v0 = vpop.f32.mrf.mxu0 }
 0x232   : > { %v1515_v34 = vpop.f32.mrf.mxu3  ;;  %v1260_v26 = vpop.f32.mrf.mxu1 }
 0x233   : > { %v6826_v57 = vadd.f32 %v1515_v34, %v1386_v22  ;;  %v6828_v24 = vadd.f32 %v1260_v26, %v1131_v0 }
 0x234   : > { %1566 = vmatmul.bf16.gmra.mxu0 %v6480_v52 }
 0x235   : > { %9282 = vst [vmem:[#allocation111_spill] sm:$0xff] %v6826_v57  ;;  %1695 = vmatmul.bf16.gmra.mxu1 %v6482_v53 }
 0x236   : > { %9283 = vst [vmem:[#allocation112_spill] sm:$0xff] %v6828_v24  ;;  %1824 = vmatmul.bf16.gmra.mxu2 %v6480_v52 }
 0x237   : > { %1953 = vmatmul.bf16.gmra.mxu3 %v6482_v53 }
 0x239   : > { %v1389_v45 = vpop.f32.mrf.mxu2  ;;  %v1133_v38 = vpop.f32.mrf.mxu0 }
 0x23a   : > { %v1518_v46 = vpop.f32.mrf.mxu3  ;;  %v1262_v20 = vpop.f32.mrf.mxu1 }
 0x23b   : > { %v6834_v39 = vadd.f32 %v1518_v46, %v1389_v45  ;;  %v6836_v14 = vadd.f32 %v1262_v20, %v1133_v38 }
 0x23d   : > { %9284 = vst [vmem:[#allocation113_spill] sm:$0xff] %v6834_v39 }
 0x23e   : > { %9285 = vst [vmem:[#allocation114_spill] sm:$0xff] %v6836_v14 }
 0x241   : > { %v1391_v22 = vpop.f32.mrf.mxu2  ;;  %v1532_v26 = vpop.f32.mrf.mxu0 }
 0x242   : > { %v1520_v34 = vpop.f32.mrf.mxu3  ;;  %v1661_v24 = vpop.f32.mrf.mxu1 }
 0x243   : > { %v6838_v0 = vadd.f32 %v1520_v34, %v1391_v22  ;;  %v6840_v57 = vadd.f32 %v1661_v24, %v1532_v26 }
 0x244   : > { %1571 = vmatmul.bf16.gmra.mxu0 %v6488_v10 }
 0x245   : > { %9286 = vst [vmem:[#allocation115_spill] sm:$0xff] %v6838_v0  ;;  %1700 = vmatmul.bf16.gmra.mxu1 %v6490_v12 }
 0x246   : > { %9287 = vst [vmem:[#allocation116_spill] sm:$0xff] %v6840_v57  ;;  %1829 = vmatmul.bf16.gmra.mxu2 %v6488_v10 }
 0x247   : > { %1958 = vmatmul.bf16.gmra.mxu3 %v6490_v12 }
 0x249   : > { %v1790_v52 = vpop.f32.mrf.mxu2  ;;  %v1534_v45 = vpop.f32.mrf.mxu0 }
 0x24a   : > { %v1919_v53 = vpop.f32.mrf.mxu3  ;;  %v1663_v38 = vpop.f32.mrf.mxu1 }
 0x24b   : > { %v6846_v46 = vadd.f32 %v1919_v53, %v1790_v52  ;;  %v6848_v20 = vadd.f32 %v1663_v38, %v1534_v45 }
 0x24d   : > { %9288 = vst [vmem:[#allocation117_spill] sm:$0xff] %v6846_v46 }
 0x24e   : > { %9289 = vst [vmem:[#allocation118_spill] sm:$0xff] %v6848_v20 }
 0x251   : > { %v1792_v22 = vpop.f32.mrf.mxu2  ;;  %v1537_v24 = vpop.f32.mrf.mxu0 }
 0x252   : > { %v1921_v34 = vpop.f32.mrf.mxu3  ;;  %v1666_v0 = vpop.f32.mrf.mxu1 }
 0x253   : > { %v6850_v26 = vadd.f32 %v1921_v34, %v1792_v22  ;;  %v6852_v14 = vadd.f32 %v1666_v0, %v1537_v24 }
 0x254   : > { %1576 = vmatmul.bf16.gmra.mxu0 %v6502_v30 }
 0x255   : > { %9290 = vst [vmem:[#allocation119_spill] sm:$0xff] %v6850_v26  ;;  %1705 = vmatmul.bf16.gmra.mxu1 %v6504_v33 }
 0x256   : > { %9291 = vst [vmem:[#allocation120_spill] sm:$0xff] %v6852_v14  ;;  %1834 = vmatmul.bf16.gmra.mxu2 %v6502_v30 }
 0x257   : > { %1963 = vmatmul.bf16.gmra.mxu3 %v6504_v33 }
 0x259   : > { %v1795_v10 = vpop.f32.mrf.mxu2  ;;  %v1539_v52 = vpop.f32.mrf.mxu0 }
 0x25a   : > { %v1924_v12 = vpop.f32.mrf.mxu3  ;;  %v1668_v45 = vpop.f32.mrf.mxu1 }
 0x25b   : > { %v6858_v53 = vadd.f32 %v1924_v12, %v1795_v10  ;;  %v6860_v38 = vadd.f32 %v1668_v45, %v1539_v52 }
 0x25d   : > { %9292 = vst [vmem:[#allocation121_spill] sm:$0xff] %v6858_v53 }
 0x25e   : > { %9293 = vst [vmem:[#allocation122_spill] sm:$0xff] %v6860_v38 }
 0x261   : > { %v1797_v22 = vpop.f32.mrf.mxu2  ;;  %v1542_v0 = vpop.f32.mrf.mxu0 }
 0x262   : > { %v1926_v34 = vpop.f32.mrf.mxu3  ;;  %v1671_v39 = vpop.f32.mrf.mxu1 }
 0x263   : > { %v6862_v24 = vadd.f32 %v1926_v34, %v1797_v22  ;;  %v6864_v8 = vadd.f32 %v1671_v39, %v1542_v0 }
 0x264   : > { %1581 = vmatmul.bf16.gmra.mxu0 %v6518_v58 }
 0x265   : > { %9294 = vst [vmem:[#allocation123_spill] sm:$0xff] %v6862_v24  ;;  %1710 = vmatmul.bf16.gmra.mxu1 %v6520_v61 }
 0x266   : > { %9295 = vst [vmem:[#allocation124_spill] sm:$0xff] %v6864_v8  ;;  %1839 = vmatmul.bf16.gmra.mxu2 %v6518_v58 }
 0x267   : > { %1968 = vmatmul.bf16.gmra.mxu3 %v6520_v61 }
 0x269   : > { %v1800_v30 = vpop.f32.mrf.mxu2  ;;  %v1544_v10 = vpop.f32.mrf.mxu0 }
 0x26a   : > { %v1929_v33 = vpop.f32.mrf.mxu3  ;;  %v1673_v52 = vpop.f32.mrf.mxu1 }
 0x26b   : > { %v6870_v12 = vadd.f32 %v1929_v33, %v1800_v30  ;;  %v6872_v45 = vadd.f32 %v1673_v52, %v1544_v10 }
 0x26d   : > { %9296 = vst [vmem:[#allocation125_spill] sm:$0xff] %v6870_v12 }
 0x26e   : > { %9297 = vst [vmem:[#allocation126_spill] sm:$0xff] %v6872_v45 }
 0x271   : > { %v1802_v22 = vpop.f32.mrf.mxu2  ;;  %v1547_v39 = vpop.f32.mrf.mxu0 }
 0x272   : > { %v1931_v34 = vpop.f32.mrf.mxu3  ;;  %v1676_v21 = vpop.f32.mrf.mxu1 }
 0x273   : > { %v6874_v0 = vadd.f32 %v1931_v34, %v1802_v22  ;;  %v6876_v54 = vadd.f32 %v1676_v21, %v1547_v39 }
 0x274   : > { %1586 = vmatmul.bf16.gmra.mxu0 %v6534_v41 }
 0x275   : > { %9298 = vst [vmem:[#allocation127_spill] sm:$0xff] %v6874_v0  ;;  %1715 = vmatmul.bf16.gmra.mxu1 %v6536_v50 }
 0x276   : > { %9299 = vst [vmem:[#allocation128_spill] sm:$0xff] %v6876_v54  ;;  %1844 = vmatmul.bf16.gmra.mxu2 %v6534_v41 }
 0x277   : > { %1973 = vmatmul.bf16.gmra.mxu3 %v6536_v50 }
 0x279   : > { %v1805_v58 = vpop.f32.mrf.mxu2  ;;  %v1549_v30 = vpop.f32.mrf.mxu0 }
 0x27a   : > { %v1934_v61 = vpop.f32.mrf.mxu3  ;;  %v1678_v10 = vpop.f32.mrf.mxu1 }
 0x27b   : > { %v6882_v33 = vadd.f32 %v1934_v61, %v1805_v58  ;;  %v6884_v52 = vadd.f32 %v1678_v10, %v1549_v30 }
 0x27d   : > { %9300 = vst [vmem:[#allocation129_spill] sm:$0xff] %v6882_v33 }
 0x27e   : > { %9301 = vst [vmem:[#allocation130_spill] sm:$0xff] %v6884_v52 }
 0x281   : > { %v1807_v22 = vpop.f32.mrf.mxu2  ;;  %v1552_v21 = vpop.f32.mrf.mxu0 }
 0x282   : > { %v1936_v34 = vpop.f32.mrf.mxu3  ;;  %v1681_v15 = vpop.f32.mrf.mxu1 }
 0x283   : > { %v6886_v39 = vadd.f32 %v1936_v34, %v1807_v22  ;;  %v6888_v43 = vadd.f32 %v1681_v15, %v1552_v21 }
 0x284   : > { %1591 = vmatmul.bf16.gmra.mxu0 %v6550_v13 }
 0x285   : > { %9302 = vst [vmem:[#allocation131_spill] sm:$0xff] %v6886_v39  ;;  %1720 = vmatmul.bf16.gmra.mxu1 %v6552_v25 }
 0x286   : > { %9303 = vst [vmem:[#allocation132_spill] sm:$0xff] %v6888_v43  ;;  %1849 = vmatmul.bf16.gmra.mxu2 %v6550_v13 }
 0x287   : > { %1978 = vmatmul.bf16.gmra.mxu3 %v6552_v25 }
 0x289   : > { %v1810_v41 = vpop.f32.mrf.mxu2  ;;  %v1554_v58 = vpop.f32.mrf.mxu0 }
 0x28a   : > { %v1939_v50 = vpop.f32.mrf.mxu3  ;;  %v1683_v30 = vpop.f32.mrf.mxu1 }
 0x28b   : > { %v6894_v61 = vadd.f32 %v1939_v50, %v1810_v41  ;;  %v6896_v10 = vadd.f32 %v1683_v30, %v1554_v58 }
 0x28d   : > { %9304 = vst [vmem:[#allocation133_spill] sm:$0xff] %v6896_v10 }
 0x291   : > { %v1812_v22 = vpop.f32.mrf.mxu2  ;;  %v1557_v15 = vpop.f32.mrf.mxu0 }
 0x292   : > { %v1941_v34 = vpop.f32.mrf.mxu3  ;;  %v1686_v9 = vpop.f32.mrf.mxu1 }
 0x293   : > { %v6898_v21 = vadd.f32 %v1941_v34, %v1812_v22  ;;  %v6900_v23 = vadd.f32 %v1686_v9, %v1557_v15 }
 0x294   : > { %1596 = vmatmul.bf16.gmra.mxu0 %v6566_v63 }
 0x295   : > { %9305 = vst [vmem:[#allocation134_spill] sm:$0xff] %v6900_v23  ;;  %1725 = vmatmul.bf16.gmra.mxu1 %v6568_v5 }
 0x296   : > { %1854 = vmatmul.bf16.gmra.mxu2 %v6566_v63 }
 0x297   : > { %1983 = vmatmul.bf16.gmra.mxu3 %v6568_v5 }
 0x299   : > { %v1815_v13 = vpop.f32.mrf.mxu2  ;;  %v1559_v41 = vpop.f32.mrf.mxu0 }
 0x29a   : > { %v1944_v25 = vpop.f32.mrf.mxu3  ;;  %v1688_v58 = vpop.f32.mrf.mxu1 }
 0x29b   : > { %v6906_v50 = vadd.f32 %v1944_v25, %v1815_v13  ;;  %v6908_v30 = vadd.f32 %v1688_v58, %v1559_v41 }
 0x29d   : > { %9306 = vst [vmem:[#allocation135_spill] sm:$0xff] %v6908_v30 }
 0x2a1   : > { %v1817_v22 = vpop.f32.mrf.mxu2  ;;  %v1562_v9 = vpop.f32.mrf.mxu0 }
 0x2a2   : > { %v1946_v34 = vpop.f32.mrf.mxu3  ;;  %v1691_v55 = vpop.f32.mrf.mxu1 }
 0x2a3   : > { %v6910_v15 = vadd.f32 %v1946_v34, %v1817_v22  ;;  %v6912_v42 = vadd.f32 %v1691_v55, %v1562_v9 }
 0x2a4   : > { %1601 = vmatmul.bf16.gmra.mxu0 %v6582_v29 }
 0x2a5   : > { %9307 = vst [vmem:[#allocation136_spill] sm:$0xff] %v6912_v42  ;;  %1730 = vmatmul.bf16.gmra.mxu1 %v6584_v37 }
 0x2a6   : > { %1859 = vmatmul.bf16.gmra.mxu2 %v6582_v29 }
 0x2a7   : > { %1988 = vmatmul.bf16.gmra.mxu3 %v6584_v37 }
 0x2a9   : > { %v1820_v63 = vpop.f32.mrf.mxu2  ;;  %v1564_v13 = vpop.f32.mrf.mxu0 }
 0x2aa   : > { %v1949_v5 = vpop.f32.mrf.mxu3  ;;  %v1693_v41 = vpop.f32.mrf.mxu1 }
 0x2ab   : > { %v6918_v25 = vadd.f32 %v1949_v5, %v1820_v63  ;;  %v6920_v58 = vadd.f32 %v1693_v41, %v1564_v13 }
 0x2ad   : > { %9308 = vst [vmem:[#allocation137_spill] sm:$0xff] %v6920_v58 }
 0x2b1   : > { %v1822_v22 = vpop.f32.mrf.mxu2  ;;  %v1567_v55 = vpop.f32.mrf.mxu0 }
 0x2b2   : > { %v1951_v34 = vpop.f32.mrf.mxu3  ;;  %v1696_v47 = vpop.f32.mrf.mxu1 }
 0x2b3   : > { %v6922_v9 = vadd.f32 %v1951_v34, %v1822_v22  ;;  %v6924_v48 = vadd.f32 %v1696_v47, %v1567_v55 }
 0x2b4   : > { %1606 = vmatmul.bf16.gmra.mxu0 %v6598_v31 }
 0x2b5   : > { %9309 = vst [vmem:[#allocation138_spill] sm:$0xff] %v6922_v9  ;;  %1735 = vmatmul.bf16.gmra.mxu1 %v6600_v59 }
 0x2b6   : > { %9310 = vst [vmem:[#allocation139_spill] sm:$0xff] %v6924_v48  ;;  %1864 = vmatmul.bf16.gmra.mxu2 %v6598_v31 }
 0x2b7   : > { %1993 = vmatmul.bf16.gmra.mxu3 %v6600_v59 }
 0x2b9   : > { %v1825_v29 = vpop.f32.mrf.mxu2  ;;  %v1569_v63 = vpop.f32.mrf.mxu0 }
 0x2ba   : > { %v1954_v37 = vpop.f32.mrf.mxu3  ;;  %v1698_v13 = vpop.f32.mrf.mxu1 }
 0x2bb   : > { %v6930_v5 = vadd.f32 %v1954_v37, %v1825_v29  ;;  %v6932_v41 = vadd.f32 %v1698_v13, %v1569_v63 }
 0x2bd   : > { %9311 = vst [vmem:[#allocation140_spill] sm:$0xff] %v6930_v5 }
 0x2be   : > { %9312 = vst [vmem:[#allocation141_spill] sm:$0xff] %v6932_v41 }
 0x2c1   : > { %v1827_v22 = vpop.f32.mrf.mxu2  ;;  %v1572_v47 = vpop.f32.mrf.mxu0 }
 0x2c2   : > { %v1956_v34 = vpop.f32.mrf.mxu3  ;;  %v1701_v62 = vpop.f32.mrf.mxu1 }
 0x2c3   : > { %v6934_v55 = vadd.f32 %v1956_v34, %v1827_v22  ;;  %v6936_v1 = vadd.f32 %v1701_v62, %v1572_v47 }
 0x2c4   : > { %1611 = vmatmul.bf16.gmra.mxu0 %v6614_v49 }
 0x2c5   : > { %9313 = vst [vmem:[#allocation142_spill] sm:$0xff] %v6934_v55  ;;  %1740 = vmatmul.bf16.gmra.mxu1 %v6616_v2 }
 0x2c6   : > { %9314 = vst [vmem:[#allocation143_spill] sm:$0xff] %v6936_v1  ;;  %1869 = vmatmul.bf16.gmra.mxu2 %v6614_v49 }
 0x2c7   : > { %1998 = vmatmul.bf16.gmra.mxu3 %v6616_v2 }
 0x2c9   : > { %v1830_v59 = vpop.f32.mrf.mxu2  ;;  %v1574_v29 = vpop.f32.mrf.mxu0 }
 0x2ca   : > { %v1959_v31 = vpop.f32.mrf.mxu3  ;;  %v1703_v63 = vpop.f32.mrf.mxu1 }
 0x2cb   : > { %v6942_v37 = vadd.f32 %v1959_v31, %v1830_v59  ;;  %v6944_v13 = vadd.f32 %v1703_v63, %v1574_v29 }
 0x2cd   : > { %9315 = vst [vmem:[#allocation144_spill] sm:$0xff] %v6942_v37 }
 0x2ce   : > { %9316 = vst [vmem:[#allocation145_spill] sm:$0xff] %v6944_v13 }
 0x2d1   : > { %v1832_v22 = vpop.f32.mrf.mxu2  ;;  %v1577_v62 = vpop.f32.mrf.mxu0 }
 0x2d2   : > { %v1961_v34 = vpop.f32.mrf.mxu3  ;;  %v1706_v17 = vpop.f32.mrf.mxu1 }
 0x2d3   : > { %v6946_v47 = vadd.f32 %v1961_v34, %v1832_v22  ;;  %v6948_v16 = vadd.f32 %v1706_v17, %v1577_v62 }
 0x2d4   : > { %1616 = vmatmul.bf16.gmra.mxu0 %v6630_v4 }
 0x2d5   : > { %9317 = vst [vmem:[#allocation146_spill] sm:$0xff] %v6946_v47  ;;  %1745 = vmatmul.bf16.gmra.mxu1 %v6632_v60 }
 0x2d6   : > { %9318 = vst [vmem:[#allocation147_spill] sm:$0xff] %v6948_v16  ;;  %1874 = vmatmul.bf16.gmra.mxu2 %v6630_v4 }
 0x2d7   : > { %2003 = vmatmul.bf16.gmra.mxu3 %v6632_v60 }
 0x2d9   : > { %v1835_v2 = vpop.f32.mrf.mxu2  ;;  %v1579_v59 = vpop.f32.mrf.mxu0 }
 0x2da   : > { %v1964_v49 = vpop.f32.mrf.mxu3  ;;  %v1708_v29 = vpop.f32.mrf.mxu1 }
 0x2db   : > { %v6954_v31 = vadd.f32 %v1964_v49, %v1835_v2  ;;  %v6956_v63 = vadd.f32 %v1708_v29, %v1579_v59 }
 0x2dd   : > { %9319 = vst [vmem:[#allocation148_spill] sm:$0xff] %v6954_v31 }
 0x2de   : > { %9320 = vst [vmem:[#allocation149_spill] sm:$0xff] %v6956_v63 }
 0x2e1   : > { %v1837_v22 = vpop.f32.mrf.mxu2  ;;  %v1582_v17 = vpop.f32.mrf.mxu0 }
 0x2e2   : > { %v1966_v34 = vpop.f32.mrf.mxu3  ;;  %v1711_v36 = vpop.f32.mrf.mxu1 }
 0x2e3   : > { %v6958_v62 = vadd.f32 %v1966_v34, %v1837_v22  ;;  %v6960_v51 = vadd.f32 %v1711_v36, %v1582_v17 }
 0x2e4   : > { %1621 = vmatmul.bf16.gmra.mxu0 %v6646_v18 }
 0x2e5   : > { %9321 = vst [vmem:[#allocation150_spill] sm:$0xff] %v6958_v62  ;;  %1750 = vmatmul.bf16.gmra.mxu1 %v6648_v44 }
 0x2e6   : > { %9322 = vst [vmem:[#allocation151_spill] sm:$0xff] %v6960_v51  ;;  %1879 = vmatmul.bf16.gmra.mxu2 %v6646_v18 }
 0x2e7   : > { %2008 = vmatmul.bf16.gmra.mxu3 %v6648_v44 }
 0x2e9   : > { %v1840_v4 = vpop.f32.mrf.mxu2  ;;  %v1584_v2 = vpop.f32.mrf.mxu0 }
 0x2ea   : > { %v1969_v60 = vpop.f32.mrf.mxu3  ;;  %v1713_v59 = vpop.f32.mrf.mxu1 }
 0x2eb   : > { %v6966_v49 = vadd.f32 %v1969_v60, %v1840_v4  ;;  %v6968_v29 = vadd.f32 %v1713_v59, %v1584_v2 }
 0x2ed   : > { %9323 = vst [vmem:[#allocation152_spill] sm:$0xff] %v6966_v49 }
 0x2ee   : > { %9324 = vst [vmem:[#allocation153_spill] sm:$0xff] %v6968_v29 }
 0x2f1   : > { %v1842_v22 = vpop.f32.mrf.mxu2  ;;  %v1587_v36 = vpop.f32.mrf.mxu0 }
 0x2f2   : > { %v1971_v34 = vpop.f32.mrf.mxu3  ;;  %v1716_v19 = vpop.f32.mrf.mxu1 }
 0x2f3   : > { %v6970_v17 = vadd.f32 %v1971_v34, %v1842_v22  ;;  %v6972_v51 = vadd.f32 %v1716_v19, %v1587_v36 }
 0x2f4   : > { %1626 = vmatmul.bf16.gmra.mxu0 %v6662_v27 }
 0x2f5   : > { %9325 = vst [vmem:[#allocation154_spill] sm:$0xff] %v6970_v17  ;;  %1755 = vmatmul.bf16.gmra.mxu1 %v6664_v11 }
 0x2f6   : > { %9326 = vst [vmem:[#allocation155_spill] sm:$0xff] %v6972_v51  ;;  %1884 = vmatmul.bf16.gmra.mxu2 %v6662_v27 }
 0x2f7   : > { %2013 = vmatmul.bf16.gmra.mxu3 %v6664_v11 }
 0x2f9   : > { %v1845_v44 = vpop.f32.mrf.mxu2  ;;  %v1589_v4 = vpop.f32.mrf.mxu0 }
 0x2fa   : > { %v1974_v18 = vpop.f32.mrf.mxu3  ;;  %v1718_v2 = vpop.f32.mrf.mxu1 }
 0x2fb   : > { %v6978_v60 = vadd.f32 %v1974_v18, %v1845_v44  ;;  %v6980_v59 = vadd.f32 %v1718_v2, %v1589_v4 }
 0x2fd   : > { %9327 = vst [vmem:[#allocation156_spill] sm:$0xff] %v6978_v60 }
 0x2fe   : > { %9328 = vst [vmem:[#allocation157_spill] sm:$0xff] %v6980_v59 }
 0x301   : > { %v1847_v22 = vpop.f32.mrf.mxu2  ;;  %v1592_v19 = vpop.f32.mrf.mxu0 }
 0x302   : > { %v1976_v34 = vpop.f32.mrf.mxu3  ;;  %v1721_v51 = vpop.f32.mrf.mxu1 }
 0x303   : > { %v6982_v36 = vadd.f32 %v1976_v34, %v1847_v22  ;;  %v6984_v17 = vadd.f32 %v1721_v51, %v1592_v19 }
 0x304   : > { %1631 = vmatmul.bf16.gmra.mxu0 %v6678_v28 }
 0x305   : > { %9329 = vst [vmem:[#allocation158_spill] sm:$0xff] %v6982_v36  ;;  %1760 = vmatmul.bf16.gmra.mxu1 %v6680_v32 }
 0x306   : > { %9330 = vst [vmem:[#allocation159_spill] sm:$0xff] %v6984_v17  ;;  %1889 = vmatmul.bf16.gmra.mxu2 %v6678_v28 }
 0x307   : > { %2018 = vmatmul.bf16.gmra.mxu3 %v6680_v32 }
 0x309   : > { %v1850_v11 = vpop.f32.mrf.mxu2  ;;  %v1594_v44 = vpop.f32.mrf.mxu0 }
 0x30a   : > { %v1979_v27 = vpop.f32.mrf.mxu3  ;;  %v1723_v4 = vpop.f32.mrf.mxu1 }
 0x30b   : > { %v6990_v18 = vadd.f32 %v1979_v27, %v1850_v11  ;;  %v6992_v2 = vadd.f32 %v1723_v4, %v1594_v44 }
 0x30d   : > { %9331 = vst [vmem:[#allocation160_spill] sm:$0xff] %v6990_v18 }
 0x30e   : > { %9332 = vst [vmem:[#allocation161_spill] sm:$0xff] %v6992_v2 }
 0x311   : > { %v1852_v22 = vpop.f32.mrf.mxu2  ;;  %v1597_v51 = vpop.f32.mrf.mxu0 }
 0x312   : > { %v1981_v34 = vpop.f32.mrf.mxu3  ;;  %v1726_v17 = vpop.f32.mrf.mxu1 }
 0x313   : > { %v6994_v19 = vadd.f32 %v1981_v34, %v1852_v22  ;;  %v6996_v36 = vadd.f32 %v1726_v17, %v1597_v51 }
 0x314   : > { %1636 = vmatmul.bf16.gmra.mxu0 %v6694_v6 }
 0x315   : > { %9333 = vst [vmem:[#allocation162_spill] sm:$0xff] %v6994_v19  ;;  %1765 = vmatmul.bf16.gmra.mxu1 %v6696_v56 }
 0x316   : > { %9334 = vst [vmem:[#allocation163_spill] sm:$0xff] %v6996_v36  ;;  %1894 = vmatmul.bf16.gmra.mxu2 %v6694_v6 }
 0x317   : > { %2023 = vmatmul.bf16.gmra.mxu3 %v6696_v56 }
 0x319   : > { %v1855_v28 = vpop.f32.mrf.mxu2  ;;  %v1599_v11 = vpop.f32.mrf.mxu0 }
 0x31a   : > { %v1984_v32 = vpop.f32.mrf.mxu3  ;;  %v1728_v44 = vpop.f32.mrf.mxu1 }
 0x31b   : > { %v7002_v27 = vadd.f32 %v1984_v32, %v1855_v28  ;;  %v7004_v4 = vadd.f32 %v1728_v44, %v1599_v11 }
 0x31d   : > { %9335 = vst [vmem:[#allocation164_spill] sm:$0xff] %v7002_v27 }
 0x31e   : > { %9336 = vst [vmem:[#allocation165_spill] sm:$0xff] %v7004_v4 }
 0x321   : > { %v1857_v22 = vpop.f32.mrf.mxu2  ;;  %v1602_v17 = vpop.f32.mrf.mxu0 }
 0x322   : > { %v1986_v34 = vpop.f32.mrf.mxu3  ;;  %v1731_v36 = vpop.f32.mrf.mxu1 }
 0x323   : > { %v7006_v51 = vadd.f32 %v1986_v34, %v1857_v22  ;;  %v7008_v19 = vadd.f32 %v1731_v36, %v1602_v17 }
 0x324   : > { %1641 = vmatmul.bf16.gmra.mxu0 %v6710_v40 }
 0x325   : > { %9337 = vst [vmem:[#allocation166_spill] sm:$0xff] %v7006_v51  ;;  %1770 = vmatmul.bf16.gmra.mxu1 %v6712_v3 }
 0x326   : > { %9338 = vst [vmem:[#allocation167_spill] sm:$0xff] %v7008_v19  ;;  %1899 = vmatmul.bf16.gmra.mxu2 %v6710_v40 }
 0x327   : > { %2028 = vmatmul.bf16.gmra.mxu3 %v6712_v3 }
 0x329   : > { %v1860_v56 = vpop.f32.mrf.mxu2  ;;  %v1604_v28 = vpop.f32.mrf.mxu0 }
 0x32a   : > { %v1989_v6 = vpop.f32.mrf.mxu3  ;;  %v1733_v11 = vpop.f32.mrf.mxu1 }
 0x32b   : > { %v7014_v32 = vadd.f32 %v1989_v6, %v1860_v56  ;;  %v7016_v44 = vadd.f32 %v1733_v11, %v1604_v28 }
 0x32d   : > { %9339 = vst [vmem:[#allocation168_spill] sm:$0xff] %v7014_v32 }
 0x32e   : > { %9340 = vst [vmem:[#allocation169_spill] sm:$0xff] %v7016_v44 }
 0x331   : > { %v1862_v22 = vpop.f32.mrf.mxu2  ;;  %v1607_v36 = vpop.f32.mrf.mxu0 }
 0x332   : > { %v1991_v34 = vpop.f32.mrf.mxu3  ;;  %v1736_v19 = vpop.f32.mrf.mxu1 }
 0x333   : > { %v7018_v17 = vadd.f32 %v1991_v34, %v1862_v22  ;;  %v7020_v51 = vadd.f32 %v1736_v19, %v1607_v36 }
 0x334   : > { %1646 = vmatmul.bf16.gmra.mxu0 %v6726_v35 }
 0x335   : > { %9341 = vst [vmem:[#allocation170_spill] sm:$0xff] %v7018_v17  ;;  %1775 = vmatmul.bf16.gmra.mxu1 %v6728_v7 }
 0x336   : > { %9342 = vst [vmem:[#allocation171_spill] sm:$0xff] %v7020_v51  ;;  %1904 = vmatmul.bf16.gmra.mxu2 %v6726_v35 }
 0x337   : > { %2033 = vmatmul.bf16.gmra.mxu3 %v6728_v7 }
 0x339   : > { %v1865_v3 = vpop.f32.mrf.mxu2  ;;  %v1609_v56 = vpop.f32.mrf.mxu0 }
 0x33a   : > { %v1994_v40 = vpop.f32.mrf.mxu3  ;;  %v1738_v28 = vpop.f32.mrf.mxu1 }
 0x33b   : > { %v7026_v6 = vadd.f32 %v1994_v40, %v1865_v3  ;;  %v7028_v11 = vadd.f32 %v1738_v28, %v1609_v56 }
 0x33d   : > { %9343 = vst [vmem:[#allocation172_spill] sm:$0xff] %v7026_v6 }
 0x33e   : > { %9344 = vst [vmem:[#allocation173_spill] sm:$0xff] %v7028_v11 }
 0x341   : > { %v1867_v22 = vpop.f32.mrf.mxu2  ;;  %v1612_v19 = vpop.f32.mrf.mxu0 }
 0x342   : > { %v1996_v34 = vpop.f32.mrf.mxu3  ;;  %v1741_v51 = vpop.f32.mrf.mxu1 }
 0x343   : > { %v7030_v36 = vadd.f32 %v1996_v34, %v1867_v22  ;;  %v7032_v17 = vadd.f32 %v1741_v51, %v1612_v19 }
 0x345   : > { %9345 = vst [vmem:[#allocation174_spill] sm:$0xff] %v7030_v36 }
 0x346   : > { %9346 = vst [vmem:[#allocation175_spill] sm:$0xff] %v7032_v17 }
 0x349   : > { %v1870_v44 = vpop.f32.mrf.mxu2  ;;  %v1614_v32 = vpop.f32.mrf.mxu0 }
 0x34a   : > { %v1999_v35 = vpop.f32.mrf.mxu3  ;;  %v1743_v4 = vpop.f32.mrf.mxu1 }
 0x34b   : > { %v7034_v7 = vadd.f32 %v1999_v35, %v1870_v44  ;;  %v7036_v27 = vadd.f32 %v1743_v4, %v1614_v32 }
 0x34d   : > { %9347 = vst [vmem:[#allocation176_spill] sm:$0xff] %v7034_v7 }
 0x34e   : > { %9348 = vst [vmem:[#allocation177_spill] sm:$0xff] %v7036_v27 }
 0x351   : > { %v1872_v3 = vpop.f32.mrf.mxu2  ;;  %v1617_v56 = vpop.f32.mrf.mxu0 }
 0x352   : > { %v2001_v40 = vpop.f32.mrf.mxu3  ;;  %v1746_v11 = vpop.f32.mrf.mxu1 }
 0x353   : > { %v7038_v28 = vadd.f32 %v2001_v40, %v1872_v3  ;;  %v7040_v6 = vadd.f32 %v1746_v11, %v1617_v56 }
 0x355   : > { %9349 = vst [vmem:[#allocation178_spill] sm:$0xff] %v7038_v28 }
 0x356   : > { %9350 = vst [vmem:[#allocation179_spill] sm:$0xff] %v7040_v6 }
 0x359   : > { %v1875_v22 = vpop.f32.mrf.mxu2  ;;  %v1619_v51 = vpop.f32.mrf.mxu0 }
 0x35a   : > { %v2004_v34 = vpop.f32.mrf.mxu3  ;;  %v1748_v17 = vpop.f32.mrf.mxu1 }
 0x35b   : > { %v7042_v19 = vadd.f32 %v2004_v34, %v1875_v22  ;;  %v7044_v36 = vadd.f32 %v1748_v17, %v1619_v51 }
 0x35d   : > { %9351 = vst [vmem:[#allocation180_spill] sm:$0xff] %v7042_v19 }
 0x35e   : > { %9352 = vst [vmem:[#allocation181_spill] sm:$0xff] %v7044_v36 }
 0x361   : > { %v1877_v44 = vpop.f32.mrf.mxu2  ;;  %v1622_v4 = vpop.f32.mrf.mxu0 }
 0x362   : > { %v2006_v35 = vpop.f32.mrf.mxu3  ;;  %v1751_v27 = vpop.f32.mrf.mxu1 }
 0x363   : > { %v7046_v32 = vadd.f32 %v2006_v35, %v1877_v44  ;;  %v7048_v7 = vadd.f32 %v1751_v27, %v1622_v4 }
 0x365   : > { %9353 = vst [vmem:[#allocation182_spill] sm:$0xff] %v7046_v32 }
 0x366   : > { %9354 = vst [vmem:[#allocation183_spill] sm:$0xff] %v7048_v7 }
 0x369   : > { %v1880_v3 = vpop.f32.mrf.mxu2  ;;  %v1624_v11 = vpop.f32.mrf.mxu0 }
 0x36a   : > { %v2009_v40 = vpop.f32.mrf.mxu3  ;;  %v1753_v6 = vpop.f32.mrf.mxu1 }
 0x36b   : > { %v7050_v56 = vadd.f32 %v2009_v40, %v1880_v3  ;;  %v7052_v28 = vadd.f32 %v1753_v6, %v1624_v11 }
 0x36d   : > { %9355 = vst [vmem:[#allocation184_spill] sm:$0xff] %v7050_v56 }
 0x36e   : > { %9356 = vst [vmem:[#allocation185_spill] sm:$0xff] %v7052_v28 }
 0x371   : > { %v1882_v22 = vpop.f32.mrf.mxu2  ;;  %v1627_v17 = vpop.f32.mrf.mxu0 }
 0x372   : > { %v2011_v34 = vpop.f32.mrf.mxu3  ;;  %v1756_v36 = vpop.f32.mrf.mxu1 }
 0x373   : > { %v7054_v51 = vadd.f32 %v2011_v34, %v1882_v22  ;;  %v7056_v19 = vadd.f32 %v1756_v36, %v1627_v17 }
 0x375   : > { %9357 = vst [vmem:[#allocation186_spill] sm:$0xff] %v7054_v51 }
 0x376   : > { %9358 = vst [vmem:[#allocation187_spill] sm:$0xff] %v7056_v19 }
 0x379   : > { %v1885_v44 = vpop.f32.mrf.mxu2  ;;  %v1629_v27 = vpop.f32.mrf.mxu0 }
 0x37a   : > { %v2014_v35 = vpop.f32.mrf.mxu3  ;;  %v1758_v7 = vpop.f32.mrf.mxu1 }
 0x37b   : > { %v7058_v4 = vadd.f32 %v2014_v35, %v1885_v44  ;;  %v7060_v32 = vadd.f32 %v1758_v7, %v1629_v27 }
 0x37d   : > { %9359 = vst [vmem:[#allocation188_spill] sm:$0xff] %v7058_v4 }
 0x37e   : > { %9360 = vst [vmem:[#allocation189_spill] sm:$0xff] %v7060_v32 }
 0x381   : > { %v1887_v3 = vpop.f32.mrf.mxu2  ;;  %v1632_v6 = vpop.f32.mrf.mxu0 }
 0x382   : > { %v2016_v40 = vpop.f32.mrf.mxu3  ;;  %v1761_v28 = vpop.f32.mrf.mxu1 }
 0x383   : > { %v7062_v11 = vadd.f32 %v2016_v40, %v1887_v3  ;;  %v7064_v56 = vadd.f32 %v1761_v28, %v1632_v6 }
 0x385   : > { %9361 = vst [vmem:[#allocation190_spill] sm:$0xff] %v7062_v11 }
 0x386   : > { %9362 = vst [vmem:[#allocation191_spill] sm:$0xff] %v7064_v56 }
 0x389   : > { %v1890_v22 = vpop.f32.mrf.mxu2  ;;  %v1634_v36 = vpop.f32.mrf.mxu0 }
 0x38a   : > { %v2019_v34 = vpop.f32.mrf.mxu3  ;;  %v1763_v19 = vpop.f32.mrf.mxu1 }
 0x38b   : > { %v7066_v17 = vadd.f32 %v2019_v34, %v1890_v22  ;;  %v7068_v51 = vadd.f32 %v1763_v19, %v1634_v36 }
 0x38d   : > { %9363 = vst [vmem:[#allocation192_spill] sm:$0xff] %v7066_v17 }
 0x38e   : > { %9364 = vst [vmem:[#allocation193_spill] sm:$0xff] %v7068_v51 }
 0x391   : > { %v1892_v44 = vpop.f32.mrf.mxu2  ;;  %v1637_v7 = vpop.f32.mrf.mxu0 }
 0x392   : > { %v2021_v35 = vpop.f32.mrf.mxu3  ;;  %v1766_v32 = vpop.f32.mrf.mxu1 }
 0x393   : > { %v7070_v27 = vadd.f32 %v2021_v35, %v1892_v44  ;;  %v7072_v4 = vadd.f32 %v1766_v32, %v1637_v7 }
 0x395   : > { %9365 = vst [vmem:[#allocation194_spill] sm:$0xff] %v7070_v27 }
 0x396   : > { %9366 = vst [vmem:[#allocation195_spill] sm:$0xff] %v7072_v4 }
 0x399   : > { %v1895_v3 = vpop.f32.mrf.mxu2  ;;  %v1639_v28 = vpop.f32.mrf.mxu0 }
 0x39a   : > { %v2024_v40 = vpop.f32.mrf.mxu3  ;;  %v1768_v56 = vpop.f32.mrf.mxu1 }
 0x39b   : > { %v7074_v6 = vadd.f32 %v2024_v40, %v1895_v3  ;;  %v7076_v11 = vadd.f32 %v1768_v56, %v1639_v28 }
 0x39d   : > { %9367 = vst [vmem:[#allocation196_spill] sm:$0xff] %v7074_v6 }
 0x39e   : > { %9368 = vst [vmem:[#allocation197_spill] sm:$0xff] %v7076_v11 }
 0x3a1   : > { %v1897_v22 = vpop.f32.mrf.mxu2  ;;  %v1642_v19 = vpop.f32.mrf.mxu0 }
 0x3a2   : > { %v2026_v34 = vpop.f32.mrf.mxu3  ;;  %v1771_v51 = vpop.f32.mrf.mxu1 }
 0x3a3   : > { %v7078_v36 = vadd.f32 %v2026_v34, %v1897_v22  ;;  %v7080_v17 = vadd.f32 %v1771_v51, %v1642_v19 }
 0x3a5   : > { %9369 = vst [vmem:[#allocation198_spill] sm:$0xff] %v7078_v36 }
 0x3a6   : > { %9370 = vst [vmem:[#allocation199_spill] sm:$0xff] %v7080_v17 }
 0x3a9   : > { %v1900_v44 = vpop.f32.mrf.mxu2  ;;  %v1644_v32 = vpop.f32.mrf.mxu0 }
 0x3aa   : > { %v2029_v35 = vpop.f32.mrf.mxu3  ;;  %v1773_v4 = vpop.f32.mrf.mxu1 }
 0x3ab   : > { %v7082_v7 = vadd.f32 %v2029_v35, %v1900_v44  ;;  %v7084_v27 = vadd.f32 %v1773_v4, %v1644_v32 }
 0x3ad   : > { %9371 = vst [vmem:[#allocation200_spill] sm:$0xff] %v7082_v7 }
 0x3ae   : > { %9372 = vst [vmem:[#allocation201_spill] sm:$0xff] %v7084_v27 }
 0x3b1   : > { %v1902_v3 = vpop.f32.mrf.mxu2  ;;  %v1647_v56 = vpop.f32.mrf.mxu0 }
 0x3b2   : > { %v2031_v40 = vpop.f32.mrf.mxu3  ;;  %v1776_v11 = vpop.f32.mrf.mxu1 }
 0x3b3   : > { %v7086_v28 = vadd.f32 %v2031_v40, %v1902_v3  ;;  %v7088_v6 = vadd.f32 %v1776_v11, %v1647_v56 }
 0x3b5   : > { %9373 = vst [vmem:[#allocation202_spill] sm:$0xff] %v7086_v28 }
 0x3b6   : > { %9374 = vst [vmem:[#allocation203_spill] sm:$0xff] %v7088_v6 }
 0x3b9   : > { %v1905_v22 = vpop.f32.mrf.mxu2  ;;  %v1649_v51 = vpop.f32.mrf.mxu0 }
 0x3ba   : > { %v2034_v34 = vpop.f32.mrf.mxu3  ;;  %v1778_v17 = vpop.f32.mrf.mxu1 }
 0x3bb   : > { %v7090_v19 = vadd.f32 %v2034_v34, %v1905_v22  ;;  %v7092_v36 = vadd.f32 %v1778_v17, %v1649_v51 }
 0x3bd   : > { %9375 = vst [vmem:[#allocation204_spill] sm:$0xff] %v7090_v19 }
 0x3be   : > { %9376 = vst [vmem:[#allocation205_spill] sm:$0xff] %v7092_v36 }
 0x3c1   : > { %v1907_v44 = vpop.f32.mrf.mxu2  ;;  %2042 = sbr.rel (%p5542_p7) target bundleno = 1179 (0x49b), region = 68 }
 0x3c2   : > { %v2036_v35 = vpop.f32.mrf.mxu3 }
 0x3c3   : > { %v7094_v4 = vadd.f32 %v2036_v35, %v1907_v44 }
 0x3c5   : > { %9377 = vst [vmem:[#allocation206_spill] sm:$0xff] %v7094_v4 }
 0x3c6   : > { %v2047_v32 = vlaneseq  ;;  %v9378_v3 = vld [vmem:[#allocation20_spill] sm:$0xff]  ;;  %v9379_v40 = vld [vmem:[#allocation22_spill] sm:$0xff]  ;;  %v9380_v56 = vld [vmem:[#allocation21_spill] sm:$0xff]  ;;  %v2160_v22 = vadd.f32 %v6848_v20, %v6840_v57  ;;  %v2213_v17 = vadd.f32 %v6850_v26, %v6846_v46  ;;  %v9382_v34 = vmov 0 }
 0x3c7   : > { %v2054_v11 = vadd.f32 %v9379_v40, %v9378_v3  ;;  %v9381_v6 = vld [vmem:[#allocation23_spill] sm:$0xff]  ;;  %v9385_v51 = vld [vmem:[#allocation24_spill] sm:$0xff]  ;;  %v9386_v35 = vld [vmem:[#allocation25_spill] sm:$0xff]  ;;  %v6306_v36 = vmov 0.0   ;;  %vm2273_vm1 = vcmask 1040384   ;;  %vm2275_vm2 = vcmask 1042434  }
 0x3c8   : > { %v2107_v28 = vadd.f32 %v9381_v6, %v9380_v56  ;;  %vm7105_vm0 = vcmp.lt.s32.totalorder %v2047_v32, 512  ;;  %v2161_v19 = vadd.f32 %v2160_v22, %v6852_v14  ;;  %v2214_v27 = vadd.f32 %v2213_v17, %v6858_v53  ;;  %v9387_v7 = vld [vmem:[#allocation26_spill] sm:$0xff]  ;;  %v9388_v26 = vld [vmem:[#allocation27_spill] sm:$0xff] }
 0x3c9   : > { %v9383_v34 = vsel %vm7105_vm0, 4294967295, %v9382_v34  ;;  %v2055_v44 = vadd.f32 %v2054_v11, %v9385_v51  ;;  %2051 = vst.msk [vmem:[#allocation2] sm:$0xf] %vm7105_vm0, %v6306_v36  ;;  %v9390_v51 = vld [vmem:[#allocation29_spill] sm:$0xff]  ;;  %v9391_v17 = vld [vmem:[#allocation30_spill] sm:$0xff]  ;;  %vm2277_vm3 = vcmask 1041408  }
 0x3ca   : > { %9384 = vst [vmem:[#allocation207_spill] sm:$0xff] %v9383_v34  ;;  %v2108_v4 = vadd.f32 %v2107_v28, %v9386_v35  ;;  %v2162_v6 = vadd.f32 %v2161_v19, %v6860_v38  ;;  %v2215_v11 = vadd.f32 %v2214_v27, %v6862_v24  ;;  %v9389_v28 = vld [vmem:[#allocation28_spill] sm:$0xff]  ;;  %v9392_v34 = vld [vmem:[#allocation31_spill] sm:$0xff]  ;;  %v9394_v38 = vld [vmem:[#allocation33_spill] sm:$0xff] }
 0x3cb   : > { %2052 = vst.msk [vmem:[#allocation3] sm:$0xf] %vm7105_vm0, %v6306_v36  ;;  %v2056_v32 = vadd.f32 %v2055_v44, %v9387_v7 }
 0x3cc   : > { %v2109_v20 = vadd.f32 %v2108_v4, %v9388_v26  ;;  %v2163_v46 = vadd.f32 %v2162_v6, %v6864_v8  ;;  %v2216_v22 = vadd.f32 %v2215_v11, %v6870_v12  ;;  %v9393_v26 = vld [vmem:[#allocation32_spill] sm:$0xff]  ;;  %v9396_v8 = vld [vmem:[#allocation35_spill] sm:$0xff] }
 0x3cd   : > { %v2057_v35 = vadd.f32 %v2056_v32, %v9389_v28 }
 0x3ce   : > { %v2110_v40 = vadd.f32 %v2109_v20, %v9390_v51  ;;  %v2164_v44 = vadd.f32 %v2163_v46, %v6872_v45  ;;  %v2217_v4 = vadd.f32 %v2216_v22, %v6874_v0  ;;  %v9395_v51 = vld [vmem:[#allocation34_spill] sm:$0xff]  ;;  %v9398_v45 = vld [vmem:[#allocation37_spill] sm:$0xff] }
 0x3cf   : > { %v2058_v53 = vadd.f32 %v2057_v35, %v9391_v17 }
 0x3d0   : > { %v2111_v36 = vadd.f32 %v2110_v40, %v9392_v34  ;;  %v2165_v32 = vadd.f32 %v2164_v44, %v6876_v54  ;;  %v2218_v20 = vadd.f32 %v2217_v4, %v6882_v33  ;;  %v9397_v34 = vld [vmem:[#allocation36_spill] sm:$0xff]  ;;  %v9400_v54 = vld [vmem:[#allocation39_spill] sm:$0xff] }
 0x3d1   : > { %v2059_v19 = vadd.f32 %v2058_v53, %v9393_v26 }
 0x3d2   : > { %v2112_v27 = vadd.f32 %v2111_v36, %v9394_v38  ;;  %v2166_v35 = vadd.f32 %v2165_v32, %v6884_v52  ;;  %v2219_v40 = vadd.f32 %v2218_v20, %v6886_v39  ;;  %v9399_v38 = vld [vmem:[#allocation38_spill] sm:$0xff]  ;;  %v9402_v52 = vld [vmem:[#allocation41_spill] sm:$0xff] }
 0x3d3   : > { %v2060_v6 = vadd.f32 %v2059_v19, %v9395_v51 }
 0x3d4   : > { %v2113_v11 = vadd.f32 %v2112_v27, %v9396_v8  ;;  %v2167_v53 = vadd.f32 %v2166_v35, %v6888_v43  ;;  %v2220_v36 = vadd.f32 %v2219_v40, %v6894_v61  ;;  %v9401_v8 = vld [vmem:[#allocation40_spill] sm:$0xff]  ;;  %v9404_v43 = vld [vmem:[#allocation43_spill] sm:$0xff] }
 0x3d5   : > { %v2061_v46 = vadd.f32 %v2060_v6, %v9397_v34 }
 0x3d6   : > { %v2114_v22 = vadd.f32 %v2113_v11, %v9398_v45  ;;  %v2168_v19 = vadd.f32 %v2167_v53, %v6896_v10  ;;  %v2221_v27 = vadd.f32 %v2220_v36, %v6898_v21  ;;  %v9403_v45 = vld [vmem:[#allocation42_spill] sm:$0xff]  ;;  %v9406_v10 = vld [vmem:[#allocation45_spill] sm:$0xff] }
 0x3d7   : > { %v2062_v44 = vadd.f32 %v2061_v46, %v9399_v38 }
 0x3d8   : > { %v2115_v4 = vadd.f32 %v2114_v22, %v9400_v54  ;;  %v2169_v6 = vadd.f32 %v2168_v19, %v6900_v23  ;;  %v2222_v11 = vadd.f32 %v2221_v27, %v6906_v50  ;;  %v9405_v54 = vld [vmem:[#allocation44_spill] sm:$0xff]  ;;  %v9408_v23 = vld [vmem:[#allocation47_spill] sm:$0xff] }
 0x3d9   : > { %v2063_v32 = vadd.f32 %v2062_v44, %v9401_v8 }
 0x3da   : > { %v2116_v20 = vadd.f32 %v2115_v4, %v9402_v52  ;;  %v2170_v46 = vadd.f32 %v2169_v6, %v6908_v30  ;;  %v2223_v22 = vadd.f32 %v2222_v11, %v6910_v15  ;;  %v9407_v52 = vld [vmem:[#allocation46_spill] sm:$0xff]  ;;  %v9410_v30 = vld [vmem:[#allocation49_spill] sm:$0xff] }
 0x3db   : > { %v2064_v35 = vadd.f32 %v2063_v32, %v9403_v45 }
 0x3dc   : > { %v2117_v40 = vadd.f32 %v2116_v20, %v9404_v43  ;;  %v2171_v44 = vadd.f32 %v2170_v46, %v6912_v42  ;;  %v2224_v4 = vadd.f32 %v2223_v22, %v6918_v25  ;;  %v9409_v43 = vld [vmem:[#allocation48_spill] sm:$0xff]  ;;  %v9412_v42 = vld [vmem:[#allocation51_spill] sm:$0xff] }
 0x3dd   : > { %v2065_v53 = vadd.f32 %v2064_v35, %v9405_v54 }
 0x3de   : > { %v2118_v36 = vadd.f32 %v2117_v40, %v9406_v10  ;;  %v2172_v32 = vadd.f32 %v2171_v44, %v6920_v58  ;;  %v2225_v20 = vadd.f32 %v2224_v4, %v6922_v9  ;;  %v9411_v10 = vld [vmem:[#allocation50_spill] sm:$0xff]  ;;  %v9414_v58 = vld [vmem:[#allocation53_spill] sm:$0xff] }
 0x3df   : > { %v2066_v19 = vadd.f32 %v2065_v53, %v9407_v52 }
 0x3e0   : > { %v2119_v27 = vadd.f32 %v2118_v36, %v9408_v23  ;;  %v2173_v35 = vadd.f32 %v2172_v32, %v6924_v48  ;;  %v2226_v40 = vadd.f32 %v2225_v20, %v6930_v5  ;;  %v9413_v23 = vld [vmem:[#allocation52_spill] sm:$0xff]  ;;  %v9416_v48 = vld [vmem:[#allocation55_spill] sm:$0xff] }
 0x3e1   : > { %v2067_v6 = vadd.f32 %v2066_v19, %v9409_v43 }
 0x3e2   : > { %v2120_v11 = vadd.f32 %v2119_v27, %v9410_v30  ;;  %v2174_v53 = vadd.f32 %v2173_v35, %v6932_v41  ;;  %v2227_v36 = vadd.f32 %v2226_v40, %v6934_v55  ;;  %v9415_v30 = vld [vmem:[#allocation54_spill] sm:$0xff]  ;;  %v9418_v41 = vld [vmem:[#allocation57_spill] sm:$0xff] }
 0x3e3   : > { %v2068_v46 = vadd.f32 %v2067_v6, %v9411_v10  ;;  %v9545_v55 = vld [vmem:[#allocation37_spill] sm:$0xff] }
 0x3e4   : > { %v2121_v22 = vadd.f32 %v2120_v11, %v9412_v42  ;;  %v2175_v19 = vadd.f32 %v2174_v53, %v6936_v1  ;;  %v2228_v27 = vadd.f32 %v2227_v36, %v6942_v37  ;;  %v9417_v42 = vld [vmem:[#allocation56_spill] sm:$0xff]  ;;  %v9420_v1 = vld [vmem:[#allocation59_spill] sm:$0xff] }
 0x3e5   : > { %v2069_v44 = vadd.f32 %v2068_v46, %v9413_v23 }
 0x3e6   : > { %v2122_v4 = vadd.f32 %v2121_v22, %v9414_v58  ;;  %v2176_v6 = vadd.f32 %v2175_v19, %v6944_v13  ;;  %v2229_v11 = vadd.f32 %v2228_v27, %v6946_v47  ;;  %v9419_v58 = vld [vmem:[#allocation58_spill] sm:$0xff]  ;;  %v9422_v13 = vld [vmem:[#allocation61_spill] sm:$0xff]  ;;  %v9423_v47 = vld [vmem:[#allocation151_spill] sm:$0xff] }
 0x3e7   : > { %v2070_v32 = vadd.f32 %v2069_v44, %v9415_v30  ;;  %v9544_v30 = vld [vmem:[#allocation130_spill] sm:$0xff] }
 0x3e8   : > { %v2123_v20 = vadd.f32 %v2122_v4, %v9416_v48  ;;  %v2177_v46 = vadd.f32 %v2176_v6, %v6948_v16  ;;  %v2230_v22 = vadd.f32 %v2229_v11, %v6954_v31  ;;  %v9421_v48 = vld [vmem:[#allocation60_spill] sm:$0xff]  ;;  %v9425_v16 = vld [vmem:[#allocation63_spill] sm:$0xff]  ;;  %v9541_v31 = vld [vmem:[#allocation33_spill] sm:$0xff] }
 0x3e9   : > { %v2071_v35 = vadd.f32 %v2070_v32, %v9417_v42 }
 0x3ea   : > { %v2124_v40 = vadd.f32 %v2123_v20, %v9418_v41  ;;  %v2178_v44 = vadd.f32 %v2177_v46, %v6956_v63  ;;  %v2231_v4 = vadd.f32 %v2230_v22, %v6958_v62  ;;  %v9424_v41 = vld [vmem:[#allocation62_spill] sm:$0xff]  ;;  %v9428_v63 = vld [vmem:[#allocation65_spill] sm:$0xff]  ;;  %v9429_v62 = vld [vmem:[#allocation155_spill] sm:$0xff] }
 0x3eb   : > { %v2072_v53 = vadd.f32 %v2071_v35, %v9419_v58  ;;  %v9426_v58 = vld [vmem:[#allocation154_spill] sm:$0xff] }
 0x3ec   : > { %v2125_v36 = vadd.f32 %v2124_v40, %v9420_v1  ;;  %v2179_v32 = vadd.f32 %v2178_v44, %v9423_v47  ;;  %v2232_v20 = vadd.f32 %v2231_v4, %v6966_v49  ;;  %v9427_v1 = vld [vmem:[#allocation64_spill] sm:$0xff]  ;;  %v9431_v47 = vld [vmem:[#allocation67_spill] sm:$0xff] }
 0x3ed   : > { %v2073_v19 = vadd.f32 %v2072_v53, %v9421_v48  ;;  %v9535_v49 = vld [vmem:[#allocation31_spill] sm:$0xff]  ;;  %v9538_v48 = vld [vmem:[#allocation126_spill] sm:$0xff] }
 0x3ee   : > { %v2126_v27 = vadd.f32 %v2125_v36, %v9422_v13  ;;  %v2180_v35 = vadd.f32 %v2179_v32, %v6968_v29  ;;  %v2233_v40 = vadd.f32 %v2232_v20, %v9426_v58  ;;  %v9430_v13 = vld [vmem:[#allocation66_spill] sm:$0xff]  ;;  %v9434_v29 = vld [vmem:[#allocation69_spill] sm:$0xff]  ;;  %v9435_v58 = vld [vmem:[#allocation159_spill] sm:$0xff] }
 0x3ef   : > { %v2074_v6 = vadd.f32 %v2073_v19, %v9424_v41  ;;  %v9432_v41 = vld [vmem:[#allocation158_spill] sm:$0xff] }
 0x3f0   : > { %v2127_v11 = vadd.f32 %v2126_v27, %v9425_v16  ;;  %v2181_v53 = vadd.f32 %v2180_v35, %v9429_v62  ;;  %v2234_v36 = vadd.f32 %v2233_v40, %v6978_v60  ;;  %v9433_v16 = vld [vmem:[#allocation68_spill] sm:$0xff]  ;;  %v9437_v62 = vld [vmem:[#allocation71_spill] sm:$0xff]  ;;  %v9529_v60 = vld [vmem:[#allocation29_spill] sm:$0xff] }
 0x3f1   : > { %v2075_v46 = vadd.f32 %v2074_v6, %v9427_v1  ;;  %v9532_v1 = vld [vmem:[#allocation124_spill] sm:$0xff] }
 0x3f2   : > { %v2128_v22 = vadd.f32 %v2127_v11, %v9428_v63  ;;  %v2182_v19 = vadd.f32 %v2181_v53, %v6980_v59  ;;  %v2235_v27 = vadd.f32 %v2234_v36, %v9432_v41  ;;  %v9436_v63 = vld [vmem:[#allocation70_spill] sm:$0xff]  ;;  %v9440_v59 = vld [vmem:[#allocation73_spill] sm:$0xff]  ;;  %v9441_v41 = vld [vmem:[#allocation163_spill] sm:$0xff] }
 0x3f3   : > { %v2076_v44 = vadd.f32 %v2075_v46, %v9430_v13  ;;  %v9438_v13 = vld [vmem:[#allocation162_spill] sm:$0xff] }
 0x3f4   : > { %v2129_v4 = vadd.f32 %v2128_v22, %v9431_v47  ;;  %v2183_v6 = vadd.f32 %v2182_v19, %v9435_v58  ;;  %v2236_v11 = vadd.f32 %v2235_v27, %v6990_v18  ;;  %v9439_v47 = vld [vmem:[#allocation72_spill] sm:$0xff]  ;;  %v9444_v58 = vld [vmem:[#allocation75_spill] sm:$0xff]  ;;  %v9445_v18 = vld [vmem:[#allocation165_spill] sm:$0xff] }
 0x3f5   : > { %v2077_v32 = vadd.f32 %v2076_v44, %v9433_v16  ;;  %v9442_v16 = vld [vmem:[#allocation164_spill] sm:$0xff] }
 0x3f6   : > { %v2130_v20 = vadd.f32 %v2129_v4, %v9434_v29  ;;  %v2184_v46 = vadd.f32 %v2183_v6, %v6992_v2  ;;  %v2237_v22 = vadd.f32 %v2236_v11, %v9438_v13  ;;  %v9443_v29 = vld [vmem:[#allocation74_spill] sm:$0xff]  ;;  %v9448_v2 = vld [vmem:[#allocation77_spill] sm:$0xff]  ;;  %v9449_v13 = vld [vmem:[#allocation167_spill] sm:$0xff] }
 0x3f7   : > { %v2078_v35 = vadd.f32 %v2077_v32, %v9436_v63  ;;  %v9446_v63 = vld [vmem:[#allocation166_spill] sm:$0xff] }
 0x3f8   : > { %v2131_v40 = vadd.f32 %v2130_v20, %v9437_v62  ;;  %v2185_v44 = vadd.f32 %v2184_v46, %v9441_v41  ;;  %v2238_v4 = vadd.f32 %v2237_v22, %v9442_v16  ;;  %v9447_v62 = vld [vmem:[#allocation76_spill] sm:$0xff]  ;;  %v9452_v41 = vld [vmem:[#allocation79_spill] sm:$0xff]  ;;  %v9453_v16 = vld [vmem:[#allocation169_spill] sm:$0xff] }
 0x3f9   : > { %v2079_v53 = vadd.f32 %v2078_v35, %v9439_v47  ;;  %v9450_v47 = vld [vmem:[#allocation168_spill] sm:$0xff] }
 0x3fa   : > { %v2132_v36 = vadd.f32 %v2131_v40, %v9440_v59  ;;  %v2186_v32 = vadd.f32 %v2185_v44, %v9445_v18  ;;  %v2239_v20 = vadd.f32 %v2238_v4, %v9446_v63  ;;  %v9451_v59 = vld [vmem:[#allocation78_spill] sm:$0xff]  ;;  %v9456_v18 = vld [vmem:[#allocation81_spill] sm:$0xff]  ;;  %v9457_v63 = vld [vmem:[#allocation171_spill] sm:$0xff] }
 0x3fb   : > { %v2080_v19 = vadd.f32 %v2079_v53, %v9443_v29  ;;  %v9454_v29 = vld [vmem:[#allocation170_spill] sm:$0xff] }
 0x3fc   : > { %v2133_v27 = vadd.f32 %v2132_v36, %v9444_v58  ;;  %v2187_v35 = vadd.f32 %v2186_v32, %v9449_v13  ;;  %v2240_v40 = vadd.f32 %v2239_v20, %v9450_v47  ;;  %v9455_v58 = vld [vmem:[#allocation80_spill] sm:$0xff]  ;;  %v9460_v13 = vld [vmem:[#allocation83_spill] sm:$0xff]  ;;  %v9461_v47 = vld [vmem:[#allocation173_spill] sm:$0xff] }
 0x3fd   : > { %v2081_v6 = vadd.f32 %v2080_v19, %v9447_v62  ;;  %v9458_v62 = vld [vmem:[#allocation172_spill] sm:$0xff] }
 0x3fe   : > { %v2134_v11 = vadd.f32 %v2133_v27, %v9448_v2  ;;  %v2188_v53 = vadd.f32 %v2187_v35, %v9453_v16  ;;  %v2241_v36 = vadd.f32 %v2240_v40, %v9454_v29  ;;  %v9459_v2 = vld [vmem:[#allocation82_spill] sm:$0xff]  ;;  %v9464_v16 = vld [vmem:[#allocation85_spill] sm:$0xff]  ;;  %v9465_v29 = vld [vmem:[#allocation175_spill] sm:$0xff] }
 0x3ff   : > { %v2082_v46 = vadd.f32 %v2081_v6, %v9451_v59  ;;  %v9462_v59 = vld [vmem:[#allocation174_spill] sm:$0xff] }
 0x400   : > { %v2135_v22 = vadd.f32 %v2134_v11, %v9452_v41  ;;  %v2189_v19 = vadd.f32 %v2188_v53, %v9457_v63  ;;  %v2242_v27 = vadd.f32 %v2241_v36, %v9458_v62  ;;  %v9463_v41 = vld [vmem:[#allocation84_spill] sm:$0xff]  ;;  %v9468_v63 = vld [vmem:[#allocation87_spill] sm:$0xff]  ;;  %v9469_v62 = vld [vmem:[#allocation177_spill] sm:$0xff] }
 0x401   : > { %v2083_v44 = vadd.f32 %v2082_v46, %v9455_v58  ;;  %v9466_v58 = vld [vmem:[#allocation176_spill] sm:$0xff] }
 0x402   : > { %v2136_v4 = vadd.f32 %v2135_v22, %v9456_v18  ;;  %v2190_v6 = vadd.f32 %v2189_v19, %v9461_v47  ;;  %v2243_v11 = vadd.f32 %v2242_v27, %v9462_v59  ;;  %v9467_v18 = vld [vmem:[#allocation86_spill] sm:$0xff]  ;;  %v9472_v47 = vld [vmem:[#allocation89_spill] sm:$0xff]  ;;  %v9473_v59 = vld [vmem:[#allocation179_spill] sm:$0xff] }
 0x403   : > { %v2084_v32 = vadd.f32 %v2083_v44, %v9459_v2  ;;  %v9470_v2 = vld [vmem:[#allocation178_spill] sm:$0xff] }
 0x404   : > { %v2137_v20 = vadd.f32 %v2136_v4, %v9460_v13  ;;  %v2191_v46 = vadd.f32 %v2190_v6, %v9465_v29  ;;  %v2244_v22 = vadd.f32 %v2243_v11, %v9466_v58  ;;  %v9471_v13 = vld [vmem:[#allocation88_spill] sm:$0xff]  ;;  %v9476_v29 = vld [vmem:[#allocation91_spill] sm:$0xff]  ;;  %v9477_v58 = vld [vmem:[#allocation181_spill] sm:$0xff] }
 0x405   : > { %v2085_v35 = vadd.f32 %v2084_v32, %v9463_v41  ;;  %v9474_v41 = vld [vmem:[#allocation180_spill] sm:$0xff] }
 0x406   : > { %v2138_v40 = vadd.f32 %v2137_v20, %v9464_v16  ;;  %v2192_v44 = vadd.f32 %v2191_v46, %v9469_v62  ;;  %v2245_v4 = vadd.f32 %v2244_v22, %v9470_v2  ;;  %v9475_v16 = vld [vmem:[#allocation90_spill] sm:$0xff]  ;;  %v9480_v62 = vld [vmem:[#allocation93_spill] sm:$0xff]  ;;  %v9481_v2 = vld [vmem:[#allocation183_spill] sm:$0xff] }
 0x407   : > { %v2086_v53 = vadd.f32 %v2085_v35, %v9467_v18  ;;  %v9478_v18 = vld [vmem:[#allocation182_spill] sm:$0xff] }
 0x408   : > { %v2139_v36 = vadd.f32 %v2138_v40, %v9468_v63  ;;  %v2193_v32 = vadd.f32 %v2192_v44, %v9473_v59  ;;  %v2246_v20 = vadd.f32 %v2245_v4, %v9474_v41  ;;  %v9479_v63 = vld [vmem:[#allocation92_spill] sm:$0xff]  ;;  %v9484_v59 = vld [vmem:[#allocation95_spill] sm:$0xff]  ;;  %v9485_v41 = vld [vmem:[#allocation185_spill] sm:$0xff] }
 0x409   : > { %v2087_v19 = vadd.f32 %v2086_v53, %v9471_v13  ;;  %v9482_v13 = vld [vmem:[#allocation184_spill] sm:$0xff] }
 0x40a   : > { %v2140_v27 = vadd.f32 %v2139_v36, %v9472_v47  ;;  %v2194_v35 = vadd.f32 %v2193_v32, %v9477_v58  ;;  %v2247_v40 = vadd.f32 %v2246_v20, %v9478_v18  ;;  %v9483_v47 = vld [vmem:[#allocation94_spill] sm:$0xff]  ;;  %v9488_v58 = vld [vmem:[#allocation97_spill] sm:$0xff]  ;;  %v9489_v18 = vld [vmem:[#allocation187_spill] sm:$0xff] }
 0x40b   : > { %v2088_v6 = vadd.f32 %v2087_v19, %v9475_v16  ;;  %v9486_v16 = vld [vmem:[#allocation186_spill] sm:$0xff] }
 0x40c   : > { %v2141_v11 = vadd.f32 %v2140_v27, %v9476_v29  ;;  %v2195_v53 = vadd.f32 %v2194_v35, %v9481_v2  ;;  %v2248_v36 = vadd.f32 %v2247_v40, %v9482_v13  ;;  %v9487_v29 = vld [vmem:[#allocation96_spill] sm:$0xff]  ;;  %v9492_v2 = vld [vmem:[#allocation99_spill] sm:$0xff]  ;;  %v9493_v13 = vld [vmem:[#allocation189_spill] sm:$0xff] }
 0x40d   : > { %v2089_v46 = vadd.f32 %v2088_v6, %v9479_v63  ;;  %v9490_v63 = vld [vmem:[#allocation188_spill] sm:$0xff] }
 0x40e   : > { %v2142_v22 = vadd.f32 %v2141_v11, %v9480_v62  ;;  %v2196_v19 = vadd.f32 %v2195_v53, %v9485_v41  ;;  %v2249_v27 = vadd.f32 %v2248_v36, %v9486_v16  ;;  %v9491_v62 = vld [vmem:[#allocation98_spill] sm:$0xff]  ;;  %v9496_v41 = vld [vmem:[#allocation101_spill] sm:$0xff]  ;;  %v9497_v16 = vld [vmem:[#allocation191_spill] sm:$0xff] }
 0x40f   : > { %v2090_v44 = vadd.f32 %v2089_v46, %v9483_v47  ;;  %v9494_v47 = vld [vmem:[#allocation190_spill] sm:$0xff] }
 0x410   : > { %v2143_v4 = vadd.f32 %v2142_v22, %v9484_v59  ;;  %v2197_v6 = vadd.f32 %v2196_v19, %v9489_v18  ;;  %v2250_v11 = vadd.f32 %v2249_v27, %v9490_v63  ;;  %v9495_v59 = vld [vmem:[#allocation100_spill] sm:$0xff]  ;;  %v9500_v18 = vld [vmem:[#allocation103_spill] sm:$0xff]  ;;  %v9501_v63 = vld [vmem:[#allocation193_spill] sm:$0xff] }
 0x411   : > { %v2091_v32 = vadd.f32 %v2090_v44, %v9487_v29  ;;  %v9498_v29 = vld [vmem:[#allocation192_spill] sm:$0xff] }
 0x412   : > { %v2144_v20 = vadd.f32 %v2143_v4, %v9488_v58  ;;  %v2198_v46 = vadd.f32 %v2197_v6, %v9493_v13  ;;  %v2251_v22 = vadd.f32 %v2250_v11, %v9494_v47  ;;  %v9499_v58 = vld [vmem:[#allocation102_spill] sm:$0xff]  ;;  %v7275_v6 = vmul.f32 %v9378_v3, %v9378_v3  ;;  %v9507_v3 = vld [vmem:[#allocation196_spill] sm:$0xff]  ;;  %v9520_v47 = vld [vmem:[#allocation121_spill] sm:$0xff] }
 0x413   : > { %v2092_v35 = vadd.f32 %v2091_v32, %v9491_v62  ;;  %v9502_v62 = vld [vmem:[#allocation194_spill] sm:$0xff]  ;;  %v7279_v11 = vmul.f32 %v9380_v56, %v9380_v56  ;;  %v9523_v13 = vld [vmem:[#allocation27_spill] sm:$0xff] }
 0x414   : > { %v2145_v40 = vadd.f32 %v2144_v20, %v9492_v2  ;;  %v2199_v44 = vadd.f32 %v2198_v46, %v9497_v16  ;;  %v2252_v4 = vadd.f32 %v2251_v22, %v9498_v29  ;;  %v9504_v46 = vld [vmem:[#allocation105_spill] sm:$0xff]  ;;  %v9512_v29 = vld [vmem:[#allocation118_spill] sm:$0xff]  ;;  %v9513_v16 = vld [vmem:[#allocation119_spill] sm:$0xff] }
 0x415   : > { %v2093_v53 = vadd.f32 %v2092_v35, %v9495_v59  ;;  %v9503_v35 = vld [vmem:[#allocation104_spill] sm:$0xff]  ;;  %v9517_v59 = vld [vmem:[#allocation25_spill] sm:$0xff]  ;;  %v9526_v2 = vld [vmem:[#allocation122_spill] sm:$0xff] }
 0x416   : > { %v2146_v36 = vadd.f32 %v2145_v40, %v9496_v41  ;;  %v2200_v32 = vadd.f32 %v2199_v44, %v9501_v63  ;;  %v2253_v20 = vadd.f32 %v2252_v4, %v9502_v62  ;;  %v9506_v4 = vld [vmem:[#allocation195_spill] sm:$0xff]  ;;  %v9516_v41 = vld [vmem:[#allocation24_spill] sm:$0xff] }
 0x417   : > { %v2094_v19 = vadd.f32 %v2093_v53, %v9499_v58  ;;  %v7285_v53 = vmul.f32 %v6840_v57, %v6840_v57  ;;  %v9509_v58 = vld [vmem:[#allocation23_spill] sm:$0xff] }
 0x418   : > { %v2147_v27 = vadd.f32 %v2146_v36, %v9500_v18  ;;  %v9505_v36 = vld [vmem:[#allocation117_spill] sm:$0xff]  ;;  %v2201_v62 = vadd.f32 %v2200_v32, %v9506_v4  ;;  %v2254_v63 = vadd.f32 %v2253_v20, %v9507_v3  ;;  %v9508_v18 = vld [vmem:[#allocation22_spill] sm:$0xff]  ;;  %v9511_v57 = vld [vmem:[#allocation107_spill] sm:$0xff]  ;;  %v7309_v32 = vmul.f32 %v9513_v16, %v9513_v16 }
 0x419   : > { %v2095_v40 = vadd.f32 %v2094_v19, %v9503_v35  ;;  %v7289_v44 = vmul.f32 %v9505_v36, %v9505_v36  ;;  %v7295_v56 = vmul.f32 %v9508_v18, %v9508_v18  ;;  %v7299_v19 = vmul.f32 %v9509_v58, %v9509_v58  ;;  %v9514_v20 = vld [vmem:[#allocation197_spill] sm:$0xff]  ;;  %v9515_v18 = vld [vmem:[#allocation198_spill] sm:$0xff] }
 0x41a   : > { %v2148_v22 = vadd.f32 %v2147_v27, %v9504_v46  ;;  %v9510_v27 = vld [vmem:[#allocation106_spill] sm:$0xff]  ;;  %v7305_v36 = vmul.f32 %v9512_v29, %v9512_v29  ;;  %v2202_v3 = vadd.f32 %v2201_v62, %v9514_v20  ;;  %v2255_v4 = vadd.f32 %v2254_v63, %v9515_v18  ;;  %v9519_v29 = vld [vmem:[#allocation109_spill] sm:$0xff]  ;;  %v9521_v63 = vld [vmem:[#allocation199_spill] sm:$0xff] }
 0x41b   : > { %v2096_v46 = vadd.f32 %v2095_v40, %v9510_v27  ;;  %v7315_v58 = vmul.f32 %v9516_v41, %v9516_v41  ;;  %v7319_v40 = vmul.f32 %v9517_v59, %v9517_v59  ;;  %v7325_v16 = vmul.f32 %v6852_v14, %v6852_v14  ;;  %v9522_v41 = vld [vmem:[#allocation200_spill] sm:$0xff]  ;;  %v9525_v14 = vld [vmem:[#allocation111_spill] sm:$0xff] }
 0x41c   : > { %v2149_v35 = vadd.f32 %v2148_v22, %v9511_v57  ;;  %v9518_v22 = vld [vmem:[#allocation108_spill] sm:$0xff]  ;;  %v7329_v62 = vmul.f32 %v9520_v47, %v9520_v47  ;;  %v2203_v18 = vadd.f32 %v2202_v3, %v9521_v63  ;;  %v2256_v20 = vadd.f32 %v2255_v4, %v9522_v41  ;;  %v9527_v4 = vld [vmem:[#allocation201_spill] sm:$0xff] }
 0x41d   : > { %v2097_v57 = vadd.f32 %v2096_v46, %v9518_v22  ;;  %v7335_v59 = vmul.f32 %v9387_v7, %v9387_v7  ;;  %v7339_v46 = vmul.f32 %v9523_v13, %v9523_v13  ;;  %v7345_v47 = vmul.f32 %v9526_v2, %v9526_v2  ;;  %v9528_v7 = vld [vmem:[#allocation202_spill] sm:$0xff]  ;;  %v9531_v2 = vld [vmem:[#allocation113_spill] sm:$0xff] }
 0x41e   : > { %v2150_v27 = vadd.f32 %v2149_v35, %v9519_v29  ;;  %v9524_v35 = vld [vmem:[#allocation110_spill] sm:$0xff]  ;;  %v7349_v3 = vmul.f32 %v6862_v24, %v6862_v24  ;;  %v2204_v41 = vadd.f32 %v2203_v18, %v9527_v4  ;;  %v2257_v63 = vadd.f32 %v2256_v20, %v9528_v7  ;;  %v9533_v20 = vld [vmem:[#allocation203_spill] sm:$0xff] }
 0x41f   : > { %v2098_v29 = vadd.f32 %v2097_v57, %v9524_v35  ;;  %v7355_v13 = vmul.f32 %v9389_v28, %v9389_v28  ;;  %v7359_v57 = vmul.f32 %v9529_v60, %v9529_v60  ;;  %v7365_v24 = vmul.f32 %v9532_v1, %v9532_v1  ;;  %v9534_v28 = vld [vmem:[#allocation204_spill] sm:$0xff]  ;;  %v9537_v1 = vld [vmem:[#allocation115_spill] sm:$0xff] }
 0x420   : > { %v2151_v22 = vadd.f32 %v2150_v27, %v9525_v14  ;;  %v9530_v27 = vld [vmem:[#allocation112_spill] sm:$0xff]  ;;  %v7369_v18 = vmul.f32 %v6870_v12, %v6870_v12  ;;  %v2205_v7 = vadd.f32 %v2204_v41, %v9533_v20  ;;  %v2258_v4 = vadd.f32 %v2257_v63, %v9534_v28  ;;  %v9539_v63 = vld [vmem:[#allocation205_spill] sm:$0xff] }
 0x421   : > { %v2099_v14 = vadd.f32 %v2098_v29, %v9530_v27  ;;  %v7375_v60 = vmul.f32 %v9391_v17, %v9391_v17  ;;  %v7379_v29 = vmul.f32 %v9535_v49, %v9535_v49  ;;  %v7385_v12 = vmul.f32 %v9538_v48, %v9538_v48  ;;  %v9540_v17 = vld [vmem:[#allocation206_spill] sm:$0xff]  ;;  %v9542_v48 = vld [vmem:[#allocation128_spill] sm:$0xff] }
 0x422   : > { %v2152_v35 = vadd.f32 %v2151_v22, %v9531_v2  ;;  %v9536_v22 = vld [vmem:[#allocation114_spill] sm:$0xff]  ;;  %v7389_v41 = vmul.f32 %v6874_v0, %v6874_v0  ;;  %v2206_v28 = vadd.f32 %v2205_v7, %v9539_v63  ;;  %v2259_v20 = vadd.f32 %v2258_v4, %v9540_v17  ;;  %v9543_v17 = vld [vmem:[#allocation35_spill] sm:$0xff] }
 0x423   : > { %v2100_v2 = vadd.f32 %v2099_v14, %v9536_v22  ;;  %v7395_v49 = vmul.f32 %v9393_v26, %v9393_v26  ;;  %v7399_v14 = vmul.f32 %v9541_v31, %v9541_v31  ;;  %v7403_v22 = vmul.f32 %v9542_v48, %v9542_v48 }
 0x424   : > { %v2153_v27 = vadd.f32 %v2152_v35, %v9537_v1  ;;  %v7407_v0 = vmul.f32 %v6882_v33, %v6882_v33  ;;  %v2207_v7 = vrot.slane %v2206_v28, 4  ;;  %v2260_v4 = vrot.slane %v2259_v20, 4 }
 0x425   : > { %v2101_v35 = vrot.slane %v2100_v2, 4  ;;  %v7411_v26 = vmul.f32 %v9395_v51, %v9395_v51  ;;  %v7415_v31 = vmul.f32 %v9543_v17, %v9543_v17  ;;  %v7419_v48 = vmul.f32 %v9544_v30, %v9544_v30 }
 0x426   : > { %v2154_v1 = vrot.slane %v2153_v27, 4  ;;  %v7423_v33 = vmul.f32 %v6886_v39, %v6886_v39  ;;  %v2208_v37 = vadd.f32 %v2207_v7, %v2206_v28  ;;  %v2261_v23 = vadd.f32 %v2260_v4, %v2259_v20 }
 0x427   : > { %v2102_v63 = vadd.f32 %v2101_v35, %v2100_v2  ;;  %v7427_v51 = vmul.f32 %v9397_v34, %v9397_v34  ;;  %v7431_v17 = vmul.f32 %v9545_v55, %v9545_v55  ;;  %v2479_v35 = vadd.f32 %v7295_v56, %v7275_v6 }
 0x428   : > { %v2155_v42 = vadd.f32 %v2154_v1, %v2153_v27  ;;  %v2209_v30 = vrot.slane %v2208_v37, 2  ;;  %v2262_v1 = vrot.slane %v2261_v23, 2  ;;  %v2532_v20 = vadd.f32 %v7299_v19, %v7279_v11 }
 0x429   : > { %v2103_v2 = vrot.slane %v2102_v63, 2  ;;  %v2585_v34 = vadd.f32 %v7305_v36, %v7285_v53  ;;  %v2638_v55 = vadd.f32 %v7309_v32, %v7289_v44  ;;  %v2480_v10 = vadd.f32 %v2479_v35, %v7315_v58 }
 0x42a   : > { %v2156_v27 = vrot.slane %v2155_v42, 2  ;;  %v2210_v4 = vadd.f32 %v2209_v30, %v2208_v37  ;;  %v2263_v39 = vadd.f32 %v2262_v1, %v2261_v23  ;;  %v2533_v5 = vadd.f32 %v2532_v20, %v7319_v40 }
 0x42b   : > { %v2104_v28 = vadd.f32 %v2103_v2, %v2102_v63  ;;  %v2586_v6 = vadd.f32 %v2585_v34, %v7325_v16  ;;  %v2639_v11 = vadd.f32 %v2638_v55, %v7329_v62  ;;  %v2481_v19 = vadd.f32 %v2480_v10, %v7335_v59  ;;  %v9550_v55 = vld [vmem:[#allocation41_spill] sm:$0xff] }
 0x42c   : > { %v2157_v7 = vadd.f32 %v2156_v27, %v2155_v42  ;;  %v2211_v56 = vrot.slane %v2210_v4, 1  ;;  %v2264_v42 = vrot.slane %v2263_v39, 1  ;;  %v2534_v53 = vadd.f32 %v2533_v5, %v7339_v46  ;;  %v2053_v46 = vld [vmem:[#allocation2] sm:$0xf] }
 0x42d   : > { %v2105_v43 = vrot.slane %v2104_v28, 1  ;;  %v2587_v23 = vadd.f32 %v2586_v6, %v7345_v47  ;;  %v2640_v37 = vadd.f32 %v2639_v11, %v7349_v3  ;;  %v2482_v40 = vadd.f32 %v2481_v19, %v7355_v13  ;;  %v9551_v6 = vld [vmem:[#allocation134_spill] sm:$0xff]  ;;  %v9552_v19 = vld [vmem:[#allocation43_spill] sm:$0xff] }
 0x42e   : > { %v2158_v9 = vrot.slane %v2157_v7, 1  ;;  %v2212_v32 = vadd.f32 %v2211_v56, %v2210_v4  ;;  %v2265_v58 = vadd.f32 %v2264_v42, %v2263_v39  ;;  %v2535_v16 = vadd.f32 %v2534_v53, %v7359_v57  ;;  %v9546_v39 = vld [vmem:[#allocation132_spill] sm:$0xff] }
 0x42f   : > { %v2106_v36 = vadd.f32 %v2105_v43, %v2104_v28  ;;  %v2588_v62 = vadd.f32 %v2587_v23, %v7365_v24  ;;  %v2641_v10 = vadd.f32 %v2640_v37, %v7369_v18  ;;  %v2483_v43 = vadd.f32 %v2482_v40, %v7375_v60 }
 0x430   : > { %v2159_v44 = vadd.f32 %v2158_v9, %v2157_v7  ;;  %v2271_v59 = vrot.slane %v2212_v32, 6  ;;  %v2272_v5 = vrot.slane %v2265_v58, 5  ;;  %v2536_v9 = vadd.f32 %v2535_v16, %v7379_v29  ;;  %v9554_v58 = vld [vmem:[#allocation45_spill] sm:$0xff] }
 0x431   : > { %v2321_v3 = vmul.f32 %v9546_v39, %v9546_v39  ;;  %v2589_v13 = vadd.f32 %v2588_v62, %v7385_v12  ;;  %v2642_v57 = vadd.f32 %v2641_v10, %v7389_v41  ;;  %v2322_v18 = vmul.f32 %v6894_v61, %v6894_v61  ;;  %v9547_v41 = vld [vmem:[#allocation39_spill] sm:$0xff]  ;;  %v9557_v39 = vld [vmem:[#allocation137_spill] sm:$0xff] }
 0x432   : > { %v2270_v63 = vrot.slane %v2159_v44, 7  ;;  %v2276_v24 = vsel %vm2275_vm2, %v2271_v59, %v2272_v5  ;;  %v2484_v2 = vadd.f32 %v2483_v43, %v7395_v49  ;;  %v2537_v60 = vadd.f32 %v2536_v9, %v7399_v14  ;;  %v9548_v49 = vld [vmem:[#allocation133_spill] sm:$0xff]  ;;  %v9553_v44 = vld [vmem:[#allocation135_spill] sm:$0xff] }
 0x433   : > { %v2323_v27 = vmul.f32 %v9399_v38, %v9399_v38  ;;  %v2590_v30 = vadd.f32 %v2589_v13, %v7403_v22  ;;  %v2643_v12 = vadd.f32 %v2642_v57, %v7407_v0  ;;  %v2324_v35 = vmul.f32 %v9547_v41, %v9547_v41  ;;  %v9556_v9 = vld [vmem:[#allocation47_spill] sm:$0xff]  ;;  %v9558_v13 = vld [vmem:[#allocation138_spill] sm:$0xff]  ;;  %v9562_v41 = vld [vmem:[#allocation140_spill] sm:$0xff] }
 0x434   : > { %v2274_v47 = vsel %vm2273_vm1, %v2106_v36, %v2270_v63  ;;  %v2485_v20 = vadd.f32 %v2484_v2, %v7411_v26  ;;  %v2538_v28 = vadd.f32 %v2537_v60, %v7415_v31  ;;  %v2325_v14 = vmul.f32 %v9548_v49, %v9548_v49  ;;  %v9555_v63 = vld [vmem:[#allocation136_spill] sm:$0xff]  ;;  %v9563_v49 = vld [vmem:[#allocation50_spill] sm:$0xff] }
 0x435   : > { %v2278_v29 = vsel %vm2277_vm3, %v2274_v47, %v2276_v24  ;;  %v2326_v7 = vmul.f32 %v6898_v21, %v6898_v21  ;;  %v2591_v38 = vadd.f32 %v2590_v30, %v7419_v48  ;;  %v2644_v22 = vadd.f32 %v2643_v12, %v7423_v33  ;;  %v9559_v2 = vld [vmem:[#allocation48_spill] sm:$0xff]  ;;  %v9561_v12 = vld [vmem:[#allocation139_spill] sm:$0xff] }
 0x436   : > { %v2280_v1 = vadd.f32 %v2278_v29, %v2053_v46  ;;  %v2327_v0 = vmul.f32 %v9401_v8, %v9401_v8  ;;  %v2328_v26 = vmul.f32 %v9550_v55, %v9550_v55  ;;  %v2486_v31 = vadd.f32 %v2485_v20, %v7427_v51  ;;  %v9560_v29 = vld [vmem:[#allocation49_spill] sm:$0xff] }
 0x437   : > { %v2539_v4 = vadd.f32 %v2538_v28, %v7431_v17  ;;  %v2329_v11 = vmul.f32 %v9551_v6, %v9551_v6  ;;  %v2330_v48 = vmul.f32 %v6906_v50, %v6906_v50  ;;  %v2592_v33 = vadd.f32 %v2591_v38, %v2321_v3  ;;  %v9565_v55 = vld [vmem:[#allocation141_spill] sm:$0xff] }
 0x438   : > { %2285 = vst.msk [vmem:[#allocation2] sm:$0xf] %vm7105_vm0, %v2280_v1  ;;  %v2645_v56 = vadd.f32 %v2644_v22, %v2322_v18  ;;  %v2331_v42 = vmul.f32 %v9403_v45, %v9403_v45  ;;  %v2332_v8 = vmul.f32 %v9552_v19, %v9552_v19  ;;  %v2487_v53 = vadd.f32 %v2486_v31, %v2323_v27  ;;  %v9566_v31 = vld [vmem:[#allocation142_spill] sm:$0xff] }
 0x439   : > { %v2540_v36 = vadd.f32 %v2539_v4, %v2324_v35  ;;  %v2333_v51 = vmul.f32 %v9553_v44, %v9553_v44  ;;  %v2334_v17 = vmul.f32 %v6910_v15, %v6910_v15  ;;  %v2593_v23 = vadd.f32 %v2592_v33, %v2325_v14  ;;  %v9570_v44 = vld [vmem:[#allocation144_spill] sm:$0xff] }
 0x43a   : > { %v2646_v37 = vadd.f32 %v2645_v56, %v2326_v7  ;;  %v2335_v32 = vmul.f32 %v9405_v54, %v9405_v54  ;;  %v2336_v40 = vmul.f32 %v9554_v58, %v9554_v58  ;;  %v2488_v45 = vadd.f32 %v2487_v53, %v2327_v0  ;;  %v9564_v7 = vld [vmem:[#allocation51_spill] sm:$0xff]  ;;  %v9568_v56 = vld [vmem:[#allocation53_spill] sm:$0xff] }
 0x43b   : > { %v2541_v16 = vadd.f32 %v2540_v36, %v2328_v26  ;;  %v2337_v62 = vmul.f32 %v9555_v63, %v9555_v63  ;;  %v2338_v10 = vmul.f32 %v6918_v25, %v6918_v25  ;;  %v2594_v59 = vadd.f32 %v2593_v23, %v2329_v11  ;;  %v9569_v53 = vld [vmem:[#allocation143_spill] sm:$0xff]  ;;  %v9573_v63 = vld [vmem:[#allocation145_spill] sm:$0xff] }
 0x43c   : > { %v2647_v5 = vadd.f32 %v2646_v37, %v2330_v48  ;;  %v2339_v43 = vmul.f32 %v9407_v52, %v9407_v52  ;;  %v2340_v46 = vmul.f32 %v9556_v9, %v9556_v9  ;;  %v2489_v54 = vadd.f32 %v2488_v45, %v2331_v42  ;;  %v9567_v48 = vld [vmem:[#allocation52_spill] sm:$0xff]  ;;  %v9571_v37 = vld [vmem:[#allocation54_spill] sm:$0xff]  ;;  %v9572_v58 = vld [vmem:[#allocation55_spill] sm:$0xff] }
 0x43d   : > { %v2542_v47 = vadd.f32 %v2541_v16, %v2332_v8  ;;  %v2341_v3 = vmul.f32 %v9557_v39, %v9557_v39  ;;  %v2342_v57 = vmul.f32 %v9558_v13, %v9558_v13  ;;  %v2595_v24 = vadd.f32 %v2594_v59, %v2333_v51  ;;  %v9575_v9 = vld [vmem:[#allocation56_spill] sm:$0xff]  ;;  %v9577_v13 = vld [vmem:[#allocation147_spill] sm:$0xff] }
 0x43e   : > { %v2648_v18 = vadd.f32 %v2647_v5, %v2334_v17  ;;  %v2343_v60 = vmul.f32 %v9559_v2, %v9559_v2  ;;  %v2344_v27 = vmul.f32 %v9560_v29, %v9560_v29  ;;  %v2490_v52 = vadd.f32 %v2489_v54, %v2335_v32  ;;  %v9576_v54 = vld [vmem:[#allocation57_spill] sm:$0xff]  ;;  %v9579_v29 = vld [vmem:[#allocation58_spill] sm:$0xff] }
 0x43f   : > { %v2543_v30 = vadd.f32 %v2542_v47, %v2336_v40  ;;  %v2345_v1 = vmul.f32 %v9561_v12, %v9561_v12  ;;  %v2346_v35 = vmul.f32 %v9562_v41, %v9562_v41  ;;  %v2596_v20 = vadd.f32 %v2595_v24, %v2337_v62  ;;  %v9578_v24 = vld [vmem:[#allocation148_spill] sm:$0xff]  ;;  %v9581_v41 = vld [vmem:[#allocation149_spill] sm:$0xff] }
 0x440   : > { %v2649_v28 = vadd.f32 %v2648_v18, %v2338_v10  ;;  %v2347_v14 = vmul.f32 %v9563_v49, %v9563_v49  ;;  %v2348_v38 = vmul.f32 %v9564_v7, %v9564_v7  ;;  %v2491_v22 = vadd.f32 %v2490_v52, %v2339_v43  ;;  %v9574_v10 = vld [vmem:[#allocation146_spill] sm:$0xff]  ;;  %v9580_v52 = vld [vmem:[#allocation59_spill] sm:$0xff]  ;;  %v9583_v7 = vld [vmem:[#allocation60_spill] sm:$0xff] }
 0x441   : > { %v2544_v0 = vadd.f32 %v2543_v30, %v2340_v46  ;;  %v2349_v26 = vmul.f32 %v9565_v55, %v9565_v55  ;;  %v2350_v4 = vmul.f32 %v9566_v31, %v9566_v31  ;;  %v2597_v6 = vadd.f32 %v2596_v20, %v2341_v3  ;;  %v9582_v20 = vld [vmem:[#allocation150_spill] sm:$0xff]  ;;  %v9585_v31 = vld [vmem:[#allocation151_spill] sm:$0xff] }
 0x442   : > { %v2650_v11 = vadd.f32 %v2649_v28, %v2342_v57  ;;  %v2351_v33 = vmul.f32 %v9567_v48, %v9567_v48  ;;  %v2352_v42 = vmul.f32 %v9568_v56, %v9568_v56  ;;  %v2492_v19 = vadd.f32 %v2491_v22, %v2343_v60  ;;  %v9584_v22 = vld [vmem:[#allocation61_spill] sm:$0xff]  ;;  %v9587_v56 = vld [vmem:[#allocation62_spill] sm:$0xff] }
 0x443   : > { %v2545_v8 = vadd.f32 %v2544_v0, %v2344_v27  ;;  %v2353_v36 = vmul.f32 %v9569_v53, %v9569_v53  ;;  %v2354_v51 = vmul.f32 %v9570_v44, %v9570_v44  ;;  %v2598_v17 = vadd.f32 %v2597_v6, %v2345_v1  ;;  %v9586_v6 = vld [vmem:[#allocation152_spill] sm:$0xff]  ;;  %v9589_v44 = vld [vmem:[#allocation153_spill] sm:$0xff] }
 0x444   : > { %v2651_v23 = vadd.f32 %v2650_v11, %v2346_v35  ;;  %v2355_v32 = vmul.f32 %v9571_v37, %v9571_v37  ;;  %v2356_v40 = vmul.f32 %v9572_v58, %v9572_v58  ;;  %v2493_v45 = vadd.f32 %v2492_v19, %v2347_v14  ;;  %v9588_v19 = vld [vmem:[#allocation63_spill] sm:$0xff]  ;;  %v9591_v58 = vld [vmem:[#allocation64_spill] sm:$0xff] }
 0x445   : > { %v2546_v16 = vadd.f32 %v2545_v8, %v2348_v38  ;;  %v2357_v62 = vmul.f32 %v9573_v63, %v9573_v63  ;;  %v2358_v59 = vmul.f32 %v9574_v10, %v9574_v10  ;;  %v2599_v5 = vadd.f32 %v2598_v17, %v2349_v26  ;;  %v9590_v17 = vld [vmem:[#allocation154_spill] sm:$0xff]  ;;  %v9593_v10 = vld [vmem:[#allocation155_spill] sm:$0xff] }
 0x446   : > { %v2652_v43 = vadd.f32 %v2651_v23, %v2350_v4  ;;  %v2359_v46 = vmul.f32 %v9575_v9, %v9575_v9  ;;  %v2360_v47 = vmul.f32 %v9576_v54, %v9576_v54  ;;  %v2494_v39 = vadd.f32 %v2493_v45, %v2351_v33  ;;  %v9592_v45 = vld [vmem:[#allocation65_spill] sm:$0xff]  ;;  %v9595_v54 = vld [vmem:[#allocation66_spill] sm:$0xff] }
 0x447   : > { %v2547_v3 = vadd.f32 %v2546_v16, %v2352_v42  ;;  %v2361_v57 = vmul.f32 %v9577_v13, %v9577_v13  ;;  %v2362_v18 = vmul.f32 %v9578_v24, %v9578_v24  ;;  %v2600_v2 = vadd.f32 %v2599_v5, %v2353_v36  ;;  %v9594_v5 = vld [vmem:[#allocation156_spill] sm:$0xff]  ;;  %v9597_v24 = vld [vmem:[#allocation157_spill] sm:$0xff] }
 0x448   : > { %v2653_v60 = vadd.f32 %v2652_v43, %v2354_v51  ;;  %v2363_v27 = vmul.f32 %v9579_v29, %v9579_v29  ;;  %v2364_v30 = vmul.f32 %v9580_v52, %v9580_v52  ;;  %v2495_v12 = vadd.f32 %v2494_v39, %v2355_v32  ;;  %v9596_v39 = vld [vmem:[#allocation67_spill] sm:$0xff]  ;;  %v9599_v52 = vld [vmem:[#allocation68_spill] sm:$0xff] }
 0x449   : > { %v2548_v1 = vadd.f32 %v2547_v3, %v2356_v40  ;;  %v2365_v35 = vmul.f32 %v9581_v41, %v9581_v41  ;;  %v2366_v28 = vmul.f32 %v9582_v20, %v9582_v20  ;;  %v2601_v49 = vadd.f32 %v2600_v2, %v2357_v62  ;;  %v9598_v2 = vld [vmem:[#allocation158_spill] sm:$0xff]  ;;  %v9601_v20 = vld [vmem:[#allocation159_spill] sm:$0xff] }
 0x44a   : > { %v2654_v14 = vadd.f32 %v2653_v60, %v2358_v59  ;;  %v2367_v38 = vmul.f32 %v9583_v7, %v9583_v7  ;;  %v2368_v0 = vmul.f32 %v9584_v22, %v9584_v22  ;;  %v2496_v55 = vadd.f32 %v2495_v12, %v2359_v46  ;;  %v9600_v12 = vld [vmem:[#allocation69_spill] sm:$0xff]  ;;  %v9603_v22 = vld [vmem:[#allocation70_spill] sm:$0xff] }
 0x44b   : > { %v2549_v26 = vadd.f32 %v2548_v1, %v2360_v47  ;;  %v2369_v4 = vmul.f32 %v9585_v31, %v9585_v31  ;;  %v2370_v11 = vmul.f32 %v9586_v6, %v9586_v6  ;;  %v2602_v48 = vadd.f32 %v2601_v49, %v2361_v57  ;;  %v9602_v49 = vld [vmem:[#allocation160_spill] sm:$0xff]  ;;  %v9605_v6 = vld [vmem:[#allocation161_spill] sm:$0xff] }
 0x44c   : > { %v2655_v33 = vadd.f32 %v2654_v14, %v2362_v18  ;;  %v2371_v42 = vmul.f32 %v9587_v56, %v9587_v56  ;;  %v2372_v8 = vmul.f32 %v9588_v19, %v9588_v19  ;;  %v2497_v53 = vadd.f32 %v2496_v55, %v2363_v27  ;;  %v9604_v55 = vld [vmem:[#allocation71_spill] sm:$0xff]  ;;  %v9607_v19 = vld [vmem:[#allocation72_spill] sm:$0xff] }
 0x44d   : > { %v2550_v36 = vadd.f32 %v2549_v26, %v2364_v30  ;;  %v2373_v51 = vmul.f32 %v9589_v44, %v9589_v44  ;;  %v2374_v23 = vmul.f32 %v9590_v17, %v9590_v17  ;;  %v2603_v37 = vadd.f32 %v2602_v48, %v2365_v35  ;;  %v9606_v48 = vld [vmem:[#allocation162_spill] sm:$0xff]  ;;  %v9609_v17 = vld [vmem:[#allocation163_spill] sm:$0xff] }
 0x44e   : > { %v2656_v32 = vadd.f32 %v2655_v33, %v2366_v28  ;;  %v2375_v40 = vmul.f32 %v9591_v58, %v9591_v58  ;;  %v2376_v16 = vmul.f32 %v9592_v45, %v9592_v45  ;;  %v2498_v63 = vadd.f32 %v2497_v53, %v2367_v38  ;;  %v9608_v53 = vld [vmem:[#allocation73_spill] sm:$0xff]  ;;  %v9611_v45 = vld [vmem:[#allocation74_spill] sm:$0xff] }
 0x44f   : > { %v2551_v62 = vadd.f32 %v2550_v36, %v2368_v0  ;;  %v2377_v59 = vmul.f32 %v9593_v10, %v9593_v10  ;;  %v2378_v43 = vmul.f32 %v9594_v5, %v9594_v5  ;;  %v2604_v9 = vadd.f32 %v2603_v37, %v2369_v4  ;;  %v9610_v37 = vld [vmem:[#allocation164_spill] sm:$0xff]  ;;  %v9613_v5 = vld [vmem:[#allocation165_spill] sm:$0xff] }
 0x450   : > { %v2657_v46 = vadd.f32 %v2656_v32, %v2370_v11  ;;  %v2379_v47 = vmul.f32 %v9595_v54, %v9595_v54  ;;  %v2380_v3 = vmul.f32 %v9596_v39, %v9596_v39  ;;  %v2499_v13 = vadd.f32 %v2498_v63, %v2371_v42  ;;  %v9612_v63 = vld [vmem:[#allocation75_spill] sm:$0xff]  ;;  %v9615_v39 = vld [vmem:[#allocation76_spill] sm:$0xff] }
 0x451   : > { %v2552_v57 = vadd.f32 %v2551_v62, %v2372_v8  ;;  %v2381_v18 = vmul.f32 %v9597_v24, %v9597_v24  ;;  %v2382_v60 = vmul.f32 %v9598_v2, %v9598_v2  ;;  %v2605_v29 = vadd.f32 %v2604_v9, %v2373_v51  ;;  %v9614_v9 = vld [vmem:[#allocation166_spill] sm:$0xff]  ;;  %v9617_v2 = vld [vmem:[#allocation167_spill] sm:$0xff] }
 0x452   : > { %v2658_v27 = vadd.f32 %v2657_v46, %v2374_v23  ;;  %v2383_v30 = vmul.f32 %v9599_v52, %v9599_v52  ;;  %v2384_v1 = vmul.f32 %v9600_v12, %v9600_v12  ;;  %v2500_v41 = vadd.f32 %v2499_v13, %v2375_v40  ;;  %v9616_v13 = vld [vmem:[#allocation77_spill] sm:$0xff]  ;;  %v9619_v12 = vld [vmem:[#allocation78_spill] sm:$0xff] }
 0x453   : > { %v2553_v35 = vadd.f32 %v2552_v57, %v2376_v16  ;;  %v2385_v28 = vmul.f32 %v9601_v20, %v9601_v20  ;;  %v2386_v14 = vmul.f32 %v9602_v49, %v9602_v49  ;;  %v2606_v7 = vadd.f32 %v2605_v29, %v2377_v59  ;;  %v9618_v29 = vld [vmem:[#allocation168_spill] sm:$0xff]  ;;  %v9621_v49 = vld [vmem:[#allocation169_spill] sm:$0xff] }
 0x454   : > { %v2659_v38 = vadd.f32 %v2658_v27, %v2378_v43  ;;  %v2387_v0 = vmul.f32 %v9603_v22, %v9603_v22  ;;  %v2388_v26 = vmul.f32 %v9604_v55, %v9604_v55  ;;  %v2501_v31 = vadd.f32 %v2500_v41, %v2379_v47  ;;  %v9620_v41 = vld [vmem:[#allocation79_spill] sm:$0xff]  ;;  %v9623_v55 = vld [vmem:[#allocation80_spill] sm:$0xff] }
 0x455   : > { %v2554_v4 = vadd.f32 %v2553_v35, %v2380_v3  ;;  %v2389_v11 = vmul.f32 %v9605_v6, %v9605_v6  ;;  %v2390_v33 = vmul.f32 %v9606_v48, %v9606_v48  ;;  %v2607_v56 = vadd.f32 %v2606_v7, %v2381_v18  ;;  %v9622_v7 = vld [vmem:[#allocation170_spill] sm:$0xff]  ;;  %v9625_v48 = vld [vmem:[#allocation171_spill] sm:$0xff] }
 0x456   : > { %v2660_v42 = vadd.f32 %v2659_v38, %v2382_v60  ;;  %v2391_v8 = vmul.f32 %v9607_v19, %v9607_v19  ;;  %v2392_v36 = vmul.f32 %v9608_v53, %v9608_v53  ;;  %v2502_v44 = vadd.f32 %v2501_v31, %v2383_v30  ;;  %v9624_v31 = vld [vmem:[#allocation81_spill] sm:$0xff]  ;;  %v9627_v53 = vld [vmem:[#allocation82_spill] sm:$0xff] }
 0x457   : > { %v2555_v51 = vadd.f32 %v2554_v4, %v2384_v1  ;;  %v2393_v23 = vmul.f32 %v9609_v17, %v9609_v17  ;;  %v2394_v32 = vmul.f32 %v9610_v37, %v9610_v37  ;;  %v2608_v58 = vadd.f32 %v2607_v56, %v2385_v28  ;;  %v9626_v56 = vld [vmem:[#allocation172_spill] sm:$0xff]  ;;  %v9629_v37 = vld [vmem:[#allocation173_spill] sm:$0xff] }
 0x458   : > { %v2661_v40 = vadd.f32 %v2660_v42, %v2386_v14  ;;  %v2395_v16 = vmul.f32 %v9611_v45, %v9611_v45  ;;  %v2396_v62 = vmul.f32 %v9612_v63, %v9612_v63  ;;  %v2503_v10 = vadd.f32 %v2502_v44, %v2387_v0  ;;  %v9628_v44 = vld [vmem:[#allocation83_spill] sm:$0xff]  ;;  %v9631_v63 = vld [vmem:[#allocation84_spill] sm:$0xff] }
 0x459   : > { %v2556_v59 = vadd.f32 %v2555_v51, %v2388_v26  ;;  %v2397_v43 = vmul.f32 %v9613_v5, %v9613_v5  ;;  %v2398_v46 = vmul.f32 %v9614_v9, %v9614_v9  ;;  %v2609_v54 = vadd.f32 %v2608_v58, %v2389_v11  ;;  %v9630_v58 = vld [vmem:[#allocation174_spill] sm:$0xff]  ;;  %v9633_v9 = vld [vmem:[#allocation175_spill] sm:$0xff] }
 0x45a   : > { %v2662_v47 = vadd.f32 %v2661_v40, %v2390_v33  ;;  %v2399_v3 = vmul.f32 %v9615_v39, %v9615_v39  ;;  %v2400_v57 = vmul.f32 %v9616_v13, %v9616_v13  ;;  %v2504_v24 = vadd.f32 %v2503_v10, %v2391_v8  ;;  %v9632_v10 = vld [vmem:[#allocation85_spill] sm:$0xff]  ;;  %v9635_v13 = vld [vmem:[#allocation86_spill] sm:$0xff] }
 0x45b   : > { %v2557_v18 = vadd.f32 %v2556_v59, %v2392_v36  ;;  %v2401_v60 = vmul.f32 %v9617_v2, %v9617_v2  ;;  %v2402_v27 = vmul.f32 %v9618_v29, %v9618_v29  ;;  %v2610_v52 = vadd.f32 %v2609_v54, %v2393_v23  ;;  %v9634_v54 = vld [vmem:[#allocation176_spill] sm:$0xff]  ;;  %v9637_v29 = vld [vmem:[#allocation177_spill] sm:$0xff] }
 0x45c   : > { %v2663_v30 = vadd.f32 %v2662_v47, %v2394_v32  ;;  %v2403_v1 = vmul.f32 %v9619_v12, %v9619_v12  ;;  %v2404_v35 = vmul.f32 %v9620_v41, %v9620_v41  ;;  %v2505_v20 = vadd.f32 %v2504_v24, %v2395_v16  ;;  %v9636_v24 = vld [vmem:[#allocation87_spill] sm:$0xff]  ;;  %v9639_v41 = vld [vmem:[#allocation88_spill] sm:$0xff] }
 0x45d   : > { %v2558_v28 = vadd.f32 %v2557_v18, %v2396_v62  ;;  %v2405_v14 = vmul.f32 %v9621_v49, %v9621_v49  ;;  %v2406_v38 = vmul.f32 %v9622_v7, %v9622_v7  ;;  %v2611_v22 = vadd.f32 %v2610_v52, %v2397_v43  ;;  %v9638_v52 = vld [vmem:[#allocation178_spill] sm:$0xff]  ;;  %v9641_v7 = vld [vmem:[#allocation179_spill] sm:$0xff] }
 0x45e   : > { %v2664_v0 = vadd.f32 %v2663_v30, %v2398_v46  ;;  %v2407_v26 = vmul.f32 %v9623_v55, %v9623_v55  ;;  %v2408_v4 = vmul.f32 %v9624_v31, %v9624_v31  ;;  %v2506_v6 = vadd.f32 %v2505_v20, %v2399_v3  ;;  %v9640_v20 = vld [vmem:[#allocation89_spill] sm:$0xff]  ;;  %v9643_v31 = vld [vmem:[#allocation90_spill] sm:$0xff] }
 0x45f   : > { %v2559_v11 = vadd.f32 %v2558_v28, %v2400_v57  ;;  %v2409_v33 = vmul.f32 %v9625_v48, %v9625_v48  ;;  %v2410_v42 = vmul.f32 %v9626_v56, %v9626_v56  ;;  %v2612_v19 = vadd.f32 %v2611_v22, %v2401_v60  ;;  %v9642_v22 = vld [vmem:[#allocation180_spill] sm:$0xff]  ;;  %v9645_v56 = vld [vmem:[#allocation181_spill] sm:$0xff] }
 0x460   : > { %v2665_v8 = vadd.f32 %v2664_v0, %v2402_v27  ;;  %v2411_v36 = vmul.f32 %v9627_v53, %v9627_v53  ;;  %v2412_v51 = vmul.f32 %v9628_v44, %v9628_v44  ;;  %v2507_v17 = vadd.f32 %v2506_v6, %v2403_v1  ;;  %v9644_v6 = vld [vmem:[#allocation91_spill] sm:$0xff]  ;;  %v9647_v44 = vld [vmem:[#allocation92_spill] sm:$0xff] }
 0x461   : > { %v2560_v23 = vadd.f32 %v2559_v11, %v2404_v35  ;;  %v2413_v32 = vmul.f32 %v9629_v37, %v9629_v37  ;;  %v2414_v40 = vmul.f32 %v9630_v58, %v9630_v58  ;;  %v2613_v45 = vadd.f32 %v2612_v19, %v2405_v14  ;;  %v9646_v19 = vld [vmem:[#allocation182_spill] sm:$0xff]  ;;  %v9649_v58 = vld [vmem:[#allocation183_spill] sm:$0xff] }
 0x462   : > { %v2666_v16 = vadd.f32 %v2665_v8, %v2406_v38  ;;  %v2415_v62 = vmul.f32 %v9631_v63, %v9631_v63  ;;  %v2416_v59 = vmul.f32 %v9632_v10, %v9632_v10  ;;  %v2508_v5 = vadd.f32 %v2507_v17, %v2407_v26  ;;  %v9648_v17 = vld [vmem:[#allocation93_spill] sm:$0xff]  ;;  %v9651_v10 = vld [vmem:[#allocation94_spill] sm:$0xff] }
 0x463   : > { %v2561_v43 = vadd.f32 %v2560_v23, %v2408_v4  ;;  %v2417_v46 = vmul.f32 %v9633_v9, %v9633_v9  ;;  %v2418_v47 = vmul.f32 %v9634_v54, %v9634_v54  ;;  %v2614_v39 = vadd.f32 %v2613_v45, %v2409_v33  ;;  %v9650_v45 = vld [vmem:[#allocation184_spill] sm:$0xff]  ;;  %v9653_v54 = vld [vmem:[#allocation185_spill] sm:$0xff] }
 0x464   : > { %v2667_v3 = vadd.f32 %v2666_v16, %v2410_v42  ;;  %v2419_v57 = vmul.f32 %v9635_v13, %v9635_v13  ;;  %v2420_v18 = vmul.f32 %v9636_v24, %v9636_v24  ;;  %v2509_v2 = vadd.f32 %v2508_v5, %v2411_v36  ;;  %v9652_v5 = vld [vmem:[#allocation95_spill] sm:$0xff]  ;;  %v9655_v24 = vld [vmem:[#allocation96_spill] sm:$0xff] }
 0x465   : > { %v2562_v60 = vadd.f32 %v2561_v43, %v2412_v51  ;;  %v2421_v27 = vmul.f32 %v9637_v29, %v9637_v29  ;;  %v2422_v30 = vmul.f32 %v9638_v52, %v9638_v52  ;;  %v2615_v12 = vadd.f32 %v2614_v39, %v2413_v32  ;;  %v9654_v39 = vld [vmem:[#allocation186_spill] sm:$0xff]  ;;  %v9657_v52 = vld [vmem:[#allocation187_spill] sm:$0xff] }
 0x466   : > { %v2668_v1 = vadd.f32 %v2667_v3, %v2414_v40  ;;  %v2423_v35 = vmul.f32 %v9639_v41, %v9639_v41  ;;  %v2424_v28 = vmul.f32 %v9640_v20, %v9640_v20  ;;  %v2510_v49 = vadd.f32 %v2509_v2, %v2415_v62  ;;  %v9656_v2 = vld [vmem:[#allocation97_spill] sm:$0xff]  ;;  %v9659_v20 = vld [vmem:[#allocation98_spill] sm:$0xff] }
 0x467   : > { %v2563_v14 = vadd.f32 %v2562_v60, %v2416_v59  ;;  %v2425_v38 = vmul.f32 %v9641_v7, %v9641_v7  ;;  %v2426_v0 = vmul.f32 %v9642_v22, %v9642_v22  ;;  %v2616_v55 = vadd.f32 %v2615_v12, %v2417_v46  ;;  %v9658_v12 = vld [vmem:[#allocation188_spill] sm:$0xff]  ;;  %v9661_v22 = vld [vmem:[#allocation189_spill] sm:$0xff] }
 0x468   : > { %v2669_v26 = vadd.f32 %v2668_v1, %v2418_v47  ;;  %v2427_v4 = vmul.f32 %v9643_v31, %v9643_v31  ;;  %v2428_v11 = vmul.f32 %v9644_v6, %v9644_v6  ;;  %v2511_v48 = vadd.f32 %v2510_v49, %v2419_v57  ;;  %v9660_v49 = vld [vmem:[#allocation99_spill] sm:$0xff]  ;;  %v9663_v6 = vld [vmem:[#allocation100_spill] sm:$0xff] }
 0x469   : > { %v2564_v33 = vadd.f32 %v2563_v14, %v2420_v18  ;;  %v2429_v42 = vmul.f32 %v9645_v56, %v9645_v56  ;;  %v2430_v8 = vmul.f32 %v9646_v19, %v9646_v19  ;;  %v2617_v53 = vadd.f32 %v2616_v55, %v2421_v27  ;;  %v9662_v55 = vld [vmem:[#allocation190_spill] sm:$0xff]  ;;  %v9665_v19 = vld [vmem:[#allocation191_spill] sm:$0xff] }
 0x46a   : > { %v2670_v36 = vadd.f32 %v2669_v26, %v2422_v30  ;;  %v2431_v51 = vmul.f32 %v9647_v44, %v9647_v44  ;;  %v2432_v23 = vmul.f32 %v9648_v17, %v9648_v17  ;;  %v2512_v37 = vadd.f32 %v2511_v48, %v2423_v35  ;;  %v9664_v48 = vld [vmem:[#allocation101_spill] sm:$0xff]  ;;  %v9667_v17 = vld [vmem:[#allocation102_spill] sm:$0xff] }
 0x46b   : > { %v2565_v32 = vadd.f32 %v2564_v33, %v2424_v28  ;;  %v2433_v40 = vmul.f32 %v9649_v58, %v9649_v58  ;;  %v2434_v16 = vmul.f32 %v9650_v45, %v9650_v45  ;;  %v2618_v63 = vadd.f32 %v2617_v53, %v2425_v38  ;;  %v9666_v53 = vld [vmem:[#allocation192_spill] sm:$0xff]  ;;  %v9669_v45 = vld [vmem:[#allocation193_spill] sm:$0xff] }
 0x46c   : > { %v2671_v62 = vadd.f32 %v2670_v36, %v2426_v0  ;;  %v2435_v59 = vmul.f32 %v9651_v10, %v9651_v10  ;;  %v2436_v43 = vmul.f32 %v9652_v5, %v9652_v5  ;;  %v2513_v9 = vadd.f32 %v2512_v37, %v2427_v4  ;;  %v9668_v37 = vld [vmem:[#allocation103_spill] sm:$0xff]  ;;  %v9671_v5 = vld [vmem:[#allocation104_spill] sm:$0xff] }
 0x46d   : > { %v2566_v46 = vadd.f32 %v2565_v32, %v2428_v11  ;;  %v2437_v47 = vmul.f32 %v9653_v54, %v9653_v54  ;;  %v2438_v3 = vmul.f32 %v9654_v39, %v9654_v39  ;;  %v2619_v13 = vadd.f32 %v2618_v63, %v2429_v42  ;;  %v9670_v63 = vld [vmem:[#allocation194_spill] sm:$0xff]  ;;  %v9673_v39 = vld [vmem:[#allocation195_spill] sm:$0xff] }
 0x46e   : > { %v2672_v57 = vadd.f32 %v2671_v62, %v2430_v8  ;;  %v2439_v18 = vmul.f32 %v9655_v24, %v9655_v24  ;;  %v2440_v60 = vmul.f32 %v9656_v2, %v9656_v2  ;;  %v2514_v29 = vadd.f32 %v2513_v9, %v2431_v51  ;;  %v9672_v9 = vld [vmem:[#allocation105_spill] sm:$0xff]  ;;  %v9675_v2 = vld [vmem:[#allocation106_spill] sm:$0xff] }
 0x46f   : > { %v2567_v27 = vadd.f32 %v2566_v46, %v2432_v23  ;;  %v2441_v30 = vmul.f32 %v9657_v52, %v9657_v52  ;;  %v2442_v1 = vmul.f32 %v9658_v12, %v9658_v12  ;;  %v2620_v41 = vadd.f32 %v2619_v13, %v2433_v40  ;;  %v9674_v13 = vld [vmem:[#allocation196_spill] sm:$0xff]  ;;  %v9677_v12 = vld [vmem:[#allocation197_spill] sm:$0xff] }
 0x470   : > { %v2673_v35 = vadd.f32 %v2672_v57, %v2434_v16  ;;  %v2443_v28 = vmul.f32 %v9659_v20, %v9659_v20  ;;  %v2444_v14 = vmul.f32 %v9660_v49, %v9660_v49  ;;  %v2515_v7 = vadd.f32 %v2514_v29, %v2435_v59  ;;  %v9676_v29 = vld [vmem:[#allocation107_spill] sm:$0xff]  ;;  %v9679_v49 = vld [vmem:[#allocation108_spill] sm:$0xff] }
 0x471   : > { %v2568_v38 = vadd.f32 %v2567_v27, %v2436_v43  ;;  %v2445_v0 = vmul.f32 %v9661_v22, %v9661_v22  ;;  %v2446_v26 = vmul.f32 %v9662_v55, %v9662_v55  ;;  %v2621_v31 = vadd.f32 %v2620_v41, %v2437_v47  ;;  %v9678_v41 = vld [vmem:[#allocation198_spill] sm:$0xff]  ;;  %v9681_v55 = vld [vmem:[#allocation199_spill] sm:$0xff] }
 0x472   : > { %v2674_v4 = vadd.f32 %v2673_v35, %v2438_v3  ;;  %v2447_v11 = vmul.f32 %v9663_v6, %v9663_v6  ;;  %v2448_v33 = vmul.f32 %v9664_v48, %v9664_v48  ;;  %v2516_v56 = vadd.f32 %v2515_v7, %v2439_v18  ;;  %v9680_v7 = vld [vmem:[#allocation109_spill] sm:$0xff]  ;;  %v9683_v48 = vld [vmem:[#allocation110_spill] sm:$0xff] }
 0x473   : > { %v2569_v42 = vadd.f32 %v2568_v38, %v2440_v60  ;;  %v2449_v8 = vmul.f32 %v9665_v19, %v9665_v19  ;;  %v2450_v36 = vmul.f32 %v9666_v53, %v9666_v53  ;;  %v2622_v44 = vadd.f32 %v2621_v31, %v2441_v30  ;;  %v9682_v31 = vld [vmem:[#allocation200_spill] sm:$0xff]  ;;  %v9685_v53 = vld [vmem:[#allocation201_spill] sm:$0xff] }
 0x474   : > { %v2675_v51 = vadd.f32 %v2674_v4, %v2442_v1  ;;  %v2451_v23 = vmul.f32 %v9667_v17, %v9667_v17  ;;  %v2452_v32 = vmul.f32 %v9668_v37, %v9668_v37  ;;  %v2517_v58 = vadd.f32 %v2516_v56, %v2443_v28  ;;  %v9684_v56 = vld [vmem:[#allocation111_spill] sm:$0xff]  ;;  %v9687_v37 = vld [vmem:[#allocation112_spill] sm:$0xff] }
 0x475   : > { %v2570_v40 = vadd.f32 %v2569_v42, %v2444_v14  ;;  %v2453_v16 = vmul.f32 %v9669_v45, %v9669_v45  ;;  %v2454_v62 = vmul.f32 %v9670_v63, %v9670_v63  ;;  %v2623_v10 = vadd.f32 %v2622_v44, %v2445_v0  ;;  %v9686_v44 = vld [vmem:[#allocation202_spill] sm:$0xff]  ;;  %v9689_v63 = vld [vmem:[#allocation203_spill] sm:$0xff] }
 0x476   : > { %v2676_v59 = vadd.f32 %v2675_v51, %v2446_v26  ;;  %v2455_v43 = vmul.f32 %v9671_v5, %v9671_v5  ;;  %v2456_v46 = vmul.f32 %v9672_v9, %v9672_v9  ;;  %v2518_v54 = vadd.f32 %v2517_v58, %v2447_v11  ;;  %v9688_v58 = vld [vmem:[#allocation113_spill] sm:$0xff]  ;;  %v9691_v9 = vld [vmem:[#allocation114_spill] sm:$0xff] }
 0x477   : > { %v2571_v47 = vadd.f32 %v2570_v40, %v2448_v33  ;;  %v2457_v3 = vmul.f32 %v9673_v39, %v9673_v39  ;;  %v2458_v57 = vmul.f32 %v9674_v13, %v9674_v13  ;;  %v2624_v24 = vadd.f32 %v2623_v10, %v2449_v8  ;;  %v9690_v10 = vld [vmem:[#allocation204_spill] sm:$0xff]  ;;  %v9693_v13 = vld [vmem:[#allocation205_spill] sm:$0xff] }
 0x478   : > { %v2677_v18 = vadd.f32 %v2676_v59, %v2450_v36  ;;  %v2459_v60 = vmul.f32 %v9675_v2, %v9675_v2  ;;  %v2460_v27 = vmul.f32 %v9676_v29, %v9676_v29  ;;  %v2519_v52 = vadd.f32 %v2518_v54, %v2451_v23  ;;  %v9692_v54 = vld [vmem:[#allocation115_spill] sm:$0xff] }
 0x479   : > { %v2572_v30 = vadd.f32 %v2571_v47, %v2452_v32  ;;  %v2461_v1 = vmul.f32 %v9677_v12, %v9677_v12  ;;  %v2462_v35 = vmul.f32 %v9678_v41, %v9678_v41  ;;  %v2625_v20 = vadd.f32 %v2624_v24, %v2453_v16  ;;  %v9694_v24 = vld [vmem:[#allocation206_spill] sm:$0xff] }
 0x47a   : > { %v2678_v28 = vadd.f32 %v2677_v18, %v2454_v62  ;;  %v2463_v14 = vmul.f32 %v9679_v49, %v9679_v49  ;;  %v2464_v38 = vmul.f32 %v9680_v7, %v9680_v7  ;;  %v2520_v22 = vadd.f32 %v2519_v52, %v2455_v43 }
 0x47b   : > { %v2573_v0 = vadd.f32 %v2572_v30, %v2456_v46  ;;  %v2465_v26 = vmul.f32 %v9681_v55, %v9681_v55  ;;  %v2466_v4 = vmul.f32 %v9682_v31, %v9682_v31  ;;  %v2626_v6 = vadd.f32 %v2625_v20, %v2457_v3 }
 0x47c   : > { %v2679_v11 = vadd.f32 %v2678_v28, %v2458_v57  ;;  %v2467_v33 = vmul.f32 %v9683_v48, %v9683_v48  ;;  %v2468_v42 = vmul.f32 %v9684_v56, %v9684_v56  ;;  %v2521_v19 = vadd.f32 %v2520_v22, %v2459_v60 }
 0x47d   : > { %v2574_v8 = vadd.f32 %v2573_v0, %v2460_v27  ;;  %v2469_v36 = vmul.f32 %v9685_v53, %v9685_v53  ;;  %v2470_v51 = vmul.f32 %v9686_v44, %v9686_v44  ;;  %v2627_v17 = vadd.f32 %v2626_v6, %v2461_v1 }
 0x47e   : > { %v2680_v23 = vadd.f32 %v2679_v11, %v2462_v35  ;;  %v2471_v32 = vmul.f32 %v9687_v37, %v9687_v37  ;;  %v2472_v40 = vmul.f32 %v9688_v58, %v9688_v58  ;;  %v2522_v45 = vadd.f32 %v2521_v19, %v2463_v14 }
 0x47f   : > { %v2575_v16 = vadd.f32 %v2574_v8, %v2464_v38  ;;  %v2473_v62 = vmul.f32 %v9689_v63, %v9689_v63  ;;  %v2474_v59 = vmul.f32 %v9690_v10, %v9690_v10  ;;  %v2628_v5 = vadd.f32 %v2627_v17, %v2465_v26 }
 0x480   : > { %v2681_v43 = vadd.f32 %v2680_v23, %v2466_v4  ;;  %v2475_v46 = vmul.f32 %v9691_v9, %v9691_v9  ;;  %v2476_v47 = vmul.f32 %v9692_v54, %v9692_v54  ;;  %v2523_v39 = vadd.f32 %v2522_v45, %v2467_v33 }
 0x481   : > { %v2576_v3 = vadd.f32 %v2575_v16, %v2468_v42  ;;  %v2477_v57 = vmul.f32 %v9693_v13, %v9693_v13  ;;  %v2478_v18 = vmul.f32 %v9694_v24, %v9694_v24  ;;  %v2629_v2 = vadd.f32 %v2628_v5, %v2469_v36 }
 0x482   : > { %v2682_v60 = vadd.f32 %v2681_v43, %v2470_v51  ;;  %v2524_v29 = vadd.f32 %v2523_v39, %v2471_v32  ;;  %v2286_v32 = vld [vmem:[#allocation3] sm:$0xf] }
 0x483   : > { %v2577_v27 = vadd.f32 %v2576_v3, %v2472_v40  ;;  %v2630_v52 = vadd.f32 %v2629_v2, %v2473_v62 }
 0x484   : > { %v2683_v30 = vadd.f32 %v2682_v60, %v2474_v59  ;;  %v2525_v12 = vadd.f32 %v2524_v29, %v2475_v46 }
 0x485   : > { %v2578_v1 = vadd.f32 %v2577_v27, %v2476_v47  ;;  %v2631_v41 = vadd.f32 %v2630_v52, %v2477_v57 }
 0x486   : > { %v2684_v35 = vadd.f32 %v2683_v30, %v2478_v18  ;;  %v2526_v20 = vrot.slane %v2525_v12, 4 }
 0x487   : > { %v2579_v28 = vrot.slane %v2578_v1, 4  ;;  %v2632_v49 = vrot.slane %v2631_v41, 4 }
 0x488   : > { %v2685_v14 = vrot.slane %v2684_v35, 4  ;;  %v2527_v7 = vadd.f32 %v2526_v20, %v2525_v12 }
 0x489   : > { %v2580_v38 = vadd.f32 %v2579_v28, %v2578_v1  ;;  %v2633_v22 = vadd.f32 %v2632_v49, %v2631_v41 }
 0x48a   : > { %v2686_v0 = vadd.f32 %v2685_v14, %v2684_v35  ;;  %v2528_v55 = vrot.slane %v2527_v7, 2 }
 0x48b   : > { %v2581_v26 = vrot.slane %v2580_v38, 2  ;;  %v2634_v31 = vrot.slane %v2633_v22, 2 }
 0x48c   : > { %v2687_v4 = vrot.slane %v2686_v0, 2  ;;  %v2529_v6 = vadd.f32 %v2528_v55, %v2527_v7 }
 0x48d   : > { %v2582_v11 = vadd.f32 %v2581_v26, %v2580_v38  ;;  %v2635_v48 = vadd.f32 %v2634_v31, %v2633_v22 }
 0x48e   : > { %v2688_v33 = vadd.f32 %v2687_v4, %v2686_v0  ;;  %v2530_v56 = vrot.slane %v2529_v6, 1 }
 0x48f   : > { %v2583_v42 = vrot.slane %v2582_v11, 1  ;;  %v2636_v19 = vrot.slane %v2635_v48, 1 }
 0x490   : > { %v2689_v8 = vrot.slane %v2688_v33, 1  ;;  %v2531_v53 = vadd.f32 %v2530_v56, %v2529_v6 }
 0x491   : > { %v2584_v36 = vadd.f32 %v2583_v42, %v2582_v11  ;;  %v2637_v44 = vadd.f32 %v2636_v19, %v2635_v48 }
 0x492   : > { %v2690_v51 = vadd.f32 %v2689_v8, %v2688_v33 }
 0x493   : > { %v2695_v17 = vrot.slane %v2584_v36, 7  ;;  %v2696_v23 = vrot.slane %v2637_v44, 6 }
 0x494   : > { %v2697_v37 = vrot.slane %v2690_v51, 5 }
 0x495   : > { %v2698_v58 = vsel %vm2273_vm1, %v2531_v53, %v2695_v17 }
 0x496   : > { %v2699_v40 = vsel %vm2275_vm2, %v2696_v23, %v2697_v37 }
 0x497   : > { %v2700_v45 = vsel %vm2277_vm3, %v2698_v58, %v2699_v40 }
 0x498   : > { %v2702_v16 = vadd.f32 %v2700_v45, %v2286_v32 }
 0x49a   : > { %2703 = vst.msk [vmem:[#allocation3] sm:$0xf] %vm7105_vm0, %v2702_v16 }
 0x49b PF: > { %p2704_p8 = scmp.eq.s32.totalorder %s6287_s21, 1 }
 0x49c   : > { %v2710_v63 = vld [vmem:[#allocation2] sm:$0xf] (%p2704_p8)  ;;  %v2730_v13 = vlaneseq (%p2704_p8)  ;;  %v2717_v57 = vld [vmem:[#allocation11] sm:$0xf] (%p2704_p8)  ;;  %v2735_v60 = vld [vmem:[#allocation12] sm:$0xf] (%p2704_p8) }
 0x49d   : > { %2709 = sbr.rel (!%p2704_p8) target bundleno = 1219 (0x4c3), region = 76  ;;  %v2711_v10 = vmul.f32 (%p2704_p8), 0.0033333334, %v2710_v63 }
 0x49e   : > { %vm2732_vm7 = vcmp.lt.s32.totalorder (%p2704_p8), %v2730_v13, 512 }
 0x49f   : > { %v2714_v5 = vmul.f32 (%p2704_p8), %v2711_v10, %v2711_v10 }
 0x4a1   : > { %v2712_v62 = vld [vmem:[#allocation3] sm:$0xf] (%p2704_p8) }
 0x4a2   : > { %v2713_v59 = vmul.f32 0.0033333334, %v2712_v62 }
 0x4a4   : > { %v2715_v43 = vsub.f32 %v2713_v59, %v2714_v5 }
 0x4a6   : > { %v2716_v9 = vmax.f32 %v2715_v43, 0.0 }
 0x4a8   : > { %v2718_v46 = vadd.f32 1e-05, %v2716_v9 }
 0x4aa   : > { %6076 = vrsqrt.f32 %v2718_v46  ;;  %vm2725_vm4 = vweird.f32 %v2718_v46 }
 0x4b0   : > { %v6077_v54 = vpop.eup %6076 }
 0x4b1   : > { %v2720_v47 = vmul.f32 %v6077_v54, %v2718_v46  ;;  %vm2726_vm5 = vweird.f32 %v6077_v54 }
 0x4b2   : > { %vm2727_vm6 = vmor %vm2725_vm4, %vm2726_vm5 }
 0x4b3   : > { %v2721_v39 = vmul.f32 %v6077_v54, %v2720_v47 }
 0x4b5   : > { %v2722_v3 = vmul.f32 0.5, %v2721_v39 }
 0x4b7   : > { %v2723_v34 = vsub.f32 1.5, %v2722_v3 }
 0x4b9   : > { %v2724_v24 = vmul.f32 %v6077_v54, %v2723_v34 }
 0x4bb   : > { %v2728_v18 = vsel %vm2727_vm6, %v6077_v54, %v2724_v24 }
 0x4bc   : > { %v2729_v2 = vmul.f32 %v2728_v18, %v2717_v57 }
 0x4be   : > { %2734 = vst.msk [vmem:[#allocation4] sm:$0xf] %vm2732_vm7, %v2729_v2  ;;  %v2736_v29 = vmul.f32 %v2729_v2, %v2711_v10 }
 0x4c0   : > { %v2737_v27 = vsub.f32 %v2735_v60, %v2736_v29 }
 0x4c2   : > { %2738 = vst.msk [vmem:[#allocation5] sm:$0xf] %vm2732_vm7, %v2737_v27 }
 0x4c3 PF: > { %p5544_p9 = scmp.ne.s32.totalorder %s6287_s21, 1 }
 0x4c5   : > { %2741 = sbr.rel (%p5544_p9) target bundleno = 2159 (0x86f), region = 80 }
 0x4ca   : > { %v5603_v52 = vld [vmem:[#allocation14 + $0x70] sm:$0xf]  ;;  %v5933_v30 = vld [vmem:[#allocation14 + $0x74] sm:$0xf0]  ;;  %v5595_v38 = vld [vmem:[#allocation14 + $0x60] sm:$0xf] }
 0x4cb   : > { %v5667_v12 = vld [vmem:[#allocation14 + $0xf0] sm:$0xf]  ;;  %v5604_v1 = vor.u32 %v5933_v30, %v5603_v52  ;;  %v5949_v41 = vld [vmem:[#allocation14 + $0xf4] sm:$0xf0]  ;;  %v5931_v0 = vld [vmem:[#allocation14 + $0x64] sm:$0xf0] }
 0x4cc   : > { %v5731_v35 = vld [vmem:[#allocation14 + $0x170] sm:$0xf]  ;;  %v5965_v20 = vld [vmem:[#allocation14 + $0x174] sm:$0xf0]  ;;  %v5668_v28 = vor.u32 %v5949_v41, %v5667_v12  ;;  %v5659_v55 = vld [vmem:[#allocation14 + $0xe0] sm:$0xf]  ;;  %v5596_v31 = vor.u32 %v5931_v0, %v5595_v38 }
 0x4cd   : > { %v5732_v49 = vor.u32 %v5965_v20, %v5731_v35  ;;  %v5795_v14 = vld [vmem:[#allocation14 + $0x1f0] sm:$0xf]  ;;  %v5981_v7 = vld [vmem:[#allocation14 + $0x1f4] sm:$0xf0]  ;;  %3824 = vmatpush.bf16.msra.mxu0 %v5604_v1  ;;  %v5947_v26 = vld [vmem:[#allocation14 + $0xe4] sm:$0xf0] }
 0x4ce   : > { %v5796_v22 = vor.u32 %v5981_v7, %v5795_v14  ;;  %3953 = vmatpush.bf16.msra.mxu1 %v5668_v28  ;;  %v5660_v4 = vor.u32 %v5947_v26, %v5659_v55  ;;  %v5723_v6 = vld [vmem:[#allocation14 + $0x160] sm:$0xf]  ;;  %v5963_v11 = vld [vmem:[#allocation14 + $0x164] sm:$0xf0]  ;;  %v5587_v42 = vld [vmem:[#allocation14 + $0x50] sm:$0xf] }
 0x4cf   : > { %4082 = vmatpush.bf16.msra.mxu2 %v5732_v49  ;;  %v5787_v48 = vld [vmem:[#allocation14 + $0x1e0] sm:$0xf]  ;;  %v5724_v33 = vor.u32 %v5963_v11, %v5723_v6  ;;  %v5979_v56 = vld [vmem:[#allocation14 + $0x1e4] sm:$0xf0]  ;;  %v5929_v19 = vld [vmem:[#allocation14 + $0x54] sm:$0xf0] }
 0x4d0   : > { %4211 = vmatpush.bf16.msra.mxu3 %v5796_v22  ;;  %v5788_v8 = vor.u32 %v5979_v56, %v5787_v48  ;;  %v5651_v53 = vld [vmem:[#allocation14 + $0xd0] sm:$0xf]  ;;  %v5945_v36 = vld [vmem:[#allocation14 + $0xd4] sm:$0xf0]  ;;  %v5588_v51 = vor.u32 %v5929_v19, %v5587_v42  ;;  %v5579_v40 = vld [vmem:[#allocation14 + $0x40] sm:$0xf] }
 0x4d1   : > { %v5715_v44 = vld [vmem:[#allocation14 + $0x150] sm:$0xf]  ;;  %3825 = vmatpush.bf16.msra.mxu0 %v5596_v31  ;;  %v5961_v17 = vld [vmem:[#allocation14 + $0x154] sm:$0xf0]  ;;  %v5652_v32 = vor.u32 %v5945_v36, %v5651_v53  ;;  %v5927_v45 = vld [vmem:[#allocation14 + $0x44] sm:$0xf0] }
 0x4d2   : > { %v5779_v23 = vld [vmem:[#allocation14 + $0x1d0] sm:$0xf]  ;;  %v5977_v37 = vld [vmem:[#allocation14 + $0x1d4] sm:$0xf0]  ;;  %3954 = vmatpush.bf16.msra.mxu1 %v5660_v4  ;;  %v5716_v58 = vor.u32 %v5961_v17, %v5715_v44  ;;  %v5643_v16 = vld [vmem:[#allocation14 + $0xc0] sm:$0xf]  ;;  %v5580_v9 = vor.u32 %v5927_v45, %v5579_v40 }
 0x4d3   : > { %4083 = vmatpush.bf16.msra.mxu2 %v5724_v33  ;;  %v5780_v63 = vor.u32 %v5977_v37, %v5779_v23  ;;  %v5943_v62 = vld [vmem:[#allocation14 + $0xc4] sm:$0xf0]  ;;  %v5707_v10 = vld [vmem:[#allocation14 + $0x140] sm:$0xf]  ;;  %v5571_v46 = vld [vmem:[#allocation14 + $0x30] sm:$0xf] }
 0x4d4   : > { %4212 = vmatpush.bf16.msra.mxu3 %v5788_v8  ;;  %v5959_v59 = vld [vmem:[#allocation14 + $0x144] sm:$0xf0]  ;;  %v5771_v5 = vld [vmem:[#allocation14 + $0x1c0] sm:$0xf]  ;;  %v5925_v54 = vld [vmem:[#allocation14 + $0x34] sm:$0xf0]  ;;  %v5644_v47 = vor.u32 %v5943_v62, %v5643_v16 }
 0x4d5   : > { %v5975_v43 = vld [vmem:[#allocation14 + $0x1c4] sm:$0xf0]  ;;  %3826 = vmatpush.bf16.msra.mxu0 %v5588_v51  ;;  %v5708_v39 = vor.u32 %v5959_v59, %v5707_v10  ;;  %v5635_v3 = vld [vmem:[#allocation14 + $0xb0] sm:$0xf]  ;;  %v5941_v34 = vld [vmem:[#allocation14 + $0xb4] sm:$0xf0]  ;;  %v5572_v12 = vor.u32 %v5925_v54, %v5571_v46 }
 0x4d6   : > { %3955 = vmatpush.bf16.msra.mxu1 %v5652_v32  ;;  %v5699_v13 = vld [vmem:[#allocation14 + $0x130] sm:$0xf]  ;;  %v5772_v57 = vor.u32 %v5975_v43, %v5771_v5  ;;  %v5957_v24 = vld [vmem:[#allocation14 + $0x134] sm:$0xf0]  ;;  %v5563_v60 = vld [vmem:[#allocation14 + $0x20] sm:$0xf]  ;;  %v5636_v20 = vor.u32 %v5941_v34, %v5635_v3 }
 0x4d7   : > { %4084 = vmatpush.bf16.msra.mxu2 %v5716_v58  ;;  %v5763_v18 = vld [vmem:[#allocation14 + $0x1b0] sm:$0xf]  ;;  %v5973_v2 = vld [vmem:[#allocation14 + $0x1b4] sm:$0xf0]  ;;  %v5923_v29 = vld [vmem:[#allocation14 + $0x24] sm:$0xf0]  ;;  %v5700_v28 = vor.u32 %v5957_v24, %v5699_v13 }
 0x4d8   : > { %4213 = vmatpush.bf16.msra.mxu3 %v5780_v63  ;;  %v5627_v27 = vld [vmem:[#allocation14 + $0xa0] sm:$0xf]  ;;  %v5939_v52 = vld [vmem:[#allocation14 + $0xa4] sm:$0xf0]  ;;  %v5555_v49 = vld [vmem:[#allocation14 + $0x10] sm:$0xf]  ;;  %v5764_v38 = vor.u32 %v5973_v2, %v5763_v18  ;;  %v5564_v6 = vor.u32 %v5923_v29, %v5563_v60 }
 0x4d9   : > { %v5691_v30 = vld [vmem:[#allocation14 + $0x120] sm:$0xf]  ;;  %3827 = vmatpush.bf16.msra.mxu0 %v5580_v9  ;;  %v5955_v1 = vld [vmem:[#allocation14 + $0x124] sm:$0xf0]  ;;  %v5921_v14 = vld [vmem:[#allocation14 + $0x14] sm:$0xf0]  ;;  %v5628_v11 = vor.u32 %v5939_v52, %v5627_v27 }
 0x4da   : > { %v5755_v41 = vld [vmem:[#allocation14 + $0x1a0] sm:$0xf]  ;;  %v5971_v35 = vld [vmem:[#allocation14 + $0x1a4] sm:$0xf0]  ;;  %3956 = vmatpush.bf16.msra.mxu1 %v5644_v47  ;;  %v7795_v7 = vld [vmem:[#allocation14 + $0x90] sm:$0xf]  ;;  %v5692_v48 = vor.u32 %v5955_v1, %v5691_v30  ;;  %v5556_v8 = vor.u32 %v5921_v14, %v5555_v49 }
 0x4db   : > { %4085 = vmatpush.bf16.msra.mxu2 %v5708_v39  ;;  %v7797_v22 = vld [vmem:[#allocation14 + $0x94] sm:$0xf0]  ;;  %v7799_v0 = vld [vmem:[#allocation14 + $0x110] sm:$0xf]  ;;  %v7805_v4 = vld [vmem:[#allocation14] sm:$0xf]  ;;  %v5756_v33 = vor.u32 %v5971_v35, %v5755_v41 }
 0x4dc   : > { %4214 = vmatpush.bf16.msra.mxu3 %v5772_v57  ;;  %v5953_v55 = vld [vmem:[#allocation14 + $0x114] sm:$0xf0]  ;;  %v7801_v26 = vld [vmem:[#allocation14 + $0x190] sm:$0xf]  ;;  %v7807_v56 = vld [vmem:[#allocation14 + $0x4] sm:$0xf0]  ;;  %v5620_v53 = vor.u32 %v7797_v22, %v7795_v7 }
 0x4dd   : > { %v7803_v31 = vld [vmem:[#allocation14 + $0x194] sm:$0xf0]  ;;  %3828 = vmatpush.bf16.msra.mxu0 %v5572_v12  ;;  %v7809_v42 = vld [vmem:[#allocation14 + $0x80] sm:$0xf]  ;;  %v7811_v19 = vld [vmem:[#allocation14 + $0x84] sm:$0xf0]  ;;  %v5684_v36 = vor.u32 %v5953_v55, %v7799_v0  ;;  %v5548_v37 = vor.u32 %v7807_v56, %v7805_v4 }
 0x4de   : > { %3957 = vmatpush.bf16.msra.mxu1 %v5636_v20  ;;  %v7816_v44 = vld [vmem:[#allocation14 + $0x100] sm:$0xf]  ;;  %v7818_v51 = vld [vmem:[#allocation14 + $0x104] sm:$0xf0]  ;;  %v5748_v23 = vor.u32 %v7803_v31, %v7801_v26  ;;  %v5612_v32 = vor.u32 %v7811_v19, %v7809_v42  ;;  %v2742_v45 = vld [vmem:[#allocation4] sm:$0xf] }
 0x4df   : > { %4086 = vmatpush.bf16.msra.mxu2 %v5700_v28  ;;  %v7820_v17 = vld [vmem:[#allocation14 + $0x180] sm:$0xf]  ;;  %v5676_v58 = vor.u32 %v7818_v51, %v7816_v44  ;;  %v5967_v40 = vld [vmem:[#allocation14 + $0x184] sm:$0xf0]  ;;  %v2944_v16 = vld [vmem:[#allocation5] sm:$0xf] }
 0x4e0   : > { %4215 = vmatpush.bf16.msra.mxu3 %v5764_v38  ;;  %v5740_v63 = vor.u32 %v5967_v40, %v7820_v17  ;;  %v7831_v62 = vperm.slane %v2742_v45, 0  ;;  %v7833_v10 = vperm.slane %v2944_v16, 0  ;;  %v7835_v59 = vperm.slane %v2742_v45, 1  ;;  %v9695_v54 = vld [vmem:[#allocation20_spill] sm:$0xff]  ;;  %v9696_v39 = vld [vmem:[#allocation22_spill] sm:$0xff]  ;;  %v9697_v34 = vld [vmem:[#allocation21_spill] sm:$0xff] }
 0x4e1   : > { %3829 = vmatpush.bf16.msra.mxu0 %v5564_v6  ;;  %v7837_v5 = vperm.slane %v2944_v16, 1  ;;  %v7839_v43 = vperm.slane %v2742_v45, 2  ;;  %v7841_v9 = vperm.slane %v2944_v16, 2  ;;  %v7843_v46 = vperm.slane %v2742_v45, 3  ;;  %v9698_v24 = vld [vmem:[#allocation23_spill] sm:$0xff]  ;;  %v9699_v2 = vld [vmem:[#allocation116_spill] sm:$0xff] }
 0x4e2   : > { %3958 = vmatpush.bf16.msra.mxu1 %v5628_v11  ;;  %v2752_v47 = vmul.f32 %v7831_v62, %v9695_v54  ;;  %v2756_v3 = vmul.f32 %v7831_v62, %v9696_v39  ;;  %v2753_v13 = vmul.f32 %v7835_v59, %v9697_v34  ;;  %v7851_v57 = vperm.slane %v2944_v16, 3  ;;  %v9700_v29 = vld [vmem:[#allocation118_spill] sm:$0xff]  ;;  %v9701_v52 = vld [vmem:[#allocation117_spill] sm:$0xff]  ;;  %v9702_v35 = vld [vmem:[#allocation119_spill] sm:$0xff] }
 0x4e3   : > { %4087 = vmatpush.bf16.msra.mxu2 %v5692_v48  ;;  %v2757_v18 = vmul.f32 %v7835_v59, %v9698_v24  ;;  %v2754_v60 = vmul.f32 %v7839_v43, %v9699_v2  ;;  %v2758_v27 = vmul.f32 %v7839_v43, %v9700_v29  ;;  %v2755_v30 = vmul.f32 %v7843_v46, %v9701_v52  ;;  %v5964_v28 = vld [vmem:[#allocation14 + $0x174] sm:$0xf]  ;;  %v5733_v22 = vld [vmem:[#allocation14 + $0x178] sm:$0xf0]  ;;  %v9705_v34 = vld [vmem:[#allocation25_spill] sm:$0xff] }
 0x4e4   : > { %4216 = vmatpush.bf16.msra.mxu3 %v5756_v33  ;;  %v2954_v12 = vadd.f32 %v7833_v10, %v2752_v47  ;;  %v2958_v1 = vadd.f32 %v7833_v10, %v2756_v3  ;;  %v2955_v41 = vadd.f32 %v7837_v5, %v2753_v13  ;;  %v2759_v20 = vmul.f32 %v7843_v46, %v9702_v35  ;;  %v5932_v0 = vld [vmem:[#allocation14 + $0x74] sm:$0xf]  ;;  %v5797_v11 = vld [vmem:[#allocation14 + $0x1f8] sm:$0xf0]  ;;  %v9703_v47 = vld [vmem:[#allocation24_spill] sm:$0xff] }
 0x4e5   : > { %3830 = vmatpush.bf16.msra.mxu0 %v5556_v8  ;;  %v2959_v49 = vadd.f32 %v7837_v5, %v2757_v18  ;;  %v2956_v14 = vadd.f32 %v7841_v9, %v2754_v60  ;;  %v2960_v7 = vadd.f32 %v7841_v9, %v2758_v27  ;;  %v2957_v38 = vadd.f32 %v7851_v57, %v2755_v30  ;;  %v5980_v55 = vld [vmem:[#allocation14 + $0x1f4] sm:$0xf]  ;;  %v5605_v19 = vld [vmem:[#allocation14 + $0x78] sm:$0xf0]  ;;  %v9709_v60 = vld [vmem:[#allocation121_spill] sm:$0xff] }
 0x4e6   : > { %3959 = vmatpush.bf16.msra.mxu1 %v5620_v53  ;;  %v3146_v26 = vmax.f32 %v2954_v12, 0.0  ;;  %v3150_v31 = vmax.f32 %v2958_v1, 0.0  ;;  %v3147_v4 = vmax.f32 %v2955_v41, 0.0  ;;  %v2961_v6 = vadd.f32 %v7851_v57, %v2759_v20  ;;  %v5948_v17 = vld [vmem:[#allocation14 + $0xf4] sm:$0xf]  ;;  %v9710_v27 = vld [vmem:[#allocation123_spill] sm:$0xff] }
 0x4e7   : > { %4088 = vmatpush.bf16.msra.mxu2 %v5684_v36  ;;  %v3151_v48 = vmax.f32 %v2959_v49, 0.0  ;;  %v3148_v33 = vmax.f32 %v2956_v14, 0.0  ;;  %v3152_v56 = vmax.f32 %v2960_v7, 0.0  ;;  %v3149_v42 = vmax.f32 %v2957_v38, 0.0  ;;  %v5669_v40 = vld [vmem:[#allocation14 + $0xf8] sm:$0xf0] }
 0x4e8   : > { %4217 = vmatpush.bf16.msra.mxu3 %v5748_v23  ;;  %v7871_v8 = vpack.c.bf16 %v3150_v31, %v3146_v26  ;;  %v3153_v44 = vmax.f32 %v2961_v6, 0.0  ;;  %v5736_v51 = vor.u32 %v5964_v28, %v5733_v22  ;;  %v5800_v45 = vor.u32 %v5980_v55, %v5797_v11  ;;  %v9708_v18 = vld [vmem:[#allocation122_spill] sm:$0xff] }
 0x4e9   : > { %3831 = vmatpush.bf16.msra.mxu0 %v5548_v37  ;;  %v7873_v53 = vpack.c.bf16 %v3151_v48, %v3147_v4  ;;  %v7875_v36 = vpack.c.bf16 %v3152_v56, %v3148_v33  ;;  %v5608_v16 = vor.u32 %v5932_v0, %v5605_v19  ;;  %v5672_v54 = vor.u32 %v5948_v17, %v5669_v40  ;;  %v9704_v37 = vld [vmem:[#allocation26_spill] sm:$0xff]  ;;  %v9711_v33 = vld [vmem:[#allocation28_spill] sm:$0xff]  ;;  %v9714_v17 = vld [vmem:[#allocation31_spill] sm:$0xff] }
 0x4ea   : > { %3960 = vmatpush.bf16.msra.mxu1 %v5612_v32  ;;  %v7877_v23 = vpack.c.bf16 %v3153_v44, %v3149_v42  ;;  %v2760_v39 = vmul.f32 %v7831_v62, %v9703_v47  ;;  %v2764_v3 = vmul.f32 %v7831_v62, %v9704_v37  ;;  %v2761_v13 = vmul.f32 %v7835_v59, %v9705_v34  ;;  %v9706_v32 = vld [vmem:[#allocation27_spill] sm:$0xff]  ;;  %v9712_v42 = vld [vmem:[#allocation30_spill] sm:$0xff]  ;;  %v9713_v44 = vld [vmem:[#allocation29_spill] sm:$0xff] }
 0x4eb   : > { %4089 = vmatpush.bf16.msra.mxu2 %v5676_v58  ;;  %v2765_v58 = vmul.f32 %v7835_v59, %v9706_v32  ;;  %v2766_v2 = vmul.f32 %v7839_v43, %v9708_v18  ;;  %v2763_v29 = vmul.f32 %v7843_v46, %v9709_v60  ;;  %v2767_v52 = vmul.f32 %v7843_v46, %v9710_v27  ;;  %v5725_v32 = vld [vmem:[#allocation14 + $0x168] sm:$0xf0]  ;;  %v5978_v18 = vld [vmem:[#allocation14 + $0x1e4] sm:$0xf] }
 0x4ec   : > { %4218 = vmatpush.bf16.msra.mxu3 %v5740_v63  ;;  %3832 = vmatmul.bf16.vlgmr.msra.gmra.mxu0 %v7871_v8  ;;  %v9707_v63 = vld [vmem:[#allocation120_spill] sm:$0xff]  ;;  %v2962_v30 = vadd.f32 %v7833_v10, %v2760_v39  ;;  %v2966_v12 = vadd.f32 %v7833_v10, %v2764_v3  ;;  %v2963_v1 = vadd.f32 %v7837_v5, %v2761_v13  ;;  %v9717_v39 = vld [vmem:[#allocation125_spill] sm:$0xff]  ;;  %v9718_v3 = vld [vmem:[#allocation127_spill] sm:$0xff] }
 0x4ed   : > { %3961 = vmatmul.bf16.vlgmr.msra.gmra.mxu1 %v7873_v53  ;;  %v2762_v24 = vmul.f32 %v7839_v43, %v9707_v63  ;;  %4340 = vmatpush.bf16.msrb.mxu0 %v5608_v16  ;;  %v2967_v41 = vadd.f32 %v7837_v5, %v2765_v58  ;;  %v2968_v20 = vadd.f32 %v7841_v9, %v2766_v2  ;;  %v5962_v13 = vld [vmem:[#allocation14 + $0x164] sm:$0xf] }
 0x4ee   : > { %4090 = vmatmul.bf16.vlgmr.msra.gmra.mxu2 %v7875_v36  ;;  %4469 = vmatpush.bf16.msrb.mxu1 %v5672_v54  ;;  %v2965_v28 = vadd.f32 %v7851_v57, %v2763_v29  ;;  %v2969_v49 = vadd.f32 %v7851_v57, %v2767_v52  ;;  %v3154_v14 = vmax.f32 %v2962_v30, 0.0  ;;  %v3158_v7 = vmax.f32 %v2966_v12, 0.0  ;;  %v9716_v54 = vld [vmem:[#allocation126_spill] sm:$0xff]  ;;  %v5930_v63 = vld [vmem:[#allocation14 + $0x64] sm:$0xf] }
 0x4ef   : > { %4598 = vmatpush.bf16.msrb.mxu2 %v5736_v51  ;;  %4219 = vmatmul.bf16.vlgmr.msra.gmra.mxu3 %v7877_v23  ;;  %v2964_v35 = vadd.f32 %v7841_v9, %v2762_v24  ;;  %v3155_v38 = vmax.f32 %v2963_v1, 0.0  ;;  %v3159_v22 = vmax.f32 %v2967_v41, 0.0  ;;  %v3160_v55 = vmax.f32 %v2968_v20, 0.0  ;;  %v5597_v24 = vld [vmem:[#allocation14 + $0x68] sm:$0xf0] }
 0x4f0   : > { %4727 = vmatpush.bf16.msrb.mxu3 %v5800_v45  ;;  %v3157_v26 = vmax.f32 %v2965_v28, 0.0  ;;  %v3161_v31 = vmax.f32 %v2969_v49, 0.0  ;;  %v7907_v4 = vpack.c.bf16 %v3158_v7, %v3154_v14  ;;  %v2768_v56 = vmul.f32 %v7831_v62, %v9711_v33  ;;  %v9715_v45 = vld [vmem:[#allocation124_spill] sm:$0xff]  ;;  %v5789_v52 = vld [vmem:[#allocation14 + $0x1e8] sm:$0xf0] }
 0x4f1   : > { %v3156_v0 = vmax.f32 %v2964_v35, 0.0  ;;  %v7909_v6 = vpack.c.bf16 %v3159_v22, %v3155_v38  ;;  %v2772_v19 = vmul.f32 %v7831_v62, %v9712_v42  ;;  %v2769_v51 = vmul.f32 %v7835_v59, %v9713_v44  ;;  %v5946_v30 = vld [vmem:[#allocation14 + $0xe4] sm:$0xf]  ;;  %v5661_v20 = vld [vmem:[#allocation14 + $0xe8] sm:$0xf0] }
 0x4f2   : > { %v7913_v48 = vpack.c.bf16 %v3161_v31, %v3157_v26  ;;  %v2773_v40 = vmul.f32 %v7835_v59, %v9714_v17  ;;  %v2770_v16 = vmul.f32 %v7839_v43, %v9715_v45  ;;  %v2774_v47 = vmul.f32 %v7839_v43, %v9716_v54 }
 0x4f3   : > { %v7911_v11 = vpack.c.bf16 %v3160_v55, %v3156_v0  ;;  %v2771_v37 = vmul.f32 %v7843_v46, %v9717_v39  ;;  %v2775_v34 = vmul.f32 %v7843_v46, %v9718_v3  ;;  %v5728_v58 = vor.u32 %v5962_v13, %v5725_v32  ;;  %v9725_v32 = vld [vmem:[#allocation129_spill] sm:$0xff] }
 0x4f4   : > { %v2970_v2 = vadd.f32 %v7833_v10, %v2768_v56  ;;  %v2974_v60 = vadd.f32 %v7833_v10, %v2772_v19  ;;  %v2971_v29 = vadd.f32 %v7837_v5, %v2769_v51  ;;  %v5600_v27 = vor.u32 %v5930_v63, %v5597_v24  ;;  %v9719_v51 = vld [vmem:[#allocation32_spill] sm:$0xff]  ;;  %v9726_v63 = vld [vmem:[#allocation131_spill] sm:$0xff] }
 0x4f5   : > { %v2975_v12 = vadd.f32 %v7837_v5, %v2773_v40  ;;  %v2972_v1 = vadd.f32 %v7841_v9, %v2770_v16  ;;  %v2976_v41 = vadd.f32 %v7841_v9, %v2774_v47  ;;  %4599 = vmatpush.bf16.msrb.mxu2 %v5728_v58  ;;  %v5792_v35 = vor.u32 %v5978_v18, %v5789_v52  ;;  %v9720_v40 = vld [vmem:[#allocation34_spill] sm:$0xff]  ;;  %v9721_v16 = vld [vmem:[#allocation33_spill] sm:$0xff]  ;;  %v9722_v47 = vld [vmem:[#allocation35_spill] sm:$0xff] }
 0x4f6   : > { %v2973_v28 = vadd.f32 %v7851_v57, %v2771_v37  ;;  %v2977_v49 = vadd.f32 %v7851_v57, %v2775_v34  ;;  %4341 = vmatpush.bf16.msrb.mxu0 %v5600_v27  ;;  %v5664_v14 = vor.u32 %v5946_v30, %v5661_v20  ;;  %v3162_v7 = vmax.f32 %v2970_v2, 0.0  ;;  %v9723_v37 = vld [vmem:[#allocation128_spill] sm:$0xff]  ;;  %v9724_v34 = vld [vmem:[#allocation130_spill] sm:$0xff] }
 0x4f7   : > { %4728 = vmatpush.bf16.msrb.mxu3 %v5792_v35  ;;  %v3166_v38 = vmax.f32 %v2974_v60, 0.0  ;;  %v3163_v22 = vmax.f32 %v2971_v29, 0.0  ;;  %v3167_v0 = vmax.f32 %v2975_v12, 0.0  ;;  %v3164_v55 = vmax.f32 %v2972_v1, 0.0 }
 0x4f8   : > { %4470 = vmatpush.bf16.msrb.mxu1 %v5664_v14  ;;  %v3168_v26 = vmax.f32 %v2976_v41, 0.0  ;;  %v3165_v31 = vmax.f32 %v2973_v28, 0.0  ;;  %v3169_v33 = vmax.f32 %v2977_v49, 0.0  ;;  %v2776_v17 = vmul.f32 %v7831_v62, %v9719_v51 }
 0x4f9   : > { %v7943_v56 = vpack.c.bf16 %v3166_v38, %v3162_v7  ;;  %v7945_v42 = vpack.c.bf16 %v3167_v0, %v3163_v22  ;;  %v2780_v45 = vmul.f32 %v7831_v62, %v9720_v40  ;;  %v2777_v54 = vmul.f32 %v7835_v59, %v9721_v16 }
 0x4fa   : > { %v7947_v19 = vpack.c.bf16 %v3168_v26, %v3164_v55  ;;  %v7949_v44 = vpack.c.bf16 %v3169_v33, %v3165_v31  ;;  %v2781_v39 = vmul.f32 %v7835_v59, %v9722_v47  ;;  %v2778_v3 = vmul.f32 %v7839_v43, %v9723_v37  ;;  %v9727_v26 = vld [vmem:[#allocation36_spill] sm:$0xff]  ;;  %v9728_v33 = vld [vmem:[#allocation38_spill] sm:$0xff] }
 0x4fb   : > { %v2782_v13 = vmul.f32 %v7839_v43, %v9724_v34  ;;  %v2779_v58 = vmul.f32 %v7843_v46, %v9725_v32  ;;  %v2783_v24 = vmul.f32 %v7843_v46, %v9726_v63  ;;  %v2978_v18 = vadd.f32 %v7833_v10, %v2776_v17  ;;  %v9729_v17 = vld [vmem:[#allocation37_spill] sm:$0xff] }
 0x4fc   : > { %3837 = vmatmul.bf16.gmra.mxu0 %v7907_v4  ;;  %v2982_v2 = vadd.f32 %v7833_v10, %v2780_v45  ;;  %v2979_v60 = vadd.f32 %v7837_v5, %v2777_v54  ;;  %v2983_v29 = vadd.f32 %v7837_v5, %v2781_v39  ;;  %v2980_v27 = vadd.f32 %v7841_v9, %v2778_v3  ;;  %v9730_v45 = vld [vmem:[#allocation39_spill] sm:$0xff]  ;;  %v9731_v54 = vld [vmem:[#allocation132_spill] sm:$0xff]  ;;  %v9732_v39 = vld [vmem:[#allocation133_spill] sm:$0xff] }
 0x4fd   : > { %3966 = vmatmul.bf16.gmra.mxu1 %v7909_v6  ;;  %v2984_v52 = vadd.f32 %v7841_v9, %v2782_v13  ;;  %v2981_v30 = vadd.f32 %v7851_v57, %v2779_v58  ;;  %v2985_v12 = vadd.f32 %v7851_v57, %v2783_v24  ;;  %v3170_v1 = vmax.f32 %v2978_v18, 0.0 }
 0x4fe   : > { %4095 = vmatmul.bf16.gmra.mxu2 %v7911_v11  ;;  %v3174_v41 = vmax.f32 %v2982_v2, 0.0  ;;  %v3171_v35 = vmax.f32 %v2979_v60, 0.0  ;;  %v3175_v20 = vmax.f32 %v2983_v29, 0.0  ;;  %v3172_v28 = vmax.f32 %v2980_v27, 0.0 }
 0x4ff   : > { %4224 = vmatmul.bf16.gmra.mxu3 %v7913_v48  ;;  %v3176_v49 = vmax.f32 %v2984_v52, 0.0  ;;  %v3173_v14 = vmax.f32 %v2981_v30, 0.0  ;;  %v3177_v7 = vmax.f32 %v2985_v12, 0.0  ;;  %v2784_v31 = vmul.f32 %v7831_v62, %v9727_v26 }
 0x500   : > { %v7979_v38 = vpack.c.bf16 %v3174_v41, %v3170_v1  ;;  %v7981_v22 = vpack.c.bf16 %v3175_v20, %v3171_v35  ;;  %v2788_v51 = vmul.f32 %v7831_v62, %v9728_v33  ;;  %v2785_v40 = vmul.f32 %v7835_v59, %v9729_v17 }
 0x501   : > { %v7983_v0 = vpack.c.bf16 %v3176_v49, %v3172_v28  ;;  %v7985_v55 = vpack.c.bf16 %v3177_v7, %v3173_v14  ;;  %v2789_v16 = vmul.f32 %v7835_v59, %v9730_v45  ;;  %v2786_v47 = vmul.f32 %v7839_v43, %v9731_v54  ;;  %v9733_v49 = vld [vmem:[#allocation40_spill] sm:$0xff]  ;;  %v9734_v7 = vld [vmem:[#allocation42_spill] sm:$0xff] }
 0x502   : > { %v2790_v37 = vmul.f32 %v7839_v43, %v9732_v39  ;;  %v2787_v3 = vmul.f32 %v7843_v46, %v6894_v61  ;;  %v2791_v34 = vmul.f32 %v7843_v46, %v6898_v21  ;;  %v2986_v13 = vadd.f32 %v7833_v10, %v2784_v31  ;;  %v9735_v31 = vld [vmem:[#allocation41_spill] sm:$0xff] }
 0x503   : > { %v2990_v32 = vadd.f32 %v7833_v10, %v2788_v51  ;;  %v2987_v58 = vadd.f32 %v7837_v5, %v2785_v40  ;;  %v2991_v63 = vadd.f32 %v7837_v5, %v2789_v16  ;;  %v2988_v24 = vadd.f32 %v7841_v9, %v2786_v47  ;;  %v9736_v51 = vld [vmem:[#allocation43_spill] sm:$0xff]  ;;  %v9737_v40 = vld [vmem:[#allocation134_spill] sm:$0xff] }
 0x504   : > { %v2992_v18 = vadd.f32 %v7841_v9, %v2790_v37  ;;  %v2989_v2 = vadd.f32 %v7851_v57, %v2787_v3  ;;  %v2993_v60 = vadd.f32 %v7851_v57, %v2791_v34  ;;  %v3178_v61 = vmax.f32 %v2986_v13, 0.0  ;;  %v9738_v16 = vld [vmem:[#allocation135_spill] sm:$0xff]  ;;  %v5960_v37 = vld [vmem:[#allocation14 + $0x154] sm:$0xf] }
 0x505   : > { %v3182_v29 = vmax.f32 %v2990_v32, 0.0  ;;  %v3179_v27 = vmax.f32 %v2987_v58, 0.0  ;;  %v3183_v21 = vmax.f32 %v2991_v63, 0.0  ;;  %v3180_v52 = vmax.f32 %v2988_v24, 0.0  ;;  %v5717_v3 = vld [vmem:[#allocation14 + $0x158] sm:$0xf0] }
 0x506   : > { %v3184_v30 = vmax.f32 %v2992_v18, 0.0  ;;  %v3181_v12 = vmax.f32 %v2989_v2, 0.0  ;;  %v3185_v1 = vmax.f32 %v2993_v60, 0.0  ;;  %v2792_v14 = vmul.f32 %v7831_v62, %v9733_v49  ;;  %v5928_v34 = vld [vmem:[#allocation14 + $0x54] sm:$0xf] }
 0x507   : > { %v8015_v41 = vpack.c.bf16 %v3182_v29, %v3178_v61  ;;  %v8017_v35 = vpack.c.bf16 %v3183_v21, %v3179_v27  ;;  %v2796_v26 = vmul.f32 %v7831_v62, %v9734_v7  ;;  %v2793_v33 = vmul.f32 %v7835_v59, %v9735_v31  ;;  %v5589_v58 = vld [vmem:[#allocation14 + $0x58] sm:$0xf0]  ;;  %v5976_v63 = vld [vmem:[#allocation14 + $0x1d4] sm:$0xf] }
 0x508   : > { %v8019_v20 = vpack.c.bf16 %v3184_v30, %v3180_v52  ;;  %v8021_v28 = vpack.c.bf16 %v3185_v1, %v3181_v12  ;;  %v2797_v17 = vmul.f32 %v7835_v59, %v9736_v51  ;;  %v2794_v45 = vmul.f32 %v7839_v43, %v9737_v40  ;;  %v5781_v24 = vld [vmem:[#allocation14 + $0x1d8] sm:$0xf0]  ;;  %v5944_v29 = vld [vmem:[#allocation14 + $0xd4] sm:$0xf] }
 0x509   : > { %v2798_v54 = vmul.f32 %v7839_v43, %v9738_v16  ;;  %v2795_v47 = vmul.f32 %v7843_v46, %v6906_v50  ;;  %v2799_v39 = vmul.f32 %v7843_v46, %v6910_v15  ;;  %v2994_v13 = vadd.f32 %v7833_v10, %v2792_v14  ;;  %v5653_v50 = vld [vmem:[#allocation14 + $0xd8] sm:$0xf0] }
 0x50a   : > { %v5720_v32 = vor.u32 %v5960_v37, %v5717_v3  ;;  %v2998_v18 = vadd.f32 %v7833_v10, %v2796_v26  ;;  %v2995_v2 = vadd.f32 %v7837_v5, %v2793_v33  ;;  %v5592_v60 = vor.u32 %v5928_v34, %v5589_v58  ;;  %v9741_v3 = vld [vmem:[#allocation45_spill] sm:$0xff]  ;;  %v9743_v58 = vld [vmem:[#allocation136_spill] sm:$0xff] }
 0x50b   : > { %v5784_v61 = vor.u32 %v5976_v63, %v5781_v24  ;;  %v2999_v27 = vadd.f32 %v7837_v5, %v2797_v17  ;;  %v2996_v15 = vadd.f32 %v7841_v9, %v2794_v45  ;;  %v3000_v21 = vadd.f32 %v7841_v9, %v2798_v54  ;;  %v9739_v54 = vld [vmem:[#allocation44_spill] sm:$0xff]  ;;  %v9744_v24 = vld [vmem:[#allocation137_spill] sm:$0xff] }
 0x50c   : > { %3842 = vmatmul.bf16.gmra.mxu0 %v7943_v56  ;;  %4600 = vmatpush.bf16.msrb.mxu2 %v5720_v32  ;;  %v5656_v52 = vor.u32 %v5944_v29, %v5653_v50  ;;  %v2997_v30 = vadd.f32 %v7851_v57, %v2795_v47  ;;  %v3001_v12 = vadd.f32 %v7851_v57, %v2799_v39  ;;  %v3186_v1 = vmax.f32 %v2994_v13, 0.0  ;;  %v9740_v39 = vld [vmem:[#allocation46_spill] sm:$0xff]  ;;  %v9742_v13 = vld [vmem:[#allocation47_spill] sm:$0xff] }
 0x50d   : > { %3971 = vmatmul.bf16.gmra.mxu1 %v7945_v42  ;;  %4342 = vmatpush.bf16.msrb.mxu0 %v5592_v60  ;;  %v3190_v49 = vmax.f32 %v2998_v18, 0.0  ;;  %v3187_v14 = vmax.f32 %v2995_v2, 0.0  ;;  %v3191_v7 = vmax.f32 %v2999_v27, 0.0  ;;  %v3188_v26 = vmax.f32 %v2996_v15, 0.0  ;;  %v9745_v60 = vld [vmem:[#allocation138_spill] sm:$0xff] }
 0x50e   : > { %4100 = vmatmul.bf16.gmra.mxu2 %v7947_v19  ;;  %4729 = vmatpush.bf16.msrb.mxu3 %v5784_v61  ;;  %v3192_v31 = vmax.f32 %v3000_v21, 0.0  ;;  %v3189_v33 = vmax.f32 %v2997_v30, 0.0  ;;  %v3193_v51 = vmax.f32 %v3001_v12, 0.0  ;;  %v2800_v47 = vmul.f32 %v7831_v62, %v9739_v54 }
 0x50f   : > { %4229 = vmatmul.bf16.gmra.mxu3 %v7949_v44  ;;  %4471 = vmatpush.bf16.msrb.mxu1 %v5656_v52  ;;  %v8051_v17 = vpack.c.bf16 %v3190_v49, %v3186_v1  ;;  %v8053_v40 = vpack.c.bf16 %v3191_v7, %v3187_v14  ;;  %v2804_v37 = vmul.f32 %v7831_v62, %v9740_v39 }
 0x510   : > { %v8055_v45 = vpack.c.bf16 %v3192_v31, %v3188_v26  ;;  %v8057_v16 = vpack.c.bf16 %v3193_v51, %v3189_v33  ;;  %v2801_v34 = vmul.f32 %v7835_v59, %v9741_v3  ;;  %v2805_v32 = vmul.f32 %v7835_v59, %v9742_v13 }
 0x511   : > { %v2802_v63 = vmul.f32 %v7839_v43, %v9743_v58  ;;  %v2806_v18 = vmul.f32 %v7839_v43, %v9744_v24  ;;  %v2803_v2 = vmul.f32 %v7843_v46, %v6918_v25  ;;  %v2807_v61 = vmul.f32 %v7843_v46, %v9745_v60  ;;  %v9754_v60 = vld [vmem:[#allocation141_spill] sm:$0xff] }
 0x512   : > { %v3002_v29 = vadd.f32 %v7833_v10, %v2800_v47  ;;  %v3006_v50 = vadd.f32 %v7833_v10, %v2804_v37  ;;  %v3003_v27 = vadd.f32 %v7837_v5, %v2801_v34  ;;  %v3007_v15 = vadd.f32 %v7837_v5, %v2805_v32  ;;  %v9749_v37 = vld [vmem:[#allocation48_spill] sm:$0xff]  ;;  %v9750_v34 = vld [vmem:[#allocation50_spill] sm:$0xff]  ;;  %v9751_v32 = vld [vmem:[#allocation49_spill] sm:$0xff] }
 0x513   : > { %v3004_v21 = vadd.f32 %v7841_v9, %v2802_v63  ;;  %v3008_v52 = vadd.f32 %v7841_v9, %v2806_v18  ;;  %v3005_v30 = vadd.f32 %v7851_v57, %v2803_v2  ;;  %v3009_v12 = vadd.f32 %v7851_v57, %v2807_v61  ;;  %v9752_v63 = vld [vmem:[#allocation51_spill] sm:$0xff] }
 0x514   : > { %v3194_v25 = vmax.f32 %v3002_v29, 0.0  ;;  %v3198_v1 = vmax.f32 %v3006_v50, 0.0  ;;  %v3195_v49 = vmax.f32 %v3003_v27, 0.0  ;;  %v3199_v14 = vmax.f32 %v3007_v15, 0.0  ;;  %v9753_v18 = vld [vmem:[#allocation139_spill] sm:$0xff]  ;;  %v9755_v29 = vld [vmem:[#allocation140_spill] sm:$0xff] }
 0x515   : > { %v3196_v7 = vmax.f32 %v3004_v21, 0.0  ;;  %v3200_v26 = vmax.f32 %v3008_v52, 0.0  ;;  %v3197_v31 = vmax.f32 %v3005_v30, 0.0  ;;  %v3201_v33 = vmax.f32 %v3009_v12, 0.0  ;;  %v9756_v27 = vld [vmem:[#allocation142_spill] sm:$0xff] }
 0x516   : > { %v8087_v51 = vpack.c.bf16 %v3198_v1, %v3194_v25  ;;  %v8089_v54 = vpack.c.bf16 %v3199_v14, %v3195_v49  ;;  %v2808_v3 = vmul.f32 %v7831_v62, %v9749_v37  ;;  %v2812_v13 = vmul.f32 %v7831_v62, %v9750_v34 }
 0x517   : > { %v8091_v47 = vpack.c.bf16 %v3200_v26, %v3196_v7  ;;  %v8093_v39 = vpack.c.bf16 %v3201_v33, %v3197_v31  ;;  %v2809_v58 = vmul.f32 %v7835_v59, %v9751_v32  ;;  %v2813_v24 = vmul.f32 %v7835_v59, %v9752_v63 }
 0x518   : > { %9746 = vst [vmem:[#allocation208_spill] sm:$0xff] %v8089_v54  ;;  %v2810_v2 = vmul.f32 %v7839_v43, %v9753_v18  ;;  %v2814_v61 = vmul.f32 %v7839_v43, %v9754_v60  ;;  %v2811_v50 = vmul.f32 %v7843_v46, %v9755_v29  ;;  %v2815_v15 = vmul.f32 %v7843_v46, %v9756_v27  ;;  %v9761_v18 = vld [vmem:[#allocation52_spill] sm:$0xff]  ;;  %v9762_v60 = vld [vmem:[#allocation54_spill] sm:$0xff]  ;;  %v9763_v29 = vld [vmem:[#allocation53_spill] sm:$0xff] }
 0x519   : > { %9747 = vst [vmem:[#allocation209_spill] sm:$0xff] %v8091_v47  ;;  %v3010_v21 = vadd.f32 %v7833_v10, %v2808_v3  ;;  %v3014_v52 = vadd.f32 %v7833_v10, %v2812_v13  ;;  %v3011_v30 = vadd.f32 %v7837_v5, %v2809_v58  ;;  %v3015_v12 = vadd.f32 %v7837_v5, %v2813_v24  ;;  %v9764_v27 = vld [vmem:[#allocation55_spill] sm:$0xff] }
 0x51a   : > { %9748 = vst [vmem:[#allocation210_spill] sm:$0xff] %v8093_v39  ;;  %v3012_v25 = vadd.f32 %v7841_v9, %v2810_v2  ;;  %v3016_v1 = vadd.f32 %v7841_v9, %v2814_v61  ;;  %v3013_v49 = vadd.f32 %v7851_v57, %v2811_v50  ;;  %v3017_v14 = vadd.f32 %v7851_v57, %v2815_v15 }
 0x51b   : > { %v3202_v7 = vmax.f32 %v3010_v21, 0.0  ;;  %v3206_v26 = vmax.f32 %v3014_v52, 0.0  ;;  %v3203_v31 = vmax.f32 %v3011_v30, 0.0  ;;  %v3207_v33 = vmax.f32 %v3015_v12, 0.0  ;;  %v9765_v21 = vld [vmem:[#allocation143_spill] sm:$0xff]  ;;  %v9766_v30 = vld [vmem:[#allocation145_spill] sm:$0xff] }
 0x51c   : > { %3847 = vmatmul.bf16.gmra.mxu0 %v7979_v38  ;;  %v3204_v37 = vmax.f32 %v3012_v25, 0.0  ;;  %v3208_v3 = vmax.f32 %v3016_v1, 0.0  ;;  %v3205_v34 = vmax.f32 %v3013_v49, 0.0  ;;  %v3209_v13 = vmax.f32 %v3017_v14, 0.0  ;;  %v9767_v25 = vld [vmem:[#allocation144_spill] sm:$0xff]  ;;  %v9768_v49 = vld [vmem:[#allocation146_spill] sm:$0xff] }
 0x51d   : > { %3976 = vmatmul.bf16.gmra.mxu1 %v7981_v22  ;;  %v8123_v32 = vpack.c.bf16 %v3206_v26, %v3202_v7  ;;  %v8125_v58 = vpack.c.bf16 %v3207_v33, %v3203_v31  ;;  %v2816_v2 = vmul.f32 %v7831_v62, %v9761_v18  ;;  %v2820_v61 = vmul.f32 %v7831_v62, %v9762_v60  ;;  %v5958_v7 = vld [vmem:[#allocation14 + $0x144] sm:$0xf]  ;;  %v5709_v26 = vld [vmem:[#allocation14 + $0x148] sm:$0xf0] }
 0x51e   : > { %4105 = vmatmul.bf16.gmra.mxu2 %v7983_v0  ;;  %v8127_v63 = vpack.c.bf16 %v3208_v3, %v3204_v37  ;;  %v8129_v24 = vpack.c.bf16 %v3209_v13, %v3205_v34  ;;  %v2817_v50 = vmul.f32 %v7835_v59, %v9763_v29  ;;  %v2821_v15 = vmul.f32 %v7835_v59, %v9764_v27  ;;  %v5926_v31 = vld [vmem:[#allocation14 + $0x44] sm:$0xf]  ;;  %v5581_v34 = vld [vmem:[#allocation14 + $0x48] sm:$0xf0] }
 0x51f   : > { %4234 = vmatmul.bf16.gmra.mxu3 %v7985_v55  ;;  %9757 = vst [vmem:[#allocation211_spill] sm:$0xff] %v8123_v32  ;;  %v2818_v52 = vmul.f32 %v7839_v43, %v9765_v21  ;;  %v2822_v12 = vmul.f32 %v7839_v43, %v9766_v30  ;;  %v2819_v1 = vmul.f32 %v7843_v46, %v9767_v25  ;;  %v5974_v13 = vld [vmem:[#allocation14 + $0x1c4] sm:$0xf]  ;;  %v5773_v18 = vld [vmem:[#allocation14 + $0x1c8] sm:$0xf0] }
 0x520   : > { %9758 = vst [vmem:[#allocation212_spill] sm:$0xff] %v8125_v58  ;;  %v2823_v14 = vmul.f32 %v7843_v46, %v9768_v49  ;;  %v3018_v33 = vadd.f32 %v7833_v10, %v2816_v2  ;;  %v3022_v37 = vadd.f32 %v7833_v10, %v2820_v61  ;;  %v5712_v3 = vor.u32 %v5958_v7, %v5709_v26  ;;  %v3498_v61 = vld [vmem:[%s8935_s5] sm:$0x3] }
 0x521   : > { %9759 = vst [vmem:[#allocation213_spill] sm:$0xff] %v8127_v63  ;;  %v3019_v60 = vadd.f32 %v7837_v5, %v2817_v50  ;;  %v3023_v29 = vadd.f32 %v7837_v5, %v2821_v15  ;;  %v5584_v27 = vor.u32 %v5926_v31, %v5581_v34  ;;  %v5776_v21 = vor.u32 %v5974_v13, %v5773_v18  ;;  %v5645_v13 = vld [vmem:[#allocation14 + $0xc8] sm:$0xf0] }
 0x522   : > { %9760 = vst [vmem:[#allocation214_spill] sm:$0xff] %v8129_v24  ;;  %v3020_v30 = vadd.f32 %v7841_v9, %v2818_v52  ;;  %v3024_v25 = vadd.f32 %v7841_v9, %v2822_v12  ;;  %4601 = vmatpush.bf16.msrb.mxu2 %v5712_v3  ;;  %v3021_v49 = vadd.f32 %v7851_v57, %v2819_v1  ;;  %v3210_v50 = vmax.f32 %v3018_v33, 0.0  ;;  %v5942_v52 = vld [vmem:[#allocation14 + $0xc4] sm:$0xf] }
 0x523   : > { %v3025_v2 = vadd.f32 %v7851_v57, %v2823_v14  ;;  %4343 = vmatpush.bf16.msrb.mxu0 %v5584_v27  ;;  %4730 = vmatpush.bf16.msrb.mxu3 %v5776_v21  ;;  %v3214_v7 = vmax.f32 %v3022_v37, 0.0  ;;  %v3211_v15 = vmax.f32 %v3019_v60, 0.0  ;;  %v3215_v26 = vmax.f32 %v3023_v29, 0.0  ;;  %v9773_v29 = vld [vmem:[#allocation56_spill] sm:$0xff] }
 0x524   : > { %v3212_v31 = vmax.f32 %v3020_v30, 0.0  ;;  %v3216_v34 = vmax.f32 %v3024_v25, 0.0  ;;  %v8162_v12 = vperm.slane %v3498_v61, 0  ;;  %v3213_v3 = vmax.f32 %v3021_v49, 0.0  ;;  %v9774_v25 = vld [vmem:[#allocation58_spill] sm:$0xff] }
 0x525   : > { %v3217_v1 = vmax.f32 %v3025_v2, 0.0  ;;  %v5648_v18 = vor.u32 %v5942_v52, %v5645_v13  ;;  %v8164_v14 = vpack.c.bf16 %v3214_v7, %v3210_v50  ;;  %v8166_v21 = vpack.c.bf16 %v3215_v26, %v3211_v15  ;;  %v9775_v2 = vld [vmem:[#allocation57_spill] sm:$0xff]  ;;  %v9776_v50 = vld [vmem:[#allocation59_spill] sm:$0xff]  ;;  %v9779_v13 = vld [vmem:[#allocation148_spill] sm:$0xff] }
 0x526   : > { %v2824_v30 = vmul.f32 %v7831_v62, %v9773_v29  ;;  %v2828_v49 = vmul.f32 %v7831_v62, %v9774_v25  ;;  %v2825_v61 = vmul.f32 %v7835_v59, %v9775_v2  ;;  %v2829_v7 = vmul.f32 %v7835_v59, %v9776_v50  ;;  %v9777_v26 = vld [vmem:[#allocation147_spill] sm:$0xff] }
 0x527   : > { %9769 = vst [vmem:[#allocation215_spill] sm:$0xff] %v8164_v14  ;;  %4472 = vmatpush.bf16.msrb.mxu1 %v5648_v18  ;;  %v8171_v60 = vpack.c.bf16 %v3217_v1, %v3213_v3  ;;  %v2827_v3 = vmul.f32 %v7843_v46, %v9779_v13  ;;  %v9780_v1 = vld [vmem:[#allocation150_spill] sm:$0xff] }
 0x528   : > { %9770 = vst [vmem:[#allocation216_spill] sm:$0xff] %v8166_v21  ;;  %v2831_v18 = vmul.f32 %v7843_v46, %v9780_v1  ;;  %v3027_v29 = vadd.f32 %v7837_v5, %v2825_v61 }
 0x529   : > { %9772 = vst [vmem:[#allocation218_spill] sm:$0xff] %v8171_v60 }
 0x52a   : > { %v3033_v1 = vadd.f32 %v7851_v57, %v2831_v18  ;;  %v3219_v61 = vmax.f32 %v3027_v29, 0.0 }
 0x52c   : > { %3852 = vmatmul.bf16.gmra.mxu0 %v8015_v41 }
 0x52d   : > { %3981 = vmatmul.bf16.gmra.mxu1 %v8017_v35 }
 0x52e   : > { %4110 = vmatmul.bf16.gmra.mxu2 %v8019_v20 }
 0x52f   : > { %4239 = vmatmul.bf16.gmra.mxu3 %v8021_v28 }
 0x53c   : > { %3857 = vmatmul.bf16.gmra.mxu0 %v8051_v17 }
 0x53d   : > { %3986 = vmatmul.bf16.gmra.mxu1 %v8053_v40 }
 0x53e   : > { %4115 = vmatmul.bf16.gmra.mxu2 %v8055_v45 }
 0x53f   : > { %4244 = vmatmul.bf16.gmra.mxu3 %v8057_v16 }
 0x54c   : > { %3862 = vmatmul.bf16.gmra.mxu0 %v8087_v51 }
 0x54d   : > { %3991 = vmatmul.bf16.gmra.mxu1 %v8089_v54 }
 0x54e   : > { %4120 = vmatmul.bf16.gmra.mxu2 %v8091_v47 }
 0x54f   : > { %4249 = vmatmul.bf16.gmra.mxu3 %v8093_v39 }
 0x55c   : > { %3867 = vmatmul.bf16.gmra.mxu0 %v8123_v32 }
 0x55d   : > { %3996 = vmatmul.bf16.gmra.mxu1 %v8125_v58  ;;  %v3225_v58 = vmax.f32 %v3033_v1, 0.0  ;;  %v9791_v1 = vld [vmem:[#allocation152_spill] sm:$0xff] }
 0x55e   : > { %4125 = vmatmul.bf16.gmra.mxu2 %v8127_v63 }
 0x55f   : > { %4254 = vmatmul.bf16.gmra.mxu3 %v8129_v24  ;;  %v8168_v24 = vpack.c.bf16 %v3216_v34, %v3212_v31  ;;  %v2826_v31 = vmul.f32 %v7839_v43, %v9777_v26  ;;  %v9778_v34 = vld [vmem:[#allocation149_spill] sm:$0xff]  ;;  %v3031_v26 = vadd.f32 %v7837_v5, %v2829_v7 }
 0x560   : > { %v2830_v52 = vmul.f32 %v7839_v43, %v9778_v34 }
 0x561   : > { %9771 = vst [vmem:[#allocation217_spill] sm:$0xff] %v8168_v24  ;;  %v3028_v34 = vadd.f32 %v7841_v9, %v2826_v31 }
 0x569   : > { %v3833_v27 = vpop.f32.mrf.mxu0 }
 0x56a   : > { %v3834_v33 = vadd.f32 %v3833_v27, %v8162_v12  ;;  %v3962_v37 = vpop.f32.mrf.mxu1 }
 0x56c   : > { %3872 = vmatmul.bf16.gmra.mxu0 %v8164_v14  ;;  %v3963_v15 = vadd.f32 %v3962_v37, %v3834_v33  ;;  %v3026_v33 = vadd.f32 %v7833_v10, %v2824_v30  ;;  %v3030_v37 = vadd.f32 %v7833_v10, %v2828_v49 }
 0x56d   : > { %4001 = vmatmul.bf16.gmra.mxu1 %v8166_v21 }
 0x56e   : > { %4130 = vmatmul.bf16.gmra.mxu2 %v8168_v24  ;;  %v3029_v24 = vadd.f32 %v7851_v57, %v2827_v3  ;;  %v3218_v49 = vmax.f32 %v3026_v33, 0.0  ;;  %v3222_v14 = vmax.f32 %v3030_v37, 0.0 }
 0x56f   : > { %4259 = vmatmul.bf16.gmra.mxu3 %v8171_v60  ;;  %v3032_v60 = vadd.f32 %v7841_v9, %v2830_v52 }
 0x570   : > { %v3221_v7 = vmax.f32 %v3029_v24, 0.0  ;;  %v8202_v52 = vpack.c.bf16 %v3222_v14, %v3218_v49  ;;  %v9785_v24 = vld [vmem:[#allocation60_spill] sm:$0xff]  ;;  %v9786_v14 = vld [vmem:[#allocation62_spill] sm:$0xff] }
 0x571   : > { %v4091_v27 = vpop.f32.mrf.mxu2  ;;  %v3835_v50 = vpop.f32.mrf.mxu0  ;;  %v3224_v63 = vmax.f32 %v3032_v60, 0.0  ;;  %v2832_v60 = vmul.f32 %v7831_v62, %v9785_v24  ;;  %v9792_v49 = vld [vmem:[#allocation154_spill] sm:$0xff] }
 0x572   : > { %v4092_v25 = vadd.f32 %v4091_v27, %v3963_v15  ;;  %v4220_v2 = vpop.f32.mrf.mxu3  ;;  %v3964_v13 = vpop.f32.mrf.mxu1  ;;  %v3836_v30 = vadd.f32 %v3835_v50, %v8162_v12  ;;  %v3223_v15 = vmax.f32 %v3031_v26, 0.0  ;;  %v3220_v27 = vmax.f32 %v3028_v34, 0.0  ;;  %9781 = vst [vmem:[#allocation219_spill] sm:$0xff] %v8202_v52  ;;  %v9788_v26 = vld [vmem:[#allocation63_spill] sm:$0xff]  ;;  %v9790_v34 = vld [vmem:[#allocation153_spill] sm:$0xff] }
 0x573   : > { %v8209_v37 = vpack.c.bf16 %v3225_v58, %v3221_v7 }
 0x574   : > { %v4221_v21 = vadd.f32 %v4220_v2, %v4092_v25  ;;  %v3965_v31 = vadd.f32 %v3964_v13, %v3836_v30  ;;  %v8204_v18 = vpack.c.bf16 %v3223_v15, %v3219_v61  ;;  %v8206_v25 = vpack.c.bf16 %v3224_v63, %v3220_v27  ;;  %v9787_v2 = vld [vmem:[#allocation61_spill] sm:$0xff] }
 0x575   : > { %9784 = vst [vmem:[#allocation222_spill] sm:$0xff] %v8209_v37  ;;  %v2833_v50 = vmul.f32 %v7835_v59, %v9787_v2  ;;  %v2837_v63 = vmul.f32 %v7835_v59, %v9788_v26  ;;  %v2838_v13 = vmul.f32 %v7839_v43, %v9790_v34  ;;  %v2835_v30 = vmul.f32 %v7843_v46, %v9791_v1 }
 0x576   : > { %4856 = vst [vmem:[#allocation15] sm:$0xff] %v4221_v21  ;;  %v2839_v61 = vmul.f32 %v7843_v46, %v9792_v49  ;;  %v3034_v27 = vadd.f32 %v7833_v10, %v2832_v60 }
 0x577   : > { %9782 = vst [vmem:[#allocation220_spill] sm:$0xff] %v8204_v18  ;;  %v3037_v26 = vadd.f32 %v7851_v57, %v2835_v30 }
 0x578   : > { %9783 = vst [vmem:[#allocation221_spill] sm:$0xff] %v8206_v25 }
 0x579   : > { %v4093_v32 = vpop.f32.mrf.mxu2  ;;  %v3838_v47 = vpop.f32.mrf.mxu0 }
 0x57a   : > { %v4094_v39 = vadd.f32 %v4093_v32, %v3965_v31  ;;  %v4222_v3 = vpop.f32.mrf.mxu3  ;;  %v3839_v33 = vadd.f32 %v3838_v47, %v8162_v12  ;;  %v3967_v21 = vpop.f32.mrf.mxu1  ;;  %v2836_v32 = vmul.f32 %v7831_v62, %v9786_v14  ;;  %v3035_v31 = vadd.f32 %v7837_v5, %v2833_v50 }
 0x57b   : > { %v3040_v14 = vadd.f32 %v7841_v9, %v2838_v13 }
 0x57c   : > { %v4223_v29 = vadd.f32 %v4222_v3, %v4094_v39  ;;  %3877 = vmatmul.bf16.gmra.mxu0 %v8202_v52  ;;  %v3968_v47 = vadd.f32 %v3967_v21, %v3839_v33  ;;  %v9789_v39 = vld [vmem:[#allocation151_spill] sm:$0xff]  ;;  %v3038_v7 = vadd.f32 %v7833_v10, %v2836_v32  ;;  %v3226_v32 = vmax.f32 %v3034_v27, 0.0 }
 0x57d   : > { %4006 = vmatmul.bf16.gmra.mxu1 %v8204_v18  ;;  %v2834_v58 = vmul.f32 %v7839_v43, %v9789_v39  ;;  %v3041_v39 = vadd.f32 %v7851_v57, %v2839_v61  ;;  %v3227_v50 = vmax.f32 %v3035_v31, 0.0 }
 0x57e   : > { %4858 = vst [vmem:[#allocation15 + $0x10] sm:$0xff] %v4223_v29  ;;  %4135 = vmatmul.bf16.gmra.mxu2 %v8206_v25  ;;  %v3039_v29 = vadd.f32 %v7837_v5, %v2837_v63  ;;  %v3230_v1 = vmax.f32 %v3038_v7, 0.0  ;;  %v3229_v63 = vmax.f32 %v3037_v26, 0.0  ;;  %v9800_v26 = vld [vmem:[#allocation67_spill] sm:$0xff] }
 0x57f   : > { %4264 = vmatmul.bf16.gmra.mxu3 %v8209_v37  ;;  %v3036_v24 = vadd.f32 %v7841_v9, %v2834_v58  ;;  %v3233_v37 = vmax.f32 %v3041_v39, 0.0  ;;  %v2845_v39 = vmul.f32 %v7835_v59, %v9800_v26 }
 0x580   : > { %v8240_v13 = vpack.c.bf16 %v3230_v1, %v3226_v32  ;;  %v9803_v32 = vld [vmem:[#allocation156_spill] sm:$0xff] }
 0x581   : > { %v4096_v15 = vpop.f32.mrf.mxu2  ;;  %v3840_v21 = vpop.f32.mrf.mxu0  ;;  %v3228_v49 = vmax.f32 %v3036_v24, 0.0  ;;  %v8247_v31 = vpack.c.bf16 %v3233_v37, %v3229_v63  ;;  %v9798_v24 = vld [vmem:[#allocation66_spill] sm:$0xff]  ;;  %v2843_v1 = vmul.f32 %v7843_v46, %v9803_v32 }
 0x582   : > { %v4097_v3 = vadd.f32 %v4096_v15, %v3968_v47  ;;  %v4225_v33 = vpop.f32.mrf.mxu3  ;;  %v3969_v2 = vpop.f32.mrf.mxu1  ;;  %v3841_v60 = vadd.f32 %v3840_v21, %v8162_v12  ;;  %v3231_v47 = vmax.f32 %v3039_v29, 0.0  ;;  %v3232_v15 = vmax.f32 %v3040_v14, 0.0  ;;  %9793 = vst [vmem:[#allocation223_spill] sm:$0xff] %v8240_v13  ;;  %v9797_v21 = vld [vmem:[#allocation64_spill] sm:$0xff] }
 0x583   : > { %9796 = vst [vmem:[#allocation226_spill] sm:$0xff] %v8247_v31  ;;  %v2840_v29 = vmul.f32 %v7831_v62, %v9797_v21  ;;  %v2844_v14 = vmul.f32 %v7831_v62, %v9798_v24 }
 0x584   : > { %v4226_v34 = vadd.f32 %v4225_v33, %v4097_v3  ;;  %v3970_v58 = vadd.f32 %v3969_v2, %v3841_v60  ;;  %v8242_v61 = vpack.c.bf16 %v3231_v47, %v3227_v50  ;;  %v8244_v3 = vpack.c.bf16 %v3232_v15, %v3228_v49  ;;  %v9804_v50 = vld [vmem:[#allocation158_spill] sm:$0xff]  ;;  %v5701_v15 = vld [vmem:[#allocation14 + $0x138] sm:$0xf0] }
 0x585   : > { %v2847_v47 = vmul.f32 %v7843_v46, %v9804_v50  ;;  %v5956_v49 = vld [vmem:[#allocation14 + $0x134] sm:$0xf]  ;;  %v3042_v63 = vadd.f32 %v7833_v10, %v2840_v29 }
 0x586   : > { %4860 = vst [vmem:[#allocation15 + $0x20] sm:$0xff] %v4226_v34  ;;  %v9801_v34 = vld [vmem:[#allocation155_spill] sm:$0xff] }
 0x587   : > { %9794 = vst [vmem:[#allocation224_spill] sm:$0xff] %v8242_v61 }
 0x588   : > { %9795 = vst [vmem:[#allocation225_spill] sm:$0xff] %v8244_v3 }
 0x589   : > { %v4098_v25 = vpop.f32.mrf.mxu2  ;;  %v3843_v52 = vpop.f32.mrf.mxu0 }
 0x58a   : > { %v4099_v18 = vadd.f32 %v4098_v25, %v3970_v58  ;;  %v4227_v30 = vpop.f32.mrf.mxu3  ;;  %v3844_v27 = vadd.f32 %v3843_v52, %v8162_v12  ;;  %v3972_v7 = vpop.f32.mrf.mxu1  ;;  %v9799_v25 = vld [vmem:[#allocation65_spill] sm:$0xff]  ;;  %v2842_v52 = vmul.f32 %v7839_v43, %v9801_v34  ;;  %v3046_v58 = vadd.f32 %v7833_v10, %v2844_v14 }
 0x58b   : > { %v2841_v2 = vmul.f32 %v7835_v59, %v9799_v25  ;;  %v3047_v25 = vadd.f32 %v7837_v5, %v2845_v39 }
 0x58c   : > { %v4228_v33 = vadd.f32 %v4227_v30, %v4099_v18  ;;  %3882 = vmatmul.bf16.gmra.mxu0 %v8240_v13  ;;  %v3973_v37 = vadd.f32 %v3972_v7, %v3844_v27  ;;  %v9802_v18 = vld [vmem:[#allocation157_spill] sm:$0xff]  ;;  %v5704_v30 = vor.u32 %v5956_v49, %v5701_v15  ;;  %v5924_v27 = vld [vmem:[#allocation14 + $0x34] sm:$0xf]  ;;  %v5573_v7 = vld [vmem:[#allocation14 + $0x38] sm:$0xf0]  ;;  %v3044_v26 = vadd.f32 %v7841_v9, %v2842_v52 }
 0x58d   : > { %4011 = vmatmul.bf16.gmra.mxu1 %v8242_v61  ;;  %v2846_v60 = vmul.f32 %v7839_v43, %v9802_v18  ;;  %v3043_v24 = vadd.f32 %v7837_v5, %v2841_v2  ;;  %v5576_v34 = vor.u32 %v5924_v27, %v5573_v7  ;;  %v5765_v18 = vld [vmem:[#allocation14 + $0x1b8] sm:$0xf0]  ;;  %v3045_v15 = vadd.f32 %v7851_v57, %v2843_v1 }
 0x58e   : > { %4862 = vst [vmem:[#allocation15 + $0x30] sm:$0xff] %v4228_v33  ;;  %4140 = vmatmul.bf16.gmra.mxu2 %v8244_v3  ;;  %v5972_v33 = vld [vmem:[#allocation14 + $0x1b4] sm:$0xf]  ;;  %v3049_v3 = vadd.f32 %v7851_v57, %v2847_v47  ;;  %v3234_v61 = vmax.f32 %v3042_v63, 0.0  ;;  %v3238_v52 = vmax.f32 %v3046_v58, 0.0  ;;  %v3236_v7 = vmax.f32 %v3044_v26, 0.0 }
 0x58f   : > { %4269 = vmatmul.bf16.gmra.mxu3 %v8247_v31  ;;  %v3048_v29 = vadd.f32 %v7841_v9, %v2846_v60  ;;  %4602 = vmatpush.bf16.msrb.mxu2 %v5704_v30  ;;  %v5768_v14 = vor.u32 %v5972_v33, %v5765_v18  ;;  %v3235_v27 = vmax.f32 %v3043_v24, 0.0  ;;  %v5940_v60 = vld [vmem:[#allocation14 + $0xb4] sm:$0xf]  ;;  %v5637_v30 = vld [vmem:[#allocation14 + $0xb8] sm:$0xf0]  ;;  %v3237_v33 = vmax.f32 %v3045_v15, 0.0 }
 0x590   : > { %4344 = vmatpush.bf16.msrb.mxu0 %v5576_v34  ;;  %v3241_v18 = vmax.f32 %v3049_v3, 0.0  ;;  %v5640_v13 = vor.u32 %v5940_v60, %v5637_v30  ;;  %v8278_v47 = vpack.c.bf16 %v3238_v52, %v3234_v61  ;;  %v9809_v3 = vld [vmem:[#allocation68_spill] sm:$0xff]  ;;  %v9816_v60 = vld [vmem:[#allocation162_spill] sm:$0xff] }
 0x591   : > { %v4101_v21 = vpop.f32.mrf.mxu2  ;;  %v3845_v31 = vpop.f32.mrf.mxu0  ;;  %4731 = vmatpush.bf16.msrb.mxu3 %v5768_v14  ;;  %v2848_v61 = vmul.f32 %v7831_v62, %v9809_v3  ;;  %v2855_v30 = vmul.f32 %v7843_v46, %v9816_v60 }
 0x592   : > { %v4102_v32 = vadd.f32 %v4101_v21, %v3973_v37  ;;  %v4230_v50 = vpop.f32.mrf.mxu3  ;;  %v3974_v49 = vpop.f32.mrf.mxu1  ;;  %v3846_v39 = vadd.f32 %v3845_v31, %v8162_v12  ;;  %v3239_v37 = vmax.f32 %v3047_v25, 0.0  ;;  %v3240_v21 = vmax.f32 %v3048_v29, 0.0  ;;  %9805 = vst [vmem:[#allocation227_spill] sm:$0xff] %v8278_v47  ;;  %4473 = vmatpush.bf16.msrb.mxu1 %v5640_v13  ;;  %v9810_v29 = vld [vmem:[#allocation70_spill] sm:$0xff]  ;;  %v9811_v13 = vld [vmem:[#allocation69_spill] sm:$0xff] }
 0x593   : > { %v8285_v26 = vpack.c.bf16 %v3241_v18, %v3237_v33  ;;  %v2849_v14 = vmul.f32 %v7835_v59, %v9811_v13  ;;  %v3050_v18 = vadd.f32 %v7833_v10, %v2848_v61 }
 0x594   : > { %v4231_v2 = vadd.f32 %v4230_v50, %v4102_v32  ;;  %v3975_v1 = vadd.f32 %v3974_v49, %v3846_v39  ;;  %v8280_v32 = vpack.c.bf16 %v3239_v37, %v3235_v27  ;;  %v8282_v58 = vpack.c.bf16 %v3240_v21, %v3236_v7  ;;  %v9812_v49 = vld [vmem:[#allocation71_spill] sm:$0xff]  ;;  %v9814_v27 = vld [vmem:[#allocation161_spill] sm:$0xff]  ;;  %v9815_v7 = vld [vmem:[#allocation160_spill] sm:$0xff] }
 0x595   : > { %9808 = vst [vmem:[#allocation230_spill] sm:$0xff] %v8285_v26  ;;  %v2853_v15 = vmul.f32 %v7835_v59, %v9812_v49  ;;  %v9813_v39 = vld [vmem:[#allocation159_spill] sm:$0xff]  ;;  %v2854_v37 = vmul.f32 %v7839_v43, %v9814_v27  ;;  %v2851_v21 = vmul.f32 %v7843_v46, %v9815_v7  ;;  %v3057_v49 = vadd.f32 %v7851_v57, %v2855_v30 }
 0x596   : > { %4864 = vst [vmem:[#allocation15 + $0x40] sm:$0xff] %v4231_v2  ;;  %v2850_v52 = vmul.f32 %v7839_v43, %v9813_v39 }
 0x597   : > { %9806 = vst [vmem:[#allocation228_spill] sm:$0xff] %v8280_v32  ;;  %v3056_v3 = vadd.f32 %v7841_v9, %v2854_v37  ;;  %v3053_v13 = vadd.f32 %v7851_v57, %v2851_v21 }
 0x598   : > { %9807 = vst [vmem:[#allocation229_spill] sm:$0xff] %v8282_v58 }
 0x599   : > { %v4103_v54 = vpop.f32.mrf.mxu2  ;;  %v3848_v63 = vpop.f32.mrf.mxu0  ;;  %v3248_v60 = vmax.f32 %v3056_v3, 0.0  ;;  %v9823_v3 = vld [vmem:[#allocation73_spill] sm:$0xff] }
 0x59a   : > { %v4104_v34 = vadd.f32 %v4103_v54, %v3975_v1  ;;  %v4232_v31 = vpop.f32.mrf.mxu3  ;;  %v3849_v24 = vadd.f32 %v3848_v63, %v8162_v12  ;;  %v3977_v25 = vpop.f32.mrf.mxu1  ;;  %v2852_v54 = vmul.f32 %v7831_v62, %v9810_v29 }
 0x59c   : > { %v4233_v50 = vadd.f32 %v4232_v31, %v4104_v34  ;;  %3887 = vmatmul.bf16.gmra.mxu0 %v8278_v47  ;;  %v3978_v2 = vadd.f32 %v3977_v25, %v3849_v24  ;;  %v3054_v1 = vadd.f32 %v7833_v10, %v2852_v54  ;;  %v3051_v34 = vadd.f32 %v7837_v5, %v2849_v14 }
 0x59d   : > { %4016 = vmatmul.bf16.gmra.mxu1 %v8280_v32  ;;  %v3055_v25 = vadd.f32 %v7837_v5, %v2853_v15  ;;  %v3242_v54 = vmax.f32 %v3050_v18, 0.0  ;;  %v3245_v15 = vmax.f32 %v3053_v13, 0.0  ;;  %v9824_v13 = vld [vmem:[#allocation75_spill] sm:$0xff] }
 0x59e   : > { %4866 = vst [vmem:[#allocation15 + $0x50] sm:$0xff] %v4233_v50  ;;  %4145 = vmatmul.bf16.gmra.mxu2 %v8282_v58  ;;  %v3052_v50 = vadd.f32 %v7841_v9, %v2850_v52  ;;  %v3246_v27 = vmax.f32 %v3054_v1, 0.0  ;;  %v3243_v14 = vmax.f32 %v3051_v34, 0.0 }
 0x59f   : > { %4274 = vmatmul.bf16.gmra.mxu3 %v8285_v26 }
 0x5a0   : > { %v3244_v7 = vmax.f32 %v3052_v50, 0.0  ;;  %v8316_v37 = vpack.c.bf16 %v3246_v27, %v3242_v54  ;;  %v9822_v50 = vld [vmem:[#allocation74_spill] sm:$0xff]  ;;  %v9827_v27 = vld [vmem:[#allocation164_spill] sm:$0xff] }
 0x5a1   : > { %v4106_v33 = vpop.f32.mrf.mxu2  ;;  %v3850_v24 = vpop.f32.mrf.mxu0 }
 0x5a2   : > { %v4107_v31 = vadd.f32 %v4106_v33, %v3978_v2  ;;  %v4235_v63 = vpop.f32.mrf.mxu3  ;;  %v3979_v29 = vpop.f32.mrf.mxu1  ;;  %v3851_v61 = vadd.f32 %v3850_v24, %v8162_v12  ;;  %v3247_v2 = vmax.f32 %v3055_v25, 0.0  ;;  %v3249_v33 = vmax.f32 %v3057_v49, 0.0  ;;  %9817 = vst [vmem:[#allocation231_spill] sm:$0xff] %v8316_v37  ;;  %v9821_v24 = vld [vmem:[#allocation72_spill] sm:$0xff] }
 0x5a3   : > { %v2856_v25 = vmul.f32 %v7831_v62, %v9821_v24  ;;  %v2861_v49 = vmul.f32 %v7835_v59, %v9824_v13 }
 0x5a4   : > { %v4236_v39 = vadd.f32 %v4235_v63, %v4107_v31  ;;  %v3980_v52 = vadd.f32 %v3979_v29, %v3851_v61  ;;  %v8318_v30 = vpack.c.bf16 %v3247_v2, %v3243_v14  ;;  %v8320_v31 = vpack.c.bf16 %v3248_v60, %v3244_v7  ;;  %v9826_v61 = vld [vmem:[#allocation165_spill] sm:$0xff]  ;;  %v9828_v2 = vld [vmem:[#allocation166_spill] sm:$0xff] }
 0x5a5   : > { %v8323_v34 = vpack.c.bf16 %v3249_v33, %v3245_v15  ;;  %v2857_v29 = vmul.f32 %v7835_v59, %v9823_v3  ;;  %v2862_v54 = vmul.f32 %v7839_v43, %v9826_v61  ;;  %v2859_v14 = vmul.f32 %v7843_v46, %v9827_v27 }
 0x5a6   : > { %4868 = vst [vmem:[#allocation15 + $0x60] sm:$0xff] %v4236_v39  ;;  %v2863_v7 = vmul.f32 %v7843_v46, %v9828_v2  ;;  %v3058_v15 = vadd.f32 %v7833_v10, %v2856_v25 }
 0x5a7   : > { %9818 = vst [vmem:[#allocation232_spill] sm:$0xff] %v8318_v30  ;;  %v3061_v13 = vadd.f32 %v7851_v57, %v2859_v14 }
 0x5a8   : > { %9819 = vst [vmem:[#allocation233_spill] sm:$0xff] %v8320_v31 }
 0x5a9   : > { %v4108_v26 = vpop.f32.mrf.mxu2  ;;  %v3853_v32 = vpop.f32.mrf.mxu0  ;;  %9820 = vst [vmem:[#allocation234_spill] sm:$0xff] %v8323_v34 }
 0x5aa   : > { %v4109_v58 = vadd.f32 %v4108_v26, %v3980_v52  ;;  %v4237_v21 = vpop.f32.mrf.mxu3  ;;  %v3854_v18 = vadd.f32 %v3853_v32, %v8162_v12  ;;  %v3982_v1 = vpop.f32.mrf.mxu1  ;;  %v2860_v26 = vmul.f32 %v7831_v62, %v9822_v50  ;;  %v3059_v52 = vadd.f32 %v7837_v5, %v2857_v29 }
 0x5ab   : > { %v3064_v50 = vadd.f32 %v7841_v9, %v2862_v54 }
 0x5ac   : > { %v4238_v63 = vadd.f32 %v4237_v21, %v4109_v58  ;;  %3892 = vmatmul.bf16.gmra.mxu0 %v8316_v37  ;;  %v3983_v32 = vadd.f32 %v3982_v1, %v3854_v18  ;;  %v9825_v58 = vld [vmem:[#allocation163_spill] sm:$0xff]  ;;  %v3062_v33 = vadd.f32 %v7833_v10, %v2860_v26  ;;  %v3250_v26 = vmax.f32 %v3058_v15, 0.0 }
 0x5ad   : > { %4021 = vmatmul.bf16.gmra.mxu1 %v8318_v30  ;;  %v2858_v39 = vmul.f32 %v7839_v43, %v9825_v58  ;;  %v3065_v58 = vadd.f32 %v7851_v57, %v2863_v7  ;;  %v3251_v29 = vmax.f32 %v3059_v52, 0.0 }
 0x5ae   : > { %4870 = vst [vmem:[#allocation15 + $0x70] sm:$0xff] %v4238_v63  ;;  %4150 = vmatmul.bf16.gmra.mxu2 %v8320_v31  ;;  %v3063_v63 = vadd.f32 %v7837_v5, %v2861_v49  ;;  %v3254_v27 = vmax.f32 %v3062_v33, 0.0  ;;  %v3253_v49 = vmax.f32 %v3061_v13, 0.0  ;;  %v9836_v13 = vld [vmem:[#allocation79_spill] sm:$0xff] }
 0x5af   : > { %4279 = vmatmul.bf16.gmra.mxu3 %v8323_v34  ;;  %v3060_v24 = vadd.f32 %v7841_v9, %v2858_v39  ;;  %v3257_v34 = vmax.f32 %v3065_v58, 0.0  ;;  %v2869_v58 = vmul.f32 %v7835_v59, %v9836_v13 }
 0x5b0   : > { %v8354_v54 = vpack.c.bf16 %v3254_v27, %v3250_v26  ;;  %v9839_v26 = vld [vmem:[#allocation168_spill] sm:$0xff] }
 0x5b1   : > { %v4111_v60 = vpop.f32.mrf.mxu2  ;;  %v3855_v1 = vpop.f32.mrf.mxu0  ;;  %v3252_v2 = vmax.f32 %v3060_v24, 0.0  ;;  %v8361_v52 = vpack.c.bf16 %v3257_v34, %v3253_v49  ;;  %v9834_v24 = vld [vmem:[#allocation78_spill] sm:$0xff]  ;;  %v2867_v27 = vmul.f32 %v7843_v46, %v9839_v26 }
 0x5b2   : > { %v4112_v21 = vadd.f32 %v4111_v60, %v3983_v32  ;;  %v4240_v18 = vpop.f32.mrf.mxu3  ;;  %v3984_v3 = vpop.f32.mrf.mxu1  ;;  %v3856_v25 = vadd.f32 %v3855_v1, %v8162_v12  ;;  %v3255_v32 = vmax.f32 %v3063_v63, 0.0  ;;  %v3256_v60 = vmax.f32 %v3064_v50, 0.0  ;;  %9829 = vst [vmem:[#allocation235_spill] sm:$0xff] %v8354_v54  ;;  %v9833_v1 = vld [vmem:[#allocation76_spill] sm:$0xff] }
 0x5b3   : > { %9832 = vst [vmem:[#allocation238_spill] sm:$0xff] %v8361_v52  ;;  %v2864_v63 = vmul.f32 %v7831_v62, %v9833_v1  ;;  %v2868_v50 = vmul.f32 %v7831_v62, %v9834_v24 }
 0x5b4   : > { %v4241_v61 = vadd.f32 %v4240_v18, %v4112_v21  ;;  %v3985_v39 = vadd.f32 %v3984_v3, %v3856_v25  ;;  %v8356_v7 = vpack.c.bf16 %v3255_v32, %v3251_v29  ;;  %v8358_v21 = vpack.c.bf16 %v3256_v60, %v3252_v2  ;;  %v9840_v29 = vld [vmem:[#allocation170_spill] sm:$0xff]  ;;  %v5954_v2 = vld [vmem:[#allocation14 + $0x124] sm:$0xf]  ;;  %v5693_v60 = vld [vmem:[#allocation14 + $0x128] sm:$0xf0] }
 0x5b5   : > { %v2871_v32 = vmul.f32 %v7843_v46, %v9840_v29  ;;  %v3066_v49 = vadd.f32 %v7833_v10, %v2864_v63 }
 0x5b6   : > { %4872 = vst [vmem:[#allocation15 + $0x80] sm:$0xff] %v4241_v61  ;;  %v9837_v61 = vld [vmem:[#allocation167_spill] sm:$0xff] }
 0x5b7   : > { %9830 = vst [vmem:[#allocation236_spill] sm:$0xff] %v8356_v7 }
 0x5b8   : > { %9831 = vst [vmem:[#allocation237_spill] sm:$0xff] %v8358_v21 }
 0x5b9   : > { %v4113_v31 = vpop.f32.mrf.mxu2  ;;  %v3858_v37 = vpop.f32.mrf.mxu0 }
 0x5ba   : > { %v4114_v30 = vadd.f32 %v4113_v31, %v3985_v39  ;;  %v4242_v14 = vpop.f32.mrf.mxu3  ;;  %v3859_v15 = vadd.f32 %v3858_v37, %v8162_v12  ;;  %v3987_v33 = vpop.f32.mrf.mxu1  ;;  %v9835_v31 = vld [vmem:[#allocation77_spill] sm:$0xff]  ;;  %v2866_v37 = vmul.f32 %v7839_v43, %v9837_v61  ;;  %v3070_v39 = vadd.f32 %v7833_v10, %v2868_v50 }
 0x5bb   : > { %v2865_v3 = vmul.f32 %v7835_v59, %v9835_v31  ;;  %v3071_v31 = vadd.f32 %v7837_v5, %v2869_v58 }
 0x5bc   : > { %v4243_v18 = vadd.f32 %v4242_v14, %v4114_v30  ;;  %3897 = vmatmul.bf16.gmra.mxu0 %v8354_v54  ;;  %v3988_v34 = vadd.f32 %v3987_v33, %v3859_v15  ;;  %v9838_v30 = vld [vmem:[#allocation169_spill] sm:$0xff]  ;;  %v5696_v14 = vor.u32 %v5954_v2, %v5693_v60  ;;  %v5922_v15 = vld [vmem:[#allocation14 + $0x24] sm:$0xf]  ;;  %v3068_v13 = vadd.f32 %v7841_v9, %v2866_v37 }
 0x5bd   : > { %4026 = vmatmul.bf16.gmra.mxu1 %v8356_v7  ;;  %v2870_v25 = vmul.f32 %v7839_v43, %v9838_v30  ;;  %v5565_v33 = vld [vmem:[#allocation14 + $0x28] sm:$0xf0]  ;;  %v3067_v24 = vadd.f32 %v7837_v5, %v2865_v3  ;;  %v3069_v60 = vadd.f32 %v7851_v57, %v2867_v27  ;;  %v3258_v7 = vmax.f32 %v3066_v49, 0.0 }
 0x5be   : > { %4874 = vst [vmem:[#allocation15 + $0x90] sm:$0xff] %v4243_v18  ;;  %4155 = vmatmul.bf16.gmra.mxu2 %v8358_v21  ;;  %v5970_v18 = vld [vmem:[#allocation14 + $0x1a4] sm:$0xf]  ;;  %v5568_v61 = vor.u32 %v5922_v15, %v5565_v33  ;;  %v5757_v30 = vld [vmem:[#allocation14 + $0x1a8] sm:$0xf0]  ;;  %v3073_v21 = vadd.f32 %v7851_v57, %v2871_v32  ;;  %v3262_v37 = vmax.f32 %v3070_v39, 0.0 }
 0x5bf   : > { %4284 = vmatmul.bf16.gmra.mxu3 %v8361_v52  ;;  %v3072_v63 = vadd.f32 %v7841_v9, %v2870_v25  ;;  %4603 = vmatpush.bf16.msrb.mxu2 %v5696_v14  ;;  %v5760_v50 = vor.u32 %v5970_v18, %v5757_v30  ;;  %v3259_v15 = vmax.f32 %v3067_v24, 0.0  ;;  %v3260_v33 = vmax.f32 %v3068_v13, 0.0  ;;  %v5938_v25 = vld [vmem:[#allocation14 + $0xa4] sm:$0xf]  ;;  %v5629_v14 = vld [vmem:[#allocation14 + $0xa8] sm:$0xf0] }
 0x5c0   : > { %4345 = vmatpush.bf16.msrb.mxu0 %v5568_v61  ;;  %v3261_v18 = vmax.f32 %v3069_v60, 0.0  ;;  %v3265_v30 = vmax.f32 %v3073_v21, 0.0  ;;  %v5632_v54 = vor.u32 %v5938_v25, %v5629_v14  ;;  %v8392_v32 = vpack.c.bf16 %v3262_v37, %v3258_v7  ;;  %v9845_v21 = vld [vmem:[#allocation80_spill] sm:$0xff]  ;;  %v9852_v25 = vld [vmem:[#allocation174_spill] sm:$0xff] }
 0x5c1   : > { %v4116_v1 = vpop.f32.mrf.mxu2  ;;  %v3860_v52 = vpop.f32.mrf.mxu0  ;;  %4732 = vmatpush.bf16.msrb.mxu3 %v5760_v50  ;;  %v2872_v7 = vmul.f32 %v7831_v62, %v9845_v21  ;;  %v2879_v14 = vmul.f32 %v7843_v46, %v9852_v25 }
 0x5c2   : > { %v4117_v26 = vadd.f32 %v4116_v1, %v3988_v34  ;;  %v4245_v29 = vpop.f32.mrf.mxu3  ;;  %v3989_v2 = vpop.f32.mrf.mxu1  ;;  %v3861_v58 = vadd.f32 %v3860_v52, %v8162_v12  ;;  %v3263_v34 = vmax.f32 %v3071_v31, 0.0  ;;  %v3264_v1 = vmax.f32 %v3072_v63, 0.0  ;;  %9841 = vst [vmem:[#allocation239_spill] sm:$0xff] %v8392_v32  ;;  %4474 = vmatpush.bf16.msrb.mxu1 %v5632_v54  ;;  %v9846_v63 = vld [vmem:[#allocation82_spill] sm:$0xff]  ;;  %v9847_v54 = vld [vmem:[#allocation81_spill] sm:$0xff] }
 0x5c3   : > { %v8399_v13 = vpack.c.bf16 %v3265_v30, %v3261_v18  ;;  %v2873_v50 = vmul.f32 %v7835_v59, %v9847_v54  ;;  %v3074_v30 = vadd.f32 %v7833_v10, %v2872_v7 }
 0x5c4   : > { %v4246_v3 = vadd.f32 %v4245_v29, %v4117_v26  ;;  %v3990_v27 = vadd.f32 %v3989_v2, %v3861_v58  ;;  %v8394_v26 = vpack.c.bf16 %v3263_v34, %v3259_v15  ;;  %v8396_v39 = vpack.c.bf16 %v3264_v1, %v3260_v33  ;;  %v9848_v2 = vld [vmem:[#allocation83_spill] sm:$0xff]  ;;  %v9850_v15 = vld [vmem:[#allocation173_spill] sm:$0xff]  ;;  %v9851_v33 = vld [vmem:[#allocation172_spill] sm:$0xff] }
 0x5c5   : > { %9844 = vst [vmem:[#allocation242_spill] sm:$0xff] %v8399_v13  ;;  %v2877_v60 = vmul.f32 %v7835_v59, %v9848_v2  ;;  %v9849_v58 = vld [vmem:[#allocation171_spill] sm:$0xff]  ;;  %v2878_v34 = vmul.f32 %v7839_v43, %v9850_v15  ;;  %v2875_v1 = vmul.f32 %v7843_v46, %v9851_v33  ;;  %v3081_v2 = vadd.f32 %v7851_v57, %v2879_v14 }
 0x5c6   : > { %4876 = vst [vmem:[#allocation15 + $0xa0] sm:$0xff] %v4246_v3  ;;  %v2874_v37 = vmul.f32 %v7839_v43, %v9849_v58 }
 0x5c7   : > { %9842 = vst [vmem:[#allocation240_spill] sm:$0xff] %v8394_v26  ;;  %v3080_v21 = vadd.f32 %v7841_v9, %v2878_v34  ;;  %v3077_v54 = vadd.f32 %v7851_v57, %v2875_v1 }
 0x5c8   : > { %9843 = vst [vmem:[#allocation241_spill] sm:$0xff] %v8396_v39 }
 0x5c9   : > { %v4118_v47 = vpop.f32.mrf.mxu2  ;;  %v3863_v49 = vpop.f32.mrf.mxu0  ;;  %v3272_v25 = vmax.f32 %v3080_v21, 0.0  ;;  %v9859_v21 = vld [vmem:[#allocation85_spill] sm:$0xff] }
 0x5ca   : > { %v4119_v61 = vadd.f32 %v4118_v47, %v3990_v27  ;;  %v4247_v52 = vpop.f32.mrf.mxu3  ;;  %v3864_v24 = vadd.f32 %v3863_v49, %v8162_v12  ;;  %v3992_v31 = vpop.f32.mrf.mxu1  ;;  %v2876_v47 = vmul.f32 %v7831_v62, %v9846_v63 }
 0x5cc   : > { %v4248_v29 = vadd.f32 %v4247_v52, %v4119_v61  ;;  %3902 = vmatmul.bf16.gmra.mxu0 %v8392_v32  ;;  %v3993_v3 = vadd.f32 %v3992_v31, %v3864_v24  ;;  %v3078_v27 = vadd.f32 %v7833_v10, %v2876_v47  ;;  %v3075_v61 = vadd.f32 %v7837_v5, %v2873_v50 }
 0x5cd   : > { %4031 = vmatmul.bf16.gmra.mxu1 %v8394_v26  ;;  %v3079_v31 = vadd.f32 %v7837_v5, %v2877_v60  ;;  %v3266_v47 = vmax.f32 %v3074_v30, 0.0  ;;  %v3269_v60 = vmax.f32 %v3077_v54, 0.0  ;;  %v9860_v54 = vld [vmem:[#allocation87_spill] sm:$0xff] }
 0x5ce   : > { %4878 = vst [vmem:[#allocation15 + $0xb0] sm:$0xff] %v4248_v29  ;;  %4160 = vmatmul.bf16.gmra.mxu2 %v8396_v39  ;;  %v3076_v29 = vadd.f32 %v7841_v9, %v2874_v37  ;;  %v3270_v15 = vmax.f32 %v3078_v27, 0.0  ;;  %v3267_v50 = vmax.f32 %v3075_v61, 0.0 }
 0x5cf   : > { %4289 = vmatmul.bf16.gmra.mxu3 %v8399_v13 }
 0x5d0   : > { %v3268_v33 = vmax.f32 %v3076_v29, 0.0  ;;  %v8430_v34 = vpack.c.bf16 %v3270_v15, %v3266_v47  ;;  %v9858_v29 = vld [vmem:[#allocation86_spill] sm:$0xff]  ;;  %v9863_v15 = vld [vmem:[#allocation176_spill] sm:$0xff] }
 0x5d1   : > { %v4121_v18 = vpop.f32.mrf.mxu2  ;;  %v3865_v24 = vpop.f32.mrf.mxu0 }
 0x5d2   : > { %v4122_v52 = vadd.f32 %v4121_v18, %v3993_v3  ;;  %v4250_v49 = vpop.f32.mrf.mxu3  ;;  %v3994_v63 = vpop.f32.mrf.mxu1  ;;  %v3866_v7 = vadd.f32 %v3865_v24, %v8162_v12  ;;  %v3271_v3 = vmax.f32 %v3079_v31, 0.0  ;;  %v3273_v18 = vmax.f32 %v3081_v2, 0.0  ;;  %9853 = vst [vmem:[#allocation243_spill] sm:$0xff] %v8430_v34  ;;  %v9857_v24 = vld [vmem:[#allocation84_spill] sm:$0xff] }
 0x5d3   : > { %v2880_v31 = vmul.f32 %v7831_v62, %v9857_v24  ;;  %v2885_v2 = vmul.f32 %v7835_v59, %v9860_v54 }
 0x5d4   : > { %v4251_v58 = vadd.f32 %v4250_v49, %v4122_v52  ;;  %v3995_v37 = vadd.f32 %v3994_v63, %v3866_v7  ;;  %v8432_v14 = vpack.c.bf16 %v3271_v3, %v3267_v50  ;;  %v8434_v52 = vpack.c.bf16 %v3272_v25, %v3268_v33  ;;  %v9862_v7 = vld [vmem:[#allocation177_spill] sm:$0xff]  ;;  %v9864_v3 = vld [vmem:[#allocation178_spill] sm:$0xff] }
 0x5d5   : > { %v8437_v61 = vpack.c.bf16 %v3273_v18, %v3269_v60  ;;  %v2881_v63 = vmul.f32 %v7835_v59, %v9859_v21  ;;  %v2886_v47 = vmul.f32 %v7839_v43, %v9862_v7  ;;  %v2883_v50 = vmul.f32 %v7843_v46, %v9863_v15 }
 0x5d6   : > { %4880 = vst [vmem:[#allocation15 + $0xc0] sm:$0xff] %v4251_v58  ;;  %v2887_v33 = vmul.f32 %v7843_v46, %v9864_v3  ;;  %v3082_v60 = vadd.f32 %v7833_v10, %v2880_v31 }
 0x5d7   : > { %9854 = vst [vmem:[#allocation244_spill] sm:$0xff] %v8432_v14  ;;  %v3085_v54 = vadd.f32 %v7851_v57, %v2883_v50 }
 0x5d8   : > { %9855 = vst [vmem:[#allocation245_spill] sm:$0xff] %v8434_v52 }
 0x5d9   : > { %v4123_v13 = vpop.f32.mrf.mxu2  ;;  %v3868_v26 = vpop.f32.mrf.mxu0  ;;  %9856 = vst [vmem:[#allocation246_spill] sm:$0xff] %v8437_v61 }
 0x5da   : > { %v4124_v39 = vadd.f32 %v4123_v13, %v3995_v37  ;;  %v4252_v1 = vpop.f32.mrf.mxu3  ;;  %v3869_v30 = vadd.f32 %v3868_v26, %v8162_v12  ;;  %v3997_v27 = vpop.f32.mrf.mxu1  ;;  %v2884_v13 = vmul.f32 %v7831_v62, %v9858_v29  ;;  %v3083_v37 = vadd.f32 %v7837_v5, %v2881_v63 }
 0x5db   : > { %v3088_v29 = vadd.f32 %v7841_v9, %v2886_v47 }
 0x5dc   : > { %v4253_v49 = vadd.f32 %v4252_v1, %v4124_v39  ;;  %3907 = vmatmul.bf16.gmra.mxu0 %v8430_v34  ;;  %v3998_v26 = vadd.f32 %v3997_v27, %v3869_v30  ;;  %v9861_v39 = vld [vmem:[#allocation175_spill] sm:$0xff]  ;;  %v3086_v18 = vadd.f32 %v7833_v10, %v2884_v13  ;;  %v3274_v13 = vmax.f32 %v3082_v60, 0.0 }
 0x5dd   : > { %4036 = vmatmul.bf16.gmra.mxu1 %v8432_v14  ;;  %v2882_v58 = vmul.f32 %v7839_v43, %v9861_v39  ;;  %v3089_v39 = vadd.f32 %v7851_v57, %v2887_v33  ;;  %v3275_v63 = vmax.f32 %v3083_v37, 0.0 }
 0x5de   : > { %4882 = vst [vmem:[#allocation15 + $0xd0] sm:$0xff] %v4253_v49  ;;  %4165 = vmatmul.bf16.gmra.mxu2 %v8434_v52  ;;  %v3087_v49 = vadd.f32 %v7837_v5, %v2885_v2  ;;  %v3278_v15 = vmax.f32 %v3086_v18, 0.0  ;;  %v3277_v2 = vmax.f32 %v3085_v54, 0.0  ;;  %v9872_v54 = vld [vmem:[#allocation91_spill] sm:$0xff] }
 0x5df   : > { %4294 = vmatmul.bf16.gmra.mxu3 %v8437_v61  ;;  %v3084_v24 = vadd.f32 %v7841_v9, %v2882_v58  ;;  %v3281_v61 = vmax.f32 %v3089_v39, 0.0  ;;  %v2893_v39 = vmul.f32 %v7835_v59, %v9872_v54 }
 0x5e0   : > { %v8468_v47 = vpack.c.bf16 %v3278_v15, %v3274_v13  ;;  %v9875_v13 = vld [vmem:[#allocation180_spill] sm:$0xff] }
 0x5e1   : > { %v4126_v25 = vpop.f32.mrf.mxu2  ;;  %v3870_v27 = vpop.f32.mrf.mxu0  ;;  %v3276_v3 = vmax.f32 %v3084_v24, 0.0  ;;  %v8475_v37 = vpack.c.bf16 %v3281_v61, %v3277_v2  ;;  %v9870_v24 = vld [vmem:[#allocation90_spill] sm:$0xff]  ;;  %v2891_v15 = vmul.f32 %v7843_v46, %v9875_v13 }
 0x5e2   : > { %v4127_v1 = vadd.f32 %v4126_v25, %v3998_v26  ;;  %v4255_v30 = vpop.f32.mrf.mxu3  ;;  %v3999_v21 = vpop.f32.mrf.mxu1  ;;  %v3871_v31 = vadd.f32 %v3870_v27, %v8162_v12  ;;  %v3279_v26 = vmax.f32 %v3087_v49, 0.0  ;;  %v3280_v25 = vmax.f32 %v3088_v29, 0.0  ;;  %9865 = vst [vmem:[#allocation247_spill] sm:$0xff] %v8468_v47  ;;  %v9869_v27 = vld [vmem:[#allocation88_spill] sm:$0xff] }
 0x5e3   : > { %9868 = vst [vmem:[#allocation250_spill] sm:$0xff] %v8475_v37  ;;  %v2888_v49 = vmul.f32 %v7831_v62, %v9869_v27  ;;  %v2892_v29 = vmul.f32 %v7831_v62, %v9870_v24 }
 0x5e4   : > { %v4256_v7 = vadd.f32 %v4255_v30, %v4127_v1  ;;  %v4000_v58 = vadd.f32 %v3999_v21, %v3871_v31  ;;  %v8470_v33 = vpack.c.bf16 %v3279_v26, %v3275_v63  ;;  %v8472_v1 = vpack.c.bf16 %v3280_v25, %v3276_v3  ;;  %v9876_v63 = vld [vmem:[#allocation182_spill] sm:$0xff]  ;;  %v5685_v25 = vld [vmem:[#allocation14 + $0x118] sm:$0xf0] }
 0x5e5   : > { %v2895_v26 = vmul.f32 %v7843_v46, %v9876_v63  ;;  %v5952_v3 = vld [vmem:[#allocation14 + $0x114] sm:$0xf]  ;;  %v3090_v2 = vadd.f32 %v7833_v10, %v2888_v49 }
 0x5e6   : > { %4884 = vst [vmem:[#allocation15 + $0xe0] sm:$0xff] %v4256_v7  ;;  %v9873_v7 = vld [vmem:[#allocation179_spill] sm:$0xff] }
 0x5e7   : > { %9866 = vst [vmem:[#allocation248_spill] sm:$0xff] %v8470_v33 }
 0x5e8   : > { %9867 = vst [vmem:[#allocation249_spill] sm:$0xff] %v8472_v1 }
 0x5e9   : > { %v4128_v52 = vpop.f32.mrf.mxu2  ;;  %v3873_v34 = vpop.f32.mrf.mxu0 }
 0x5ea   : > { %v4129_v14 = vadd.f32 %v4128_v52, %v4000_v58  ;;  %v4257_v50 = vpop.f32.mrf.mxu3  ;;  %v3874_v60 = vadd.f32 %v3873_v34, %v8162_v12  ;;  %v4002_v18 = vpop.f32.mrf.mxu1  ;;  %v9871_v52 = vld [vmem:[#allocation89_spill] sm:$0xff]  ;;  %v2890_v34 = vmul.f32 %v7839_v43, %v9873_v7  ;;  %v3094_v58 = vadd.f32 %v7833_v10, %v2892_v29 }
 0x5eb   : > { %v2889_v21 = vmul.f32 %v7835_v59, %v9871_v52  ;;  %v3095_v52 = vadd.f32 %v7837_v5, %v2893_v39 }
 0x5ec   : > { %v4258_v30 = vadd.f32 %v4257_v50, %v4129_v14  ;;  %3912 = vmatmul.bf16.gmra.mxu0 %v8468_v47  ;;  %v4003_v61 = vadd.f32 %v4002_v18, %v3874_v60  ;;  %v9874_v14 = vld [vmem:[#allocation181_spill] sm:$0xff]  ;;  %v5688_v50 = vor.u32 %v5952_v3, %v5685_v25  ;;  %v5920_v60 = vld [vmem:[#allocation14 + $0x14] sm:$0xf]  ;;  %v5557_v18 = vld [vmem:[#allocation14 + $0x18] sm:$0xf0]  ;;  %v3092_v54 = vadd.f32 %v7841_v9, %v2890_v34 }
 0x5ed   : > { %4041 = vmatmul.bf16.gmra.mxu1 %v8470_v33  ;;  %v2894_v31 = vmul.f32 %v7839_v43, %v9874_v14  ;;  %v3091_v24 = vadd.f32 %v7837_v5, %v2889_v21  ;;  %v5560_v7 = vor.u32 %v5920_v60, %v5557_v18  ;;  %v5749_v14 = vld [vmem:[#allocation14 + $0x198] sm:$0xf0]  ;;  %v3093_v25 = vadd.f32 %v7851_v57, %v2891_v15 }
 0x5ee   : > { %4886 = vst [vmem:[#allocation15 + $0xf0] sm:$0xff] %v4258_v30  ;;  %4170 = vmatmul.bf16.gmra.mxu2 %v8472_v1  ;;  %v5968_v30 = vld [vmem:[#allocation14 + $0x194] sm:$0xf]  ;;  %v3097_v1 = vadd.f32 %v7851_v57, %v2895_v26  ;;  %v3282_v33 = vmax.f32 %v3090_v2, 0.0  ;;  %v3286_v34 = vmax.f32 %v3094_v58, 0.0  ;;  %v3284_v18 = vmax.f32 %v3092_v54, 0.0 }
 0x5ef   : > { %4299 = vmatmul.bf16.gmra.mxu3 %v8475_v37  ;;  %v3096_v49 = vadd.f32 %v7841_v9, %v2894_v31  ;;  %4604 = vmatpush.bf16.msrb.mxu2 %v5688_v50  ;;  %v5752_v29 = vor.u32 %v5968_v30, %v5749_v14  ;;  %v3283_v60 = vmax.f32 %v3091_v24, 0.0  ;;  %v5936_v31 = vld [vmem:[#allocation14 + $0x94] sm:$0xf]  ;;  %v5621_v50 = vld [vmem:[#allocation14 + $0x98] sm:$0xf0]  ;;  %v3285_v30 = vmax.f32 %v3093_v25, 0.0 }
 0x5f0   : > { %4346 = vmatpush.bf16.msrb.mxu0 %v5560_v7  ;;  %v3289_v14 = vmax.f32 %v3097_v1, 0.0  ;;  %v5624_v47 = vor.u32 %v5936_v31, %v5621_v50  ;;  %v8506_v26 = vpack.c.bf16 %v3286_v34, %v3282_v33  ;;  %v9881_v1 = vld [vmem:[#allocation92_spill] sm:$0xff]  ;;  %v9888_v31 = vld [vmem:[#allocation186_spill] sm:$0xff] }
 0x5f1   : > { %v4131_v27 = vpop.f32.mrf.mxu2  ;;  %v3875_v37 = vpop.f32.mrf.mxu0  ;;  %4733 = vmatpush.bf16.msrb.mxu3 %v5752_v29  ;;  %v2896_v33 = vmul.f32 %v7831_v62, %v9881_v1  ;;  %v2903_v50 = vmul.f32 %v7843_v46, %v9888_v31 }
 0x5f2   : > { %v4132_v13 = vadd.f32 %v4131_v27, %v4003_v61  ;;  %v4260_v63 = vpop.f32.mrf.mxu3  ;;  %v4004_v3 = vpop.f32.mrf.mxu1  ;;  %v3876_v39 = vadd.f32 %v3875_v37, %v8162_v12  ;;  %v3287_v61 = vmax.f32 %v3095_v52, 0.0  ;;  %v3288_v27 = vmax.f32 %v3096_v49, 0.0  ;;  %9877 = vst [vmem:[#allocation251_spill] sm:$0xff] %v8506_v26  ;;  %4475 = vmatpush.bf16.msrb.mxu1 %v5624_v47  ;;  %v9882_v49 = vld [vmem:[#allocation94_spill] sm:$0xff]  ;;  %v9883_v47 = vld [vmem:[#allocation93_spill] sm:$0xff] }
 0x5f3   : > { %v8513_v54 = vpack.c.bf16 %v3289_v14, %v3285_v30  ;;  %v2897_v29 = vmul.f32 %v7835_v59, %v9883_v47  ;;  %v3098_v14 = vadd.f32 %v7833_v10, %v2896_v33 }
 0x5f4   : > { %v4261_v21 = vadd.f32 %v4260_v63, %v4132_v13  ;;  %v4005_v15 = vadd.f32 %v4004_v3, %v3876_v39  ;;  %v8508_v13 = vpack.c.bf16 %v3287_v61, %v3283_v60  ;;  %v8510_v58 = vpack.c.bf16 %v3288_v27, %v3284_v18  ;;  %v9884_v3 = vld [vmem:[#allocation95_spill] sm:$0xff]  ;;  %v9886_v60 = vld [vmem:[#allocation185_spill] sm:$0xff]  ;;  %v9887_v18 = vld [vmem:[#allocation184_spill] sm:$0xff] }
 0x5f5   : > { %9880 = vst [vmem:[#allocation254_spill] sm:$0xff] %v8513_v54  ;;  %v2901_v25 = vmul.f32 %v7835_v59, %v9884_v3  ;;  %v9885_v39 = vld [vmem:[#allocation183_spill] sm:$0xff]  ;;  %v2902_v61 = vmul.f32 %v7839_v43, %v9886_v60  ;;  %v2899_v27 = vmul.f32 %v7843_v46, %v9887_v18  ;;  %v3105_v3 = vadd.f32 %v7851_v57, %v2903_v50 }
 0x5f6   : > { %4888 = vst [vmem:[#allocation15 + $0x100] sm:$0xff] %v4261_v21  ;;  %v2898_v34 = vmul.f32 %v7839_v43, %v9885_v39 }
 0x5f7   : > { %9878 = vst [vmem:[#allocation252_spill] sm:$0xff] %v8508_v13  ;;  %v3104_v1 = vadd.f32 %v7841_v9, %v2902_v61  ;;  %v3101_v47 = vadd.f32 %v7851_v57, %v2899_v27 }
 0x5f8   : > { %9879 = vst [vmem:[#allocation253_spill] sm:$0xff] %v8510_v58 }
 0x5f9   : > { %v4133_v32 = vpop.f32.mrf.mxu2  ;;  %v3878_v2 = vpop.f32.mrf.mxu0  ;;  %v3296_v31 = vmax.f32 %v3104_v1, 0.0  ;;  %v9895_v1 = vld [vmem:[#allocation97_spill] sm:$0xff] }
 0x5fa   : > { %v4134_v7 = vadd.f32 %v4133_v32, %v4005_v15  ;;  %v4262_v37 = vpop.f32.mrf.mxu3  ;;  %v3879_v24 = vadd.f32 %v3878_v2, %v8162_v12  ;;  %v4007_v52 = vpop.f32.mrf.mxu1  ;;  %v2900_v32 = vmul.f32 %v7831_v62, %v9882_v49 }
 0x5fc   : > { %v4263_v63 = vadd.f32 %v4262_v37, %v4134_v7  ;;  %3917 = vmatmul.bf16.gmra.mxu0 %v8506_v26  ;;  %v4008_v21 = vadd.f32 %v4007_v52, %v3879_v24  ;;  %v3102_v15 = vadd.f32 %v7833_v10, %v2900_v32  ;;  %v3099_v7 = vadd.f32 %v7837_v5, %v2897_v29 }
 0x5fd   : > { %4046 = vmatmul.bf16.gmra.mxu1 %v8508_v13  ;;  %v3103_v52 = vadd.f32 %v7837_v5, %v2901_v25  ;;  %v3290_v32 = vmax.f32 %v3098_v14, 0.0  ;;  %v3293_v25 = vmax.f32 %v3101_v47, 0.0  ;;  %v9896_v47 = vld [vmem:[#allocation99_spill] sm:$0xff] }
 0x5fe   : > { %4890 = vst [vmem:[#allocation15 + $0x110] sm:$0xff] %v4263_v63  ;;  %4175 = vmatmul.bf16.gmra.mxu2 %v8510_v58  ;;  %v3100_v63 = vadd.f32 %v7841_v9, %v2898_v34  ;;  %v3294_v60 = vmax.f32 %v3102_v15, 0.0  ;;  %v3291_v29 = vmax.f32 %v3099_v7, 0.0 }
 0x5ff   : > { %4304 = vmatmul.bf16.gmra.mxu3 %v8513_v54 }
 0x600   : > { %v3292_v18 = vmax.f32 %v3100_v63, 0.0  ;;  %v8544_v61 = vpack.c.bf16 %v3294_v60, %v3290_v32  ;;  %v9894_v63 = vld [vmem:[#allocation98_spill] sm:$0xff]  ;;  %v9899_v60 = vld [vmem:[#allocation188_spill] sm:$0xff] }
 0x601   : > { %v4136_v30 = vpop.f32.mrf.mxu2  ;;  %v3880_v24 = vpop.f32.mrf.mxu0 }
 0x602   : > { %v4137_v37 = vadd.f32 %v4136_v30, %v4008_v21  ;;  %v4265_v2 = vpop.f32.mrf.mxu3  ;;  %v4009_v49 = vpop.f32.mrf.mxu1  ;;  %v3881_v33 = vadd.f32 %v3880_v24, %v8162_v12  ;;  %v3295_v21 = vmax.f32 %v3103_v52, 0.0  ;;  %v3297_v30 = vmax.f32 %v3105_v3, 0.0  ;;  %9889 = vst [vmem:[#allocation255_spill] sm:$0xff] %v8544_v61  ;;  %v9893_v24 = vld [vmem:[#allocation96_spill] sm:$0xff] }
 0x603   : > { %v2904_v52 = vmul.f32 %v7831_v62, %v9893_v24  ;;  %v2909_v3 = vmul.f32 %v7835_v59, %v9896_v47 }
 0x604   : > { %v4266_v39 = vadd.f32 %v4265_v2, %v4137_v37  ;;  %v4010_v34 = vadd.f32 %v4009_v49, %v3881_v33  ;;  %v8546_v50 = vpack.c.bf16 %v3295_v21, %v3291_v29  ;;  %v8548_v37 = vpack.c.bf16 %v3296_v31, %v3292_v18  ;;  %v9898_v33 = vld [vmem:[#allocation189_spill] sm:$0xff]  ;;  %v9900_v21 = vld [vmem:[#allocation190_spill] sm:$0xff] }
 0x605   : > { %v8551_v7 = vpack.c.bf16 %v3297_v30, %v3293_v25  ;;  %v2905_v49 = vmul.f32 %v7835_v59, %v9895_v1  ;;  %v2910_v32 = vmul.f32 %v7839_v43, %v9898_v33  ;;  %v2907_v29 = vmul.f32 %v7843_v46, %v9899_v60 }
 0x606   : > { %4892 = vst [vmem:[#allocation15 + $0x120] sm:$0xff] %v4266_v39  ;;  %v2911_v18 = vmul.f32 %v7843_v46, %v9900_v21  ;;  %v3106_v25 = vadd.f32 %v7833_v10, %v2904_v52 }
 0x607   : > { %9890 = vst [vmem:[#allocation256_spill] sm:$0xff] %v8546_v50  ;;  %v3109_v47 = vadd.f32 %v7851_v57, %v2907_v29 }
 0x608   : > { %9891 = vst [vmem:[#allocation257_spill] sm:$0xff] %v8548_v37 }
 0x609   : > { %v4138_v54 = vpop.f32.mrf.mxu2  ;;  %v3883_v13 = vpop.f32.mrf.mxu0  ;;  %9892 = vst [vmem:[#allocation258_spill] sm:$0xff] %v8551_v7 }
 0x60a   : > { %v4139_v58 = vadd.f32 %v4138_v54, %v4010_v34  ;;  %v4267_v27 = vpop.f32.mrf.mxu3  ;;  %v3884_v14 = vadd.f32 %v3883_v13, %v8162_v12  ;;  %v4012_v15 = vpop.f32.mrf.mxu1  ;;  %v2908_v54 = vmul.f32 %v7831_v62, %v9894_v63  ;;  %v3107_v34 = vadd.f32 %v7837_v5, %v2905_v49 }
 0x60b   : > { %v3112_v63 = vadd.f32 %v7841_v9, %v2910_v32 }
 0x60c   : > { %v4268_v2 = vadd.f32 %v4267_v27, %v4139_v58  ;;  %3922 = vmatmul.bf16.gmra.mxu0 %v8544_v61  ;;  %v4013_v13 = vadd.f32 %v4012_v15, %v3884_v14  ;;  %v9897_v58 = vld [vmem:[#allocation187_spill] sm:$0xff]  ;;  %v3110_v30 = vadd.f32 %v7833_v10, %v2908_v54  ;;  %v3298_v54 = vmax.f32 %v3106_v25, 0.0 }
 0x60d   : > { %4051 = vmatmul.bf16.gmra.mxu1 %v8546_v50  ;;  %v2906_v39 = vmul.f32 %v7839_v43, %v9897_v58  ;;  %v3113_v58 = vadd.f32 %v7851_v57, %v2911_v18  ;;  %v3299_v49 = vmax.f32 %v3107_v34, 0.0 }
 0x60e   : > { %4894 = vst [vmem:[#allocation15 + $0x130] sm:$0xff] %v4268_v2  ;;  %4180 = vmatmul.bf16.gmra.mxu2 %v8548_v37  ;;  %v3111_v2 = vadd.f32 %v7837_v5, %v2909_v3  ;;  %v3302_v60 = vmax.f32 %v3110_v30, 0.0  ;;  %v3301_v3 = vmax.f32 %v3109_v47, 0.0  ;;  %v9908_v47 = vld [vmem:[#allocation103_spill] sm:$0xff] }
 0x60f   : > { %4309 = vmatmul.bf16.gmra.mxu3 %v8551_v7  ;;  %v3108_v24 = vadd.f32 %v7841_v9, %v2906_v39  ;;  %v3305_v7 = vmax.f32 %v3113_v58, 0.0  ;;  %v2917_v58 = vmul.f32 %v7835_v59, %v9908_v47 }
 0x610   : > { %v8582_v32 = vpack.c.bf16 %v3302_v60, %v3298_v54  ;;  %v9911_v54 = vld [vmem:[#allocation192_spill] sm:$0xff] }
 0x611   : > { %v4141_v31 = vpop.f32.mrf.mxu2  ;;  %v3885_v15 = vpop.f32.mrf.mxu0  ;;  %v3300_v21 = vmax.f32 %v3108_v24, 0.0  ;;  %v8589_v34 = vpack.c.bf16 %v3305_v7, %v3301_v3  ;;  %v9906_v24 = vld [vmem:[#allocation102_spill] sm:$0xff]  ;;  %v2915_v60 = vmul.f32 %v7843_v46, %v9911_v54 }
 0x612   : > { %v4142_v27 = vadd.f32 %v4141_v31, %v4013_v13  ;;  %v4270_v14 = vpop.f32.mrf.mxu3  ;;  %v4014_v1 = vpop.f32.mrf.mxu1  ;;  %v3886_v52 = vadd.f32 %v3885_v15, %v8162_v12  ;;  %v3303_v13 = vmax.f32 %v3111_v2, 0.0  ;;  %v3304_v31 = vmax.f32 %v3112_v63, 0.0  ;;  %9901 = vst [vmem:[#allocation259_spill] sm:$0xff] %v8582_v32  ;;  %v9905_v15 = vld [vmem:[#allocation100_spill] sm:$0xff] }
 0x613   : > { %9904 = vst [vmem:[#allocation262_spill] sm:$0xff] %v8589_v34  ;;  %v2912_v2 = vmul.f32 %v7831_v62, %v9905_v15  ;;  %v2916_v63 = vmul.f32 %v7831_v62, %v9906_v24 }
 0x614   : > { %v4271_v33 = vadd.f32 %v4270_v14, %v4142_v27  ;;  %v4015_v39 = vadd.f32 %v4014_v1, %v3886_v52  ;;  %v8584_v18 = vpack.c.bf16 %v3303_v13, %v3299_v49  ;;  %v8586_v27 = vpack.c.bf16 %v3304_v31, %v3300_v21  ;;  %v9912_v49 = vld [vmem:[#allocation194_spill] sm:$0xff]  ;;  %v5950_v21 = vld [vmem:[#allocation14 + $0x104] sm:$0xf]  ;;  %v5677_v31 = vld [vmem:[#allocation14 + $0x108] sm:$0xf0] }
 0x615   : > { %v2919_v13 = vmul.f32 %v7843_v46, %v9912_v49  ;;  %v3114_v3 = vadd.f32 %v7833_v10, %v2912_v2 }
 0x616   : > { %4896 = vst [vmem:[#allocation15 + $0x140] sm:$0xff] %v4271_v33  ;;  %v9909_v33 = vld [vmem:[#allocation191_spill] sm:$0xff] }
 0x617   : > { %9902 = vst [vmem:[#allocation260_spill] sm:$0xff] %v8584_v18 }
 0x618   : > { %9903 = vst [vmem:[#allocation261_spill] sm:$0xff] %v8586_v27 }
 0x619   : > { %v4143_v37 = vpop.f32.mrf.mxu2  ;;  %v3888_v61 = vpop.f32.mrf.mxu0 }
 0x61a   : > { %v4144_v50 = vadd.f32 %v4143_v37, %v4015_v39  ;;  %v4272_v29 = vpop.f32.mrf.mxu3  ;;  %v3889_v25 = vadd.f32 %v3888_v61, %v8162_v12  ;;  %v4017_v30 = vpop.f32.mrf.mxu1  ;;  %v9907_v37 = vld [vmem:[#allocation101_spill] sm:$0xff]  ;;  %v2914_v61 = vmul.f32 %v7839_v43, %v9909_v33  ;;  %v3118_v39 = vadd.f32 %v7833_v10, %v2916_v63 }
 0x61b   : > { %v2913_v1 = vmul.f32 %v7835_v59, %v9907_v37  ;;  %v3119_v37 = vadd.f32 %v7837_v5, %v2917_v58 }
 0x61c   : > { %v4273_v14 = vadd.f32 %v4272_v29, %v4144_v50  ;;  %3927 = vmatmul.bf16.gmra.mxu0 %v8582_v32  ;;  %v4018_v7 = vadd.f32 %v4017_v30, %v3889_v25  ;;  %v9910_v50 = vld [vmem:[#allocation193_spill] sm:$0xff]  ;;  %v5680_v29 = vor.u32 %v5950_v21, %v5677_v31  ;;  %v5918_v25 = vld [vmem:[#allocation14 + $0x4] sm:$0xf]  ;;  %v3116_v47 = vadd.f32 %v7841_v9, %v2914_v61 }
 0x61d   : > { %4056 = vmatmul.bf16.gmra.mxu1 %v8584_v18  ;;  %v2918_v52 = vmul.f32 %v7839_v43, %v9910_v50  ;;  %v5549_v30 = vld [vmem:[#allocation14 + $0x8] sm:$0xf0]  ;;  %v3115_v24 = vadd.f32 %v7837_v5, %v2913_v1  ;;  %v3117_v31 = vadd.f32 %v7851_v57, %v2915_v60  ;;  %v3306_v18 = vmax.f32 %v3114_v3, 0.0 }
 0x61e   : > { %4898 = vst [vmem:[#allocation15 + $0x150] sm:$0xff] %v4273_v14  ;;  %4185 = vmatmul.bf16.gmra.mxu2 %v8586_v27  ;;  %v5966_v14 = vld [vmem:[#allocation14 + $0x184] sm:$0xf]  ;;  %v5552_v33 = vor.u32 %v5918_v25, %v5549_v30  ;;  %v5741_v50 = vld [vmem:[#allocation14 + $0x188] sm:$0xf0]  ;;  %v3121_v27 = vadd.f32 %v7851_v57, %v2919_v13  ;;  %v3310_v61 = vmax.f32 %v3118_v39, 0.0 }
 0x61f   : > { %4314 = vmatmul.bf16.gmra.mxu3 %v8589_v34  ;;  %v3120_v2 = vadd.f32 %v7841_v9, %v2918_v52  ;;  %4605 = vmatpush.bf16.msrb.mxu2 %v5680_v29  ;;  %v5744_v63 = vor.u32 %v5966_v14, %v5741_v50  ;;  %v3307_v25 = vmax.f32 %v3115_v24, 0.0  ;;  %v3308_v30 = vmax.f32 %v3116_v47, 0.0  ;;  %v5934_v52 = vld [vmem:[#allocation14 + $0x84] sm:$0xf]  ;;  %v5613_v29 = vld [vmem:[#allocation14 + $0x88] sm:$0xf0] }
 0x620   : > { %4347 = vmatpush.bf16.msrb.mxu0 %v5552_v33  ;;  %v3309_v14 = vmax.f32 %v3117_v31, 0.0  ;;  %v3313_v50 = vmax.f32 %v3121_v27, 0.0  ;;  %v5616_v32 = vor.u32 %v5934_v52, %v5613_v29  ;;  %v8620_v13 = vpack.c.bf16 %v3310_v61, %v3306_v18  ;;  %v9916_v27 = vld [vmem:[#allocation104_spill] sm:$0xff]  ;;  %v9923_v52 = vld [vmem:[#allocation198_spill] sm:$0xff] }
 0x621   : > { %v4146_v15 = vpop.f32.mrf.mxu2  ;;  %v3890_v34 = vpop.f32.mrf.mxu0  ;;  %4734 = vmatpush.bf16.msrb.mxu3 %v5744_v63  ;;  %v2920_v18 = vmul.f32 %v7831_v62, %v9916_v27  ;;  %v2927_v29 = vmul.f32 %v7843_v46, %v9923_v52 }
 0x622   : > { %v4147_v54 = vadd.f32 %v4146_v15, %v4018_v7  ;;  %v4275_v49 = vpop.f32.mrf.mxu3  ;;  %v4019_v21 = vpop.f32.mrf.mxu1  ;;  %v3891_v58 = vadd.f32 %v3890_v34, %v8162_v12  ;;  %v3311_v7 = vmax.f32 %v3119_v37, 0.0  ;;  %v3312_v15 = vmax.f32 %v3120_v2, 0.0  ;;  %4476 = vmatpush.bf16.msrb.mxu1 %v5616_v32  ;;  %v9917_v2 = vld [vmem:[#allocation106_spill] sm:$0xff]  ;;  %v9918_v32 = vld [vmem:[#allocation105_spill] sm:$0xff] }
 0x623   : > { %v8627_v47 = vpack.c.bf16 %v3313_v50, %v3309_v14  ;;  %v2921_v63 = vmul.f32 %v7835_v59, %v9918_v32  ;;  %v3122_v50 = vadd.f32 %v7833_v10, %v2920_v18 }
 0x624   : > { %v4276_v1 = vadd.f32 %v4275_v49, %v4147_v54  ;;  %v4020_v60 = vadd.f32 %v4019_v21, %v3891_v58  ;;  %v8622_v54 = vpack.c.bf16 %v3311_v7, %v3307_v25  ;;  %v8624_v39 = vpack.c.bf16 %v3312_v15, %v3308_v30  ;;  %v9919_v21 = vld [vmem:[#allocation107_spill] sm:$0xff]  ;;  %v9921_v25 = vld [vmem:[#allocation197_spill] sm:$0xff]  ;;  %v9922_v30 = vld [vmem:[#allocation196_spill] sm:$0xff] }
 0x625   : > { %9915 = vst [vmem:[#allocation265_spill] sm:$0xff] %v8627_v47  ;;  %v2925_v31 = vmul.f32 %v7835_v59, %v9919_v21  ;;  %v9920_v58 = vld [vmem:[#allocation195_spill] sm:$0xff]  ;;  %v2926_v7 = vmul.f32 %v7839_v43, %v9921_v25  ;;  %v2923_v15 = vmul.f32 %v7843_v46, %v9922_v30  ;;  %v3129_v21 = vadd.f32 %v7851_v57, %v2927_v29 }
 0x626   : > { %4900 = vst [vmem:[#allocation15 + $0x160] sm:$0xff] %v4276_v1  ;;  %v2922_v61 = vmul.f32 %v7839_v43, %v9920_v58 }
 0x627   : > { %9913 = vst [vmem:[#allocation263_spill] sm:$0xff] %v8622_v54  ;;  %v3128_v27 = vadd.f32 %v7841_v9, %v2926_v7  ;;  %v3125_v32 = vadd.f32 %v7851_v57, %v2923_v15 }
 0x628   : > { %9914 = vst [vmem:[#allocation264_spill] sm:$0xff] %v8624_v39 }
 0x629   : > { %v4148_v26 = vpop.f32.mrf.mxu2  ;;  %v3893_v3 = vpop.f32.mrf.mxu0  ;;  %v3320_v52 = vmax.f32 %v3128_v27, 0.0  ;;  %v9930_v27 = vld [vmem:[#allocation109_spill] sm:$0xff] }
 0x62a   : > { %v4149_v33 = vadd.f32 %v4148_v26, %v4020_v60  ;;  %v4277_v34 = vpop.f32.mrf.mxu3  ;;  %v3894_v24 = vadd.f32 %v3893_v3, %v8162_v12  ;;  %v4022_v37 = vpop.f32.mrf.mxu1  ;;  %v2924_v26 = vmul.f32 %v7831_v62, %v9917_v2 }
 0x62c   : > { %v4278_v49 = vadd.f32 %v4277_v34, %v4149_v33  ;;  %3932 = vmatmul.bf16.gmra.mxu0 %v8620_v13  ;;  %v4023_v1 = vadd.f32 %v4022_v37, %v3894_v24  ;;  %v3126_v60 = vadd.f32 %v7833_v10, %v2924_v26  ;;  %v3123_v33 = vadd.f32 %v7837_v5, %v2921_v63 }
 0x62d   : > { %4061 = vmatmul.bf16.gmra.mxu1 %v8622_v54  ;;  %v3127_v37 = vadd.f32 %v7837_v5, %v2925_v31  ;;  %v3314_v26 = vmax.f32 %v3122_v50, 0.0  ;;  %v3317_v31 = vmax.f32 %v3125_v32, 0.0  ;;  %v9931_v32 = vld [vmem:[#allocation111_spill] sm:$0xff] }
 0x62e   : > { %4902 = vst [vmem:[#allocation15 + $0x170] sm:$0xff] %v4278_v49  ;;  %4190 = vmatmul.bf16.gmra.mxu2 %v8624_v39  ;;  %v3124_v49 = vadd.f32 %v7841_v9, %v2922_v61  ;;  %v3318_v25 = vmax.f32 %v3126_v60, 0.0  ;;  %v3315_v63 = vmax.f32 %v3123_v33, 0.0 }
 0x62f   : > { %4319 = vmatmul.bf16.gmra.mxu3 %v8627_v47 }
 0x630   : > { %v3316_v30 = vmax.f32 %v3124_v49, 0.0  ;;  %v8658_v7 = vpack.c.bf16 %v3318_v25, %v3314_v26  ;;  %v9929_v49 = vld [vmem:[#allocation110_spill] sm:$0xff]  ;;  %v9934_v25 = vld [vmem:[#allocation200_spill] sm:$0xff] }
 0x631   : > { %v4151_v14 = vpop.f32.mrf.mxu2  ;;  %v3895_v24 = vpop.f32.mrf.mxu0 }
 0x632   : > { %v4152_v34 = vadd.f32 %v4151_v14, %v4023_v1  ;;  %v4280_v3 = vpop.f32.mrf.mxu3  ;;  %v4024_v2 = vpop.f32.mrf.mxu1  ;;  %v3896_v18 = vadd.f32 %v3895_v24, %v8162_v12  ;;  %v3319_v1 = vmax.f32 %v3127_v37, 0.0  ;;  %v3321_v14 = vmax.f32 %v3129_v21, 0.0  ;;  %9924 = vst [vmem:[#allocation266_spill] sm:$0xff] %v8658_v7  ;;  %v9928_v24 = vld [vmem:[#allocation108_spill] sm:$0xff] }
 0x633   : > { %v2928_v37 = vmul.f32 %v7831_v62, %v9928_v24  ;;  %v2933_v21 = vmul.f32 %v7835_v59, %v9931_v32 }
 0x634   : > { %v4281_v58 = vadd.f32 %v4280_v3, %v4152_v34  ;;  %v4025_v61 = vadd.f32 %v4024_v2, %v3896_v18  ;;  %v8660_v29 = vpack.c.bf16 %v3319_v1, %v3315_v63  ;;  %v8662_v34 = vpack.c.bf16 %v3320_v52, %v3316_v30  ;;  %v9933_v18 = vld [vmem:[#allocation201_spill] sm:$0xff]  ;;  %v9935_v1 = vld [vmem:[#allocation202_spill] sm:$0xff] }
 0x635   : > { %v8665_v33 = vpack.c.bf16 %v3321_v14, %v3317_v31  ;;  %v2929_v2 = vmul.f32 %v7835_v59, %v9930_v27  ;;  %v2934_v26 = vmul.f32 %v7839_v43, %v9933_v18  ;;  %v2931_v63 = vmul.f32 %v7843_v46, %v9934_v25 }
 0x636   : > { %4904 = vst [vmem:[#allocation15 + $0x180] sm:$0xff] %v4281_v58  ;;  %v2935_v30 = vmul.f32 %v7843_v46, %v9935_v1  ;;  %v3130_v31 = vadd.f32 %v7833_v10, %v2928_v37 }
 0x637   : > { %9925 = vst [vmem:[#allocation267_spill] sm:$0xff] %v8660_v29  ;;  %v3133_v32 = vadd.f32 %v7851_v57, %v2931_v63 }
 0x638   : > { %9926 = vst [vmem:[#allocation268_spill] sm:$0xff] %v8662_v34 }
 0x639   : > { %v4153_v47 = vpop.f32.mrf.mxu2  ;;  %v3898_v54 = vpop.f32.mrf.mxu0  ;;  %9927 = vst [vmem:[#allocation269_spill] sm:$0xff] %v8665_v33 }
 0x63a   : > { %v4154_v39 = vadd.f32 %v4153_v47, %v4025_v61  ;;  %v4282_v15 = vpop.f32.mrf.mxu3  ;;  %v3899_v50 = vadd.f32 %v3898_v54, %v8162_v12  ;;  %v4027_v60 = vpop.f32.mrf.mxu1  ;;  %v2932_v47 = vmul.f32 %v7831_v62, %v9929_v49  ;;  %v3131_v61 = vadd.f32 %v7837_v5, %v2929_v2 }
 0x63b   : > { %v3136_v49 = vadd.f32 %v7841_v9, %v2934_v26 }
 0x63c   : > { %v4283_v3 = vadd.f32 %v4282_v15, %v4154_v39  ;;  %3937 = vmatmul.bf16.gmra.mxu0 %v8658_v7  ;;  %v4028_v54 = vadd.f32 %v4027_v60, %v3899_v50  ;;  %v9932_v39 = vld [vmem:[#allocation199_spill] sm:$0xff]  ;;  %v3134_v14 = vadd.f32 %v7833_v10, %v2932_v47  ;;  %v3322_v47 = vmax.f32 %v3130_v31, 0.0 }
 0x63d   : > { %4066 = vmatmul.bf16.gmra.mxu1 %v8660_v29  ;;  %v2930_v58 = vmul.f32 %v7839_v43, %v9932_v39  ;;  %v3137_v39 = vadd.f32 %v7851_v57, %v2935_v30  ;;  %v3323_v2 = vmax.f32 %v3131_v61, 0.0 }
 0x63e   : > { %4906 = vst [vmem:[#allocation15 + $0x190] sm:$0xff] %v4283_v3  ;;  %4195 = vmatmul.bf16.gmra.mxu2 %v8662_v34  ;;  %v3135_v3 = vadd.f32 %v7837_v5, %v2933_v21  ;;  %v3326_v25 = vmax.f32 %v3134_v14, 0.0  ;;  %v3325_v21 = vmax.f32 %v3133_v32, 0.0  ;;  %v9939_v32 = vld [vmem:[#allocation115_spill] sm:$0xff] }
 0x63f   : > { %4324 = vmatmul.bf16.gmra.mxu3 %v8665_v33  ;;  %v3132_v24 = vadd.f32 %v7841_v9, %v2930_v58  ;;  %v3329_v33 = vmax.f32 %v3137_v39, 0.0  ;;  %v2941_v39 = vmul.f32 %v7835_v59, %v9939_v32 }
 0x640   : > { %v8696_v26 = vpack.c.bf16 %v3326_v25, %v3322_v47  ;;  %v9943_v25 = vld [vmem:[#allocation206_spill] sm:$0xff] }
 0x641   : > { %v4156_v52 = vpop.f32.mrf.mxu2  ;;  %v3900_v60 = vpop.f32.mrf.mxu0  ;;  %v3324_v1 = vmax.f32 %v3132_v24, 0.0  ;;  %v8703_v61 = vpack.c.bf16 %v3329_v33, %v3325_v21  ;;  %v9937_v24 = vld [vmem:[#allocation114_spill] sm:$0xff] }
 0x642   : > { %v4157_v15 = vadd.f32 %v4156_v52, %v4028_v54  ;;  %v4285_v50 = vpop.f32.mrf.mxu3  ;;  %v4029_v27 = vpop.f32.mrf.mxu1  ;;  %v3901_v37 = vadd.f32 %v3900_v60, %v8162_v12  ;;  %v3327_v54 = vmax.f32 %v3135_v3, 0.0  ;;  %v3328_v52 = vmax.f32 %v3136_v49, 0.0  ;;  %v9936_v60 = vld [vmem:[#allocation112_spill] sm:$0xff]  ;;  %v9938_v49 = vld [vmem:[#allocation113_spill] sm:$0xff] }
 0x643   : > { %v2936_v3 = vmul.f32 %v7831_v62, %v9936_v60 }
 0x644   : > { %v4286_v18 = vadd.f32 %v4285_v50, %v4157_v15  ;;  %v4030_v58 = vadd.f32 %v4029_v27, %v3901_v37  ;;  %v8698_v30 = vpack.c.bf16 %v3327_v54, %v3323_v2  ;;  %v8700_v15 = vpack.c.bf16 %v3328_v52, %v3324_v1 }
 0x645   : > { %v2937_v27 = vmul.f32 %v7835_v59, %v9938_v49  ;;  %v2943_v59 = vmul.f32 %v7843_v46, %v9943_v25  ;;  %v3138_v54 = vadd.f32 %v7833_v10, %v2936_v3 }
 0x646   : > { %4908 = vst [vmem:[#allocation15 + $0x1a0] sm:$0xff] %v4286_v18  ;;  %v9941_v18 = vld [vmem:[#allocation205_spill] sm:$0xff] }
 0x647   : > { %v2942_v37 = vmul.f32 %v7839_v43, %v9941_v18  ;;  %v3139_v52 = vadd.f32 %v7837_v5, %v2937_v27 }
 0x649   : > { %v4158_v34 = vpop.f32.mrf.mxu2  ;;  %v3903_v7 = vpop.f32.mrf.mxu0  ;;  %v3331_v49 = vmax.f32 %v3139_v52, 0.0 }
 0x64a   : > { %v4159_v29 = vadd.f32 %v4158_v34, %v4030_v58  ;;  %v4287_v63 = vpop.f32.mrf.mxu3  ;;  %v3904_v31 = vadd.f32 %v3903_v7, %v8162_v12  ;;  %v4032_v14 = vpop.f32.mrf.mxu1  ;;  %v2940_v34 = vmul.f32 %v7831_v62, %v9937_v24  ;;  %v9942_v62 = vld [vmem:[#allocation204_spill] sm:$0xff] }
 0x64b   : > { %v2939_v47 = vmul.f32 %v7843_v46, %v9942_v62  ;;  %v3145_v46 = vadd.f32 %v7851_v57, %v2943_v59 }
 0x64c   : > { %v4288_v50 = vadd.f32 %v4287_v63, %v4159_v29  ;;  %3942 = vmatmul.bf16.gmra.mxu0 %v8696_v26  ;;  %v4033_v7 = vadd.f32 %v4032_v14, %v3904_v31  ;;  %v9940_v29 = vld [vmem:[#allocation203_spill] sm:$0xff]  ;;  %v3142_v1 = vadd.f32 %v7833_v10, %v2940_v34  ;;  %v3144_v14 = vadd.f32 %v7841_v9, %v2942_v37 }
 0x64d   : > { %4071 = vmatmul.bf16.gmra.mxu1 %v8698_v30  ;;  %v2938_v33 = vmul.f32 %v7839_v43, %v9940_v29  ;;  %v3143_v43 = vadd.f32 %v7837_v5, %v2941_v39  ;;  %v3141_v60 = vadd.f32 %v7851_v57, %v2939_v47  ;;  %v3330_v10 = vmax.f32 %v3138_v54, 0.0 }
 0x64e   : > { %4910 = vst [vmem:[#allocation15 + $0x1b0] sm:$0xff] %v4288_v50  ;;  %4200 = vmatmul.bf16.gmra.mxu2 %v8700_v15  ;;  %v3334_v34 = vmax.f32 %v3142_v1, 0.0  ;;  %v3337_v39 = vmax.f32 %v3145_v46, 0.0 }
 0x64f   : > { %4329 = vmatmul.bf16.gmra.mxu3 %v8703_v61  ;;  %v3140_v31 = vadd.f32 %v7841_v9, %v2938_v33  ;;  %v3335_v27 = vmax.f32 %v3143_v43, 0.0  ;;  %v3333_v5 = vmax.f32 %v3141_v60, 0.0 }
 0x650   : > { %v8734_v9 = vpack.c.bf16 %v3334_v34, %v3330_v10 }
 0x651   : > { %v4161_v2 = vpop.f32.mrf.mxu2  ;;  %v3905_v63 = vpop.f32.mrf.mxu0  ;;  %v3332_v32 = vmax.f32 %v3140_v31, 0.0  ;;  %v8736_v57 = vpack.c.bf16 %v3335_v27, %v3331_v49 }
 0x652   : > { %v4162_v21 = vadd.f32 %v4161_v2, %v4033_v7  ;;  %v4290_v58 = vpop.f32.mrf.mxu3  ;;  %v4034_v50 = vpop.f32.mrf.mxu1  ;;  %v3906_v3 = vadd.f32 %v3905_v63, %v8162_v12  ;;  %v3336_v7 = vmax.f32 %v3144_v14, 0.0  ;;  %v8741_v2 = vpack.c.bf16 %v3337_v39, %v3333_v5 }
 0x654   : > { %v4291_v24 = vadd.f32 %v4290_v58, %v4162_v21  ;;  %v4035_v29 = vadd.f32 %v4034_v50, %v3906_v3  ;;  %v8738_v47 = vpack.c.bf16 %v3336_v7, %v3332_v32 }
 0x656   : > { %4912 = vst [vmem:[#allocation15 + $0x1c0] sm:$0xff] %v4291_v24 }
 0x659   : > { %v4163_v33 = vpop.f32.mrf.mxu2  ;;  %v3908_v62 = vpop.f32.mrf.mxu0 }
 0x65a   : > { %v4164_v18 = vadd.f32 %v4163_v33, %v4035_v29  ;;  %v4292_v37 = vpop.f32.mrf.mxu3  ;;  %v3909_v25 = vadd.f32 %v3908_v62, %v8162_v12  ;;  %v4037_v59 = vpop.f32.mrf.mxu1 }
 0x65c   : > { %v4293_v54 = vadd.f32 %v4292_v37, %v4164_v18  ;;  %3947 = vmatmul.bf16.gmra.mxu0 %v8734_v9  ;;  %v4038_v1 = vadd.f32 %v4037_v59, %v3909_v25 }
 0x65d   : > { %4076 = vmatmul.bf16.gmra.mxu1 %v8736_v57 }
 0x65e   : > { %4914 = vst [vmem:[#allocation15 + $0x1d0] sm:$0xff] %v4293_v54  ;;  %4205 = vmatmul.bf16.gmra.mxu2 %v8738_v47 }
 0x65f   : > { %4334 = vmatmul.bf16.gmra.mxu3 %v8741_v2 }
 0x661   : > { %v4166_v52 = vpop.f32.mrf.mxu2  ;;  %v3910_v63 = vpop.f32.mrf.mxu0 }
 0x662   : > { %v4167_v21 = vadd.f32 %v4166_v52, %v4038_v1  ;;  %v4295_v58 = vpop.f32.mrf.mxu3  ;;  %v4039_v43 = vpop.f32.mrf.mxu1  ;;  %v3911_v14 = vadd.f32 %v3910_v63, %v8162_v12 }
 0x664   : > { %v4296_v31 = vadd.f32 %v4295_v58, %v4167_v21  ;;  %v4040_v50 = vadd.f32 %v4039_v43, %v3911_v14 }
 0x666   : > { %4916 = vst [vmem:[#allocation15 + $0x1e0] sm:$0xff] %v4296_v31 }
 0x669   : > { %v4168_v60 = vpop.f32.mrf.mxu2  ;;  %v3913_v3 = vpop.f32.mrf.mxu0 }
 0x66a   : > { %v4169_v46 = vadd.f32 %v4168_v60, %v4040_v50  ;;  %v4297_v24 = vpop.f32.mrf.mxu3  ;;  %v3914_v10 = vadd.f32 %v3913_v3, %v8162_v12  ;;  %v4042_v34 = vpop.f32.mrf.mxu1 }
 0x66c   : > { %v4298_v49 = vadd.f32 %v4297_v24, %v4169_v46  ;;  %4348 = vmatmul.bf16.vlgmr.msrb.gmra.mxu0 %v7871_v8  ;;  %v4043_v27 = vadd.f32 %v4042_v34, %v3914_v10 }
 0x66d   : > { %4477 = vmatmul.bf16.vlgmr.msrb.gmra.mxu1 %v7873_v53 }
 0x66e   : > { %4918 = vst [vmem:[#allocation15 + $0x1f0] sm:$0xff] %v4298_v49  ;;  %4606 = vmatmul.bf16.vlgmr.msrb.gmra.mxu2 %v7875_v36 }
 0x66f   : > { %4735 = vmatmul.bf16.vlgmr.msrb.gmra.mxu3 %v7877_v23 }
 0x671   : > { %v4171_v32 = vpop.f32.mrf.mxu2  ;;  %v3915_v39 = vpop.f32.mrf.mxu0 }
 0x672   : > { %v4172_v7 = vadd.f32 %v4171_v32, %v4043_v27  ;;  %v4300_v5 = vpop.f32.mrf.mxu3  ;;  %v4044_v29 = vpop.f32.mrf.mxu1  ;;  %v3916_v18 = vadd.f32 %v3915_v39, %v8162_v12 }
 0x674   : > { %v4301_v33 = vadd.f32 %v4300_v5, %v4172_v7  ;;  %v4045_v37 = vadd.f32 %v4044_v29, %v3916_v18 }
 0x676   : > { %4920 = vst [vmem:[#allocation15 + $0x200] sm:$0xff] %v4301_v33 }
 0x679   : > { %v4173_v62 = vpop.f32.mrf.mxu2  ;;  %v3918_v59 = vpop.f32.mrf.mxu0 }
 0x67a   : > { %v4174_v8 = vadd.f32 %v4173_v62, %v4045_v37  ;;  %v4302_v25 = vpop.f32.mrf.mxu3  ;;  %v3919_v53 = vadd.f32 %v3918_v59, %v8162_v12  ;;  %v4047_v54 = vpop.f32.mrf.mxu1 }
 0x67c   : > { %v4303_v36 = vadd.f32 %v4302_v25, %v4174_v8  ;;  %4353 = vmatmul.bf16.gmra.mxu0 %v7907_v4  ;;  %v4048_v23 = vadd.f32 %v4047_v54, %v3919_v53 }
 0x67d   : > { %4482 = vmatmul.bf16.gmra.mxu1 %v7909_v6 }
 0x67e   : > { %4922 = vst [vmem:[#allocation15 + $0x210] sm:$0xff] %v4303_v36  ;;  %4611 = vmatmul.bf16.gmra.mxu2 %v7911_v11 }
 0x67f   : > { %4740 = vmatmul.bf16.gmra.mxu3 %v7913_v48 }
 0x681   : > { %v4176_v1 = vpop.f32.mrf.mxu2  ;;  %v3920_v58 = vpop.f32.mrf.mxu0 }
 0x682   : > { %v4177_v52 = vadd.f32 %v4176_v1, %v4048_v23  ;;  %v4305_v21 = vpop.f32.mrf.mxu3  ;;  %v4049_v63 = vpop.f32.mrf.mxu1  ;;  %v3921_v31 = vadd.f32 %v3920_v58, %v8162_v12 }
 0x684   : > { %v4306_v43 = vadd.f32 %v4305_v21, %v4177_v52  ;;  %v4050_v14 = vadd.f32 %v4049_v63, %v3921_v31 }
 0x686   : > { %4924 = vst [vmem:[#allocation15 + $0x220] sm:$0xff] %v4306_v43 }
 0x689   : > { %v4178_v50 = vpop.f32.mrf.mxu2  ;;  %v3923_v46 = vpop.f32.mrf.mxu0 }
 0x68a   : > { %v4179_v4 = vadd.f32 %v4178_v50, %v4050_v14  ;;  %v4307_v60 = vpop.f32.mrf.mxu3  ;;  %v3924_v6 = vadd.f32 %v3923_v46, %v8162_v12  ;;  %v4052_v24 = vpop.f32.mrf.mxu1 }
 0x68c   : > { %v4308_v11 = vadd.f32 %v4307_v60, %v4179_v4  ;;  %4358 = vmatmul.bf16.gmra.mxu0 %v7943_v56  ;;  %v4053_v48 = vadd.f32 %v4052_v24, %v3924_v6 }
 0x68d   : > { %4487 = vmatmul.bf16.gmra.mxu1 %v7945_v42 }
 0x68e   : > { %4926 = vst [vmem:[#allocation15 + $0x230] sm:$0xff] %v4308_v11  ;;  %4616 = vmatmul.bf16.gmra.mxu2 %v7947_v19 }
 0x68f   : > { %4745 = vmatmul.bf16.gmra.mxu3 %v7949_v44 }
 0x691   : > { %v4181_v3 = vpop.f32.mrf.mxu2  ;;  %v3925_v49 = vpop.f32.mrf.mxu0 }
 0x692   : > { %v4182_v10 = vadd.f32 %v4181_v3, %v4053_v48  ;;  %v4310_v34 = vpop.f32.mrf.mxu3  ;;  %v4054_v27 = vpop.f32.mrf.mxu1  ;;  %v3926_v7 = vadd.f32 %v3925_v49, %v8162_v12 }
 0x694   : > { %v4311_v32 = vadd.f32 %v4310_v34, %v4182_v10  ;;  %v4055_v5 = vadd.f32 %v4054_v27, %v3926_v7 }
 0x696   : > { %4928 = vst [vmem:[#allocation15 + $0x240] sm:$0xff] %v4311_v32 }
 0x699   : > { %v4183_v39 = vpop.f32.mrf.mxu2  ;;  %v3928_v33 = vpop.f32.mrf.mxu0 }
 0x69a   : > { %v4184_v56 = vadd.f32 %v4183_v39, %v4055_v5  ;;  %v4312_v29 = vpop.f32.mrf.mxu3  ;;  %v3929_v42 = vadd.f32 %v3928_v33, %v8162_v12  ;;  %v4057_v18 = vpop.f32.mrf.mxu1  ;;  %v9944_v33 = vld [vmem:[#allocation208_spill] sm:$0xff] }
 0x69c   : > { %v4313_v19 = vadd.f32 %v4312_v29, %v4184_v56  ;;  %4363 = vmatmul.bf16.gmra.mxu0 %v7979_v38  ;;  %v4058_v44 = vadd.f32 %v4057_v18, %v3929_v42  ;;  %v9945_v42 = vld [vmem:[#allocation209_spill] sm:$0xff]  ;;  %v9946_v18 = vld [vmem:[#allocation210_spill] sm:$0xff] }
 0x69d   : > { %4492 = vmatmul.bf16.gmra.mxu1 %v7981_v22 }
 0x69e   : > { %4930 = vst [vmem:[#allocation15 + $0x250] sm:$0xff] %v4313_v19  ;;  %4621 = vmatmul.bf16.gmra.mxu2 %v7983_v0 }
 0x69f   : > { %4750 = vmatmul.bf16.gmra.mxu3 %v7985_v55 }
 0x6a1   : > { %v4186_v37 = vpop.f32.mrf.mxu2  ;;  %v3930_v25 = vpop.f32.mrf.mxu0 }
 0x6a2   : > { %v4187_v62 = vadd.f32 %v4186_v37, %v4058_v44  ;;  %v4315_v8 = vpop.f32.mrf.mxu3  ;;  %v4059_v59 = vpop.f32.mrf.mxu1  ;;  %v3931_v54 = vadd.f32 %v3930_v25, %v8162_v12 }
 0x6a4   : > { %v4316_v53 = vadd.f32 %v4315_v8, %v4187_v62  ;;  %v4060_v36 = vadd.f32 %v4059_v59, %v3931_v54 }
 0x6a6   : > { %4932 = vst [vmem:[#allocation15 + $0x260] sm:$0xff] %v4316_v53 }
 0x6a9   : > { %v4188_v23 = vpop.f32.mrf.mxu2  ;;  %v3933_v52 = vpop.f32.mrf.mxu0 }
 0x6aa   : > { %v4189_v38 = vadd.f32 %v4188_v23, %v4060_v36  ;;  %v4317_v1 = vpop.f32.mrf.mxu3  ;;  %v3934_v22 = vadd.f32 %v3933_v52, %v8162_v12  ;;  %v4062_v21 = vpop.f32.mrf.mxu1 }
 0x6ac   : > { %v4318_v0 = vadd.f32 %v4317_v1, %v4189_v38  ;;  %4368 = vmatmul.bf16.gmra.mxu0 %v8015_v41  ;;  %v4063_v55 = vadd.f32 %v4062_v21, %v3934_v22  ;;  %v9947_v22 = vld [vmem:[#allocation211_spill] sm:$0xff] }
 0x6ad   : > { %4497 = vmatmul.bf16.gmra.mxu1 %v8017_v35 }
 0x6ae   : > { %4934 = vst [vmem:[#allocation15 + $0x270] sm:$0xff] %v4318_v0  ;;  %4626 = vmatmul.bf16.gmra.mxu2 %v8019_v20  ;;  %v9948_v0 = vld [vmem:[#allocation212_spill] sm:$0xff] }
 0x6af   : > { %4755 = vmatmul.bf16.gmra.mxu3 %v8021_v28 }
 0x6b1   : > { %v4191_v58 = vpop.f32.mrf.mxu2  ;;  %v3935_v31 = vpop.f32.mrf.mxu0 }
 0x6b2   : > { %v4192_v63 = vadd.f32 %v4191_v58, %v4063_v55  ;;  %v4320_v43 = vpop.f32.mrf.mxu3  ;;  %v4064_v14 = vpop.f32.mrf.mxu1  ;;  %v3936_v4 = vadd.f32 %v3935_v31, %v8162_v12  ;;  %v9949_v55 = vld [vmem:[#allocation213_spill] sm:$0xff]  ;;  %v9950_v58 = vld [vmem:[#allocation214_spill] sm:$0xff] }
 0x6b4   : > { %v4321_v50 = vadd.f32 %v4320_v43, %v4192_v63  ;;  %v4065_v60 = vadd.f32 %v4064_v14, %v3936_v4 }
 0x6b6   : > { %4936 = vst [vmem:[#allocation15 + $0x280] sm:$0xff] %v4321_v50 }
 0x6b9   : > { %v4193_v46 = vpop.f32.mrf.mxu2  ;;  %v3938_v24 = vpop.f32.mrf.mxu0 }
 0x6ba   : > { %v4194_v41 = vadd.f32 %v4193_v46, %v4065_v60  ;;  %v4322_v6 = vpop.f32.mrf.mxu3  ;;  %v3939_v35 = vadd.f32 %v3938_v24, %v8162_v12  ;;  %v4067_v11 = vpop.f32.mrf.mxu1  ;;  %v6078_v46 = vld [vmem:[%s8935_s5] sm:$0x3] }
 0x6bc   : > { %v4323_v20 = vadd.f32 %v4322_v6, %v4194_v41  ;;  %4373 = vmatmul.bf16.gmra.mxu0 %v8051_v17  ;;  %v4068_v28 = vadd.f32 %v4067_v11, %v3939_v35  ;;  %v8799_v41 = vperm.slane %v6078_v46, 1 }
 0x6bd   : > { %4502 = vmatmul.bf16.gmra.mxu1 %v8053_v40 }
 0x6be   : > { %4938 = vst [vmem:[#allocation15 + $0x290] sm:$0xff] %v4323_v20  ;;  %4631 = vmatmul.bf16.gmra.mxu2 %v8055_v45 }
 0x6bf   : > { %4760 = vmatmul.bf16.gmra.mxu3 %v8057_v16 }
 0x6c1   : > { %v4196_v48 = vpop.f32.mrf.mxu2  ;;  %v3940_v34 = vpop.f32.mrf.mxu0 }
 0x6c2   : > { %v4197_v3 = vadd.f32 %v4196_v48, %v4068_v28  ;;  %v4325_v10 = vpop.f32.mrf.mxu3  ;;  %v4069_v49 = vpop.f32.mrf.mxu1  ;;  %v3941_v32 = vadd.f32 %v3940_v34, %v8162_v12  ;;  %v9952_v34 = vld [vmem:[#allocation216_spill] sm:$0xff] }
 0x6c4   : > { %v4326_v27 = vadd.f32 %v4325_v10, %v4197_v3  ;;  %v4070_v7 = vadd.f32 %v4069_v49, %v3941_v32  ;;  %v9951_v10 = vld [vmem:[#allocation215_spill] sm:$0xff]  ;;  %v9953_v49 = vld [vmem:[#allocation217_spill] sm:$0xff] }
 0x6c6   : > { %4940 = vst [vmem:[#allocation15 + $0x2a0] sm:$0xff] %v4326_v27  ;;  %v9954_v27 = vld [vmem:[#allocation218_spill] sm:$0xff] }
 0x6c9   : > { %v4198_v5 = vpop.f32.mrf.mxu2  ;;  %v3943_v56 = vpop.f32.mrf.mxu0 }
 0x6ca   : > { %v4199_v17 = vadd.f32 %v4198_v5, %v4070_v7  ;;  %v4327_v39 = vpop.f32.mrf.mxu3  ;;  %v3944_v40 = vadd.f32 %v3943_v56, %v8162_v12  ;;  %v4072_v29 = vpop.f32.mrf.mxu1 }
 0x6cc   : > { %v4328_v45 = vadd.f32 %v4327_v39, %v4199_v17  ;;  %4378 = vmatmul.bf16.gmra.mxu0 %v8087_v51  ;;  %v4073_v16 = vadd.f32 %v4072_v29, %v3944_v40 }
 0x6cd   : > { %4507 = vmatmul.bf16.gmra.mxu1 %v9944_v33 }
 0x6ce   : > { %4942 = vst [vmem:[#allocation15 + $0x2b0] sm:$0xff] %v4328_v45  ;;  %4636 = vmatmul.bf16.gmra.mxu2 %v9945_v42 }
 0x6cf   : > { %4765 = vmatmul.bf16.gmra.mxu3 %v9946_v18 }
 0x6d1   : > { %v4201_v19 = vpop.f32.mrf.mxu2  ;;  %v3945_v62 = vpop.f32.mrf.mxu0 }
 0x6d2   : > { %v4202_v44 = vadd.f32 %v4201_v19, %v4073_v16  ;;  %v4330_v37 = vpop.f32.mrf.mxu3  ;;  %v4074_v8 = vpop.f32.mrf.mxu1  ;;  %v3946_v59 = vadd.f32 %v3945_v62, %v8162_v12 }
 0x6d4   : > { %v4331_v25 = vadd.f32 %v4330_v37, %v4202_v44  ;;  %v4075_v53 = vadd.f32 %v4074_v8, %v3946_v59  ;;  %v9955_v37 = vld [vmem:[#allocation219_spill] sm:$0xff]  ;;  %v9956_v8 = vld [vmem:[#allocation220_spill] sm:$0xff]  ;;  %v9958_v59 = vld [vmem:[#allocation222_spill] sm:$0xff] }
 0x6d6   : > { %4944 = vst [vmem:[#allocation15 + $0x2c0] sm:$0xff] %v4331_v25  ;;  %v9957_v25 = vld [vmem:[#allocation221_spill] sm:$0xff] }
 0x6d9   : > { %v4203_v54 = vpop.f32.mrf.mxu2  ;;  %v3948_v23 = vpop.f32.mrf.mxu0 }
 0x6da   : > { %v4204_v51 = vadd.f32 %v4203_v54, %v4075_v53  ;;  %v4332_v36 = vpop.f32.mrf.mxu3  ;;  %v3949_v38 = vadd.f32 %v3948_v23, %v8162_v12  ;;  %v4077_v1 = vpop.f32.mrf.mxu1 }
 0x6dc   : > { %v4333_v52 = vadd.f32 %v4332_v36, %v4204_v51  ;;  %4383 = vmatmul.bf16.gmra.mxu0 %v9947_v22  ;;  %v4078_v21 = vadd.f32 %v4077_v1, %v3949_v38 }
 0x6dd   : > { %4512 = vmatmul.bf16.gmra.mxu1 %v9948_v0 }
 0x6de   : > { %4946 = vst [vmem:[#allocation15 + $0x2d0] sm:$0xff] %v4333_v52  ;;  %4641 = vmatmul.bf16.gmra.mxu2 %v9949_v55 }
 0x6df   : > { %4770 = vmatmul.bf16.gmra.mxu3 %v9950_v58 }
 0x6e1   : > { %v4206_v63 = vpop.f32.mrf.mxu2  ;;  %v3950_v14 = vpop.f32.mrf.mxu0 }
 0x6e2   : > { %v4207_v43 = vadd.f32 %v4206_v63, %v4078_v21  ;;  %v4335_v31 = vpop.f32.mrf.mxu3  ;;  %v4079_v50 = vpop.f32.mrf.mxu1  ;;  %v3951_v60 = vadd.f32 %v3950_v14, %v8162_v12 }
 0x6e4   : > { %v4336_v4 = vadd.f32 %v4335_v31, %v4207_v43  ;;  %v4080_v6 = vadd.f32 %v4079_v50, %v3951_v60  ;;  %v9959_v31 = vld [vmem:[#allocation223_spill] sm:$0xff]  ;;  %v9960_v50 = vld [vmem:[#allocation224_spill] sm:$0xff]  ;;  %v9962_v60 = vld [vmem:[#allocation226_spill] sm:$0xff] }
 0x6e6   : > { %4948 = vst [vmem:[#allocation15 + $0x2e0] sm:$0xff] %v4336_v4  ;;  %v9961_v4 = vld [vmem:[#allocation225_spill] sm:$0xff] }
 0x6e9   : > { %v4208_v24 = vpop.f32.mrf.mxu2  ;;  %v4349_v20 = vpop.f32.mrf.mxu0 }
 0x6ea   : > { %v4209_v35 = vadd.f32 %v4208_v24, %v4080_v6  ;;  %v4337_v11 = vpop.f32.mrf.mxu3  ;;  %v4350_v28 = vadd.f32 %v4349_v20, %v8799_v41  ;;  %v4478_v48 = vpop.f32.mrf.mxu1 }
 0x6ec   : > { %v4338_v3 = vadd.f32 %v4337_v11, %v4209_v35  ;;  %4388 = vmatmul.bf16.gmra.mxu0 %v9951_v10  ;;  %v4479_v12 = vadd.f32 %v4478_v48, %v4350_v28 }
 0x6ed   : > { %4517 = vmatmul.bf16.gmra.mxu1 %v9952_v34 }
 0x6ee   : > { %4950 = vst [vmem:[#allocation15 + $0x2f0] sm:$0xff] %v4338_v3  ;;  %4646 = vmatmul.bf16.gmra.mxu2 %v9953_v49 }
 0x6ef   : > { %4775 = vmatmul.bf16.gmra.mxu3 %v9954_v27 }
 0x6f1   : > { %v4607_v32 = vpop.f32.mrf.mxu2  ;;  %v4351_v17 = vpop.f32.mrf.mxu0 }
 0x6f2   : > { %v4608_v7 = vadd.f32 %v4607_v32, %v4479_v12  ;;  %v4736_v5 = vpop.f32.mrf.mxu3  ;;  %v4480_v39 = vpop.f32.mrf.mxu1  ;;  %v4352_v40 = vadd.f32 %v4351_v17, %v8799_v41  ;;  %v9964_v17 = vld [vmem:[#allocation228_spill] sm:$0xff] }
 0x6f4   : > { %v4737_v56 = vadd.f32 %v4736_v5, %v4608_v7  ;;  %v4481_v29 = vadd.f32 %v4480_v39, %v4352_v40  ;;  %v9963_v7 = vld [vmem:[#allocation227_spill] sm:$0xff]  ;;  %v9965_v39 = vld [vmem:[#allocation229_spill] sm:$0xff] }
 0x6f6   : > { %4857 = vst [vmem:[#allocation15 + $0x8] sm:$0xff] %v4737_v56  ;;  %v9966_v56 = vld [vmem:[#allocation230_spill] sm:$0xff] }
 0x6f9   : > { %v4609_v45 = vpop.f32.mrf.mxu2  ;;  %v4354_v42 = vpop.f32.mrf.mxu0 }
 0x6fa   : > { %v4610_v16 = vadd.f32 %v4609_v45, %v4481_v29  ;;  %v4738_v33 = vpop.f32.mrf.mxu3  ;;  %v4355_v18 = vadd.f32 %v4354_v42, %v8799_v41  ;;  %v4483_v19 = vpop.f32.mrf.mxu1 }
 0x6fc   : > { %v4739_v44 = vadd.f32 %v4738_v33, %v4610_v16  ;;  %4393 = vmatmul.bf16.gmra.mxu0 %v9955_v37  ;;  %v4484_v62 = vadd.f32 %v4483_v19, %v4355_v18 }
 0x6fd   : > { %4522 = vmatmul.bf16.gmra.mxu1 %v9956_v8 }
 0x6fe   : > { %4859 = vst [vmem:[#allocation15 + $0x18] sm:$0xff] %v4739_v44  ;;  %4651 = vmatmul.bf16.gmra.mxu2 %v9957_v25 }
 0x6ff   : > { %4780 = vmatmul.bf16.gmra.mxu3 %v9958_v59 }
 0x701   : > { %v4612_v53 = vpop.f32.mrf.mxu2  ;;  %v4356_v36 = vpop.f32.mrf.mxu0 }
 0x702   : > { %v4613_v54 = vadd.f32 %v4612_v53, %v4484_v62  ;;  %v4741_v51 = vpop.f32.mrf.mxu3  ;;  %v4485_v23 = vpop.f32.mrf.mxu1  ;;  %v4357_v1 = vadd.f32 %v4356_v36, %v8799_v41  ;;  %v9968_v36 = vld [vmem:[#allocation232_spill] sm:$0xff] }
 0x704   : > { %v4742_v38 = vadd.f32 %v4741_v51, %v4613_v54  ;;  %v4486_v52 = vadd.f32 %v4485_v23, %v4357_v1  ;;  %v9967_v54 = vld [vmem:[#allocation231_spill] sm:$0xff]  ;;  %v9969_v23 = vld [vmem:[#allocation233_spill] sm:$0xff] }
 0x706   : > { %4861 = vst [vmem:[#allocation15 + $0x28] sm:$0xff] %v4742_v38  ;;  %v9970_v38 = vld [vmem:[#allocation234_spill] sm:$0xff] }
 0x709   : > { %v4614_v22 = vpop.f32.mrf.mxu2  ;;  %v4359_v55 = vpop.f32.mrf.mxu0 }
 0x70a   : > { %v4615_v21 = vadd.f32 %v4614_v22, %v4486_v52  ;;  %v4743_v0 = vpop.f32.mrf.mxu3  ;;  %v4360_v58 = vadd.f32 %v4359_v55, %v8799_v41  ;;  %v4488_v63 = vpop.f32.mrf.mxu1 }
 0x70c   : > { %v4744_v43 = vadd.f32 %v4743_v0, %v4615_v21  ;;  %4398 = vmatmul.bf16.gmra.mxu0 %v9959_v31  ;;  %v4489_v14 = vadd.f32 %v4488_v63, %v4360_v58 }
 0x70d   : > { %4527 = vmatmul.bf16.gmra.mxu1 %v9960_v50 }
 0x70e   : > { %4863 = vst [vmem:[#allocation15 + $0x38] sm:$0xff] %v4744_v43  ;;  %4656 = vmatmul.bf16.gmra.mxu2 %v9961_v4 }
 0x70f   : > { %4785 = vmatmul.bf16.gmra.mxu3 %v9962_v60 }
 0x711   : > { %v4617_v46 = vpop.f32.mrf.mxu2  ;;  %v4361_v35 = vpop.f32.mrf.mxu0 }
 0x712   : > { %v4618_v6 = vadd.f32 %v4617_v46, %v4489_v14  ;;  %v4746_v24 = vpop.f32.mrf.mxu3  ;;  %v4490_v11 = vpop.f32.mrf.mxu1  ;;  %v4362_v28 = vadd.f32 %v4361_v35, %v8799_v41  ;;  %v9972_v35 = vld [vmem:[#allocation236_spill] sm:$0xff] }
 0x714   : > { %v4747_v20 = vadd.f32 %v4746_v24, %v4618_v6  ;;  %v4491_v48 = vadd.f32 %v4490_v11, %v4362_v28  ;;  %v9971_v6 = vld [vmem:[#allocation235_spill] sm:$0xff]  ;;  %v9973_v11 = vld [vmem:[#allocation237_spill] sm:$0xff] }
 0x716   : > { %4865 = vst [vmem:[#allocation15 + $0x48] sm:$0xff] %v4747_v20  ;;  %v9974_v20 = vld [vmem:[#allocation238_spill] sm:$0xff] }
 0x719   : > { %v4619_v3 = vpop.f32.mrf.mxu2  ;;  %v4364_v34 = vpop.f32.mrf.mxu0 }
 0x71a   : > { %v4620_v10 = vadd.f32 %v4619_v3, %v4491_v48  ;;  %v4748_v12 = vpop.f32.mrf.mxu3  ;;  %v4365_v49 = vadd.f32 %v4364_v34, %v8799_v41  ;;  %v4493_v27 = vpop.f32.mrf.mxu1 }
 0x71c   : > { %v4749_v32 = vadd.f32 %v4748_v12, %v4620_v10  ;;  %4403 = vmatmul.bf16.gmra.mxu0 %v9963_v7  ;;  %v4494_v5 = vadd.f32 %v4493_v27, %v4365_v49 }
 0x71d   : > { %4532 = vmatmul.bf16.gmra.mxu1 %v9964_v17 }
 0x71e   : > { %4867 = vst [vmem:[#allocation15 + $0x58] sm:$0xff] %v4749_v32  ;;  %4661 = vmatmul.bf16.gmra.mxu2 %v9965_v39 }
 0x71f   : > { %4790 = vmatmul.bf16.gmra.mxu3 %v9966_v56 }
 0x721   : > { %v4622_v40 = vpop.f32.mrf.mxu2  ;;  %v4366_v16 = vpop.f32.mrf.mxu0 }
 0x722   : > { %v4623_v29 = vadd.f32 %v4622_v40, %v4494_v5  ;;  %v4751_v45 = vpop.f32.mrf.mxu3  ;;  %v4495_v33 = vpop.f32.mrf.mxu1  ;;  %v4367_v18 = vadd.f32 %v4366_v16, %v8799_v41  ;;  %v9976_v16 = vld [vmem:[#allocation240_spill] sm:$0xff] }
 0x724   : > { %v4752_v42 = vadd.f32 %v4751_v45, %v4623_v29  ;;  %v4496_v19 = vadd.f32 %v4495_v33, %v4367_v18  ;;  %v9975_v29 = vld [vmem:[#allocation239_spill] sm:$0xff]  ;;  %v9977_v33 = vld [vmem:[#allocation241_spill] sm:$0xff] }
 0x726   : > { %4869 = vst [vmem:[#allocation15 + $0x68] sm:$0xff] %v4752_v42  ;;  %v9978_v42 = vld [vmem:[#allocation242_spill] sm:$0xff] }
 0x729   : > { %v4624_v44 = vpop.f32.mrf.mxu2  ;;  %v4369_v8 = vpop.f32.mrf.mxu0 }
 0x72a   : > { %v4625_v37 = vadd.f32 %v4624_v44, %v4496_v19  ;;  %v4753_v62 = vpop.f32.mrf.mxu3  ;;  %v4370_v25 = vadd.f32 %v4369_v8, %v8799_v41  ;;  %v4498_v59 = vpop.f32.mrf.mxu1 }
 0x72c   : > { %v4754_v53 = vadd.f32 %v4753_v62, %v4625_v37  ;;  %4408 = vmatmul.bf16.gmra.mxu0 %v9967_v54  ;;  %v4499_v51 = vadd.f32 %v4498_v59, %v4370_v25 }
 0x72d   : > { %4537 = vmatmul.bf16.gmra.mxu1 %v9968_v36 }
 0x72e   : > { %4871 = vst [vmem:[#allocation15 + $0x78] sm:$0xff] %v4754_v53  ;;  %4666 = vmatmul.bf16.gmra.mxu2 %v9969_v23 }
 0x72f   : > { %4795 = vmatmul.bf16.gmra.mxu3 %v9970_v38 }
 0x731   : > { %v4627_v1 = vpop.f32.mrf.mxu2  ;;  %v4371_v21 = vpop.f32.mrf.mxu0 }
 0x732   : > { %v4628_v52 = vadd.f32 %v4627_v1, %v4499_v51  ;;  %v4756_v22 = vpop.f32.mrf.mxu3  ;;  %v4500_v0 = vpop.f32.mrf.mxu1  ;;  %v4372_v58 = vadd.f32 %v4371_v21, %v8799_v41  ;;  %v9980_v21 = vld [vmem:[#allocation244_spill] sm:$0xff] }
 0x734   : > { %v4757_v55 = vadd.f32 %v4756_v22, %v4628_v52  ;;  %v4501_v63 = vadd.f32 %v4500_v0, %v4372_v58  ;;  %v9979_v52 = vld [vmem:[#allocation243_spill] sm:$0xff]  ;;  %v9981_v0 = vld [vmem:[#allocation245_spill] sm:$0xff] }
 0x736   : > { %4873 = vst [vmem:[#allocation15 + $0x88] sm:$0xff] %v4757_v55  ;;  %v9982_v55 = vld [vmem:[#allocation246_spill] sm:$0xff] }
 0x739   : > { %v4629_v43 = vpop.f32.mrf.mxu2  ;;  %v4374_v50 = vpop.f32.mrf.mxu0 }
 0x73a   : > { %v4630_v31 = vadd.f32 %v4629_v43, %v4501_v63  ;;  %v4758_v14 = vpop.f32.mrf.mxu3  ;;  %v4375_v4 = vadd.f32 %v4374_v50, %v8799_v41  ;;  %v4503_v60 = vpop.f32.mrf.mxu1 }
 0x73c   : > { %v4759_v46 = vadd.f32 %v4758_v14, %v4630_v31  ;;  %4413 = vmatmul.bf16.gmra.mxu0 %v9971_v6  ;;  %v4504_v24 = vadd.f32 %v4503_v60, %v4375_v4 }
 0x73d   : > { %4542 = vmatmul.bf16.gmra.mxu1 %v9972_v35 }
 0x73e   : > { %4875 = vst [vmem:[#allocation15 + $0x98] sm:$0xff] %v4759_v46  ;;  %4671 = vmatmul.bf16.gmra.mxu2 %v9973_v11 }
 0x73f   : > { %4800 = vmatmul.bf16.gmra.mxu3 %v9974_v20 }
 0x741   : > { %v4632_v28 = vpop.f32.mrf.mxu2  ;;  %v4376_v10 = vpop.f32.mrf.mxu0 }
 0x742   : > { %v4633_v48 = vadd.f32 %v4632_v28, %v4504_v24  ;;  %v4761_v3 = vpop.f32.mrf.mxu3  ;;  %v4505_v12 = vpop.f32.mrf.mxu1  ;;  %v4377_v49 = vadd.f32 %v4376_v10, %v8799_v41  ;;  %v9984_v10 = vld [vmem:[#allocation248_spill] sm:$0xff] }
 0x744   : > { %v4762_v34 = vadd.f32 %v4761_v3, %v4633_v48  ;;  %v4506_v27 = vadd.f32 %v4505_v12, %v4377_v49  ;;  %v9983_v48 = vld [vmem:[#allocation247_spill] sm:$0xff]  ;;  %v9985_v12 = vld [vmem:[#allocation249_spill] sm:$0xff] }
 0x746   : > { %4877 = vst [vmem:[#allocation15 + $0xa8] sm:$0xff] %v4762_v34  ;;  %v9986_v34 = vld [vmem:[#allocation250_spill] sm:$0xff] }
 0x749   : > { %v4634_v32 = vpop.f32.mrf.mxu2  ;;  %v4379_v17 = vpop.f32.mrf.mxu0 }
 0x74a   : > { %v4635_v7 = vadd.f32 %v4634_v32, %v4506_v27  ;;  %v4763_v5 = vpop.f32.mrf.mxu3  ;;  %v4380_v39 = vadd.f32 %v4379_v17, %v8799_v41  ;;  %v4508_v56 = vpop.f32.mrf.mxu1 }
 0x74c   : > { %v4764_v40 = vadd.f32 %v4763_v5, %v4635_v7  ;;  %4418 = vmatmul.bf16.gmra.mxu0 %v9975_v29  ;;  %v4509_v45 = vadd.f32 %v4508_v56, %v4380_v39 }
 0x74d   : > { %4547 = vmatmul.bf16.gmra.mxu1 %v9976_v16 }
 0x74e   : > { %4879 = vst [vmem:[#allocation15 + $0xb8] sm:$0xff] %v4764_v40  ;;  %4676 = vmatmul.bf16.gmra.mxu2 %v9977_v33 }
 0x74f   : > { %4805 = vmatmul.bf16.gmra.mxu3 %v9978_v42 }
 0x751   : > { %v4637_v18 = vpop.f32.mrf.mxu2  ;;  %v4381_v37 = vpop.f32.mrf.mxu0 }
 0x752   : > { %v4638_v19 = vadd.f32 %v4637_v18, %v4509_v45  ;;  %v4766_v44 = vpop.f32.mrf.mxu3  ;;  %v4510_v62 = vpop.f32.mrf.mxu1  ;;  %v4382_v25 = vadd.f32 %v4381_v37, %v8799_v41  ;;  %v9988_v37 = vld [vmem:[#allocation252_spill] sm:$0xff] }
 0x754   : > { %v4767_v8 = vadd.f32 %v4766_v44, %v4638_v19  ;;  %v4511_v59 = vadd.f32 %v4510_v62, %v4382_v25  ;;  %v9987_v19 = vld [vmem:[#allocation251_spill] sm:$0xff]  ;;  %v9989_v62 = vld [vmem:[#allocation253_spill] sm:$0xff] }
 0x756   : > { %4881 = vst [vmem:[#allocation15 + $0xc8] sm:$0xff] %v4767_v8  ;;  %v9990_v8 = vld [vmem:[#allocation254_spill] sm:$0xff] }
 0x759   : > { %v4639_v53 = vpop.f32.mrf.mxu2  ;;  %v4384_v36 = vpop.f32.mrf.mxu0 }
 0x75a   : > { %v4640_v54 = vadd.f32 %v4639_v53, %v4511_v59  ;;  %v4768_v51 = vpop.f32.mrf.mxu3  ;;  %v4385_v23 = vadd.f32 %v4384_v36, %v8799_v41  ;;  %v4513_v38 = vpop.f32.mrf.mxu1 }
 0x75c   : > { %v4769_v1 = vadd.f32 %v4768_v51, %v4640_v54  ;;  %4423 = vmatmul.bf16.gmra.mxu0 %v9979_v52  ;;  %v4514_v22 = vadd.f32 %v4513_v38, %v4385_v23 }
 0x75d   : > { %4552 = vmatmul.bf16.gmra.mxu1 %v9980_v21 }
 0x75e   : > { %4883 = vst [vmem:[#allocation15 + $0xd8] sm:$0xff] %v4769_v1  ;;  %4681 = vmatmul.bf16.gmra.mxu2 %v9981_v0 }
 0x75f   : > { %4810 = vmatmul.bf16.gmra.mxu3 %v9982_v55 }
 0x761   : > { %v4642_v58 = vpop.f32.mrf.mxu2  ;;  %v4386_v31 = vpop.f32.mrf.mxu0 }
 0x762   : > { %v4643_v63 = vadd.f32 %v4642_v58, %v4514_v22  ;;  %v4771_v43 = vpop.f32.mrf.mxu3  ;;  %v4515_v14 = vpop.f32.mrf.mxu1  ;;  %v4387_v4 = vadd.f32 %v4386_v31, %v8799_v41  ;;  %v9992_v31 = vld [vmem:[#allocation256_spill] sm:$0xff] }
 0x764   : > { %v4772_v50 = vadd.f32 %v4771_v43, %v4643_v63  ;;  %v4516_v60 = vadd.f32 %v4515_v14, %v4387_v4  ;;  %v9991_v63 = vld [vmem:[#allocation255_spill] sm:$0xff]  ;;  %v9993_v14 = vld [vmem:[#allocation257_spill] sm:$0xff] }
 0x766   : > { %4885 = vst [vmem:[#allocation15 + $0xe8] sm:$0xff] %v4772_v50  ;;  %v9994_v50 = vld [vmem:[#allocation258_spill] sm:$0xff] }
 0x769   : > { %v4644_v46 = vpop.f32.mrf.mxu2  ;;  %v4389_v35 = vpop.f32.mrf.mxu0 }
 0x76a   : > { %v4645_v6 = vadd.f32 %v4644_v46, %v4516_v60  ;;  %v4773_v24 = vpop.f32.mrf.mxu3  ;;  %v4390_v11 = vadd.f32 %v4389_v35, %v8799_v41  ;;  %v4518_v20 = vpop.f32.mrf.mxu1 }
 0x76c   : > { %v4774_v28 = vadd.f32 %v4773_v24, %v4645_v6  ;;  %4428 = vmatmul.bf16.gmra.mxu0 %v9983_v48  ;;  %v4519_v3 = vadd.f32 %v4518_v20, %v4390_v11 }
 0x76d   : > { %4557 = vmatmul.bf16.gmra.mxu1 %v9984_v10 }
 0x76e   : > { %4887 = vst [vmem:[#allocation15 + $0xf8] sm:$0xff] %v4774_v28  ;;  %4686 = vmatmul.bf16.gmra.mxu2 %v9985_v12 }
 0x76f   : > { %4815 = vmatmul.bf16.gmra.mxu3 %v9986_v34 }
 0x771   : > { %v4647_v49 = vpop.f32.mrf.mxu2  ;;  %v4391_v7 = vpop.f32.mrf.mxu0 }
 0x772   : > { %v4648_v27 = vadd.f32 %v4647_v49, %v4519_v3  ;;  %v4776_v32 = vpop.f32.mrf.mxu3  ;;  %v4520_v5 = vpop.f32.mrf.mxu1  ;;  %v4392_v39 = vadd.f32 %v4391_v7, %v8799_v41  ;;  %v9996_v7 = vld [vmem:[#allocation260_spill] sm:$0xff] }
 0x774   : > { %v4777_v17 = vadd.f32 %v4776_v32, %v4648_v27  ;;  %v4521_v56 = vadd.f32 %v4520_v5, %v4392_v39  ;;  %v9995_v27 = vld [vmem:[#allocation259_spill] sm:$0xff]  ;;  %v9997_v5 = vld [vmem:[#allocation261_spill] sm:$0xff] }
 0x776   : > { %4889 = vst [vmem:[#allocation15 + $0x108] sm:$0xff] %v4777_v17  ;;  %v9998_v17 = vld [vmem:[#allocation262_spill] sm:$0xff] }
 0x779   : > { %v4649_v40 = vpop.f32.mrf.mxu2  ;;  %v4394_v16 = vpop.f32.mrf.mxu0 }
 0x77a   : > { %v4650_v29 = vadd.f32 %v4649_v40, %v4521_v56  ;;  %v4778_v45 = vpop.f32.mrf.mxu3  ;;  %v4395_v33 = vadd.f32 %v4394_v16, %v8799_v41  ;;  %v4523_v42 = vpop.f32.mrf.mxu1 }
 0x77c   : > { %v4779_v18 = vadd.f32 %v4778_v45, %v4650_v29  ;;  %4433 = vmatmul.bf16.gmra.mxu0 %v9987_v19  ;;  %v4524_v44 = vadd.f32 %v4523_v42, %v4395_v33 }
 0x77d   : > { %4562 = vmatmul.bf16.gmra.mxu1 %v9988_v37 }
 0x77e   : > { %4891 = vst [vmem:[#allocation15 + $0x118] sm:$0xff] %v4779_v18  ;;  %4691 = vmatmul.bf16.gmra.mxu2 %v9989_v62 }
 0x77f   : > { %4820 = vmatmul.bf16.gmra.mxu3 %v9990_v8 }
 0x781   : > { %v4652_v25 = vpop.f32.mrf.mxu2  ;;  %v4396_v54 = vpop.f32.mrf.mxu0 }
 0x782   : > { %v4653_v59 = vadd.f32 %v4652_v25, %v4524_v44  ;;  %v4781_v53 = vpop.f32.mrf.mxu3  ;;  %v4525_v51 = vpop.f32.mrf.mxu1  ;;  %v4397_v23 = vadd.f32 %v4396_v54, %v8799_v41  ;;  %v10000_v54 = vld [vmem:[#allocation264_spill] sm:$0xff] }
 0x784   : > { %v4782_v36 = vadd.f32 %v4781_v53, %v4653_v59  ;;  %v4526_v38 = vadd.f32 %v4525_v51, %v4397_v23  ;;  %v9999_v53 = vld [vmem:[#allocation263_spill] sm:$0xff]  ;;  %v10001_v51 = vld [vmem:[#allocation265_spill] sm:$0xff] }
 0x786   : > { %4893 = vst [vmem:[#allocation15 + $0x128] sm:$0xff] %v4782_v36 }
 0x789   : > { %v4654_v1 = vpop.f32.mrf.mxu2  ;;  %v4399_v21 = vpop.f32.mrf.mxu0 }
 0x78a   : > { %v4655_v52 = vadd.f32 %v4654_v1, %v4526_v38  ;;  %v4783_v22 = vpop.f32.mrf.mxu3  ;;  %v4400_v0 = vadd.f32 %v4399_v21, %v8799_v41  ;;  %v4528_v55 = vpop.f32.mrf.mxu1 }
 0x78c   : > { %v4784_v58 = vadd.f32 %v4783_v22, %v4655_v52  ;;  %4438 = vmatmul.bf16.gmra.mxu0 %v9991_v63  ;;  %v4529_v43 = vadd.f32 %v4528_v55, %v4400_v0 }
 0x78d   : > { %4567 = vmatmul.bf16.gmra.mxu1 %v9992_v31 }
 0x78e   : > { %4895 = vst [vmem:[#allocation15 + $0x138] sm:$0xff] %v4784_v58  ;;  %4696 = vmatmul.bf16.gmra.mxu2 %v9993_v14 }
 0x78f   : > { %4825 = vmatmul.bf16.gmra.mxu3 %v9994_v50  ;;  %v10002_v50 = vld [vmem:[#allocation266_spill] sm:$0xff] }
 0x791   : > { %v4657_v4 = vpop.f32.mrf.mxu2  ;;  %v4401_v6 = vpop.f32.mrf.mxu0 }
 0x792   : > { %v4658_v60 = vadd.f32 %v4657_v4, %v4529_v43  ;;  %v4786_v46 = vpop.f32.mrf.mxu3  ;;  %v4530_v24 = vpop.f32.mrf.mxu1  ;;  %v4402_v11 = vadd.f32 %v4401_v6, %v8799_v41  ;;  %v10005_v6 = vld [vmem:[#allocation269_spill] sm:$0xff] }
 0x794   : > { %v4787_v35 = vadd.f32 %v4786_v46, %v4658_v60  ;;  %v4531_v20 = vadd.f32 %v4530_v24, %v4402_v11  ;;  %v10003_v60 = vld [vmem:[#allocation267_spill] sm:$0xff]  ;;  %v10004_v46 = vld [vmem:[#allocation268_spill] sm:$0xff] }
 0x796   : > { %4897 = vst [vmem:[#allocation15 + $0x148] sm:$0xff] %v4787_v35 }
 0x799   : > { %v4659_v28 = vpop.f32.mrf.mxu2  ;;  %v4404_v10 = vpop.f32.mrf.mxu0 }
 0x79a   : > { %v4660_v48 = vadd.f32 %v4659_v28, %v4531_v20  ;;  %v4788_v3 = vpop.f32.mrf.mxu3  ;;  %v4405_v12 = vadd.f32 %v4404_v10, %v8799_v41  ;;  %v4533_v34 = vpop.f32.mrf.mxu1 }
 0x79c   : > { %v4789_v49 = vadd.f32 %v4788_v3, %v4660_v48  ;;  %4443 = vmatmul.bf16.gmra.mxu0 %v9995_v27  ;;  %v4534_v32 = vadd.f32 %v4533_v34, %v4405_v12 }
 0x79d   : > { %4572 = vmatmul.bf16.gmra.mxu1 %v9996_v7 }
 0x79e   : > { %4899 = vst [vmem:[#allocation15 + $0x158] sm:$0xff] %v4789_v49  ;;  %4701 = vmatmul.bf16.gmra.mxu2 %v9997_v5 }
 0x79f   : > { %4830 = vmatmul.bf16.gmra.mxu3 %v9998_v17 }
 0x7a1   : > { %v4662_v39 = vpop.f32.mrf.mxu2  ;;  %v4406_v29 = vpop.f32.mrf.mxu0 }
 0x7a2   : > { %v4663_v56 = vadd.f32 %v4662_v39, %v4534_v32  ;;  %v4791_v40 = vpop.f32.mrf.mxu3  ;;  %v4535_v45 = vpop.f32.mrf.mxu1  ;;  %v4407_v33 = vadd.f32 %v4406_v29, %v8799_v41 }
 0x7a4   : > { %v4792_v16 = vadd.f32 %v4791_v40, %v4663_v56  ;;  %v4536_v42 = vadd.f32 %v4535_v45, %v4407_v33 }
 0x7a6   : > { %4901 = vst [vmem:[#allocation15 + $0x168] sm:$0xff] %v4792_v16 }
 0x7a9   : > { %v4664_v18 = vpop.f32.mrf.mxu2  ;;  %v4409_v37 = vpop.f32.mrf.mxu0 }
 0x7aa   : > { %v4665_v19 = vadd.f32 %v4664_v18, %v4536_v42  ;;  %v4793_v44 = vpop.f32.mrf.mxu3  ;;  %v4410_v62 = vadd.f32 %v4409_v37, %v8799_v41  ;;  %v4538_v8 = vpop.f32.mrf.mxu1 }
 0x7ac   : > { %v4794_v25 = vadd.f32 %v4793_v44, %v4665_v19  ;;  %4448 = vmatmul.bf16.gmra.mxu0 %v8620_v13  ;;  %v4539_v59 = vadd.f32 %v4538_v8, %v4410_v62 }
 0x7ad   : > { %4577 = vmatmul.bf16.gmra.mxu1 %v9999_v53 }
 0x7ae   : > { %4903 = vst [vmem:[#allocation15 + $0x178] sm:$0xff] %v4794_v25  ;;  %4706 = vmatmul.bf16.gmra.mxu2 %v10000_v54 }
 0x7af   : > { %4835 = vmatmul.bf16.gmra.mxu3 %v10001_v51 }
 0x7b1   : > { %v4667_v36 = vpop.f32.mrf.mxu2  ;;  %v4411_v1 = vpop.f32.mrf.mxu0 }
 0x7b2   : > { %v4668_v23 = vadd.f32 %v4667_v36, %v4539_v59  ;;  %v4796_v38 = vpop.f32.mrf.mxu3  ;;  %v4540_v52 = vpop.f32.mrf.mxu1  ;;  %v4412_v21 = vadd.f32 %v4411_v1, %v8799_v41 }
 0x7b4   : > { %v4797_v22 = vadd.f32 %v4796_v38, %v4668_v23  ;;  %v4541_v0 = vadd.f32 %v4540_v52, %v4412_v21 }
 0x7b6   : > { %4905 = vst [vmem:[#allocation15 + $0x188] sm:$0xff] %v4797_v22 }
 0x7b9   : > { %v4669_v55 = vpop.f32.mrf.mxu2  ;;  %v4414_v63 = vpop.f32.mrf.mxu0 }
 0x7ba   : > { %v4670_v13 = vadd.f32 %v4669_v55, %v4541_v0  ;;  %v4798_v58 = vpop.f32.mrf.mxu3  ;;  %v4415_v43 = vadd.f32 %v4414_v63, %v8799_v41  ;;  %v4543_v31 = vpop.f32.mrf.mxu1 }
 0x7bc   : > { %v4799_v14 = vadd.f32 %v4798_v58, %v4670_v13  ;;  %4453 = vmatmul.bf16.gmra.mxu0 %v10002_v50  ;;  %v4544_v4 = vadd.f32 %v4543_v31, %v4415_v43 }
 0x7bd   : > { %4582 = vmatmul.bf16.gmra.mxu1 %v10003_v60 }
 0x7be   : > { %4907 = vst [vmem:[#allocation15 + $0x198] sm:$0xff] %v4799_v14  ;;  %4711 = vmatmul.bf16.gmra.mxu2 %v10004_v46 }
 0x7bf   : > { %4840 = vmatmul.bf16.gmra.mxu3 %v10005_v6 }
 0x7c1   : > { %v4672_v24 = vpop.f32.mrf.mxu2  ;;  %v4416_v20 = vpop.f32.mrf.mxu0 }
 0x7c2   : > { %v4673_v35 = vadd.f32 %v4672_v24, %v4544_v4  ;;  %v4801_v11 = vpop.f32.mrf.mxu3  ;;  %v4545_v28 = vpop.f32.mrf.mxu1  ;;  %v4417_v3 = vadd.f32 %v4416_v20, %v8799_v41 }
 0x7c4   : > { %v4802_v48 = vadd.f32 %v4801_v11, %v4673_v35  ;;  %v4546_v10 = vadd.f32 %v4545_v28, %v4417_v3 }
 0x7c6   : > { %4909 = vst [vmem:[#allocation15 + $0x1a8] sm:$0xff] %v4802_v48 }
 0x7c9   : > { %v4674_v12 = vpop.f32.mrf.mxu2  ;;  %v4419_v27 = vpop.f32.mrf.mxu0 }
 0x7ca   : > { %v4675_v34 = vadd.f32 %v4674_v12, %v4546_v10  ;;  %v4803_v49 = vpop.f32.mrf.mxu3  ;;  %v4420_v32 = vadd.f32 %v4419_v27, %v8799_v41  ;;  %v4548_v7 = vpop.f32.mrf.mxu1 }
 0x7cc   : > { %v4804_v5 = vadd.f32 %v4803_v49, %v4675_v34  ;;  %4458 = vmatmul.bf16.gmra.mxu0 %v8696_v26  ;;  %v4549_v17 = vadd.f32 %v4548_v7, %v4420_v32 }
 0x7cd   : > { %4587 = vmatmul.bf16.gmra.mxu1 %v8698_v30 }
 0x7ce   : > { %4911 = vst [vmem:[#allocation15 + $0x1b8] sm:$0xff] %v4804_v5  ;;  %4716 = vmatmul.bf16.gmra.mxu2 %v8700_v15 }
 0x7cf   : > { %4845 = vmatmul.bf16.gmra.mxu3 %v8703_v61 }
 0x7d1   : > { %v4677_v39 = vpop.f32.mrf.mxu2  ;;  %v4421_v29 = vpop.f32.mrf.mxu0 }
 0x7d2   : > { %v4678_v56 = vadd.f32 %v4677_v39, %v4549_v17  ;;  %v4806_v40 = vpop.f32.mrf.mxu3  ;;  %v4550_v45 = vpop.f32.mrf.mxu1  ;;  %v4422_v33 = vadd.f32 %v4421_v29, %v8799_v41 }
 0x7d4   : > { %v4807_v16 = vadd.f32 %v4806_v40, %v4678_v56  ;;  %v4551_v42 = vadd.f32 %v4550_v45, %v4422_v33 }
 0x7d6   : > { %4913 = vst [vmem:[#allocation15 + $0x1c8] sm:$0xff] %v4807_v16 }
 0x7d9   : > { %v4679_v18 = vpop.f32.mrf.mxu2  ;;  %v4424_v44 = vpop.f32.mrf.mxu0 }
 0x7da   : > { %v4680_v26 = vadd.f32 %v4679_v18, %v4551_v42  ;;  %v4808_v19 = vpop.f32.mrf.mxu3  ;;  %v4425_v30 = vadd.f32 %v4424_v44, %v8799_v41  ;;  %v4553_v37 = vpop.f32.mrf.mxu1 }
 0x7dc   : > { %v4809_v15 = vadd.f32 %v4808_v19, %v4680_v26  ;;  %4463 = vmatmul.bf16.gmra.mxu0 %v8734_v9  ;;  %v4554_v61 = vadd.f32 %v4553_v37, %v4425_v30 }
 0x7dd   : > { %4592 = vmatmul.bf16.gmra.mxu1 %v8736_v57 }
 0x7de   : > { %4915 = vst [vmem:[#allocation15 + $0x1d8] sm:$0xff] %v4809_v15  ;;  %4721 = vmatmul.bf16.gmra.mxu2 %v8738_v47 }
 0x7df   : > { %4850 = vmatmul.bf16.gmra.mxu3 %v8741_v2 }
 0x7e1   : > { %v4682_v62 = vpop.f32.mrf.mxu2  ;;  %v4426_v59 = vpop.f32.mrf.mxu0 }
 0x7e2   : > { %v4683_v8 = vadd.f32 %v4682_v62, %v4554_v61  ;;  %v4811_v25 = vpop.f32.mrf.mxu3  ;;  %v4555_v53 = vpop.f32.mrf.mxu1  ;;  %v4427_v51 = vadd.f32 %v4426_v59, %v8799_v41 }
 0x7e4   : > { %v4812_v54 = vadd.f32 %v4811_v25, %v4683_v8  ;;  %v4556_v36 = vadd.f32 %v4555_v53, %v4427_v51 }
 0x7e6   : > { %4917 = vst [vmem:[#allocation15 + $0x1e8] sm:$0xff] %v4812_v54 }
 0x7e9   : > { %v4684_v23 = vpop.f32.mrf.mxu2  ;;  %v4429_v1 = vpop.f32.mrf.mxu0 }
 0x7ea   : > { %v4685_v9 = vadd.f32 %v4684_v23, %v4556_v36  ;;  %v4813_v38 = vpop.f32.mrf.mxu3  ;;  %v4430_v57 = vadd.f32 %v4429_v1, %v8799_v41  ;;  %v4558_v52 = vpop.f32.mrf.mxu1 }
 0x7ec   : > { %v4814_v47 = vadd.f32 %v4813_v38, %v4685_v9  ;;  %v4559_v2 = vadd.f32 %v4558_v52, %v4430_v57 }
 0x7ee   : > { %4919 = vst [vmem:[#allocation15 + $0x1f8] sm:$0xff] %v4814_v47 }
 0x7f1   : > { %v4687_v22 = vpop.f32.mrf.mxu2  ;;  %v4431_v55 = vpop.f32.mrf.mxu0 }
 0x7f2   : > { %v4688_v21 = vadd.f32 %v4687_v22, %v4559_v2  ;;  %v4816_v0 = vpop.f32.mrf.mxu3  ;;  %v4560_v13 = vpop.f32.mrf.mxu1  ;;  %v4432_v63 = vadd.f32 %v4431_v55, %v8799_v41 }
 0x7f4   : > { %v4817_v58 = vadd.f32 %v4816_v0, %v4688_v21  ;;  %v4561_v43 = vadd.f32 %v4560_v13, %v4432_v63 }
 0x7f6   : > { %4921 = vst [vmem:[#allocation15 + $0x208] sm:$0xff] %v4817_v58 }
 0x7f9   : > { %v4689_v31 = vpop.f32.mrf.mxu2  ;;  %v4434_v4 = vpop.f32.mrf.mxu0 }
 0x7fa   : > { %v4690_v14 = vadd.f32 %v4689_v31, %v4561_v43  ;;  %v4818_v50 = vpop.f32.mrf.mxu3  ;;  %v4435_v60 = vadd.f32 %v4434_v4, %v8799_v41  ;;  %v4563_v46 = vpop.f32.mrf.mxu1 }
 0x7fc   : > { %v4819_v6 = vadd.f32 %v4818_v50, %v4690_v14  ;;  %v4564_v24 = vadd.f32 %v4563_v46, %v4435_v60 }
 0x7fe   : > { %4923 = vst [vmem:[#allocation15 + $0x218] sm:$0xff] %v4819_v6 }
 0x801   : > { %v4692_v35 = vpop.f32.mrf.mxu2  ;;  %v4436_v28 = vpop.f32.mrf.mxu0 }
 0x802   : > { %v4693_v11 = vadd.f32 %v4692_v35, %v4564_v24  ;;  %v4821_v20 = vpop.f32.mrf.mxu3  ;;  %v4565_v48 = vpop.f32.mrf.mxu1  ;;  %v4437_v10 = vadd.f32 %v4436_v28, %v8799_v41 }
 0x804   : > { %v4822_v3 = vadd.f32 %v4821_v20, %v4693_v11  ;;  %v4566_v12 = vadd.f32 %v4565_v48, %v4437_v10 }
 0x806   : > { %4925 = vst [vmem:[#allocation15 + $0x228] sm:$0xff] %v4822_v3 }
 0x809   : > { %v4694_v34 = vpop.f32.mrf.mxu2  ;;  %v4439_v32 = vpop.f32.mrf.mxu0 }
 0x80a   : > { %v4695_v49 = vadd.f32 %v4694_v34, %v4566_v12  ;;  %v4823_v27 = vpop.f32.mrf.mxu3  ;;  %v4440_v7 = vadd.f32 %v4439_v32, %v8799_v41  ;;  %v4568_v5 = vpop.f32.mrf.mxu1 }
 0x80c   : > { %v4824_v17 = vadd.f32 %v4823_v27, %v4695_v49  ;;  %v4569_v39 = vadd.f32 %v4568_v5, %v4440_v7 }
 0x80e   : > { %4927 = vst [vmem:[#allocation15 + $0x238] sm:$0xff] %v4824_v17 }
 0x811   : > { %v4697_v56 = vpop.f32.mrf.mxu2  ;;  %v4441_v45 = vpop.f32.mrf.mxu0 }
 0x812   : > { %v4698_v40 = vadd.f32 %v4697_v56, %v4569_v39  ;;  %v4826_v29 = vpop.f32.mrf.mxu3  ;;  %v4570_v16 = vpop.f32.mrf.mxu1  ;;  %v4442_v42 = vadd.f32 %v4441_v45, %v8799_v41 }
 0x814   : > { %v4827_v33 = vadd.f32 %v4826_v29, %v4698_v40  ;;  %v4571_v18 = vadd.f32 %v4570_v16, %v4442_v42 }
 0x816   : > { %4929 = vst [vmem:[#allocation15 + $0x248] sm:$0xff] %v4827_v33 }
 0x819   : > { %v4699_v26 = vpop.f32.mrf.mxu2  ;;  %v4444_v30 = vpop.f32.mrf.mxu0 }
 0x81a   : > { %v4700_v19 = vadd.f32 %v4699_v26, %v4571_v18  ;;  %v4828_v44 = vpop.f32.mrf.mxu3  ;;  %v4445_v37 = vadd.f32 %v4444_v30, %v8799_v41  ;;  %v4573_v15 = vpop.f32.mrf.mxu1 }
 0x81c   : > { %v4829_v61 = vadd.f32 %v4828_v44, %v4700_v19  ;;  %v4574_v62 = vadd.f32 %v4573_v15, %v4445_v37 }
 0x81e   : > { %4931 = vst [vmem:[#allocation15 + $0x258] sm:$0xff] %v4829_v61 }
 0x821   : > { %v4702_v8 = vpop.f32.mrf.mxu2  ;;  %v4446_v53 = vpop.f32.mrf.mxu0 }
 0x822   : > { %v4703_v25 = vadd.f32 %v4702_v8, %v4574_v62  ;;  %v4831_v59 = vpop.f32.mrf.mxu3  ;;  %v4575_v54 = vpop.f32.mrf.mxu1  ;;  %v4447_v36 = vadd.f32 %v4446_v53, %v8799_v41 }
 0x824   : > { %v4832_v51 = vadd.f32 %v4831_v59, %v4703_v25  ;;  %v4576_v23 = vadd.f32 %v4575_v54, %v4447_v36 }
 0x826   : > { %4933 = vst [vmem:[#allocation15 + $0x268] sm:$0xff] %v4832_v51 }
 0x829   : > { %v4704_v9 = vpop.f32.mrf.mxu2  ;;  %v4449_v57 = vpop.f32.mrf.mxu0 }
 0x82a   : > { %v4705_v38 = vadd.f32 %v4704_v9, %v4576_v23  ;;  %v4833_v1 = vpop.f32.mrf.mxu3  ;;  %v4450_v52 = vadd.f32 %v4449_v57, %v8799_v41  ;;  %v4578_v47 = vpop.f32.mrf.mxu1 }
 0x82c   : > { %v4834_v2 = vadd.f32 %v4833_v1, %v4705_v38  ;;  %v4579_v22 = vadd.f32 %v4578_v47, %v4450_v52 }
 0x82e   : > { %4935 = vst [vmem:[#allocation15 + $0x278] sm:$0xff] %v4834_v2 }
 0x831   : > { %v4707_v21 = vpop.f32.mrf.mxu2  ;;  %v4451_v13 = vpop.f32.mrf.mxu0 }
 0x832   : > { %v4708_v0 = vadd.f32 %v4707_v21, %v4579_v22  ;;  %v4836_v55 = vpop.f32.mrf.mxu3  ;;  %v4580_v58 = vpop.f32.mrf.mxu1  ;;  %v4452_v43 = vadd.f32 %v4451_v13, %v8799_v41 }
 0x834   : > { %v4837_v63 = vadd.f32 %v4836_v55, %v4708_v0  ;;  %v4581_v31 = vadd.f32 %v4580_v58, %v4452_v43 }
 0x836   : > { %4937 = vst [vmem:[#allocation15 + $0x288] sm:$0xff] %v4837_v63 }
 0x839   : > { %v4709_v14 = vpop.f32.mrf.mxu2  ;;  %v4454_v60 = vpop.f32.mrf.mxu0 }
 0x83a   : > { %v4710_v50 = vadd.f32 %v4709_v14, %v4581_v31  ;;  %v4838_v4 = vpop.f32.mrf.mxu3  ;;  %v4455_v46 = vadd.f32 %v4454_v60, %v8799_v41  ;;  %v4583_v6 = vpop.f32.mrf.mxu1 }
 0x83c   : > { %v4839_v24 = vadd.f32 %v4838_v4, %v4710_v50  ;;  %v4584_v35 = vadd.f32 %v4583_v6, %v4455_v46 }
 0x83e   : > { %4939 = vst [vmem:[#allocation15 + $0x298] sm:$0xff] %v4839_v24 }
 0x841   : > { %v4712_v11 = vpop.f32.mrf.mxu2  ;;  %v4456_v48 = vpop.f32.mrf.mxu0 }
 0x842   : > { %v4713_v20 = vadd.f32 %v4712_v11, %v4584_v35  ;;  %v4841_v28 = vpop.f32.mrf.mxu3  ;;  %v4585_v3 = vpop.f32.mrf.mxu1  ;;  %v4457_v12 = vadd.f32 %v4456_v48, %v8799_v41 }
 0x844   : > { %v4842_v10 = vadd.f32 %v4841_v28, %v4713_v20  ;;  %v4586_v34 = vadd.f32 %v4585_v3, %v4457_v12 }
 0x846   : > { %4941 = vst [vmem:[#allocation15 + $0x2a8] sm:$0xff] %v4842_v10 }
 0x849   : > { %v4714_v49 = vpop.f32.mrf.mxu2  ;;  %v4459_v7 = vpop.f32.mrf.mxu0 }
 0x84a   : > { %v4715_v27 = vadd.f32 %v4714_v49, %v4586_v34  ;;  %v4843_v32 = vpop.f32.mrf.mxu3  ;;  %v4460_v5 = vadd.f32 %v4459_v7, %v8799_v41  ;;  %v4588_v17 = vpop.f32.mrf.mxu1 }
 0x84c   : > { %v4844_v39 = vadd.f32 %v4843_v32, %v4715_v27  ;;  %v4589_v56 = vadd.f32 %v4588_v17, %v4460_v5 }
 0x84e   : > { %4943 = vst [vmem:[#allocation15 + $0x2b8] sm:$0xff] %v4844_v39 }
 0x851   : > { %v4717_v40 = vpop.f32.mrf.mxu2  ;;  %v4461_v16 = vpop.f32.mrf.mxu0 }
 0x852   : > { %v4718_v29 = vadd.f32 %v4717_v40, %v4589_v56  ;;  %v4846_v45 = vpop.f32.mrf.mxu3  ;;  %v4590_v33 = vpop.f32.mrf.mxu1  ;;  %v4462_v18 = vadd.f32 %v4461_v16, %v8799_v41 }
 0x854   : > { %v4847_v42 = vadd.f32 %v4846_v45, %v4718_v29  ;;  %v4591_v26 = vadd.f32 %v4590_v33, %v4462_v18 }
 0x856   : > { %4945 = vst [vmem:[#allocation15 + $0x2c8] sm:$0xff] %v4847_v42 }
 0x859   : > { %v4719_v19 = vpop.f32.mrf.mxu2  ;;  %v4464_v37 = vpop.f32.mrf.mxu0 }
 0x85a   : > { %v4720_v44 = vadd.f32 %v4719_v19, %v4591_v26  ;;  %v4848_v30 = vpop.f32.mrf.mxu3  ;;  %v4465_v15 = vadd.f32 %v4464_v37, %v8799_v41  ;;  %v4593_v62 = vpop.f32.mrf.mxu1 }
 0x85c   : > { %v4849_v61 = vadd.f32 %v4848_v30, %v4720_v44  ;;  %v4594_v8 = vadd.f32 %v4593_v62, %v4465_v15 }
 0x85e   : > { %4947 = vst [vmem:[#allocation15 + $0x2d8] sm:$0xff] %v4849_v61 }
 0x861   : > { %v4722_v25 = vpop.f32.mrf.mxu2  ;;  %v4466_v54 = vpop.f32.mrf.mxu0 }
 0x862   : > { %v4723_v59 = vadd.f32 %v4722_v25, %v4594_v8  ;;  %v4851_v53 = vpop.f32.mrf.mxu3  ;;  %v4467_v36 = vadd.f32 %v4466_v54, %v8799_v41  ;;  %v4595_v23 = vpop.f32.mrf.mxu1 }
 0x864   : > { %v4852_v51 = vadd.f32 %v4851_v53, %v4723_v59  ;;  %v4596_v9 = vadd.f32 %v4595_v23, %v4467_v36 }
 0x866   : > { %4949 = vst [vmem:[#allocation15 + $0x2e8] sm:$0xff] %v4852_v51 }
 0x869   : > { %v4724_v38 = vpop.f32.mrf.mxu2 }
 0x86a   : > { %v4725_v1 = vadd.f32 %v4724_v38, %v4596_v9  ;;  %v4853_v57 = vpop.f32.mrf.mxu3 }
 0x86c   : > { %v4854_v52 = vadd.f32 %v4853_v57, %v4725_v1 }
 0x86e   : > { %4951 = vst [vmem:[#allocation15 + $0x2f8] sm:$0xff] %v4854_v52 }
 0x86f PF: > { %p6036_p10 = scmp.eq.s32.totalorder %s5080_s27, 1  ;;  %s4969_s25 = sshll.u32 %s8936_s6, 4  ;;  %s4970_s25 = int_to_ptr.hbm [resolvable:$true] %s4969_s25 }
 0x870   : > { %s6307_s7 = smov [#allocation15]   ;;  %s6308_s26 = smov 256  }
 0x871   : > { %s4967_s9 = sshll.u32 %s6307_s7, 4  ;;  %s6309_s8 = smov 16   ;;  %s4968_s9 = int_to_ptr.vmem [resolvable:$true] %s4967_s9 }
 0x872   : > { %6003 = dma.vmem_to_hbm [thread:$0]  (%p6036_p10), %s4968_s9, 12288, %s4970_s25, [#allocation8], %s6308_s26, %s6308_s26, %s6309_s8  }
 0x873 PF: > { %p6037_p11 = scmp.ge.s32.totalorder %s6295_s23, 2  ;;  %p6038_p12 = scmp.eq.s32.totalorder %s5081_s28, 1 }
 0x875   : > { %p6023_p13 = pnand %p6038_p12, %p6037_p11 }
 0x877   : > { %p6024_p0 = pneg %p6023_p13 }
 0x879   : > { %6282 = dma.done.wait (%p6024_p0), [#allocation8], 12288  }
 0x87a   : > { %6284 = vsyncadd (%p6024_p0), [#allocation8], 4294955008  ;;  %s22_s23 = sadd.s32 1, %s6295_s23   ;;  %s10006_s21 = smov %s6291_s22 }
 0x87b   : > { %p19_p1 = scmp.ge.s32.totalorder %s22_s23, 4   ;;  %s10007_s22 = smov %s10009_s17 }
 0x87d   :  { %21 = sbr.rel (!%p19_p1) target bundleno = 6 (0x6), region = 114 }
 0x882   :  { %4991 = vsyncpa [#allocation7], 1 }
 0x883   :  { %4993 = vsyncpa [#allocation7 + $0x1], 1 }
 0x884   :  { %4994 = vsyncpa [#allocation10], 1 }
 0x885   :  { %4995 = vsyncpa [#allocation13], 1 }
 0x886   :  { %4996 = vsyncpa [#allocation8], 1 }
 0x887   :  { %4998 = vsyncpa [#allocation8 + $0x1], 1 }

</bundles_post_ra>
